<compile_context>
chip_gen: v7x
topology: tpu7x:2x2x1
jax: 0.10.0
libtpu: 0.0.40
codegen_flags: <defaults>
</compile_context>

<pallas_src>
import functools

import jax
import jax.numpy as jnp
from jax.experimental import pallas as pl
from jax.experimental.pallas import tpu as pltpu

INPUT_LAYER = 784
HID_NODES = 2000
NUM_CLASSES = 10

HID_PAD = 2048   # 16 * 128, lane-aligned hidden width
CLS_PAD = 128    # lane-dense output width
NEG_BIG = -1e30  # padded-class bias -> exp underflows to exactly 0 (output stays f32)


def _round_up(v, m):
    return ((v + m - 1) // m) * m


@functools.lru_cache(maxsize=None)
def _use_bf16_tanh():
    """bf16 EUP/VPU exists on v6e/v7x; keep f32 tanh on v5e and older gens."""
    try:
        kind = jax.devices()[0].device_kind.lower()
    except Exception:
        return True
    return not any(t in kind for t in ("v2", "v3", "v4", "v5"))


def _choose_tb(B):
    """Batch tile size.

    Always a multiple of 16 (bf16 sublane pack). Once the batch is large
    enough, use >= 2 tiles so dimension_semantics=('parallel',) gives v7x's
    second TensorCore work, and cap tiles at 1024 rows (multiple of 256) to
    amortize the ~0.35 us per-grid-step overhead on v6e/v7x.
    """
    b16 = _round_up(B, 16)
    if b16 <= 128:
        return b16                               # tiny batch: one small tile
    if b16 <= 2048:
        tb = _round_up(pl.cdiv(b16, 2), 16)      # two tiles (both v7x TCs busy)
        if tb >= 256:
            tb = _round_up(tb, 128)              # keep MXU M-passes full
        return tb
    return 1024                                  # large batch: 1024-row tiles


def prepare_params(w1, b1, w2, b2):
    """Pad + cast parameters ONCE (hoisted out of the per-call path).

    w1: (784, 2000), b1: (2000,), w2: (2000, 10), b2: (10,) float32, stored as
    (in, out) -- the transpose of torch nn.Linear's (out, in) weight layout.
    """
    w1p = jnp.zeros((INPUT_LAYER, HID_PAD), jnp.bfloat16)
    w1p = w1p.at[:, :HID_NODES].set(w1.astype(jnp.bfloat16))
    b1p = jnp.zeros((1, HID_PAD), jnp.float32).at[:, :HID_NODES].set(b1)
    w2p = jnp.zeros((HID_PAD, CLS_PAD), jnp.bfloat16)
    w2p = w2p.at[:HID_NODES, :NUM_CLASSES].set(w2.astype(jnp.bfloat16))
    b2p = jnp.full((1, CLS_PAD), NEG_BIG, jnp.float32).at[:, :NUM_CLASSES].set(b2)
    return w1p, b1p, w2p, b2p


def netfull_kernel(x_ref, w1_ref, b1_ref, w2_ref, b2_ref, out_ref, *, tanh_bf16):
    # x_ref:  (TB, 784)    bf16   streamed per batch tile
    # w1_ref: (784, 2048)  bf16   resident across all tiles
    # b1_ref: (1, 2048)    f32    resident
    # w2_ref: (2048, 128)  bf16   resident
    # b2_ref: (1, 128)     f32    resident (padded lanes = NEG_BIG)
    # out_ref:(TB, 128)    f32

    # linear1 (bf16 MXU, f32 accumulate) + bias
    h = jnp.dot(x_ref[...], w1_ref[...], preferred_element_type=jnp.float32)
    h = h + b1_ref[...]
    if tanh_bf16:
        # v6e/v7x: bf16 EUP tanh ~2x faster and the separate downcast vanishes.
        h = jnp.tanh(h.astype(jnp.bfloat16))
    else:
        # v5e: no bf16 EUP; tanh in f32, then downcast for the second MXU pass.
        h = jnp.tanh(h).astype(jnp.bfloat16)

    # linear2 (bf16 MXU, f32 accumulate)
    logits = jnp.dot(h, w2_ref[...], preferred_element_type=jnp.float32) + b2_ref[...]

    # log_softmax over the class lanes. Padded lanes hold ~NEG_BIG, never win
    # the max, and exp() underflows to 0 -> exact softmax over the 10 classes.
    m = jnp.max(logits, axis=-1, keepdims=True)
    shifted = logits - m
    lse = jnp.log(jnp.sum(jnp.exp(shifted), axis=-1, keepdims=True))
    out_ref[...] = shifted - lse


def _pallas_forward(xb, w1p, b1p, w2p, b2p, *, tb, tanh_bf16, single_buffer_weights):
    Bp = xb.shape[0]
    resident_kwargs = (
        dict(pipeline_mode=pl.Buffered(1)) if single_buffer_weights else {}
    )
    in_specs = [
        pl.BlockSpec((tb, INPUT_LAYER), lambda i: (i, 0)),                     # x: streamed
        pl.BlockSpec((INPUT_LAYER, HID_PAD), lambda i: (0, 0), **resident_kwargs),  # w1
        pl.BlockSpec((1, HID_PAD), lambda i: (0, 0), **resident_kwargs),            # b1
        pl.BlockSpec((HID_PAD, CLS_PAD), lambda i: (0, 0), **resident_kwargs),      # w2
        pl.BlockSpec((1, CLS_PAD), lambda i: (0, 0), **resident_kwargs),            # b2
    ]
    return pl.pallas_call(
        functools.partial(netfull_kernel, tanh_bf16=tanh_bf16),
        out_shape=jax.ShapeDtypeStruct((Bp, CLS_PAD), jnp.float32),
        grid=(Bp // tb,),
        in_specs=in_specs,
        out_specs=pl.BlockSpec((tb, CLS_PAD), lambda i: (i, 0)),
        compiler_params=pltpu.CompilerParams(
            dimension_semantics=("parallel",),   # batch tiles across v7x's 2 TCs
            vmem_limit_bytes=32 << 20,           # footprint ~12 MiB at TB=1024
        ),
    )(xb, w1p, b1p, w2p, b2p)


def netfull_forward(x, params, *, tb=None):
    """x: (B, 1, 28, 28) or (B, 784). params: output of prepare_params().
    Returns (B, 10) log-probs."""
    w1p, b1p, w2p, b2p = params
    B = x.shape[0]
    x_flat = x.reshape(B, -1)
    assert x_flat.shape[1] == INPUT_LAYER

    if tb is None:
        TB = _choose_tb(B)
    else:
        TB = _round_up(min(tb, _round_up(B, 16)), 16)   # user tile, still 16-aligned
    Bp = _round_up(B, TB)

    xb = jnp.zeros((Bp, INPUT_LAYER), jnp.bfloat16)
    xb = xb.at[:B].set(x_flat.astype(jnp.bfloat16))

    tanh_bf16 = _use_bf16_tanh()
    try:
        out = _pallas_forward(xb, w1p, b1p, w2p, b2p, tb=TB, tanh_bf16=tanh_bf16,
                              single_buffer_weights=True)
    except Exception:
        # pl.Buffered(1) unsupported by this jax/libtpu -> default double-buffering.
        out = _pallas_forward(xb, w1p, b1p, w2p, b2p, tb=TB, tanh_bf16=tanh_bf16,
                              single_buffer_weights=False)
    return out[:B, :NUM_CLASSES]


def init_params(key):
    """nn.Linear-style init: U(-1/sqrt(fan_in), 1/sqrt(fan_in)); (in, out) layout."""
    k1, k2, k3, k4 = jax.random.split(key, 4)
    bound1 = 1.0 / jnp.sqrt(jnp.float32(INPUT_LAYER))
    bound2 = 1.0 / jnp.sqrt(jnp.float32(HID_NODES))
    w1 = jax.random.uniform(k1, (INPUT_LAYER, HID_NODES), jnp.float32, -bound1, bound1)
    b1 = jax.random.uniform(k2, (HID_NODES,), jnp.float32, -bound1, bound1)
    w2 = jax.random.uniform(k3, (HID_NODES, NUM_CLASSES), jnp.float32, -bound2, bound2)
    b2 = jax.random.uniform(k4, (NUM_CLASSES,), jnp.float32, -bound2, bound2)
    return w1, b1, w2, b2


def reference_forward(x, w1, b1, w2, b2):
    B = x.shape[0]
    xf = x.reshape(B, -1).astype(jnp.float32)
    h = jnp.tanh(xf @ w1 + b1)
    logits = h @ w2 + b2
    return jax.nn.log_softmax(logits, axis=1)


if __name__ == "__main__":
    key = jax.random.PRNGKey(0)
    kx, kp = jax.random.split(key)

    w1, b1, w2, b2 = init_params(kp)
    params = prepare_params(w1, b1, w2, b2)   # hoisted: pad/cast weights once

    # MNIST-like input: batch=2, NCHW (2, 1, 28, 28) -> flattened to 784
    x = jax.random.normal(kx, (2, 1, 28, 28), jnp.float32)
    out = jax.block_until_ready(netfull_forward(x, params))
    ref = reference_forward(x, w1, b1, w2, b2)
    assert out.shape == (2, NUM_CLASSES)
    # bf16 matmul/tanh vs f32 reference -> modest tolerance
    assert jnp.allclose(out, ref, atol=2e-2, rtol=2e-2), "mismatch vs pure-JAX reference"
    # the kernel's softmax must be exactly normalized over the 10 real classes
    assert jnp.allclose(jnp.sum(jnp.exp(out), axis=1), 1.0, atol=1e-4)

    # multi-tile / partial-batch path: B=40 with tb=16 -> 3 grid steps, 8 pad rows
    x2 = jax.random.normal(jax.random.PRNGKey(1), (40, 1, 28, 28), jnp.float32)
    out2 = jax.block_until_ready(netfull_forward(x2, params, tb=16))
    ref2 = reference_forward(x2, w1, b1, w2, b2)
    assert out2.shape == (40, NUM_CLASSES)
    assert jnp.allclose(out2, ref2, atol=2e-2, rtol=2e-2), "mismatch on tiled batch"
    assert jnp.allclose(jnp.sum(jnp.exp(out2), axis=1), 1.0, atol=1e-4)

    print("KERNEL_OK")
</pallas_src>

<mosaic_0001>
module attributes {stable_mosaic.version = 11 : i64} {
  func.func @netfull_kernel(%arg0: i32, %arg1: memref<16x784xbf16, #tpu.memory_space<vmem>>, %arg2: memref<784x2048xbf16, #tpu.memory_space<vmem>>, %arg3: memref<1x2048xf32, #tpu.memory_space<vmem>>, %arg4: memref<2048x128xbf16, #tpu.memory_space<vmem>>, %arg5: memref<1x128xf32, #tpu.memory_space<vmem>>, %arg6: memref<16x128xf32, #tpu.memory_space<vmem>>) attributes {dimension_semantics = [#tpu.dimension_semantics<parallel>], iteration_bounds = array<i64: 1>, scalar_prefetch = 0 : i64, scratch_operands = 0 : i64, tpu.core_type = #tpu.core_type<tc>, window_params = [{transform_indices = @transform_0, window_bounds = array<i64: 16, 784>}, {pipeline_mode = #tpu.pipeline_mode<synchronous>, transform_indices = @transform_1, window_bounds = array<i64: 784, 2048>}, {pipeline_mode = #tpu.pipeline_mode<synchronous>, transform_indices = @transform_2, window_bounds = array<i64: 1, 2048>}, {pipeline_mode = #tpu.pipeline_mode<synchronous>, transform_indices = @transform_3, window_bounds = array<i64: 2048, 128>}, {pipeline_mode = #tpu.pipeline_mode<synchronous>, transform_indices = @transform_4, window_bounds = array<i64: 1, 128>}, {transform_indices = @transform_5, window_bounds = array<i64: 16, 128>}]} {
    %c0 = arith.constant 0 : index
    %c0_0 = arith.constant 0 : index
    %0 = vector.load %arg1[%c0, %c0_0] : memref<16x784xbf16, #tpu.memory_space<vmem>>, vector<16x784xbf16>
    %c0_1 = arith.constant 0 : index
    %c0_2 = arith.constant 0 : index
    %1 = vector.load %arg2[%c0_1, %c0_2] : memref<784x2048xbf16, #tpu.memory_space<vmem>>, vector<784x2048xbf16>
    %cst = arith.constant dense<0.000000e+00> : vector<16x2048xf32>
    %2 = tpu.matmul %0, %1, %cst {dimension_numbers = #tpu.dot_dimension_numbers<[1], [0], [0], [1], [0, 0, 1, 1], [], []>} : vector<16x784xbf16>, vector<784x2048xbf16>, vector<16x2048xf32> -> vector<16x2048xf32>
    %c0_3 = arith.constant 0 : index
    %c0_4 = arith.constant 0 : index
    %3 = vector.load %arg3[%c0_3, %c0_4] : memref<1x2048xf32, #tpu.memory_space<vmem>>, vector<1x2048xf32>
    %4 = vector.broadcast %3 : vector<1x2048xf32> to vector<16x2048xf32>
    %5 = arith.addf %2, %4 : vector<16x2048xf32>
    %6 = arith.truncf %5 : vector<16x2048xf32> to vector<16x2048xbf16>
    %7 = math.tanh %6 : vector<16x2048xbf16>
    %c0_5 = arith.constant 0 : index
    %c0_6 = arith.constant 0 : index
    %8 = vector.load %arg4[%c0_5, %c0_6] : memref<2048x128xbf16, #tpu.memory_space<vmem>>, vector<2048x128xbf16>
    %cst_7 = arith.constant dense<0.000000e+00> : vector<16x128xf32>
    %9 = tpu.matmul %7, %8, %cst_7 {dimension_numbers = #tpu.dot_dimension_numbers<[1], [0], [0], [1], [0, 0, 1, 1], [], []>} : vector<16x2048xbf16>, vector<2048x128xbf16>, vector<16x128xf32> -> vector<16x128xf32>
    %c0_8 = arith.constant 0 : index
    %c0_9 = arith.constant 0 : index
    %10 = vector.load %arg5[%c0_8, %c0_9] : memref<1x128xf32, #tpu.memory_space<vmem>>, vector<1x128xf32>
    %11 = vector.broadcast %10 : vector<1x128xf32> to vector<16x128xf32>
    %12 = arith.addf %9, %11 : vector<16x128xf32>
    %cst_10 = arith.constant dense<0xFF800000> : vector<16xf32>
    %13 = vector.multi_reduction <maximumf>, %12, %cst_10 [1] : vector<16x128xf32> to vector<16xf32>
    %14 = vector.shape_cast %13 : vector<16xf32> to vector<16x1xf32>
    %15 = vector.broadcast %14 : vector<16x1xf32> to vector<16x128xf32>
    %16 = arith.subf %12, %15 : vector<16x128xf32>
    %17 = math.exp %16 : vector<16x128xf32>
    %cst_11 = arith.constant dense<0.000000e+00> : vector<16xf32>
    %18 = vector.multi_reduction <add>, %17, %cst_11 [1] : vector<16x128xf32> to vector<16xf32>
    %19 = vector.shape_cast %18 : vector<16xf32> to vector<16x1xf32>
    %20 = math.log %19 : vector<16x1xf32>
    %21 = vector.broadcast %20 : vector<16x1xf32> to vector<16x128xf32>
    %22 = arith.subf %16, %21 : vector<16x128xf32>
    %c0_12 = arith.constant 0 : index
    %c0_13 = arith.constant 0 : index
    %23 = vector.load %arg6[%c0_12, %c0_13] : memref<16x128xf32, #tpu.memory_space<vmem>>, vector<16x128xf32>
    tpu.vector_store %arg6[%c0_12, %c0_13], %22 {strides = array<i32>} : memref<16x128xf32, #tpu.memory_space<vmem>>, vector<16x128xf32>,
    return
  }
  func.func @transform_0(%arg0: i32) -> (i32, i32) {
    %c0_i32 = arith.constant 0 : i32
    %c0_i32_0 = arith.constant 0 : i32
    return %arg0, %c0_i32 : i32, i32
  }
  func.func @transform_1(%arg0: i32) -> (i32, i32) {
    %c0_i32 = arith.constant 0 : i32
    %c0_i32_0 = arith.constant 0 : i32
    %c0_i32_1 = arith.constant 0 : i32
    return %c0_i32, %c0_i32_0 : i32, i32
  }
  func.func @transform_2(%arg0: i32) -> (i32, i32) {
    %c0_i32 = arith.constant 0 : i32
    %c0_i32_0 = arith.constant 0 : i32
    %c0_i32_1 = arith.constant 0 : i32
    return %c0_i32, %c0_i32_0 : i32, i32
  }
  func.func @transform_3(%arg0: i32) -> (i32, i32) {
    %c0_i32 = arith.constant 0 : i32
    %c0_i32_0 = arith.constant 0 : i32
    %c0_i32_1 = arith.constant 0 : i32
    return %c0_i32, %c0_i32_0 : i32, i32
  }
  func.func @transform_4(%arg0: i32) -> (i32, i32) {
    %c0_i32 = arith.constant 0 : i32
    %c0_i32_0 = arith.constant 0 : i32
    %c0_i32_1 = arith.constant 0 : i32
    return %c0_i32, %c0_i32_0 : i32, i32
  }
  func.func @transform_5(%arg0: i32) -> (i32, i32) {
    %c0_i32 = arith.constant 0 : i32
    %c0_i32_0 = arith.constant 0 : i32
    return %arg0, %c0_i32 : i32, i32
  }
}

module attributes {stable_mosaic.version = 11 : i64} {
  func.func @netfull_kernel(%arg0: i32, %arg1: memref<16x784xbf16, #tpu.memory_space<vmem>>, %arg2: memref<784x2048xbf16, #tpu.memory_space<vmem>>, %arg3: memref<1x2048xf32, #tpu.memory_space<vmem>>, %arg4: memref<2048x128xbf16, #tpu.memory_space<vmem>>, %arg5: memref<1x128xf32, #tpu.memory_space<vmem>>, %arg6: memref<16x128xf32, #tpu.memory_space<vmem>>) attributes {dimension_semantics = [#tpu.dimension_semantics<parallel>], iteration_bounds = array<i64: 1>, scalar_prefetch = 0 : i64, scratch_operands = 0 : i64, tpu.core_type = #tpu.core_type<tc>, window_params = [{transform_indices = @transform_0, window_bounds = array<i64: 16, 784>}, {pipeline_mode = #tpu.pipeline_mode<synchronous>, transform_indices = @transform_1, window_bounds = array<i64: 784, 2048>}, {pipeline_mode = #tpu.pipeline_mode<synchronous>, transform_indices = @transform_2, window_bounds = array<i64: 1, 2048>}, {pipeline_mode = #tpu.pipeline_mode<synchronous>, transform_indices = @transform_3, window_bounds = array<i64: 2048, 128>}, {pipeline_mode = #tpu.pipeline_mode<synchronous>, transform_indices = @transform_4, window_bounds = array<i64: 1, 128>}, {transform_indices = @transform_5, window_bounds = array<i64: 16, 128>}]} {
    %c0 = arith.constant 0 : index
    %c0_0 = arith.constant 0 : index
    %0 = vector.load %arg1[%c0, %c0_0] : memref<16x784xbf16, #tpu.memory_space<vmem>>, vector<16x784xbf16>
    %c0_1 = arith.constant 0 : index
    %c0_2 = arith.constant 0 : index
    %1 = vector.load %arg2[%c0_1, %c0_2] : memref<784x2048xbf16, #tpu.memory_space<vmem>>, vector<784x2048xbf16>
    %cst = arith.constant dense<0.000000e+00> : vector<16x2048xf32>
    %2 = tpu.matmul %0, %1, %cst {dimension_numbers = #tpu.dot_dimension_numbers<[1], [0], [0], [1], [0, 0, 1, 1], [], []>} : vector<16x784xbf16>, vector<784x2048xbf16>, vector<16x2048xf32> -> vector<16x2048xf32>
    %c0_3 = arith.constant 0 : index
    %c0_4 = arith.constant 0 : index
    %3 = vector.load %arg3[%c0_3, %c0_4] : memref<1x2048xf32, #tpu.memory_space<vmem>>, vector<1x2048xf32>
    %4 = vector.broadcast %3 : vector<1x2048xf32> to vector<16x2048xf32>
    %5 = arith.addf %2, %4 : vector<16x2048xf32>
    %6 = arith.truncf %5 : vector<16x2048xf32> to vector<16x2048xbf16>
    %7 = math.tanh %6 : vector<16x2048xbf16>
    %c0_5 = arith.constant 0 : index
    %c0_6 = arith.constant 0 : index
    %8 = vector.load %arg4[%c0_5, %c0_6] : memref<2048x128xbf16, #tpu.memory_space<vmem>>, vector<2048x128xbf16>
    %cst_7 = arith.constant dense<0.000000e+00> : vector<16x128xf32>
    %9 = tpu.matmul %7, %8, %cst_7 {dimension_numbers = #tpu.dot_dimension_numbers<[1], [0], [0], [1], [0, 0, 1, 1], [], []>} : vector<16x2048xbf16>, vector<2048x128xbf16>, vector<16x128xf32> -> vector<16x128xf32>
    %c0_8 = arith.constant 0 : index
    %c0_9 = arith.constant 0 : index
    %10 = vector.load %arg5[%c0_8, %c0_9] : memref<1x128xf32, #tpu.memory_space<vmem>>, vector<1x128xf32>
    %11 = vector.broadcast %10 : vector<1x128xf32> to vector<16x128xf32>
    %12 = arith.addf %9, %11 : vector<16x128xf32>
    %cst_10 = arith.constant dense<0xFF800000> : vector<16xf32>
    %13 = vector.multi_reduction <maximumf>, %12, %cst_10 [1] : vector<16x128xf32> to vector<16xf32>
    %14 = vector.shape_cast %13 : vector<16xf32> to vector<16x1xf32>
    %15 = vector.broadcast %14 : vector<16x1xf32> to vector<16x128xf32>
    %16 = arith.subf %12, %15 : vector<16x128xf32>
    %17 = math.exp %16 : vector<16x128xf32>
    %cst_11 = arith.constant dense<0.000000e+00> : vector<16xf32>
    %18 = vector.multi_reduction <add>, %17, %cst_11 [1] : vector<16x128xf32> to vector<16xf32>
    %19 = vector.shape_cast %18 : vector<16xf32> to vector<16x1xf32>
    %20 = math.log %19 : vector<16x1xf32>
    %21 = vector.broadcast %20 : vector<16x1xf32> to vector<16x128xf32>
    %22 = arith.subf %16, %21 : vector<16x128xf32>
    %c0_12 = arith.constant 0 : index
    %c0_13 = arith.constant 0 : index
    %23 = vector.load %arg6[%c0_12, %c0_13] : memref<16x128xf32, #tpu.memory_space<vmem>>, vector<16x128xf32>
    tpu.vector_store %arg6[%c0_12, %c0_13], %22 {strides = array<i32>} : memref<16x128xf32, #tpu.memory_space<vmem>>, vector<16x128xf32>,
    return
  }
  func.func @transform_0(%arg0: i32) -> (i32, i32) {
    %c0_i32 = arith.constant 0 : i32
    %c0_i32_0 = arith.constant 0 : i32
    return %arg0, %c0_i32 : i32, i32
  }
  func.func @transform_1(%arg0: i32) -> (i32, i32) {
    %c0_i32 = arith.constant 0 : i32
    %c0_i32_0 = arith.constant 0 : i32
    %c0_i32_1 = arith.constant 0 : i32
    return %c0_i32, %c0_i32_0 : i32, i32
  }
  func.func @transform_2(%arg0: i32) -> (i32, i32) {
    %c0_i32 = arith.constant 0 : i32
    %c0_i32_0 = arith.constant 0 : i32
    %c0_i32_1 = arith.constant 0 : i32
    return %c0_i32, %c0_i32_0 : i32, i32
  }
  func.func @transform_3(%arg0: i32) -> (i32, i32) {
    %c0_i32 = arith.constant 0 : i32
    %c0_i32_0 = arith.constant 0 : i32
    %c0_i32_1 = arith.constant 0 : i32
    return %c0_i32, %c0_i32_0 : i32, i32
  }
  func.func @transform_4(%arg0: i32) -> (i32, i32) {
    %c0_i32 = arith.constant 0 : i32
    %c0_i32_0 = arith.constant 0 : i32
    %c0_i32_1 = arith.constant 0 : i32
    return %c0_i32, %c0_i32_0 : i32, i32
  }
  func.func @transform_5(%arg0: i32) -> (i32, i32) {
    %c0_i32 = arith.constant 0 : i32
    %c0_i32_0 = arith.constant 0 : i32
    return %arg0, %c0_i32 : i32, i32
  }
}

</mosaic_0001>

<bundles_post_ra>
// kernel: tpu_custom_call.1
= control target key start
LH: loop header
LB: loop body
LE: loop exit
PB: predicated region body
PF: predicated region fallthrough
CT: control target
= control target key end

     0   :  { %10 = vsyncpa [#allocation3], 0  ;;  %s9607_s0 = inlined_call_operand.hbm [shape: bf16[16,784], index: 0, kind: input, shape index: {}]   ;;  %s9608_s1 = inlined_call_operand.hbm [shape: bf16[784,2048], index: 1, kind: input, shape index: {}]   ;;  %s9609_s2 = inlined_call_operand.hbm [shape: f32[1,2048], index: 2, kind: input, shape index: {}]   ;;  %s9610_s3 = inlined_call_operand.hbm [shape: bf16[2048,128], index: 3, kind: input, shape index: {}]   ;;  %s9611_s4 = inlined_call_operand.hbm [shape: f32[1,128], index: 4, kind: input, shape index: {}]   ;;  %s9612_s5 = inlined_call_operand.hbm [shape: f32[16,128], index: 5, kind: output, shape index: {}]  }
   0x1   :  { %11 = vsyncpa [#allocation6], 0 }
   0x2   :  { %12 = vsyncpa [#allocation9], 0 }
   0x3   :  { %13 = vsyncpa [#allocation4], 0  ;;  %s9315_s18 = smov [#allocation5]   ;;  %s9175_s22 = scalar_lea.hbm %s9608_s1, 100352 }
   0x4   :  { %s31_s19 = sshll.u32 %s9315_s18, 4  ;;  %p9176_p0 = scmp.ne.s32.totalorder %s9608_s1, %s9175_s22  ;;  %s32_s19 = int_to_ptr.vmem [resolvable:$true] %s31_s19 }
   0x5   :  { %p9179_p1 = scmp.lt.u32.totalorder %s9175_s22, %s9608_s1 }
   0x7   :  { %p9181_p2 = pnand %p9179_p1, %p9176_p0 }
   0x9   :  { %9184 = shalt.err (!%p9181_p2)
}
   0xa   :  { %s9185_s27 = scalar_lea.vmem %s32_s19, 100352  ;;  %p9190_p4 = scmp.lt.s32.totalorder %s32_s19, %s32_s19 }
   0xb   :  { %p9186_p3 = scmp.ne.s32.totalorder %s32_s19, %s9185_s27  ;;  %p9191_p5 = scmp.lt.s32.totalorder %s9185_s27, %s9185_s27 }
   0xd   :  { %p9192_p6 = por %p9191_p5, %p9190_p4 }
   0xf   :  { %p9193_p7 = pnand %p9192_p6, %p9186_p3 }
  0x11   :  { %9196 = shalt.err (!%p9193_p7)
}
  0x12   :  { %s9316_s28 = smov 1024   ;;  %s9317_s29 = smov 64  }
  0x13   :  { %37 = dma.hbm_to_vmem [thread:$0]  %s9608_s1, 100352, %s32_s19, [#allocation6], %s9316_s28, %s9316_s28, %s9317_s29  }
  0x14   :  { %s9318_s7 = smov [#allocation8]   ;;  %s9197_s11 = scalar_lea.hbm %s9610_s3, 16384 }
  0x15   :  { %s53_s8 = sshll.u32 %s9318_s7, 4  ;;  %p9198_p8 = scmp.ne.s32.totalorder %s9610_s3, %s9197_s11  ;;  %s54_s8 = int_to_ptr.vmem [resolvable:$true] %s53_s8 }
  0x16   :  { %p9201_p9 = scmp.lt.u32.totalorder %s9197_s11, %s9610_s3 }
  0x18   :  { %p9203_p10 = pnand %p9201_p9, %p9198_p8 }
  0x1a   :  { %9206 = shalt.err (!%p9203_p10)
}
  0x1b   :  { %s9207_s16 = scalar_lea.vmem %s54_s8, 16384  ;;  %p9212_p12 = scmp.lt.s32.totalorder %s54_s8, %s54_s8 }
  0x1c   :  { %p9208_p11 = scmp.ne.s32.totalorder %s54_s8, %s9207_s16  ;;  %p9213_p13 = scmp.lt.s32.totalorder %s9207_s16, %s9207_s16 }
  0x1e   :  { %p9214_p0 = por %p9213_p13, %p9212_p12 }
  0x20   :  { %p9215_p1 = pnand %p9214_p0, %p9208_p11 }
  0x22   :  { %9218 = shalt.err (!%p9215_p1)
}
  0x23   :  { %s9319_s1 = smov 4   ;;  %s9320_s19 = smov [#allocation2]  }
  0x24   :  { %59 = dma.hbm_to_vmem [thread:$0]  %s9610_s3, 16384, %s54_s8, [#allocation9], %s9317_s29, %s9317_s29, %s9319_s1  }
  0x25   :  { %s19_s20 = sshll.u32 %s9320_s19, 4  ;;  %s9219_s23 = scalar_lea.hbm %s9607_s0, 896  ;;  %s20_s20 = int_to_ptr.vmem [resolvable:$true] %s19_s20 }
  0x26   :  { %p9220_p2 = scmp.ne.s32.totalorder %s9607_s0, %s9219_s23  ;;  %p9223_p3 = scmp.lt.u32.totalorder %s9219_s23, %s9607_s0 }
  0x28   :  { %p9225_p4 = pnand %p9223_p3, %p9220_p2 }
  0x2a   :  { %9228 = shalt.err (!%p9225_p4)
}
  0x2b   :  { %s9229_s28 = scalar_lea.vmem %s20_s20, 896  ;;  %p9234_p6 = scmp.lt.s32.totalorder %s20_s20, %s20_s20 }
  0x2c   :  { %p9230_p5 = scmp.ne.s32.totalorder %s20_s20, %s9229_s28  ;;  %p9235_p7 = scmp.lt.s32.totalorder %s9229_s28, %s9229_s28 }
  0x2e   :  { %p9236_p8 = por %p9235_p7, %p9234_p6 }
  0x30   :  { %p9237_p9 = pnand %p9236_p8, %p9230_p5 }
  0x32   :  { %9240 = shalt.err (!%p9237_p9)
}
  0x33   :  { %s9321_s3 = smov 448   ;;  %s9322_s29 = smov 28  }
  0x34   :  { %25 = dma.hbm_to_vmem [thread:$0]  %s9607_s0, 896, %s20_s20, [#allocation3], %s9321_s3, %s9321_s3, %s9322_s29  }
  0x35   :  { %s9323_s7 = smov [#allocation7]   ;;  %s9324_s9 = smov [#allocation10]  }
  0x36   :  { %s44_s8 = sshll.u32 %s9323_s7, 4  ;;  %s66_s10 = sshll.u32 %s9324_s9, 4  ;;  %s45_s8 = int_to_ptr.vmem [resolvable:$true] %s44_s8  ;;  %s67_s10 = int_to_ptr.vmem [resolvable:$true] %s66_s10 }
  0x37   :  { %s9241_s13 = scalar_lea.hbm %s9609_s2, 256 }
  0x38   :  { %p9242_p10 = scmp.ne.s32.totalorder %s9609_s2, %s9241_s13  ;;  %p9245_p11 = scmp.lt.u32.totalorder %s9241_s13, %s9609_s2 }
  0x3a   :  { %p9247_p12 = pnand %p9245_p11, %p9242_p10 }
  0x3c   :  { %9250 = shalt.err (!%p9247_p12)
}
  0x3d   :  { %s9251_s0 = scalar_lea.vmem %s45_s8, 256  ;;  %p9256_p0 = scmp.lt.s32.totalorder %s45_s8, %s45_s8 }
  0x3e   :  { %p9252_p13 = scmp.ne.s32.totalorder %s45_s8, %s9251_s0  ;;  %p9257_p1 = scmp.lt.s32.totalorder %s9251_s0, %s9251_s0 }
  0x40   :  { %p9258_p2 = por %p9257_p1, %p9256_p0 }
  0x42   :  { %p9259_p3 = pnand %p9258_p2, %p9252_p13 }
  0x44   :  { %9262 = shalt.err (!%p9259_p3)
}
  0x45   :  { %47 = dma.hbm_to_vmem [thread:$0]  %s9609_s2, 256, %s45_s8, [#allocation6]  }
  0x46   :  { %s9263_s21 = scalar_lea.hbm %s9611_s4, 16 }
  0x47   :  { %p9264_p4 = scmp.ne.s32.totalorder %s9611_s4, %s9263_s21  ;;  %p9267_p5 = scmp.lt.u32.totalorder %s9263_s21, %s9611_s4 }
  0x49   :  { %p9269_p6 = pnand %p9267_p5, %p9264_p4 }
  0x4b   :  { %9272 = shalt.err (!%p9269_p6)
}
  0x4c   :  { %s9273_s26 = scalar_lea.vmem %s67_s10, 16  ;;  %s9277_s27 = scalar_lea.vmem %s67_s10, 32 }
  0x4d   :  { %p9274_p7 = scmp.ne.s32.totalorder %s67_s10, %s9273_s26  ;;  %p9278_p8 = scmp.lt.s32.totalorder %s67_s10, %s67_s10 }
  0x4e   :  { %p9279_p9 = scmp.lt.s32.totalorder %s9277_s27, %s9273_s26 }
  0x50   :  { %p9280_p10 = por %p9279_p9, %p9278_p8 }
  0x52   :  { %p9281_p11 = pnand %p9280_p10, %p9274_p7 }
  0x54   :  { %9284 = shalt.err (!%p9281_p11)
}
  0x55   :  { %69 = dma.hbm_to_vmem [thread:$0]  %s9611_s4, 16, %s67_s10, [#allocation9]  }
  0x56   :  { %9307 = dma.done.wait [#allocation3], 896  }
  0x57   :  { %9308 = vsyncadd [#allocation3], 4294966400 }
  0x58   :  { %9309 = dma.done.wait [#allocation6], 100608  }
  0x59   :  { %9310 = vsyncadd [#allocation6], 4294866688 }
  0x5a   :  { %9311 = dma.done.wait [#allocation9], 16400  }
  0x5b   :  { %9312 = vsyncadd [#allocation9], 4294950896  ;;  %v94_v0 = vld [vmem:[#allocation5] sm:$0xff]  ;;  %v95_v2 = vld [vmem:[#allocation5 + $0x8] sm:$0xff]  ;;  %vm4917_vm0 = vcmask 130048   ;;  %s9326_s4 = smov [#allocation11]  }
  0x5c   :  { %v102_v1 = vld [vmem:[#allocation5 + $0x40] sm:$0xff]  ;;  %v103_v4 = vld [vmem:[#allocation5 + $0x48] sm:$0xff]  ;;  %s7715_s3 = sshll.u32 %s9326_s4, 4  ;;  %s7716_s3 = int_to_ptr.vmem [resolvable:$true] %s7715_s3 }
  0x5d   :  { %v7737_v3 = vcombine.high %v94_v0, %v102_v1  ;;  %v7736_v5 = vcombine.low %v94_v0, %v102_v1  ;;  %v110_v6 = vld [vmem:[#allocation5 + $0x80] sm:$0xff]  ;;  %v7739_v8 = vcombine.high %v95_v2, %v103_v4  ;;  %v7738_v9 = vcombine.low %v95_v2, %v103_v4  ;;  %v111_v11 = vld [vmem:[#allocation5 + $0x88] sm:$0xff]  ;;  %s9285_s29 = scalar_lea.vmem %s7716_s3, 256  ;;  %p9290_p13 = scmp.lt.s32.totalorder %s7716_s3, %s7716_s3 }
  0x5e   :  { %v118_v7 = vld [vmem:[#allocation5 + $0xc0] sm:$0xff]  ;;  %v119_v12 = vld [vmem:[#allocation5 + $0xc8] sm:$0xff]  ;;  %p9286_p12 = scmp.ne.s32.totalorder %s7716_s3, %s9285_s29  ;;  %p9291_p0 = scmp.lt.s32.totalorder %s9285_s29, %s9285_s29 }
  0x5f   :  { %v7753_v10 = vcombine.high %v110_v6, %v118_v7  ;;  %v126_v13 = vld [vmem:[#allocation5 + $0x100] sm:$0xff]  ;;  %4921 = vmatprep.subr.bf16.mxu0 %v7737_v3  ;;  %v7755_v14 = vcombine.high %v111_v11, %v119_v12  ;;  %v127_v16 = vld [vmem:[#allocation5 + $0x108] sm:$0xff]  ;;  %5093 = vmatprep.subr.bf16.mxu1 %v7739_v8  ;;  %v7752_v18 = vcombine.low %v110_v6, %v118_v7 }
  0x60   :  { %v134_v15 = vld [vmem:[#allocation5 + $0x140] sm:$0xff]  ;;  %v135_v17 = vld [vmem:[#allocation5 + $0x148] sm:$0xff]  ;;  %4922 = vmatpush1.bf16.msra.mxu0 %v7736_v5  ;;  %5094 = vmatpush1.bf16.msra.mxu1 %v7738_v9  ;;  %v7754_v19 = vcombine.low %v111_v11, %v119_v12  ;;  %p9292_p1 = por %p9291_p0, %p9290_p13 }
  0x61   :  { %4923 = vmatprep.subr.bf16.mxu0 %v7753_v10  ;;  %v7769_v20 = vcombine.high %v126_v13, %v134_v15  ;;  %5095 = vmatprep.subr.bf16.mxu1 %v7755_v14  ;;  %v7771_v21 = vcombine.high %v127_v16, %v135_v17  ;;  %v142_v22 = vld [vmem:[#allocation5 + $0x180] sm:$0xff]  ;;  %v143_v24 = vld [vmem:[#allocation5 + $0x188] sm:$0xff]  ;;  %v7768_v26 = vcombine.low %v126_v13, %v134_v15 }
  0x62   :  { %v150_v23 = vld [vmem:[#allocation5 + $0x1c0] sm:$0xff]  ;;  %v151_v25 = vld [vmem:[#allocation5 + $0x1c8] sm:$0xff]  ;;  %v7770_v27 = vcombine.low %v127_v16, %v135_v17  ;;  %p9293_p2 = pnand %p9292_p1, %p9286_p12 }
  0x63   :  { %v7785_v28 = vcombine.high %v142_v22, %v150_v23  ;;  %v7787_v29 = vcombine.high %v143_v24, %v151_v25  ;;  %v158_v30 = vld [vmem:[#allocation5 + $0x200] sm:$0xff]  ;;  %v159_v32 = vld [vmem:[#allocation5 + $0x208] sm:$0xff]  ;;  %v7784_v34 = vcombine.low %v142_v22, %v150_v23  ;;  %v7786_v35 = vcombine.low %v143_v24, %v151_v25 }
  0x64   :  { %4924 = vmatpush1.bf16.msra.mxu0 %v7752_v18  ;;  %5096 = vmatpush1.bf16.msra.mxu1 %v7754_v19  ;;  %v166_v31 = vld [vmem:[#allocation5 + $0x240] sm:$0xff]  ;;  %v167_v33 = vld [vmem:[#allocation5 + $0x248] sm:$0xff] }
  0x65   :  { %4925 = vmatprep.subr.bf16.mxu0 %v7769_v20  ;;  %5097 = vmatprep.subr.bf16.mxu1 %v7771_v21  ;;  %v7801_v36 = vcombine.high %v158_v30, %v166_v31  ;;  %v7803_v37 = vcombine.high %v159_v32, %v167_v33  ;;  %v174_v38 = vld [vmem:[#allocation5 + $0x280] sm:$0xff]  ;;  %v175_v40 = vld [vmem:[#allocation5 + $0x288] sm:$0xff]  ;;  %v7800_v42 = vcombine.low %v158_v30, %v166_v31 }
  0x66   :  { %v182_v39 = vld [vmem:[#allocation5 + $0x2c0] sm:$0xff]  ;;  %v183_v41 = vld [vmem:[#allocation5 + $0x2c8] sm:$0xff]  ;;  %v7802_v43 = vcombine.low %v159_v32, %v167_v33 }
  0x67   :  { %v7817_v44 = vcombine.high %v174_v38, %v182_v39  ;;  %v7819_v45 = vcombine.high %v175_v40, %v183_v41  ;;  %v190_v46 = vld [vmem:[#allocation5 + $0x300] sm:$0xff]  ;;  %v191_v48 = vld [vmem:[#allocation5 + $0x308] sm:$0xff]  ;;  %v7816_v50 = vcombine.low %v174_v38, %v182_v39  ;;  %v7818_v51 = vcombine.low %v175_v40, %v183_v41 }
  0x68   :  { %4926 = vmatpush1.bf16.msra.mxu0 %v7768_v26  ;;  %5098 = vmatpush1.bf16.msra.mxu1 %v7770_v27  ;;  %v198_v47 = vld [vmem:[#allocation5 + $0x340] sm:$0xff]  ;;  %v199_v49 = vld [vmem:[#allocation5 + $0x348] sm:$0xff] }
  0x69   :  { %4927 = vmatprep.subr.bf16.mxu0 %v7785_v28  ;;  %5099 = vmatprep.subr.bf16.mxu1 %v7787_v29  ;;  %v7833_v52 = vcombine.high %v190_v46, %v198_v47  ;;  %v7835_v53 = vcombine.high %v191_v48, %v199_v49  ;;  %v206_v54 = vld [vmem:[#allocation5 + $0x380] sm:$0xff]  ;;  %v8975_v56 = vld [vmem:[#allocation2 + $0x4] ss:$28 sps:$4 sm:$0xff]   ;;  %v7832_v59 = vcombine.low %v190_v46, %v198_v47 }
  0x6a   :  { %v214_v55 = vld [vmem:[#allocation5 + $0x3c0] sm:$0xff]  ;;  %v207_v57 = vld [vmem:[#allocation5 + $0x388] sm:$0xff]  ;;  %4953 = vmatprep.mubr.bf16.mxu0 %v8975_v56  ;;  %v7834_v60 = vcombine.low %v191_v48, %v199_v49  ;;  %5125 = vmatprep.mubr.bf16.mxu1 %v8975_v56 }
  0x6b   :  { %v215_v58 = vld [vmem:[#allocation5 + $0x3c8] sm:$0xff]  ;;  %v7849_v61 = vcombine.high %v206_v54, %v214_v55  ;;  %v222_v63 = vld [vmem:[#allocation5 + $0x400] sm:$0xff]  ;;  %v7848_v3 = vcombine.low %v206_v54, %v214_v55 }
  0x6c   :  { %4928 = vmatpush1.bf16.msra.mxu0 %v7784_v34  ;;  %5100 = vmatpush1.bf16.msra.mxu1 %v7786_v35  ;;  %v7851_v62 = vcombine.high %v207_v57, %v215_v58  ;;  %v230_v0 = vld [vmem:[#allocation5 + $0x440] sm:$0xff]  ;;  %v223_v1 = vld [vmem:[#allocation5 + $0x408] sm:$0xff]  ;;  %v7850_v4 = vcombine.low %v207_v57, %v215_v58 }
  0x6d   :  { %4929 = vmatprep.subr.bf16.mxu0 %v7801_v36  ;;  %5101 = vmatprep.subr.bf16.mxu1 %v7803_v37  ;;  %v231_v2 = vld [vmem:[#allocation5 + $0x448] sm:$0xff]  ;;  %v7865_v5 = vcombine.high %v222_v63, %v230_v0  ;;  %v238_v7 = vld [vmem:[#allocation5 + $0x480] sm:$0xff]  ;;  %v7864_v11 = vcombine.low %v222_v63, %v230_v0 }
  0x6e   :  { %v7867_v6 = vcombine.high %v223_v1, %v231_v2  ;;  %v246_v8 = vld [vmem:[#allocation5 + $0x4c0] sm:$0xff]  ;;  %v239_v9 = vld [vmem:[#allocation5 + $0x488] sm:$0xff]  ;;  %v7866_v12 = vcombine.low %v223_v1, %v231_v2 }
  0x6f   :  { %v247_v10 = vld [vmem:[#allocation5 + $0x4c8] sm:$0xff]  ;;  %v7881_v13 = vcombine.high %v238_v7, %v246_v8  ;;  %v254_v15 = vld [vmem:[#allocation5 + $0x500] sm:$0xff]  ;;  %v7880_v19 = vcombine.low %v238_v7, %v246_v8 }
  0x70   :  { %4930 = vmatpush1.bf16.msra.mxu0 %v7800_v42  ;;  %5102 = vmatpush1.bf16.msra.mxu1 %v7802_v43  ;;  %v7883_v14 = vcombine.high %v239_v9, %v247_v10  ;;  %v262_v16 = vld [vmem:[#allocation5 + $0x540] sm:$0xff]  ;;  %v255_v17 = vld [vmem:[#allocation5 + $0x508] sm:$0xff]  ;;  %v7882_v20 = vcombine.low %v239_v9, %v247_v10 }
  0x71   :  { %4931 = vmatprep.subr.bf16.mxu0 %v7817_v44  ;;  %5103 = vmatprep.subr.bf16.mxu1 %v7819_v45  ;;  %v263_v18 = vld [vmem:[#allocation5 + $0x548] sm:$0xff]  ;;  %v7897_v21 = vcombine.high %v254_v15, %v262_v16  ;;  %v270_v23 = vld [vmem:[#allocation5 + $0x580] sm:$0xff]  ;;  %v7896_v27 = vcombine.low %v254_v15, %v262_v16 }
  0x72   :  { %v7899_v22 = vcombine.high %v255_v17, %v263_v18  ;;  %v278_v24 = vld [vmem:[#allocation5 + $0x5c0] sm:$0xff]  ;;  %v271_v25 = vld [vmem:[#allocation5 + $0x588] sm:$0xff]  ;;  %v7898_v28 = vcombine.low %v255_v17, %v263_v18  ;;  %v8978_v18 = vld [vmem:[#allocation2 + $0xc] ss:$28 sps:$4 sm:$0xff]  }
  0x73   :  { %v279_v26 = vld [vmem:[#allocation5 + $0x5c8] sm:$0xff]  ;;  %v7913_v29 = vcombine.high %v270_v23, %v278_v24  ;;  %v286_v31 = vld [vmem:[#allocation5 + $0x600] sm:$0xff]  ;;  %v7912_v35 = vcombine.low %v270_v23, %v278_v24 }
  0x74   :  { %4932 = vmatpush1.bf16.msra.mxu0 %v7816_v50  ;;  %5104 = vmatpush1.bf16.msra.mxu1 %v7818_v51  ;;  %v7915_v30 = vcombine.high %v271_v25, %v279_v26  ;;  %v294_v32 = vld [vmem:[#allocation5 + $0x640] sm:$0xff]  ;;  %v287_v33 = vld [vmem:[#allocation5 + $0x608] sm:$0xff]  ;;  %v7914_v36 = vcombine.low %v271_v25, %v279_v26 }
  0x75   :  { %4933 = vmatprep.subr.bf16.mxu0 %v7833_v52  ;;  %5105 = vmatprep.subr.bf16.mxu1 %v7835_v53  ;;  %v295_v34 = vld [vmem:[#allocation5 + $0x648] sm:$0xff]  ;;  %v7929_v37 = vcombine.high %v286_v31, %v294_v32  ;;  %v302_v39 = vld [vmem:[#allocation5 + $0x680] sm:$0xff]  ;;  %v7928_v43 = vcombine.low %v286_v31, %v294_v32 }
  0x76   :  { %v7931_v38 = vcombine.high %v287_v33, %v295_v34  ;;  %v310_v40 = vld [vmem:[#allocation5 + $0x6c0] sm:$0xff]  ;;  %v303_v41 = vld [vmem:[#allocation5 + $0x688] sm:$0xff]  ;;  %v7930_v44 = vcombine.low %v287_v33, %v295_v34 }
  0x77   :  { %v311_v42 = vld [vmem:[#allocation5 + $0x6c8] sm:$0xff]  ;;  %v7945_v45 = vcombine.high %v302_v39, %v310_v40  ;;  %v318_v47 = vld [vmem:[#allocation5 + $0x700] sm:$0xff]  ;;  %v7944_v51 = vcombine.low %v302_v39, %v310_v40 }
  0x78   :  { %4934 = vmatpush1.bf16.msra.mxu0 %v7832_v59  ;;  %5106 = vmatpush1.bf16.msra.mxu1 %v7834_v60  ;;  %v7947_v46 = vcombine.high %v303_v41, %v311_v42  ;;  %v326_v48 = vld [vmem:[#allocation5 + $0x740] sm:$0xff]  ;;  %v319_v49 = vld [vmem:[#allocation5 + $0x708] sm:$0xff]  ;;  %v7946_v52 = vcombine.low %v303_v41, %v311_v42 }
  0x79   :  { %4935 = vmatprep.subr.bf16.mxu0 %v7849_v61  ;;  %5107 = vmatprep.subr.bf16.mxu1 %v7851_v62  ;;  %v327_v50 = vld [vmem:[#allocation5 + $0x748] sm:$0xff]  ;;  %v7961_v53 = vcombine.high %v318_v47, %v326_v48  ;;  %v334_v55 = vld [vmem:[#allocation5 + $0x780] sm:$0xff]  ;;  %v7960_v59 = vcombine.low %v318_v47, %v326_v48 }
  0x7a   :  { %v7963_v54 = vcombine.high %v319_v49, %v327_v50  ;;  %v342_v56 = vld [vmem:[#allocation5 + $0x7c0] sm:$0xff]  ;;  %v335_v57 = vld [vmem:[#allocation5 + $0x788] sm:$0xff]  ;;  %v7962_v60 = vcombine.low %v319_v49, %v327_v50 }
  0x7b   :  { %v343_v58 = vld [vmem:[#allocation5 + $0x7c8] sm:$0xff]  ;;  %v7977_v61 = vcombine.high %v334_v55, %v342_v56  ;;  %v350_v63 = vld [vmem:[#allocation5 + $0x800] sm:$0xff] }
  0x7c   :  { %4936 = vmatpush1.bf16.msra.mxu0 %v7848_v3  ;;  %5108 = vmatpush1.bf16.msra.mxu1 %v7850_v4  ;;  %v7979_v62 = vcombine.high %v335_v57, %v343_v58  ;;  %v358_v0 = vld [vmem:[#allocation5 + $0x840] sm:$0xff]  ;;  %v351_v1 = vld [vmem:[#allocation5 + $0x808] sm:$0xff]  ;;  %v7976_v3 = vcombine.low %v334_v55, %v342_v56  ;;  %v7978_v4 = vcombine.low %v335_v57, %v343_v58 }
  0x7d   :  { %4937 = vmatprep.subr.bf16.mxu0 %v7865_v5  ;;  %5109 = vmatprep.subr.bf16.mxu1 %v7867_v6  ;;  %v359_v2 = vld [vmem:[#allocation5 + $0x848] sm:$0xff]  ;;  %v7993_v5 = vcombine.high %v350_v63, %v358_v0  ;;  %v366_v7 = vld [vmem:[#allocation5 + $0x880] sm:$0xff] }
  0x7e   :  { %v7995_v6 = vcombine.high %v351_v1, %v359_v2  ;;  %v374_v8 = vld [vmem:[#allocation5 + $0x8c0] sm:$0xff]  ;;  %v367_v10 = vld [vmem:[#allocation5 + $0x888] sm:$0xff] }
  0x7f   :  { %v8977_v9 = vld [vmem:[#allocation2] ss:$28 sps:$4 sm:$0xff]  }
  0x80   :  { %4938 = vmatpush1.bf16.msra.mxu0 %v7864_v11  ;;  %5110 = vmatpush1.bf16.msra.mxu1 %v7866_v12  ;;  %v375_v11 = vld [vmem:[#allocation5 + $0x8c8] sm:$0xff]  ;;  %v7992_v12 = vcombine.low %v350_v63, %v358_v0  ;;  %v382_v15 = vld [vmem:[#allocation5 + $0x900] sm:$0xff] }
  0x81   :  { %4939 = vmatprep.subr.bf16.mxu0 %v7881_v13  ;;  %5111 = vmatprep.subr.bf16.mxu1 %v7883_v14  ;;  %v7994_v13 = vcombine.low %v351_v1, %v359_v2  ;;  %v8009_v14 = vcombine.high %v366_v7, %v374_v8  ;;  %v8011_v16 = vcombine.high %v367_v10, %v375_v11  ;;  %v390_v17 = vld [vmem:[#allocation5 + $0x940] sm:$0xff]  ;;  %v415_v34 = vld [vmem:[#allocation5 + $0xa08] sm:$0xff] }
  0x82   :  { %v8025_v23 = vcombine.high %v382_v15, %v390_v17  ;;  %v398_v25 = vld [vmem:[#allocation5 + $0x980] sm:$0xff]  ;;  %v431_v42 = vld [vmem:[#allocation5 + $0xa88] sm:$0xff] }
  0x83   :  { %v406_v26 = vld [vmem:[#allocation5 + $0x9c0] sm:$0xff]  ;;  %v447_v50 = vld [vmem:[#allocation5 + $0xb08] sm:$0xff] }
  0x84   :  { %4940 = vmatpush1.bf16.msra.mxu0 %v7880_v19  ;;  %5112 = vmatpush1.bf16.msra.mxu1 %v7882_v20  ;;  %v383_v19 = vld [vmem:[#allocation5 + $0x908] sm:$0xff]  ;;  %v422_v31 = vld [vmem:[#allocation5 + $0xa40] sm:$0xff]  ;;  %v8041_v33 = vcombine.high %v398_v25, %v406_v26 }
  0x85   :  { %4941 = vmatprep.subr.bf16.mxu0 %v7897_v21  ;;  %5113 = vmatprep.subr.bf16.mxu1 %v7899_v22  ;;  %v391_v20 = vld [vmem:[#allocation5 + $0x948] sm:$0xff]  ;;  %v8008_v21 = vcombine.low %v366_v7, %v374_v8  ;;  %v8010_v22 = vcombine.low %v367_v10, %v375_v11  ;;  %v438_v39 = vld [vmem:[#allocation5 + $0xac0] sm:$0xff] }
  0x86   :  { %v8027_v24 = vcombine.high %v383_v19, %v391_v20  ;;  %v8026_v32 = vcombine.low %v383_v19, %v391_v20  ;;  %v446_v48 = vld [vmem:[#allocation5 + $0xb00] sm:$0xff]  ;;  %v463_v58 = vld [vmem:[#allocation5 + $0xb88] sm:$0xff] }
  0x87   :  { %v454_v49 = vld [vmem:[#allocation5 + $0xb40] sm:$0xff]  ;;  %v479_v2 = vld [vmem:[#allocation5 + $0xc08] sm:$0xff] }
  0x88   :  { %4942 = vmatpush1.bf16.msra.mxu0 %v7896_v27  ;;  %5114 = vmatpush1.bf16.msra.mxu1 %v7898_v28  ;;  %v399_v27 = vld [vmem:[#allocation5 + $0x988] sm:$0xff]  ;;  %v8089_v55 = vcombine.high %v446_v48, %v454_v49  ;;  %v462_v56 = vld [vmem:[#allocation5 + $0xb80] sm:$0xff] }
  0x89   :  { %4943 = vmatprep.subr.bf16.mxu0 %v7913_v29  ;;  %5115 = vmatprep.subr.bf16.mxu1 %v7915_v30  ;;  %v407_v28 = vld [vmem:[#allocation5 + $0x9c8] sm:$0xff]  ;;  %v8024_v29 = vcombine.low %v382_v15, %v390_v17  ;;  %v414_v30 = vld [vmem:[#allocation5 + $0xa00] sm:$0xff] }
  0x8a   :  { %v8042_v40 = vcombine.low %v399_v27, %v407_v28  ;;  %v8057_v41 = vcombine.high %v414_v30, %v422_v31  ;;  %v470_v57 = vld [vmem:[#allocation5 + $0xbc0] sm:$0xff]  ;;  %v495_v10 = vld [vmem:[#allocation5 + $0xc88] sm:$0xff] }
  0x8b   :  { %v8105_v63 = vcombine.high %v462_v56, %v470_v57  ;;  %v478_v0 = vld [vmem:[#allocation5 + $0xc00] sm:$0xff]  ;;  %v519_v20 = vld [vmem:[#allocation5 + $0xd48] sm:$0xff] }
  0x8c   :  { %4944 = vmatpush1.bf16.msra.mxu0 %v7912_v35  ;;  %5116 = vmatpush1.bf16.msra.mxu1 %v7914_v36  ;;  %v423_v35 = vld [vmem:[#allocation5 + $0xa48] sm:$0xff]  ;;  %v8043_v36 = vcombine.high %v399_v27, %v407_v28  ;;  %v486_v1 = vld [vmem:[#allocation5 + $0xc40] sm:$0xff] }
  0x8d   :  { %4945 = vmatprep.subr.bf16.mxu0 %v7929_v37  ;;  %5117 = vmatprep.subr.bf16.mxu1 %v7931_v38  ;;  %v8040_v37 = vcombine.low %v398_v25, %v406_v26  ;;  %v430_v38 = vld [vmem:[#allocation5 + $0xa80] sm:$0xff]  ;;  %v8121_v7 = vcombine.high %v478_v0, %v486_v1  ;;  %v527_v26 = vld [vmem:[#allocation5 + $0xd88] sm:$0xff] }
  0x8e   :  { %v8073_v47 = vcombine.high %v430_v38, %v438_v39  ;;  %v494_v8 = vld [vmem:[#allocation5 + $0xc80] sm:$0xff]  ;;  %v535_v28 = vld [vmem:[#allocation5 + $0xdc8] sm:$0xff] }
  0x8f   :  { %v518_v17 = vld [vmem:[#allocation5 + $0xd40] sm:$0xff] }
  0x90   :  { %4946 = vmatpush1.bf16.msra.mxu0 %v7928_v43  ;;  %5118 = vmatpush1.bf16.msra.mxu1 %v7930_v44  ;;  %v439_v43 = vld [vmem:[#allocation5 + $0xac8] sm:$0xff]  ;;  %v8059_v44 = vcombine.high %v415_v34, %v423_v35  ;;  %v534_v25 = vld [vmem:[#allocation5 + $0xdc0] sm:$0xff] }
  0x91   :  { %4947 = vmatprep.subr.bf16.mxu0 %v7945_v45  ;;  %5119 = vmatprep.subr.bf16.mxu1 %v7947_v46  ;;  %v8056_v45 = vcombine.low %v414_v30, %v422_v31  ;;  %v8058_v46 = vcombine.low %v415_v34, %v423_v35  ;;  %v543_v34 = vld [vmem:[#allocation5 + $0xe08] sm:$0xff]  ;;  %v8171_v35 = vcombine.high %v527_v26, %v535_v28 }
  0x94   :  { %4948 = vmatpush1.bf16.msra.mxu0 %v7944_v51  ;;  %5120 = vmatpush1.bf16.msra.mxu1 %v7946_v52  ;;  %v8075_v51 = vcombine.high %v431_v42, %v439_v43  ;;  %v455_v52 = vld [vmem:[#allocation5 + $0xb48] sm:$0xff] }
  0x95   :  { %4949 = vmatprep.subr.bf16.mxu0 %v7961_v53  ;;  %5121 = vmatprep.subr.bf16.mxu1 %v7963_v54  ;;  %v8072_v53 = vcombine.low %v430_v38, %v438_v39  ;;  %v8074_v54 = vcombine.low %v431_v42, %v439_v43  ;;  %v8170_v38 = vcombine.low %v527_v26, %v535_v28  ;;  %v559_v42 = vld [vmem:[#allocation5 + $0xe88] sm:$0xff]  ;;  %v654_v26 = vld [vmem:[#allocation5 + $0x1180] sm:$0xff] }
  0x96   :  { %v655_v28 = vld [vmem:[#allocation5 + $0x1188] sm:$0xff] }
  0x98   :  { %4950 = vmatpush1.bf16.msra.mxu0 %v7960_v59  ;;  %5122 = vmatpush1.bf16.msra.mxu1 %v7962_v60  ;;  %v8091_v59 = vcombine.high %v447_v50, %v455_v52  ;;  %v471_v60 = vld [vmem:[#allocation5 + $0xbc8] sm:$0xff] }
  0x99   :  { %4951 = vmatprep.subr.bf16.mxu0 %v7977_v61  ;;  %5123 = vmatprep.subr.bf16.mxu1 %v7979_v62  ;;  %v8088_v61 = vcombine.low %v446_v48, %v454_v49  ;;  %v8090_v62 = vcombine.low %v447_v50, %v455_v52  ;;  %v574_v48 = vld [vmem:[#allocation5 + $0xf00] sm:$0xff]  ;;  %v575_v50 = vld [vmem:[#allocation5 + $0xf08] sm:$0xff] }
  0x9a   :  { %v582_v49 = vld [vmem:[#allocation5 + $0xf40] sm:$0xff]  ;;  %v583_v52 = vld [vmem:[#allocation5 + $0xf48] sm:$0xff] }
  0x9c   :  { %4952 = vmatpush1.bf16.msra.mxu0 %v7976_v3  ;;  %5124 = vmatpush1.bf16.msra.mxu1 %v7978_v4  ;;  %v8107_v3 = vcombine.high %v463_v58, %v471_v60  ;;  %v487_v4 = vld [vmem:[#allocation5 + $0xc48] sm:$0xff] }
  0x9d   :  { %4964 = vmatprep.subr.bf16.mxu0 %v7993_v5  ;;  %5136 = vmatprep.subr.bf16.mxu1 %v7995_v6  ;;  %v8104_v5 = vcombine.low %v462_v56, %v470_v57  ;;  %v8106_v6 = vcombine.low %v463_v58, %v471_v60  ;;  %v8123_v11 = vcombine.high %v479_v2, %v487_v4  ;;  %v590_v56 = vld [vmem:[#allocation5 + $0xf80] sm:$0xff]  ;;  %v591_v58 = vld [vmem:[#allocation5 + $0xf88] sm:$0xff] }
  0x9e   :  { %v598_v57 = vld [vmem:[#allocation5 + $0xfc0] sm:$0xff]  ;;  %v599_v60 = vld [vmem:[#allocation5 + $0xfc8] sm:$0xff] }
  0x9f   :  { %4954 = vmatmul.mubr.bf16.vlgmr.msra.gmra.mrb[0].mxu0 %v8977_v9  ;;  %5126 = vmatmul.mubr.bf16.vlgmr.msra.gmra.mrb[0].mxu1 %v8977_v9  ;;  %v502_v9 = vld [vmem:[#allocation5 + $0xcc0] sm:$0xff] }
  0xa0   :  { %4965 = vmatpush1.bf16.msra.mxu0 %v7992_v12  ;;  %5137 = vmatpush1.bf16.msra.mxu1 %v7994_v13  ;;  %v503_v12 = vld [vmem:[#allocation5 + $0xcc8] sm:$0xff]  ;;  %v8120_v13 = vcombine.low %v478_v0, %v486_v1  ;;  %v8137_v15 = vcombine.high %v494_v8, %v502_v9  ;;  %v606_v0 = vld [vmem:[#allocation5 + $0x1000] sm:$0xff] }
  0xa1   :  { %4966 = vmatprep.subr.bf16.mxu0 %v8009_v14  ;;  %5138 = vmatprep.subr.bf16.mxu1 %v8011_v16  ;;  %v8122_v14 = vcombine.low %v479_v2, %v487_v4  ;;  %v510_v16 = vld [vmem:[#allocation5 + $0xd00] sm:$0xff]  ;;  %v8139_v19 = vcombine.high %v495_v10, %v503_v12  ;;  %v607_v2 = vld [vmem:[#allocation5 + $0x1008] sm:$0xff] }
  0xa2   :  { %4996 = vmatprep.mubr.bf16.mxu0 %v8978_v18  ;;  %5168 = vmatprep.mubr.bf16.mxu1 %v8978_v18  ;;  %v511_v18 = vld [vmem:[#allocation5 + $0xd08] sm:$0xff]  ;;  %v614_v1 = vld [vmem:[#allocation5 + $0x1040] sm:$0xff] }
  0xa3   :  { %v8155_v27 = vcombine.high %v511_v18, %v519_v20  ;;  %v8154_v30 = vcombine.low %v511_v18, %v519_v20  ;;  %v615_v4 = vld [vmem:[#allocation5 + $0x1048] sm:$0xff]  ;;  %v646_v18 = vld [vmem:[#allocation5 + $0x1140] sm:$0xff] }
  0xa4   :  { %4967 = vmatpush1.bf16.msra.mxu0 %v8008_v21  ;;  %5139 = vmatpush1.bf16.msra.mxu1 %v8010_v22  ;;  %v8136_v21 = vcombine.low %v494_v8, %v502_v9  ;;  %v8138_v22 = vcombine.low %v495_v10, %v503_v12  ;;  %v8980_v8 = vld [vmem:[#allocation2 + $0x8] ss:$28 sps:$4 sm:$0xff]   ;;  %v622_v9 = vld [vmem:[#allocation5 + $0x1080] sm:$0xff]  ;;  %v8251_v12 = vcombine.high %v607_v2, %v615_v4 }
  0xa5   :  { %4968 = vmatprep.subr.bf16.mxu0 %v8025_v23  ;;  %5140 = vmatprep.subr.bf16.mxu1 %v8027_v24  ;;  %v8153_v23 = vcombine.high %v510_v16, %v518_v17  ;;  %v526_v24 = vld [vmem:[#allocation5 + $0xd80] sm:$0xff]  ;;  %v647_v20 = vld [vmem:[#allocation5 + $0x1148] sm:$0xff] }
  0xa6   :  { %v8169_v31 = vcombine.high %v526_v24, %v534_v25  ;;  %v630_v10 = vld [vmem:[#allocation5 + $0x10c0] sm:$0xff] }
  0xa8   :  { %4969 = vmatpush1.bf16.msra.mxu0 %v8024_v29  ;;  %5141 = vmatpush1.bf16.msra.mxu1 %v8026_v32  ;;  %v8152_v29 = vcombine.low %v510_v16, %v518_v17  ;;  %v542_v32 = vld [vmem:[#allocation5 + $0xe00] sm:$0xff]  ;;  %v8250_v16 = vcombine.low %v607_v2, %v615_v4  ;;  %v8265_v17 = vcombine.high %v622_v9, %v630_v10  ;;  %v735_v4 = vld [vmem:[#allocation5 + $0x1408] sm:$0xff] }
  0xa9   :  { %4970 = vmatprep.subr.bf16.mxu0 %v8041_v33  ;;  %5142 = vmatprep.subr.bf16.mxu1 %v8043_v36  ;;  %v550_v33 = vld [vmem:[#allocation5 + $0xe40] sm:$0xff]  ;;  %v551_v36 = vld [vmem:[#allocation5 + $0xe48] sm:$0xff] }
  0xaa   :  { %v8185_v39 = vcombine.high %v542_v32, %v550_v33  ;;  %v8187_v43 = vcombine.high %v543_v34, %v551_v36  ;;  %v734_v2 = vld [vmem:[#allocation5 + $0x1400] sm:$0xff] }
  0xac   :  { %4971 = vmatpush1.bf16.msra.mxu0 %v8040_v37  ;;  %5143 = vmatpush1.bf16.msra.mxu1 %v8042_v40  ;;  %v8168_v37 = vcombine.low %v526_v24, %v534_v25  ;;  %v558_v40 = vld [vmem:[#allocation5 + $0xe80] sm:$0xff] }
  0xad   :  { %4972 = vmatprep.subr.bf16.mxu0 %v8057_v41  ;;  %5144 = vmatprep.subr.bf16.mxu1 %v8059_v44  ;;  %v566_v41 = vld [vmem:[#allocation5 + $0xec0] sm:$0xff]  ;;  %v567_v44 = vld [vmem:[#allocation5 + $0xec8] sm:$0xff] }
  0xb0   :  { %4973 = vmatpush1.bf16.msra.mxu0 %v8056_v45  ;;  %5145 = vmatpush1.bf16.msra.mxu1 %v8058_v46  ;;  %v8184_v45 = vcombine.low %v542_v32, %v550_v33  ;;  %v8186_v46 = vcombine.low %v543_v34, %v551_v36  ;;  %v670_v34 = vld [vmem:[#allocation5 + $0x1200] sm:$0xff]  ;;  %v671_v36 = vld [vmem:[#allocation5 + $0x1208] sm:$0xff] }
  0xb1   :  { %4974 = vmatprep.subr.bf16.mxu0 %v8073_v47  ;;  %5146 = vmatprep.subr.bf16.mxu1 %v8075_v51  ;;  %v8201_v47 = vcombine.high %v558_v40, %v566_v41  ;;  %v8203_v51 = vcombine.high %v559_v42, %v567_v44 }
  0xb4   :  { %4975 = vmatpush1.bf16.msra.mxu0 %v8072_v53  ;;  %5147 = vmatpush1.bf16.msra.mxu1 %v8074_v54  ;;  %v8200_v53 = vcombine.low %v558_v40, %v566_v41  ;;  %v8202_v54 = vcombine.low %v559_v42, %v567_v44  ;;  %v686_v42 = vld [vmem:[#allocation5 + $0x1280] sm:$0xff]  ;;  %v687_v44 = vld [vmem:[#allocation5 + $0x1288] sm:$0xff] }
  0xb5   :  { %4976 = vmatprep.subr.bf16.mxu0 %v8089_v55  ;;  %5148 = vmatprep.subr.bf16.mxu1 %v8091_v59  ;;  %v8217_v55 = vcombine.high %v574_v48, %v582_v49  ;;  %v8219_v59 = vcombine.high %v575_v50, %v583_v52 }
  0xb8   :  { %4977 = vmatpush1.bf16.msra.mxu0 %v8088_v61  ;;  %5149 = vmatpush1.bf16.msra.mxu1 %v8090_v62  ;;  %v8216_v61 = vcombine.low %v574_v48, %v582_v49  ;;  %v8218_v62 = vcombine.low %v575_v50, %v583_v52  ;;  %v702_v50 = vld [vmem:[#allocation5 + $0x1300] sm:$0xff]  ;;  %v703_v52 = vld [vmem:[#allocation5 + $0x1308] sm:$0xff] }
  0xb9   :  { %4978 = vmatprep.subr.bf16.mxu0 %v8105_v63  ;;  %5150 = vmatprep.subr.bf16.mxu1 %v8107_v3  ;;  %v8233_v63 = vcombine.high %v590_v56, %v598_v57  ;;  %v8235_v3 = vcombine.high %v591_v58, %v599_v60 }
  0xbc   :  { %4979 = vmatpush1.bf16.msra.mxu0 %v8104_v5  ;;  %5151 = vmatpush1.bf16.msra.mxu1 %v8106_v6  ;;  %v8232_v5 = vcombine.low %v590_v56, %v598_v57  ;;  %v8234_v6 = vcombine.low %v591_v58, %v599_v60  ;;  %v718_v58 = vld [vmem:[#allocation5 + $0x1380] sm:$0xff]  ;;  %v719_v60 = vld [vmem:[#allocation5 + $0x1388] sm:$0xff] }
  0xbd   :  { %4980 = vmatprep.subr.bf16.mxu0 %v8121_v7  ;;  %5152 = vmatprep.subr.bf16.mxu1 %v8123_v11  ;;  %v8249_v7 = vcombine.high %v606_v0, %v614_v1  ;;  %v623_v11 = vld [vmem:[#allocation5 + $0x1088] sm:$0xff] }
  0xc0   :  { %4981 = vmatpush1.bf16.msra.mxu0 %v8120_v13  ;;  %5153 = vmatpush1.bf16.msra.mxu1 %v8122_v14  ;;  %v631_v13 = vld [vmem:[#allocation5 + $0x10c8] sm:$0xff]  ;;  %v8248_v14 = vcombine.low %v606_v0, %v614_v1 }
  0xc1   :  { %4982 = vmatprep.subr.bf16.mxu0 %v8137_v15  ;;  %5154 = vmatprep.subr.bf16.mxu1 %v8139_v19  ;;  %v638_v15 = vld [vmem:[#allocation5 + $0x1100] sm:$0xff]  ;;  %v639_v19 = vld [vmem:[#allocation5 + $0x1108] sm:$0xff]  ;;  %v8266_v24 = vcombine.low %v623_v11, %v631_v13 }
  0xc2   :  { %v8281_v25 = vcombine.high %v638_v15, %v646_v18  ;;  %v8282_v32 = vcombine.low %v639_v19, %v647_v20 }
  0xc4   :  { %4983 = vmatpush1.bf16.msra.mxu0 %v8136_v21  ;;  %5155 = vmatpush1.bf16.msra.mxu1 %v8138_v22  ;;  %v8267_v21 = vcombine.high %v623_v11, %v631_v13  ;;  %v8981_v22 = vld [vmem:[#allocation2 + $0x14] ss:$28 sps:$4 sm:$0xff]   ;;  %v758_v11 = vld [vmem:[#allocation5 + $0x14c0] sm:$0xff] }
  0xc5   :  { %4984 = vmatprep.subr.bf16.mxu0 %v8153_v23  ;;  %5156 = vmatprep.subr.bf16.mxu1 %v8155_v27  ;;  %v8264_v23 = vcombine.low %v622_v9, %v630_v10  ;;  %v662_v27 = vld [vmem:[#allocation5 + $0x11c0] sm:$0xff] }
  0xc6   :  { %v8297_v33 = vcombine.high %v654_v26, %v662_v27  ;;  %v750_v10 = vld [vmem:[#allocation5 + $0x1480] sm:$0xff] }
  0xc8   :  { %4985 = vmatpush1.bf16.msra.mxu0 %v8152_v29  ;;  %5157 = vmatpush1.bf16.msra.mxu1 %v8154_v30  ;;  %v8283_v29 = vcombine.high %v639_v19, %v647_v20  ;;  %v663_v30 = vld [vmem:[#allocation5 + $0x11c8] sm:$0xff]  ;;  %v774_v19 = vld [vmem:[#allocation5 + $0x1540] sm:$0xff] }
  0xc9   :  { %4986 = vmatprep.subr.bf16.mxu0 %v8169_v31  ;;  %5158 = vmatprep.subr.bf16.mxu1 %v8171_v35  ;;  %v8280_v31 = vcombine.low %v638_v15, %v646_v18  ;;  %v678_v35 = vld [vmem:[#allocation5 + $0x1240] sm:$0xff]  ;;  %v8298_v40 = vcombine.low %v655_v28, %v663_v30  ;;  %v767_v20 = vld [vmem:[#allocation5 + $0x1508] sm:$0xff] }
  0xca   :  { %v8313_v41 = vcombine.high %v670_v34, %v678_v35  ;;  %v766_v18 = vld [vmem:[#allocation5 + $0x1500] sm:$0xff] }
  0xcc   :  { %4987 = vmatpush1.bf16.msra.mxu0 %v8168_v37  ;;  %5159 = vmatpush1.bf16.msra.mxu1 %v8170_v38  ;;  %v8299_v37 = vcombine.high %v655_v28, %v663_v30  ;;  %v679_v38 = vld [vmem:[#allocation5 + $0x1248] sm:$0xff] }
  0xcd   :  { %4988 = vmatprep.subr.bf16.mxu0 %v8185_v39  ;;  %5160 = vmatprep.subr.bf16.mxu1 %v8187_v43  ;;  %v8296_v39 = vcombine.low %v654_v26, %v662_v27  ;;  %v694_v43 = vld [vmem:[#allocation5 + $0x12c0] sm:$0xff]  ;;  %v8314_v48 = vcombine.low %v671_v36, %v679_v38  ;;  %v783_v28 = vld [vmem:[#allocation5 + $0x1588] sm:$0xff] }
  0xce   :  { %v8329_v49 = vcombine.high %v686_v42, %v694_v43  ;;  %v782_v26 = vld [vmem:[#allocation5 + $0x1580] sm:$0xff]  ;;  %v791_v30 = vld [vmem:[#allocation5 + $0x15c8] sm:$0xff] }
  0xcf   :  { %v790_v27 = vld [vmem:[#allocation5 + $0x15c0] sm:$0xff] }
  0xd0   :  { %4989 = vmatpush1.bf16.msra.mxu0 %v8184_v45  ;;  %5161 = vmatpush1.bf16.msra.mxu1 %v8186_v46  ;;  %v8315_v45 = vcombine.high %v671_v36, %v679_v38  ;;  %v695_v46 = vld [vmem:[#allocation5 + $0x12c8] sm:$0xff] }
  0xd1   :  { %4990 = vmatprep.subr.bf16.mxu0 %v8201_v47  ;;  %5162 = vmatprep.subr.bf16.mxu1 %v8203_v51  ;;  %v8312_v47 = vcombine.low %v670_v34, %v678_v35  ;;  %v710_v51 = vld [vmem:[#allocation5 + $0x1340] sm:$0xff]  ;;  %v8330_v56 = vcombine.low %v687_v44, %v695_v46  ;;  %v799_v36 = vld [vmem:[#allocation5 + $0x1608] sm:$0xff] }
  0xd2   :  { %v8345_v57 = vcombine.high %v702_v50, %v710_v51  ;;  %v798_v34 = vld [vmem:[#allocation5 + $0x1600] sm:$0xff]  ;;  %v807_v38 = vld [vmem:[#allocation5 + $0x1648] sm:$0xff] }
  0xd3   :  { %v806_v35 = vld [vmem:[#allocation5 + $0x1640] sm:$0xff] }
  0xd4   :  { %4991 = vmatpush1.bf16.msra.mxu0 %v8200_v53  ;;  %5163 = vmatpush1.bf16.msra.mxu1 %v8202_v54  ;;  %v8331_v53 = vcombine.high %v687_v44, %v695_v46  ;;  %v711_v54 = vld [vmem:[#allocation5 + $0x1348] sm:$0xff] }
  0xd5   :  { %4992 = vmatprep.subr.bf16.mxu0 %v8217_v55  ;;  %5164 = vmatprep.subr.bf16.mxu1 %v8219_v59  ;;  %v8328_v55 = vcombine.low %v686_v42, %v694_v43  ;;  %v726_v59 = vld [vmem:[#allocation5 + $0x13c0] sm:$0xff]  ;;  %v8346_v0 = vcombine.low %v703_v52, %v711_v54  ;;  %v815_v44 = vld [vmem:[#allocation5 + $0x1688] sm:$0xff] }
  0xd6   :  { %v8361_v1 = vcombine.high %v718_v58, %v726_v59  ;;  %v814_v42 = vld [vmem:[#allocation5 + $0x1680] sm:$0xff]  ;;  %v823_v46 = vld [vmem:[#allocation5 + $0x16c8] sm:$0xff] }
  0xd7   :  { %v822_v43 = vld [vmem:[#allocation5 + $0x16c0] sm:$0xff] }
  0xd8   :  { %4993 = vmatpush1.bf16.msra.mxu0 %v8216_v61  ;;  %5165 = vmatpush1.bf16.msra.mxu1 %v8218_v62  ;;  %v8347_v61 = vcombine.high %v703_v52, %v711_v54  ;;  %v727_v62 = vld [vmem:[#allocation5 + $0x13c8] sm:$0xff] }
  0xd9   :  { %4994 = vmatprep.subr.bf16.mxu0 %v8233_v63  ;;  %5166 = vmatprep.subr.bf16.mxu1 %v8235_v3  ;;  %v8344_v63 = vcombine.low %v702_v50, %v710_v51  ;;  %v742_v3 = vld [vmem:[#allocation5 + $0x1440] sm:$0xff]  ;;  %v831_v52 = vld [vmem:[#allocation5 + $0x1708] sm:$0xff] }
  0xda   :  { %v8377_v9 = vcombine.high %v734_v2, %v742_v3  ;;  %v8376_v15 = vcombine.low %v734_v2, %v742_v3  ;;  %v830_v50 = vld [vmem:[#allocation5 + $0x1700] sm:$0xff]  ;;  %v839_v54 = vld [vmem:[#allocation5 + $0x1748] sm:$0xff] }
  0xdb   :  { %v838_v51 = vld [vmem:[#allocation5 + $0x1740] sm:$0xff] }
  0xdc   :  { %4995 = vmatpush1.bf16.msra.mxu0 %v8232_v5  ;;  %5167 = vmatpush1.bf16.msra.mxu1 %v8234_v6  ;;  %v8363_v5 = vcombine.high %v719_v60, %v727_v62  ;;  %v743_v6 = vld [vmem:[#allocation5 + $0x1448] sm:$0xff]  ;;  %v862_v2 = vld [vmem:[#allocation5 + $0x1800] sm:$0xff] }
  0xdd   :  { %5007 = vmatprep.subr.bf16.mxu0 %v8249_v7  ;;  %5179 = vmatprep.subr.bf16.mxu1 %v8251_v12  ;;  %v8360_v7 = vcombine.low %v718_v58, %v726_v59  ;;  %v751_v12 = vld [vmem:[#allocation5 + $0x1488] sm:$0xff]  ;;  %v8379_v13 = vcombine.high %v735_v4, %v743_v6  ;;  %v846_v58 = vld [vmem:[#allocation5 + $0x1780] sm:$0xff] }
  0xde   :  { %v854_v59 = vld [vmem:[#allocation5 + $0x17c0] sm:$0xff] }
  0xdf   :  { %4997 = vmatmul.mubr.bf16.vlgmr.msra.gmra.mrb[0].mxu0 %v8980_v8  ;;  %5169 = vmatmul.mubr.bf16.vlgmr.msra.gmra.mrb[0].mxu1 %v8980_v8  ;;  %v8362_v8 = vcombine.low %v719_v60, %v727_v62  ;;  %v847_v60 = vld [vmem:[#allocation5 + $0x1788] sm:$0xff]  ;;  %v870_v3 = vld [vmem:[#allocation5 + $0x1840] sm:$0xff] }
  0xe0   :  { %5008 = vmatpush1.bf16.msra.mxu0 %v8248_v14  ;;  %5180 = vmatpush1.bf16.msra.mxu1 %v8250_v16  ;;  %v759_v14 = vld [vmem:[#allocation5 + $0x14c8] sm:$0xff]  ;;  %v8378_v16 = vcombine.low %v735_v4, %v743_v6 }
  0xe1   :  { %5009 = vmatprep.subr.bf16.mxu0 %v8265_v17  ;;  %5181 = vmatprep.subr.bf16.mxu1 %v8267_v21  ;;  %v8393_v17 = vcombine.high %v750_v10, %v758_v11  ;;  %v8395_v21 = vcombine.high %v751_v12, %v759_v14  ;;  %v855_v62 = vld [vmem:[#allocation5 + $0x17c8] sm:$0xff] }
  0xe2   :  { %5039 = vmatprep.mubr.bf16.mxu0 %v8981_v22  ;;  %5211 = vmatprep.mubr.bf16.mxu1 %v8981_v22  ;;  %v775_v22 = vld [vmem:[#allocation5 + $0x1548] sm:$0xff] }
  0xe3   :  { %v863_v4 = vld [vmem:[#allocation5 + $0x1808] sm:$0xff] }
  0xe4   :  { %5010 = vmatpush1.bf16.msra.mxu0 %v8264_v23  ;;  %5182 = vmatpush1.bf16.msra.mxu1 %v8266_v24  ;;  %v8392_v23 = vcombine.low %v750_v10, %v758_v11  ;;  %v8394_v24 = vcombine.low %v751_v12, %v759_v14  ;;  %v871_v6 = vld [vmem:[#allocation5 + $0x1848] sm:$0xff]  ;;  %v8505_v10 = vcombine.high %v862_v2, %v870_v3  ;;  %v96_v11 = vld [vmem:[#allocation5 + $0x10] sm:$0xff]  ;;  %v97_v14 = vld [vmem:[#allocation5 + $0x18] sm:$0xff] }
  0xe5   :  { %5011 = vmatprep.subr.bf16.mxu0 %v8281_v25  ;;  %5183 = vmatprep.subr.bf16.mxu1 %v8283_v29  ;;  %v8409_v25 = vcombine.high %v766_v18, %v774_v19  ;;  %v8411_v29 = vcombine.high %v767_v20, %v775_v22  ;;  %v104_v12 = vld [vmem:[#allocation5 + $0x50] sm:$0xff] }
  0xe8   :  { %5012 = vmatpush1.bf16.msra.mxu0 %v8280_v31  ;;  %5184 = vmatpush1.bf16.msra.mxu1 %v8282_v32  ;;  %v8408_v31 = vcombine.low %v766_v18, %v774_v19  ;;  %v8410_v32 = vcombine.low %v767_v20, %v775_v22  ;;  %v7741_v18 = vcombine.high %v96_v11, %v104_v12  ;;  %v9325_v20 = vmov 0   ;;  %v120_v22 = vld [vmem:[#allocation5 + $0xd0] sm:$0xff] }
  0xe9   :  { %5013 = vmatprep.subr.bf16.mxu0 %v8297_v33  ;;  %5185 = vmatprep.subr.bf16.mxu1 %v8299_v37  ;;  %v8425_v33 = vcombine.high %v782_v26, %v790_v27  ;;  %v8427_v37 = vcombine.high %v783_v28, %v791_v30 }
  0xec   :  { %5014 = vmatpush1.bf16.msra.mxu0 %v8296_v39  ;;  %5186 = vmatpush1.bf16.msra.mxu1 %v8298_v40  ;;  %v8424_v39 = vcombine.low %v782_v26, %v790_v27  ;;  %v8426_v40 = vcombine.low %v783_v28, %v791_v30  ;;  %v7740_v26 = vcombine.low %v96_v11, %v104_v12  ;;  %v128_v30 = vld [vmem:[#allocation5 + $0x110] sm:$0xff] }
  0xed   :  { %5015 = vmatprep.subr.bf16.mxu0 %v8313_v41  ;;  %5187 = vmatprep.subr.bf16.mxu1 %v8315_v45  ;;  %v8441_v41 = vcombine.high %v798_v34, %v806_v35  ;;  %v8443_v45 = vcombine.high %v799_v36, %v807_v38 }
  0xf0   :  { %5016 = vmatpush1.bf16.msra.mxu0 %v8312_v47  ;;  %5188 = vmatpush1.bf16.msra.mxu1 %v8314_v48  ;;  %v8440_v47 = vcombine.low %v798_v34, %v806_v35  ;;  %v8442_v48 = vcombine.low %v799_v36, %v807_v38  ;;  %v144_v38 = vld [vmem:[#allocation5 + $0x190] sm:$0xff] }
  0xf1   :  { %5017 = vmatprep.subr.bf16.mxu0 %v8329_v49  ;;  %5189 = vmatprep.subr.bf16.mxu1 %v8331_v53  ;;  %v8457_v49 = vcombine.high %v814_v42, %v822_v43  ;;  %v8459_v53 = vcombine.high %v815_v44, %v823_v46 }
  0xf4   :  { %5018 = vmatpush1.bf16.msra.mxu0 %v8328_v55  ;;  %5190 = vmatpush1.bf16.msra.mxu1 %v8330_v56  ;;  %v8456_v55 = vcombine.low %v814_v42, %v822_v43  ;;  %v8458_v56 = vcombine.low %v815_v44, %v823_v46  ;;  %v153_v42 = vld [vmem:[#allocation5 + $0x1d8] sm:$0xff] }
  0xf5   :  { %5019 = vmatprep.subr.bf16.mxu0 %v8345_v57  ;;  %5191 = vmatprep.subr.bf16.mxu1 %v8347_v61  ;;  %v8473_v57 = vcombine.high %v830_v50, %v838_v51  ;;  %v8475_v61 = vcombine.high %v831_v52, %v839_v54 }
  0xf8   :  { %5020 = vmatpush1.bf16.msra.mxu0 %v8344_v63  ;;  %5192 = vmatpush1.bf16.msra.mxu1 %v8346_v0  ;;  %v8472_v63 = vcombine.low %v830_v50, %v838_v51  ;;  %v8474_v0 = vcombine.low %v831_v52, %v839_v54  ;;  %v169_v50 = vld [vmem:[#allocation5 + $0x258] sm:$0xff] }
  0xf9   :  { %5021 = vmatprep.subr.bf16.mxu0 %v8361_v1  ;;  %5193 = vmatprep.subr.bf16.mxu1 %v8363_v5  ;;  %v8489_v1 = vcombine.high %v846_v58, %v854_v59  ;;  %v8491_v5 = vcombine.high %v847_v60, %v855_v62 }
  0xfc   :  { %5022 = vmatpush1.bf16.msra.mxu0 %v8360_v7  ;;  %5194 = vmatpush1.bf16.msra.mxu1 %v8362_v8  ;;  %v8488_v7 = vcombine.low %v846_v58, %v854_v59  ;;  %v8490_v8 = vcombine.low %v847_v60, %v855_v62  ;;  %v185_v58 = vld [vmem:[#allocation5 + $0x2d8] sm:$0xff] }
  0xfd   :  { %5023 = vmatprep.subr.bf16.mxu0 %v8377_v9  ;;  %5195 = vmatprep.subr.bf16.mxu1 %v8379_v13  ;;  %v8983_v9 = vld [vmem:[#allocation2 + $0x10] ss:$28 sps:$4 sm:$0xff]   ;;  %v8507_v13 = vcombine.high %v863_v4, %v871_v6 }
 0x100   :  { %5024 = vmatpush1.bf16.msra.mxu0 %v8376_v15  ;;  %5196 = vmatpush1.bf16.msra.mxu1 %v8378_v16  ;;  %v105_v15 = vld [vmem:[#allocation5 + $0x58] sm:$0xff]  ;;  %v8504_v16 = vcombine.low %v862_v2, %v870_v3 }
 0x101   :  { %5025 = vmatprep.subr.bf16.mxu0 %v8393_v17  ;;  %5197 = vmatprep.subr.bf16.mxu1 %v8395_v21  ;;  %v8506_v17 = vcombine.low %v863_v4, %v871_v6  ;;  %v7743_v19 = vcombine.high %v97_v14, %v105_v15  ;;  %v112_v21 = vld [vmem:[#allocation5 + $0x90] sm:$0xff]  ;;  %v7742_v27 = vcombine.low %v97_v14, %v105_v15  ;;  %v201_v2 = vld [vmem:[#allocation5 + $0x358] sm:$0xff] }
 0x102   :  { %v7757_v28 = vcombine.high %v112_v21, %v120_v22  ;;  %v7756_v34 = vcombine.low %v112_v21, %v120_v22  ;;  %v224_v15 = vld [vmem:[#allocation5 + $0x410] sm:$0xff] }
 0x104   :  { %5026 = vmatpush1.bf16.msra.mxu0 %v8392_v23  ;;  %5198 = vmatpush1.bf16.msra.mxu1 %v8394_v24  ;;  %v8984_v23 = vld [vmem:[#allocation2 + $0x18] ss:$28 sps:$4 sm:$0xff]  }
 0x105   :  { %5027 = vmatprep.subr.bf16.mxu0 %v8409_v25  ;;  %5199 = vmatprep.subr.bf16.mxu1 %v8411_v29  ;;  %v113_v24 = vld [vmem:[#allocation5 + $0x98] sm:$0xff] }
 0x106   :  { %v121_v25 = vld [vmem:[#allocation5 + $0xd8] sm:$0xff] }
 0x107   :  { %v7759_v29 = vcombine.high %v113_v24, %v121_v25  ;;  %v7758_v35 = vcombine.low %v113_v24, %v121_v25  ;;  %v240_v24 = vld [vmem:[#allocation5 + $0x490] sm:$0xff] }
 0x108   :  { %5028 = vmatpush1.bf16.msra.mxu0 %v8408_v31  ;;  %5200 = vmatpush1.bf16.msra.mxu1 %v8410_v32  ;;  %v136_v31 = vld [vmem:[#allocation5 + $0x150] sm:$0xff]  ;;  %v129_v32 = vld [vmem:[#allocation5 + $0x118] sm:$0xff] }
 0x109   :  { %5029 = vmatprep.subr.bf16.mxu0 %v8425_v33  ;;  %5201 = vmatprep.subr.bf16.mxu1 %v8427_v37  ;;  %v137_v33 = vld [vmem:[#allocation5 + $0x158] sm:$0xff]  ;;  %v7773_v36 = vcombine.high %v128_v30, %v136_v31  ;;  %v7772_v43 = vcombine.low %v128_v30, %v136_v31  ;;  %v248_v25 = vld [vmem:[#allocation5 + $0x4d0] sm:$0xff] }
 0x10a   :  { %v7775_v37 = vcombine.high %v129_v32, %v137_v33  ;;  %v7774_v44 = vcombine.low %v129_v32, %v137_v33  ;;  %v7885_v30 = vcombine.high %v240_v24, %v248_v25  ;;  %v256_v32 = vld [vmem:[#allocation5 + $0x510] sm:$0xff] }
 0x10b   :  { %v264_v33 = vld [vmem:[#allocation5 + $0x550] sm:$0xff] }
 0x10c   :  { %5030 = vmatpush1.bf16.msra.mxu0 %v8424_v39  ;;  %5202 = vmatpush1.bf16.msra.mxu1 %v8426_v40  ;;  %v152_v39 = vld [vmem:[#allocation5 + $0x1d0] sm:$0xff]  ;;  %v9153_v40 = vld [vmem:[#allocation2 + $0x4] ss:$28 sps:$4 sm:$0xff]  }
 0x10d   :  { %5031 = vmatprep.subr.bf16.mxu0 %v8441_v41  ;;  %5203 = vmatprep.subr.bf16.mxu1 %v8443_v45  ;;  %v145_v41 = vld [vmem:[#allocation5 + $0x198] sm:$0xff]  ;;  %v7789_v45 = vcombine.high %v144_v38, %v152_v39  ;;  %v7788_v51 = vcombine.low %v144_v38, %v152_v39  ;;  %v7901_v38 = vcombine.high %v256_v32, %v264_v33 }
 0x10e   :  { %v7791_v46 = vcombine.high %v145_v41, %v153_v42  ;;  %v7790_v52 = vcombine.low %v145_v41, %v153_v42  ;;  %v280_v41 = vld [vmem:[#allocation5 + $0x5d0] sm:$0xff]  ;;  %v273_v42 = vld [vmem:[#allocation5 + $0x598] sm:$0xff] }
 0x110   :  { %5032 = vmatpush1.bf16.msra.mxu0 %v8440_v47  ;;  %5204 = vmatpush1.bf16.msra.mxu1 %v8442_v48  ;;  %v160_v47 = vld [vmem:[#allocation5 + $0x210] sm:$0xff] }
 0x111   :  { %5033 = vmatprep.subr.bf16.mxu0 %v8457_v49  ;;  %5205 = vmatprep.subr.bf16.mxu1 %v8459_v53  ;;  %v168_v48 = vld [vmem:[#allocation5 + $0x250] sm:$0xff]  ;;  %v161_v49 = vld [vmem:[#allocation5 + $0x218] sm:$0xff] }
 0x112   :  { %v7805_v53 = vcombine.high %v160_v47, %v168_v48  ;;  %v7807_v54 = vcombine.high %v161_v49, %v169_v50  ;;  %v7804_v59 = vcombine.low %v160_v47, %v168_v48  ;;  %v7806_v60 = vcombine.low %v161_v49, %v169_v50  ;;  %v288_v48 = vld [vmem:[#allocation5 + $0x610] sm:$0xff]  ;;  %v289_v50 = vld [vmem:[#allocation5 + $0x618] sm:$0xff] }
 0x113   :  { %v296_v49 = vld [vmem:[#allocation5 + $0x650] sm:$0xff] }
 0x114   :  { %5034 = vmatpush1.bf16.msra.mxu0 %v8456_v55  ;;  %5206 = vmatpush1.bf16.msra.mxu1 %v8458_v56  ;;  %v176_v55 = vld [vmem:[#allocation5 + $0x290] sm:$0xff] }
 0x115   :  { %5035 = vmatprep.subr.bf16.mxu0 %v8473_v57  ;;  %5207 = vmatprep.subr.bf16.mxu1 %v8475_v61  ;;  %v184_v56 = vld [vmem:[#allocation5 + $0x2d0] sm:$0xff]  ;;  %v177_v57 = vld [vmem:[#allocation5 + $0x298] sm:$0xff] }
 0x116   :  { %v7821_v61 = vcombine.high %v176_v55, %v184_v56  ;;  %v7823_v62 = vcombine.high %v177_v57, %v185_v58  ;;  %v7820_v3 = vcombine.low %v176_v55, %v184_v56  ;;  %v7822_v4 = vcombine.low %v177_v57, %v185_v58  ;;  %v304_v56 = vld [vmem:[#allocation5 + $0x690] sm:$0xff]  ;;  %v305_v58 = vld [vmem:[#allocation5 + $0x698] sm:$0xff] }
 0x117   :  { %v312_v57 = vld [vmem:[#allocation5 + $0x6d0] sm:$0xff] }
 0x118   :  { %5036 = vmatpush1.bf16.msra.mxu0 %v8472_v63  ;;  %5208 = vmatpush1.bf16.msra.mxu1 %v8474_v0  ;;  %v192_v63 = vld [vmem:[#allocation5 + $0x310] sm:$0xff] }
 0x119   :  { %5037 = vmatprep.subr.bf16.mxu0 %v8489_v1  ;;  %5209 = vmatprep.subr.bf16.mxu1 %v8491_v5  ;;  %v200_v0 = vld [vmem:[#allocation5 + $0x350] sm:$0xff]  ;;  %v193_v1 = vld [vmem:[#allocation5 + $0x318] sm:$0xff] }
 0x11a   :  { %v7837_v5 = vcombine.high %v192_v63, %v200_v0  ;;  %v7839_v6 = vcombine.high %v193_v1, %v201_v2  ;;  %v7836_v11 = vcombine.low %v192_v63, %v200_v0  ;;  %v7838_v12 = vcombine.low %v193_v1, %v201_v2  ;;  %v320_v0 = vld [vmem:[#allocation5 + $0x710] sm:$0xff]  ;;  %v321_v2 = vld [vmem:[#allocation5 + $0x718] sm:$0xff] }
 0x11b   :  { %v328_v1 = vld [vmem:[#allocation5 + $0x750] sm:$0xff] }
 0x11c   :  { %5038 = vmatpush1.bf16.msra.mxu0 %v8488_v7  ;;  %5210 = vmatpush1.bf16.msra.mxu1 %v8490_v8  ;;  %v208_v7 = vld [vmem:[#allocation5 + $0x390] sm:$0xff] }
 0x11d   :  { %5050 = vmatprep.subr.bf16.mxu0 %v8505_v10  ;;  %5222 = vmatprep.subr.bf16.mxu1 %v8507_v13  ;;  %v216_v8 = vld [vmem:[#allocation5 + $0x3d0] sm:$0xff]  ;;  %v217_v10 = vld [vmem:[#allocation5 + $0x3d8] sm:$0xff] }
 0x11e   :  { %v7853_v13 = vcombine.high %v208_v7, %v216_v8 }
 0x11f   :  { %5040 = vmatmul.mubr.bf16.vlgmr.msra.gmra.mrb[0].mxu0 %v8983_v9  ;;  %5212 = vmatmul.mubr.bf16.vlgmr.msra.gmra.mrb[0].mxu1 %v8983_v9  ;;  %v209_v9 = vld [vmem:[#allocation5 + $0x398] sm:$0xff] }
 0x120   :  { %5051 = vmatpush1.bf16.msra.mxu0 %v8504_v16  ;;  %5223 = vmatpush1.bf16.msra.mxu1 %v8506_v17  ;;  %v7855_v14 = vcombine.high %v209_v9, %v217_v10  ;;  %v232_v16 = vld [vmem:[#allocation5 + $0x450] sm:$0xff]  ;;  %v225_v17 = vld [vmem:[#allocation5 + $0x418] sm:$0xff]  ;;  %v7854_v21 = vcombine.low %v209_v9, %v217_v10 }
 0x121   :  { %5082 = vmatprep.mubr.bf16.mxu0 %v9325_v20  ;;  %5254 = vmatprep.mubr.bf16.mxu1 %v9325_v20  ;;  %v7869_v22 = vcombine.high %v224_v15, %v232_v16  ;;  %v344_v9 = vld [vmem:[#allocation5 + $0x7d0] sm:$0xff]  ;;  %v337_v10 = vld [vmem:[#allocation5 + $0x798] sm:$0xff] }
 0x122   :  { %5265 = vmatprep.subr.bf16.mxu0 %v7741_v18  ;;  %5437 = vmatprep.subr.bf16.mxu1 %v7743_v19  ;;  %v233_v18 = vld [vmem:[#allocation5 + $0x458] sm:$0xff]  ;;  %v7852_v19 = vcombine.low %v208_v7, %v216_v8  ;;  %v336_v8 = vld [vmem:[#allocation5 + $0x790] sm:$0xff] }
 0x12b   :  { %8520 = vmatmul.mubr.msk.bf16.vlgmr.msra.gmra.mrb[0].mxu0 %vm4917_vm0, %v8984_v23  ;;  %8521 = vmatmul.mubr.msk.bf16.vlgmr.msra.gmra.mrb[0].mxu1 %vm4917_vm0, %v8984_v23  ;;  %v7871_v23 = vcombine.high %v225_v17, %v233_v18 }
 0x12c   :  { %5266 = vmatpush1.bf16.msra.mxu0 %v7740_v26  ;;  %5438 = vmatpush1.bf16.msra.mxu1 %v7742_v27  ;;  %v241_v26 = vld [vmem:[#allocation5 + $0x498] sm:$0xff] }
 0x12d   :  { %5267 = vmatprep.subr.bf16.mxu0 %v7757_v28  ;;  %5439 = vmatprep.subr.bf16.mxu1 %v7759_v29  ;;  %v249_v27 = vld [vmem:[#allocation5 + $0x4d8] sm:$0xff]  ;;  %v7868_v28 = vcombine.low %v224_v15, %v232_v16  ;;  %v7870_v29 = vcombine.low %v225_v17, %v233_v18  ;;  %v352_v16 = vld [vmem:[#allocation5 + $0x810] sm:$0xff] }
 0x12e   :  { %5297 = vmatprep.mubr.bf16.mxu0 %v9153_v40  ;;  %5469 = vmatprep.mubr.bf16.mxu1 %v9153_v40  ;;  %v7887_v31 = vcombine.high %v241_v26, %v249_v27  ;;  %v272_v40 = vld [vmem:[#allocation5 + $0x590] sm:$0xff]  ;;  %v353_v18 = vld [vmem:[#allocation5 + $0x818] sm:$0xff] }
 0x12f   :  { %v360_v17 = vld [vmem:[#allocation5 + $0x850] sm:$0xff] }
 0x130   :  { %5268 = vmatpush1.bf16.msra.mxu0 %v7756_v34  ;;  %5440 = vmatpush1.bf16.msra.mxu1 %v7758_v35  ;;  %v257_v34 = vld [vmem:[#allocation5 + $0x518] sm:$0xff] }
 0x131   :  { %5269 = vmatprep.subr.bf16.mxu0 %v7773_v36  ;;  %5441 = vmatprep.subr.bf16.mxu1 %v7775_v37  ;;  %v265_v35 = vld [vmem:[#allocation5 + $0x558] sm:$0xff]  ;;  %v7884_v36 = vcombine.low %v240_v24, %v248_v25  ;;  %v7886_v37 = vcombine.low %v241_v26, %v249_v27  ;;  %v368_v25 = vld [vmem:[#allocation5 + $0x890] sm:$0xff] }
 0x132   :  { %v7903_v39 = vcombine.high %v257_v34, %v265_v35  ;;  %v376_v26 = vld [vmem:[#allocation5 + $0x8d0] sm:$0xff]  ;;  %v369_v27 = vld [vmem:[#allocation5 + $0x898] sm:$0xff] }
 0x134   :  { %5270 = vmatpush1.bf16.msra.mxu0 %v7772_v43  ;;  %5442 = vmatpush1.bf16.msra.mxu1 %v7774_v44  ;;  %v281_v43 = vld [vmem:[#allocation5 + $0x5d8] sm:$0xff]  ;;  %v7900_v44 = vcombine.low %v256_v32, %v264_v33  ;;  %v384_v33 = vld [vmem:[#allocation5 + $0x910] sm:$0xff] }
 0x135   :  { %5271 = vmatprep.subr.bf16.mxu0 %v7789_v45  ;;  %5443 = vmatprep.subr.bf16.mxu1 %v7791_v46  ;;  %v7902_v45 = vcombine.low %v257_v34, %v265_v35  ;;  %v7917_v46 = vcombine.high %v272_v40, %v280_v41  ;;  %v7919_v47 = vcombine.high %v273_v42, %v281_v43  ;;  %v392_v34 = vld [vmem:[#allocation5 + $0x950] sm:$0xff]  ;;  %v9154_v35 = vld [vmem:[#allocation2] ss:$28 sps:$4 sm:$0xff]  }
 0x138   :  { %5272 = vmatpush1.bf16.msra.mxu0 %v7788_v51  ;;  %5444 = vmatpush1.bf16.msra.mxu1 %v7790_v52  ;;  %v297_v51 = vld [vmem:[#allocation5 + $0x658] sm:$0xff]  ;;  %v7916_v52 = vcombine.low %v272_v40, %v280_v41  ;;  %v8029_v40 = vcombine.high %v384_v33, %v392_v34 }
 0x139   :  { %5273 = vmatprep.subr.bf16.mxu0 %v7805_v53  ;;  %5445 = vmatprep.subr.bf16.mxu1 %v7807_v54  ;;  %v7918_v53 = vcombine.low %v273_v42, %v281_v43  ;;  %v7933_v54 = vcombine.high %v288_v48, %v296_v49  ;;  %v7935_v55 = vcombine.high %v289_v50, %v297_v51  ;;  %v400_v42 = vld [vmem:[#allocation5 + $0x990] sm:$0xff] }
 0x13a   :  { %v408_v43 = vld [vmem:[#allocation5 + $0x9d0] sm:$0xff] }
 0x13c   :  { %5274 = vmatpush1.bf16.msra.mxu0 %v7804_v59  ;;  %5446 = vmatpush1.bf16.msra.mxu1 %v7806_v60  ;;  %v313_v59 = vld [vmem:[#allocation5 + $0x6d8] sm:$0xff]  ;;  %v7932_v60 = vcombine.low %v288_v48, %v296_v49  ;;  %v8045_v49 = vcombine.high %v400_v42, %v408_v43 }
 0x13d   :  { %5275 = vmatprep.subr.bf16.mxu0 %v7821_v61  ;;  %5447 = vmatprep.subr.bf16.mxu1 %v7823_v62  ;;  %v7934_v61 = vcombine.low %v289_v50, %v297_v51  ;;  %v7949_v62 = vcombine.high %v304_v56, %v312_v57  ;;  %v7951_v63 = vcombine.high %v305_v58, %v313_v59  ;;  %v416_v51 = vld [vmem:[#allocation5 + $0xa10] sm:$0xff] }
 0x140   :  { %5276 = vmatpush1.bf16.msra.mxu0 %v7820_v3  ;;  %5448 = vmatpush1.bf16.msra.mxu1 %v7822_v4  ;;  %v329_v3 = vld [vmem:[#allocation5 + $0x758] sm:$0xff]  ;;  %v7948_v4 = vcombine.low %v304_v56, %v312_v57 }
 0x141   :  { %5277 = vmatprep.subr.bf16.mxu0 %v7837_v5  ;;  %5449 = vmatprep.subr.bf16.mxu1 %v7839_v6  ;;  %v7950_v5 = vcombine.low %v305_v58, %v313_v59  ;;  %v7965_v6 = vcombine.high %v320_v0, %v328_v1  ;;  %v7967_v7 = vcombine.high %v321_v2, %v329_v3  ;;  %v432_v59 = vld [vmem:[#allocation5 + $0xa90] sm:$0xff] }
 0x144   :  { %5278 = vmatpush1.bf16.msra.mxu0 %v7836_v11  ;;  %5450 = vmatpush1.bf16.msra.mxu1 %v7838_v12  ;;  %v345_v11 = vld [vmem:[#allocation5 + $0x7d8] sm:$0xff]  ;;  %v7964_v12 = vcombine.low %v320_v0, %v328_v1 }
 0x145   :  { %5279 = vmatprep.subr.bf16.mxu0 %v7853_v13  ;;  %5451 = vmatprep.subr.bf16.mxu1 %v7855_v14  ;;  %v7966_v13 = vcombine.low %v321_v2, %v329_v3  ;;  %v7981_v14 = vcombine.high %v336_v8, %v344_v9  ;;  %v7983_v15 = vcombine.high %v337_v10, %v345_v11  ;;  %v448_v3 = vld [vmem:[#allocation5 + $0xb10] sm:$0xff] }
 0x148   :  { %5280 = vmatpush1.bf16.msra.mxu0 %v7852_v19  ;;  %5452 = vmatpush1.bf16.msra.mxu1 %v7854_v21  ;;  %v361_v19 = vld [vmem:[#allocation5 + $0x858] sm:$0xff]  ;;  %v7980_v21 = vcombine.low %v336_v8, %v344_v9 }
 0x149   :  { %5281 = vmatprep.subr.bf16.mxu0 %v7869_v22  ;;  %5453 = vmatprep.subr.bf16.mxu1 %v7871_v23  ;;  %v7982_v22 = vcombine.low %v337_v10, %v345_v11  ;;  %v7997_v23 = vcombine.high %v352_v16, %v360_v17  ;;  %v7999_v24 = vcombine.high %v353_v18, %v361_v19  ;;  %v464_v11 = vld [vmem:[#allocation5 + $0xb90] sm:$0xff] }
 0x14c   :  { %5282 = vmatpush1.bf16.msra.mxu0 %v7868_v28  ;;  %5454 = vmatpush1.bf16.msra.mxu1 %v7870_v29  ;;  %v377_v28 = vld [vmem:[#allocation5 + $0x8d8] sm:$0xff]  ;;  %v7996_v29 = vcombine.low %v352_v16, %v360_v17 }
 0x14d   :  { %5283 = vmatprep.subr.bf16.mxu0 %v7885_v30  ;;  %5455 = vmatprep.subr.bf16.mxu1 %v7887_v31  ;;  %v7998_v30 = vcombine.low %v353_v18, %v361_v19  ;;  %v8013_v31 = vcombine.high %v368_v25, %v376_v26  ;;  %v8015_v32 = vcombine.high %v369_v27, %v377_v28  ;;  %v480_v19 = vld [vmem:[#allocation5 + $0xc10] sm:$0xff] }
 0x150   :  { %5284 = vmatpush1.bf16.msra.mxu0 %v7884_v36  ;;  %5456 = vmatpush1.bf16.msra.mxu1 %v7886_v37  ;;  %v385_v36 = vld [vmem:[#allocation5 + $0x918] sm:$0xff] }
 0x151   :  { %5285 = vmatprep.subr.bf16.mxu0 %v7901_v38  ;;  %5457 = vmatprep.subr.bf16.mxu1 %v7903_v39  ;;  %v393_v37 = vld [vmem:[#allocation5 + $0x958] sm:$0xff]  ;;  %v8012_v38 = vcombine.low %v368_v25, %v376_v26  ;;  %v8014_v39 = vcombine.low %v369_v27, %v377_v28  ;;  %v496_v28 = vld [vmem:[#allocation5 + $0xc90] sm:$0xff] }
 0x152   :  { %v8031_v41 = vcombine.high %v385_v36, %v393_v37  ;;  %v8030_v48 = vcombine.low %v385_v36, %v393_v37  ;;  %v512_v36 = vld [vmem:[#allocation5 + $0xd10] sm:$0xff] }
 0x153   :  { %v520_v37 = vld [vmem:[#allocation5 + $0xd50] sm:$0xff] }
 0x154   :  { %5286 = vmatpush1.bf16.msra.mxu0 %v7900_v44  ;;  %5458 = vmatpush1.bf16.msra.mxu1 %v7902_v45  ;;  %v9155_v44 = vld [vmem:[#allocation2 + $0xc] ss:$28 sps:$4 sm:$0xff]   ;;  %v401_v45 = vld [vmem:[#allocation5 + $0x998] sm:$0xff] }
 0x155   :  { %5287 = vmatprep.subr.bf16.mxu0 %v7917_v46  ;;  %5459 = vmatprep.subr.bf16.mxu1 %v7919_v47  ;;  %v409_v46 = vld [vmem:[#allocation5 + $0x9d8] sm:$0xff]  ;;  %v8028_v47 = vcombine.low %v384_v33, %v392_v34 }
 0x156   :  { %v8047_v50 = vcombine.high %v401_v45, %v409_v46  ;;  %v8046_v56 = vcombine.low %v401_v45, %v409_v46  ;;  %v536_v45 = vld [vmem:[#allocation5 + $0xdd0] sm:$0xff]  ;;  %v529_v46 = vld [vmem:[#allocation5 + $0xd98] sm:$0xff] }
 0x158   :  { %5288 = vmatpush1.bf16.msra.mxu0 %v7916_v52  ;;  %5460 = vmatpush1.bf16.msra.mxu1 %v7918_v53  ;;  %v424_v52 = vld [vmem:[#allocation5 + $0xa50] sm:$0xff]  ;;  %v417_v53 = vld [vmem:[#allocation5 + $0xa18] sm:$0xff] }
 0x159   :  { %5289 = vmatprep.subr.bf16.mxu0 %v7933_v54  ;;  %5461 = vmatprep.subr.bf16.mxu1 %v7935_v55  ;;  %v425_v54 = vld [vmem:[#allocation5 + $0xa58] sm:$0xff]  ;;  %v8044_v55 = vcombine.low %v400_v42, %v408_v43  ;;  %v8061_v57 = vcombine.high %v416_v51, %v424_v52  ;;  %v8157_v42 = vcombine.high %v512_v36, %v520_v37 }
 0x15a   :  { %v8063_v58 = vcombine.high %v417_v53, %v425_v54  ;;  %v8062_v0 = vcombine.low %v417_v53, %v425_v54  ;;  %v552_v53 = vld [vmem:[#allocation5 + $0xe50] sm:$0xff]  ;;  %v545_v54 = vld [vmem:[#allocation5 + $0xe18] sm:$0xff] }
 0x15c   :  { %5290 = vmatpush1.bf16.msra.mxu0 %v7932_v60  ;;  %5462 = vmatpush1.bf16.msra.mxu1 %v7934_v61  ;;  %v440_v60 = vld [vmem:[#allocation5 + $0xad0] sm:$0xff]  ;;  %v433_v61 = vld [vmem:[#allocation5 + $0xa98] sm:$0xff] }
 0x15d   :  { %5291 = vmatprep.subr.bf16.mxu0 %v7949_v62  ;;  %5463 = vmatprep.subr.bf16.mxu1 %v7951_v63  ;;  %v441_v62 = vld [vmem:[#allocation5 + $0xad8] sm:$0xff]  ;;  %v8060_v63 = vcombine.low %v416_v51, %v424_v52  ;;  %v8077_v1 = vcombine.high %v432_v59, %v440_v60  ;;  %v544_v52 = vld [vmem:[#allocation5 + $0xe10] sm:$0xff] }
 0x15e   :  { %v8079_v2 = vcombine.high %v433_v61, %v441_v62  ;;  %v8078_v8 = vcombine.low %v433_v61, %v441_v62  ;;  %v568_v61 = vld [vmem:[#allocation5 + $0xed0] sm:$0xff]  ;;  %v561_v62 = vld [vmem:[#allocation5 + $0xe98] sm:$0xff] }
 0x160   :  { %5292 = vmatpush1.bf16.msra.mxu0 %v7948_v4  ;;  %5464 = vmatpush1.bf16.msra.mxu1 %v7950_v5  ;;  %v456_v4 = vld [vmem:[#allocation5 + $0xb50] sm:$0xff]  ;;  %v449_v5 = vld [vmem:[#allocation5 + $0xb18] sm:$0xff] }
 0x161   :  { %5293 = vmatprep.subr.bf16.mxu0 %v7965_v6  ;;  %5465 = vmatprep.subr.bf16.mxu1 %v7967_v7  ;;  %v457_v6 = vld [vmem:[#allocation5 + $0xb58] sm:$0xff]  ;;  %v8076_v7 = vcombine.low %v432_v59, %v440_v60  ;;  %v8093_v9 = vcombine.high %v448_v3, %v456_v4  ;;  %v560_v60 = vld [vmem:[#allocation5 + $0xe90] sm:$0xff] }
 0x162   :  { %v8095_v10 = vcombine.high %v449_v5, %v457_v6  ;;  %v8094_v16 = vcombine.low %v449_v5, %v457_v6  ;;  %v584_v5 = vld [vmem:[#allocation5 + $0xf50] sm:$0xff]  ;;  %v577_v6 = vld [vmem:[#allocation5 + $0xf18] sm:$0xff] }
 0x164   :  { %5294 = vmatpush1.bf16.msra.mxu0 %v7964_v12  ;;  %5466 = vmatpush1.bf16.msra.mxu1 %v7966_v13  ;;  %v472_v12 = vld [vmem:[#allocation5 + $0xbd0] sm:$0xff]  ;;  %v465_v13 = vld [vmem:[#allocation5 + $0xb98] sm:$0xff] }
 0x165   :  { %5295 = vmatprep.subr.bf16.mxu0 %v7981_v14  ;;  %5467 = vmatprep.subr.bf16.mxu1 %v7983_v15  ;;  %v473_v14 = vld [vmem:[#allocation5 + $0xbd8] sm:$0xff]  ;;  %v8092_v15 = vcombine.low %v448_v3, %v456_v4  ;;  %v8109_v17 = vcombine.high %v464_v11, %v472_v12  ;;  %v576_v4 = vld [vmem:[#allocation5 + $0xf10] sm:$0xff] }
 0x166   :  { %v8111_v18 = vcombine.high %v465_v13, %v473_v14  ;;  %v8110_v25 = vcombine.low %v465_v13, %v473_v14  ;;  %v600_v13 = vld [vmem:[#allocation5 + $0xfd0] sm:$0xff]  ;;  %v593_v14 = vld [vmem:[#allocation5 + $0xf98] sm:$0xff] }
 0x168   :  { %5296 = vmatpush1.bf16.msra.mxu0 %v7980_v21  ;;  %5468 = vmatpush1.bf16.msra.mxu1 %v7982_v22  ;;  %v488_v21 = vld [vmem:[#allocation5 + $0xc50] sm:$0xff]  ;;  %v481_v22 = vld [vmem:[#allocation5 + $0xc18] sm:$0xff] }
 0x169   :  { %5308 = vmatprep.subr.bf16.mxu0 %v7997_v23  ;;  %5480 = vmatprep.subr.bf16.mxu1 %v7999_v24  ;;  %v489_v23 = vld [vmem:[#allocation5 + $0xc58] sm:$0xff]  ;;  %v8108_v24 = vcombine.low %v464_v11, %v472_v12  ;;  %v8125_v26 = vcombine.high %v480_v19, %v488_v21  ;;  %v592_v12 = vld [vmem:[#allocation5 + $0xf90] sm:$0xff] }
 0x16a   :  { %v8127_v27 = vcombine.high %v481_v22, %v489_v23  ;;  %v8126_v33 = vcombine.low %v481_v22, %v489_v23  ;;  %v616_v22 = vld [vmem:[#allocation5 + $0x1050] sm:$0xff]  ;;  %v609_v23 = vld [vmem:[#allocation5 + $0x1018] sm:$0xff] }
 0x16b   :  { %5298 = vmatmul.mubr.bf16.vlgmr.msra.gmra.mrb[4].mxu0 %v9154_v35  ;;  %5470 = vmatmul.mubr.bf16.vlgmr.msra.gmra.mrb[4].mxu1 %v9154_v35 }
 0x16c   :  { %5309 = vmatpush1.bf16.msra.mxu0 %v7996_v29  ;;  %5481 = vmatpush1.bf16.msra.mxu1 %v7998_v30  ;;  %v504_v29 = vld [vmem:[#allocation5 + $0xcd0] sm:$0xff]  ;;  %v497_v30 = vld [vmem:[#allocation5 + $0xc98] sm:$0xff] }
 0x16d   :  { %5310 = vmatprep.subr.bf16.mxu0 %v8013_v31  ;;  %5482 = vmatprep.subr.bf16.mxu1 %v8015_v32  ;;  %v505_v31 = vld [vmem:[#allocation5 + $0xcd8] sm:$0xff]  ;;  %v8124_v32 = vcombine.low %v480_v19, %v488_v21  ;;  %v8141_v34 = vcombine.high %v496_v28, %v504_v29  ;;  %v608_v21 = vld [vmem:[#allocation5 + $0x1010] sm:$0xff] }
 0x16e   :  { %5340 = vmatprep.mubr.bf16.mxu0 %v9155_v44  ;;  %5512 = vmatprep.mubr.bf16.mxu1 %v9155_v44  ;;  %v8143_v35 = vcombine.high %v497_v30, %v505_v31  ;;  %v528_v44 = vld [vmem:[#allocation5 + $0xd90] sm:$0xff] }
 0x170   :  { %5311 = vmatpush1.bf16.msra.mxu0 %v8012_v38  ;;  %5483 = vmatpush1.bf16.msra.mxu1 %v8014_v39  ;;  %v513_v38 = vld [vmem:[#allocation5 + $0xd18] sm:$0xff] }
 0x171   :  { %5312 = vmatprep.subr.bf16.mxu0 %v8029_v40  ;;  %5484 = vmatprep.subr.bf16.mxu1 %v8031_v41  ;;  %v521_v39 = vld [vmem:[#allocation5 + $0xd58] sm:$0xff]  ;;  %v8140_v40 = vcombine.low %v496_v28, %v504_v29  ;;  %v8142_v41 = vcombine.low %v497_v30, %v505_v31  ;;  %v624_v29 = vld [vmem:[#allocation5 + $0x1090] sm:$0xff] }
 0x172   :  { %v8159_v43 = vcombine.high %v513_v38, %v521_v39  ;;  %v632_v30 = vld [vmem:[#allocation5 + $0x10d0] sm:$0xff]  ;;  %v625_v31 = vld [vmem:[#allocation5 + $0x1098] sm:$0xff] }
 0x174   :  { %5313 = vmatpush1.bf16.msra.mxu0 %v8028_v47  ;;  %5485 = vmatpush1.bf16.msra.mxu1 %v8030_v48  ;;  %v537_v47 = vld [vmem:[#allocation5 + $0xdd8] sm:$0xff]  ;;  %v8156_v48 = vcombine.low %v512_v36, %v520_v37  ;;  %v640_v37 = vld [vmem:[#allocation5 + $0x1110] sm:$0xff] }
 0x175   :  { %5314 = vmatprep.subr.bf16.mxu0 %v8045_v49  ;;  %5486 = vmatprep.subr.bf16.mxu1 %v8047_v50  ;;  %v8158_v49 = vcombine.low %v513_v38, %v521_v39  ;;  %v8173_v50 = vcombine.high %v528_v44, %v536_v45  ;;  %v8175_v51 = vcombine.high %v529_v46, %v537_v47  ;;  %v648_v38 = vld [vmem:[#allocation5 + $0x1150] sm:$0xff] }
 0x176   :  { %v9156_v39 = vld [vmem:[#allocation2 + $0x8] ss:$28 sps:$4 sm:$0xff]  }
 0x178   :  { %5315 = vmatpush1.bf16.msra.mxu0 %v8044_v55  ;;  %5487 = vmatpush1.bf16.msra.mxu1 %v8046_v56  ;;  %v553_v55 = vld [vmem:[#allocation5 + $0xe58] sm:$0xff]  ;;  %v8172_v56 = vcombine.low %v528_v44, %v536_v45  ;;  %v8285_v44 = vcombine.high %v640_v37, %v648_v38 }
 0x179   :  { %5316 = vmatprep.subr.bf16.mxu0 %v8061_v57  ;;  %5488 = vmatprep.subr.bf16.mxu1 %v8063_v58  ;;  %v8174_v57 = vcombine.low %v529_v46, %v537_v47  ;;  %v8189_v58 = vcombine.high %v544_v52, %v552_v53  ;;  %v8191_v59 = vcombine.high %v545_v54, %v553_v55  ;;  %v656_v46 = vld [vmem:[#allocation5 + $0x1190] sm:$0xff] }
 0x17a   :  { %v664_v47 = vld [vmem:[#allocation5 + $0x11d0] sm:$0xff] }
 0x17c   :  { %5317 = vmatpush1.bf16.msra.mxu0 %v8060_v63  ;;  %5489 = vmatpush1.bf16.msra.mxu1 %v8062_v0  ;;  %v569_v63 = vld [vmem:[#allocation5 + $0xed8] sm:$0xff]  ;;  %v8188_v0 = vcombine.low %v544_v52, %v552_v53  ;;  %v8301_v53 = vcombine.high %v656_v46, %v664_v47 }
 0x17d   :  { %5318 = vmatprep.subr.bf16.mxu0 %v8077_v1  ;;  %5490 = vmatprep.subr.bf16.mxu1 %v8079_v2  ;;  %v8190_v1 = vcombine.low %v545_v54, %v553_v55  ;;  %v8205_v2 = vcombine.high %v560_v60, %v568_v61  ;;  %v8207_v3 = vcombine.high %v561_v62, %v569_v63  ;;  %v672_v55 = vld [vmem:[#allocation5 + $0x1210] sm:$0xff] }
 0x180   :  { %5319 = vmatpush1.bf16.msra.mxu0 %v8076_v7  ;;  %5491 = vmatpush1.bf16.msra.mxu1 %v8078_v8  ;;  %v585_v7 = vld [vmem:[#allocation5 + $0xf58] sm:$0xff]  ;;  %v8204_v8 = vcombine.low %v560_v60, %v568_v61 }
 0x181   :  { %5320 = vmatprep.subr.bf16.mxu0 %v8093_v9  ;;  %5492 = vmatprep.subr.bf16.mxu1 %v8095_v10  ;;  %v8206_v9 = vcombine.low %v561_v62, %v569_v63  ;;  %v8221_v10 = vcombine.high %v576_v4, %v584_v5  ;;  %v8223_v11 = vcombine.high %v577_v6, %v585_v7  ;;  %v688_v63 = vld [vmem:[#allocation5 + $0x1290] sm:$0xff] }
 0x184   :  { %5321 = vmatpush1.bf16.msra.mxu0 %v8092_v15  ;;  %5493 = vmatpush1.bf16.msra.mxu1 %v8094_v16  ;;  %v601_v15 = vld [vmem:[#allocation5 + $0xfd8] sm:$0xff]  ;;  %v8220_v16 = vcombine.low %v576_v4, %v584_v5 }
 0x185   :  { %5322 = vmatprep.subr.bf16.mxu0 %v8109_v17  ;;  %5494 = vmatprep.subr.bf16.mxu1 %v8111_v18  ;;  %v8222_v17 = vcombine.low %v577_v6, %v585_v7  ;;  %v8237_v18 = vcombine.high %v592_v12, %v600_v13  ;;  %v8239_v19 = vcombine.high %v593_v14, %v601_v15  ;;  %v704_v7 = vld [vmem:[#allocation5 + $0x1310] sm:$0xff] }
 0x188   :  { %5323 = vmatpush1.bf16.msra.mxu0 %v8108_v24  ;;  %5495 = vmatpush1.bf16.msra.mxu1 %v8110_v25  ;;  %v617_v24 = vld [vmem:[#allocation5 + $0x1058] sm:$0xff]  ;;  %v8236_v25 = vcombine.low %v592_v12, %v600_v13 }
 0x189   :  { %5324 = vmatprep.subr.bf16.mxu0 %v8125_v26  ;;  %5496 = vmatprep.subr.bf16.mxu1 %v8127_v27  ;;  %v8238_v26 = vcombine.low %v593_v14, %v601_v15  ;;  %v8253_v27 = vcombine.high %v608_v21, %v616_v22  ;;  %v8255_v28 = vcombine.high %v609_v23, %v617_v24  ;;  %v720_v15 = vld [vmem:[#allocation5 + $0x1390] sm:$0xff] }
 0x18c   :  { %5325 = vmatpush1.bf16.msra.mxu0 %v8124_v32  ;;  %5497 = vmatpush1.bf16.msra.mxu1 %v8126_v33  ;;  %v633_v32 = vld [vmem:[#allocation5 + $0x10d8] sm:$0xff]  ;;  %v8252_v33 = vcombine.low %v608_v21, %v616_v22 }
 0x18d   :  { %5326 = vmatprep.subr.bf16.mxu0 %v8141_v34  ;;  %5498 = vmatprep.subr.bf16.mxu1 %v8143_v35  ;;  %v8254_v34 = vcombine.low %v609_v23, %v617_v24  ;;  %v8269_v35 = vcombine.high %v624_v29, %v632_v30  ;;  %v8271_v36 = vcombine.high %v625_v31, %v633_v32  ;;  %v736_v24 = vld [vmem:[#allocation5 + $0x1410] sm:$0xff] }
 0x190   :  { %5327 = vmatpush1.bf16.msra.mxu0 %v8140_v40  ;;  %5499 = vmatpush1.bf16.msra.mxu1 %v8142_v41  ;;  %v641_v40 = vld [vmem:[#allocation5 + $0x1118] sm:$0xff] }
 0x191   :  { %5328 = vmatprep.subr.bf16.mxu0 %v8157_v42  ;;  %5500 = vmatprep.subr.bf16.mxu1 %v8159_v43  ;;  %v649_v41 = vld [vmem:[#allocation5 + $0x1158] sm:$0xff]  ;;  %v8268_v42 = vcombine.low %v624_v29, %v632_v30  ;;  %v8270_v43 = vcombine.low %v625_v31, %v633_v32  ;;  %v752_v32 = vld [vmem:[#allocation5 + $0x1490] sm:$0xff] }
 0x192   :  { %v8287_v45 = vcombine.high %v641_v40, %v649_v41  ;;  %v8286_v52 = vcombine.low %v641_v40, %v649_v41  ;;  %v768_v40 = vld [vmem:[#allocation5 + $0x1510] sm:$0xff] }
 0x193   :  { %v776_v41 = vld [vmem:[#allocation5 + $0x1550] sm:$0xff] }
 0x194   :  { %5329 = vmatpush1.bf16.msra.mxu0 %v8156_v48  ;;  %5501 = vmatpush1.bf16.msra.mxu1 %v8158_v49  ;;  %v9157_v48 = vld [vmem:[#allocation2 + $0x14] ss:$28 sps:$4 sm:$0xff]  }
 0x195   :  { %5330 = vmatprep.subr.bf16.mxu0 %v8173_v50  ;;  %5502 = vmatprep.subr.bf16.mxu1 %v8175_v51  ;;  %v657_v49 = vld [vmem:[#allocation5 + $0x1198] sm:$0xff]  ;;  %v8284_v51 = vcombine.low %v640_v37, %v648_v38 }
 0x196   :  { %v665_v50 = vld [vmem:[#allocation5 + $0x11d8] sm:$0xff] }
 0x197   :  { %v8303_v54 = vcombine.high %v657_v49, %v665_v50  ;;  %v8302_v60 = vcombine.low %v657_v49, %v665_v50  ;;  %v792_v49 = vld [vmem:[#allocation5 + $0x15d0] sm:$0xff]  ;;  %v785_v50 = vld [vmem:[#allocation5 + $0x1598] sm:$0xff] }
 0x198   :  { %5331 = vmatpush1.bf16.msra.mxu0 %v8172_v56  ;;  %5503 = vmatpush1.bf16.msra.mxu1 %v8174_v57  ;;  %v680_v56 = vld [vmem:[#allocation5 + $0x1250] sm:$0xff]  ;;  %v673_v57 = vld [vmem:[#allocation5 + $0x1218] sm:$0xff] }
 0x199   :  { %5332 = vmatprep.subr.bf16.mxu0 %v8189_v58  ;;  %5504 = vmatprep.subr.bf16.mxu1 %v8191_v59  ;;  %v681_v58 = vld [vmem:[#allocation5 + $0x1258] sm:$0xff]  ;;  %v8300_v59 = vcombine.low %v656_v46, %v664_v47  ;;  %v8317_v61 = vcombine.high %v672_v55, %v680_v56  ;;  %v8413_v46 = vcombine.high %v768_v40, %v776_v41 }
 0x19a   :  { %v8319_v62 = vcombine.high %v673_v57, %v681_v58  ;;  %v8318_v4 = vcombine.low %v673_v57, %v681_v58  ;;  %v808_v57 = vld [vmem:[#allocation5 + $0x1650] sm:$0xff]  ;;  %v801_v58 = vld [vmem:[#allocation5 + $0x1618] sm:$0xff] }
 0x19c   :  { %5333 = vmatpush1.bf16.msra.mxu0 %v8188_v0  ;;  %5505 = vmatpush1.bf16.msra.mxu1 %v8190_v1  ;;  %v696_v0 = vld [vmem:[#allocation5 + $0x12d0] sm:$0xff]  ;;  %v689_v1 = vld [vmem:[#allocation5 + $0x1298] sm:$0xff] }
 0x19d   :  { %5334 = vmatprep.subr.bf16.mxu0 %v8205_v2  ;;  %5506 = vmatprep.subr.bf16.mxu1 %v8207_v3  ;;  %v697_v2 = vld [vmem:[#allocation5 + $0x12d8] sm:$0xff]  ;;  %v8316_v3 = vcombine.low %v672_v55, %v680_v56  ;;  %v8333_v5 = vcombine.high %v688_v63, %v696_v0  ;;  %v800_v56 = vld [vmem:[#allocation5 + $0x1610] sm:$0xff] }
 0x19e   :  { %v8335_v6 = vcombine.high %v689_v1, %v697_v2  ;;  %v8334_v12 = vcombine.low %v689_v1, %v697_v2  ;;  %v824_v1 = vld [vmem:[#allocation5 + $0x16d0] sm:$0xff]  ;;  %v817_v2 = vld [vmem:[#allocation5 + $0x1698] sm:$0xff] }
 0x1a0   :  { %5335 = vmatpush1.bf16.msra.mxu0 %v8204_v8  ;;  %5507 = vmatpush1.bf16.msra.mxu1 %v8206_v9  ;;  %v712_v8 = vld [vmem:[#allocation5 + $0x1350] sm:$0xff]  ;;  %v705_v9 = vld [vmem:[#allocation5 + $0x1318] sm:$0xff] }
 0x1a1   :  { %5336 = vmatprep.subr.bf16.mxu0 %v8221_v10  ;;  %5508 = vmatprep.subr.bf16.mxu1 %v8223_v11  ;;  %v713_v10 = vld [vmem:[#allocation5 + $0x1358] sm:$0xff]  ;;  %v8332_v11 = vcombine.low %v688_v63, %v696_v0  ;;  %v8349_v13 = vcombine.high %v704_v7, %v712_v8  ;;  %v816_v0 = vld [vmem:[#allocation5 + $0x1690] sm:$0xff] }
 0x1a2   :  { %v8351_v14 = vcombine.high %v705_v9, %v713_v10  ;;  %v8350_v21 = vcombine.low %v705_v9, %v713_v10  ;;  %v840_v9 = vld [vmem:[#allocation5 + $0x1750] sm:$0xff]  ;;  %v833_v10 = vld [vmem:[#allocation5 + $0x1718] sm:$0xff] }
 0x1a4   :  { %5337 = vmatpush1.bf16.msra.mxu0 %v8220_v16  ;;  %5509 = vmatpush1.bf16.msra.mxu1 %v8222_v17  ;;  %v728_v16 = vld [vmem:[#allocation5 + $0x13d0] sm:$0xff]  ;;  %v721_v17 = vld [vmem:[#allocation5 + $0x1398] sm:$0xff] }
 0x1a5   :  { %5338 = vmatprep.subr.bf16.mxu0 %v8237_v18  ;;  %5510 = vmatprep.subr.bf16.mxu1 %v8239_v19  ;;  %v729_v18 = vld [vmem:[#allocation5 + $0x13d8] sm:$0xff]  ;;  %v8348_v19 = vcombine.low %v704_v7, %v712_v8  ;;  %v8365_v22 = vcombine.high %v720_v15, %v728_v16  ;;  %v832_v8 = vld [vmem:[#allocation5 + $0x1710] sm:$0xff] }
 0x1a6   :  { %v8367_v23 = vcombine.high %v721_v17, %v729_v18  ;;  %v8366_v29 = vcombine.low %v721_v17, %v729_v18  ;;  %v856_v17 = vld [vmem:[#allocation5 + $0x17d0] sm:$0xff]  ;;  %v849_v18 = vld [vmem:[#allocation5 + $0x1798] sm:$0xff] }
 0x1a8   :  { %5339 = vmatpush1.bf16.msra.mxu0 %v8236_v25  ;;  %5511 = vmatpush1.bf16.msra.mxu1 %v8238_v26  ;;  %v744_v25 = vld [vmem:[#allocation5 + $0x1450] sm:$0xff]  ;;  %v737_v26 = vld [vmem:[#allocation5 + $0x1418] sm:$0xff] }
 0x1a9   :  { %5351 = vmatprep.subr.bf16.mxu0 %v8253_v27  ;;  %5523 = vmatprep.subr.bf16.mxu1 %v8255_v28  ;;  %v745_v27 = vld [vmem:[#allocation5 + $0x1458] sm:$0xff]  ;;  %v8364_v28 = vcombine.low %v720_v15, %v728_v16  ;;  %v8381_v30 = vcombine.high %v736_v24, %v744_v25  ;;  %v848_v16 = vld [vmem:[#allocation5 + $0x1790] sm:$0xff] }
 0x1aa   :  { %v8383_v31 = vcombine.high %v737_v26, %v745_v27  ;;  %v8382_v37 = vcombine.low %v737_v26, %v745_v27  ;;  %v872_v26 = vld [vmem:[#allocation5 + $0x1850] sm:$0xff]  ;;  %v865_v27 = vld [vmem:[#allocation5 + $0x1818] sm:$0xff] }
 0x1ab   :  { %5341 = vmatmul.mubr.bf16.vlgmr.msra.gmra.mrb[4].mxu0 %v9156_v39  ;;  %5513 = vmatmul.mubr.bf16.vlgmr.msra.gmra.mrb[4].mxu1 %v9156_v39 }
 0x1ac   :  { %5352 = vmatpush1.bf16.msra.mxu0 %v8252_v33  ;;  %5524 = vmatpush1.bf16.msra.mxu1 %v8254_v34  ;;  %v760_v33 = vld [vmem:[#allocation5 + $0x14d0] sm:$0xff]  ;;  %v753_v34 = vld [vmem:[#allocation5 + $0x1498] sm:$0xff] }
 0x1ad   :  { %5353 = vmatprep.subr.bf16.mxu0 %v8269_v35  ;;  %5525 = vmatprep.subr.bf16.mxu1 %v8271_v36  ;;  %v761_v35 = vld [vmem:[#allocation5 + $0x14d8] sm:$0xff]  ;;  %v8380_v36 = vcombine.low %v736_v24, %v744_v25  ;;  %v8397_v38 = vcombine.high %v752_v32, %v760_v33  ;;  %v864_v25 = vld [vmem:[#allocation5 + $0x1810] sm:$0xff] }
 0x1ae   :  { %5383 = vmatprep.mubr.bf16.mxu0 %v9157_v48  ;;  %5555 = vmatprep.mubr.bf16.mxu1 %v9157_v48  ;;  %v8399_v39 = vcombine.high %v753_v34, %v761_v35  ;;  %v784_v48 = vld [vmem:[#allocation5 + $0x1590] sm:$0xff] }
 0x1b0   :  { %5354 = vmatpush1.bf16.msra.mxu0 %v8268_v42  ;;  %5526 = vmatpush1.bf16.msra.mxu1 %v8270_v43  ;;  %v769_v42 = vld [vmem:[#allocation5 + $0x1518] sm:$0xff] }
 0x1b1   :  { %5355 = vmatprep.subr.bf16.mxu0 %v8285_v44  ;;  %5527 = vmatprep.subr.bf16.mxu1 %v8287_v45  ;;  %v777_v43 = vld [vmem:[#allocation5 + $0x1558] sm:$0xff]  ;;  %v8396_v44 = vcombine.low %v752_v32, %v760_v33  ;;  %v8398_v45 = vcombine.low %v753_v34, %v761_v35  ;;  %v98_v33 = vld [vmem:[#allocation5 + $0x20] sm:$0xff]  ;;  %v8508_v35 = vcombine.low %v864_v25, %v872_v26 }
 0x1b2   :  { %v8415_v47 = vcombine.high %v769_v42, %v777_v43  ;;  %v106_v34 = vld [vmem:[#allocation5 + $0x60] sm:$0xff] }
 0x1b4   :  { %5356 = vmatpush1.bf16.msra.mxu0 %v8284_v51  ;;  %5528 = vmatpush1.bf16.msra.mxu1 %v8286_v52  ;;  %v793_v51 = vld [vmem:[#allocation5 + $0x15d8] sm:$0xff]  ;;  %v8412_v52 = vcombine.low %v768_v40, %v776_v41 }
 0x1b5   :  { %5357 = vmatprep.subr.bf16.mxu0 %v8301_v53  ;;  %5529 = vmatprep.subr.bf16.mxu1 %v8303_v54  ;;  %v8414_v53 = vcombine.low %v769_v42, %v777_v43  ;;  %v8429_v54 = vcombine.high %v784_v48, %v792_v49  ;;  %v8431_v55 = vcombine.high %v785_v50, %v793_v51  ;;  %v9158_v40 = vld [vmem:[#allocation2 + $0x10] ss:$28 sps:$4 sm:$0xff]   ;;  %v882_v42 = vlaneseq  ;;  %v114_v43 = vld [vmem:[#allocation5 + $0xa0] sm:$0xff] }
 0x1b8   :  { %5358 = vmatpush1.bf16.msra.mxu0 %v8300_v59  ;;  %5530 = vmatpush1.bf16.msra.mxu1 %v8302_v60  ;;  %v809_v59 = vld [vmem:[#allocation5 + $0x1658] sm:$0xff]  ;;  %v8428_v60 = vcombine.low %v784_v48, %v792_v49 }
 0x1b9   :  { %5359 = vmatprep.subr.bf16.mxu0 %v8317_v61  ;;  %5531 = vmatprep.subr.bf16.mxu1 %v8319_v62  ;;  %v8430_v61 = vcombine.low %v785_v50, %v793_v51  ;;  %v8445_v62 = vcombine.high %v800_v56, %v808_v57  ;;  %v8447_v63 = vcombine.high %v801_v58, %v809_v59  ;;  %v9425_v50 = vshrl.u32 %v882_v42, 7 }
 0x1bc   :  { %5360 = vmatpush1.bf16.msra.mxu0 %v8316_v3  ;;  %5532 = vmatpush1.bf16.msra.mxu1 %v8318_v4  ;;  %v825_v3 = vld [vmem:[#allocation5 + $0x16d8] sm:$0xff]  ;;  %v8444_v4 = vcombine.low %v800_v56, %v808_v57  ;;  %v139_v56 = vld [vmem:[#allocation5 + $0x168] sm:$0xff] }
 0x1bd   :  { %5361 = vmatprep.subr.bf16.mxu0 %v8333_v5  ;;  %5533 = vmatprep.subr.bf16.mxu1 %v8335_v6  ;;  %v8446_v5 = vcombine.low %v801_v58, %v809_v59  ;;  %v8461_v6 = vcombine.high %v816_v0, %v824_v1  ;;  %v8463_v7 = vcombine.high %v817_v2, %v825_v3 }
 0x1c0   :  { %5362 = vmatpush1.bf16.msra.mxu0 %v8332_v11  ;;  %5534 = vmatpush1.bf16.msra.mxu1 %v8334_v12  ;;  %v841_v11 = vld [vmem:[#allocation5 + $0x1758] sm:$0xff]  ;;  %v8460_v12 = vcombine.low %v816_v0, %v824_v1  ;;  %v888_v0 = vsub.s32 1, %v9425_v50  ;;  %v146_v1 = vld [vmem:[#allocation5 + $0x1a0] sm:$0xff] }
 0x1c1   :  { %5363 = vmatprep.subr.bf16.mxu0 %v8349_v13  ;;  %5535 = vmatprep.subr.bf16.mxu1 %v8351_v14  ;;  %v8462_v13 = vcombine.low %v817_v2, %v825_v3  ;;  %v8477_v14 = vcombine.high %v832_v8, %v840_v9  ;;  %v8479_v15 = vcombine.high %v833_v10, %v841_v11  ;;  %v154_v2 = vld [vmem:[#allocation5 + $0x1e0] sm:$0xff]  ;;  %v9160_v3 = vld [vmem:[#allocation2 + $0x4] ss:$28 sps:$4 sm:$0xff]  }
 0x1c4   :  { %5364 = vmatpush1.bf16.msra.mxu0 %v8348_v19  ;;  %5536 = vmatpush1.bf16.msra.mxu1 %v8350_v21  ;;  %v857_v19 = vld [vmem:[#allocation5 + $0x17d8] sm:$0xff]  ;;  %v8476_v21 = vcombine.low %v832_v8, %v840_v9 }
 0x1c5   :  { %5365 = vmatprep.subr.bf16.mxu0 %v8365_v22  ;;  %5537 = vmatprep.subr.bf16.mxu1 %v8367_v23  ;;  %v8478_v22 = vcombine.low %v833_v10, %v841_v11  ;;  %v8493_v23 = vcombine.high %v848_v16, %v856_v17  ;;  %v8495_v24 = vcombine.high %v849_v18, %v857_v19  ;;  %v162_v11 = vld [vmem:[#allocation5 + $0x220] sm:$0xff] }
 0x1c6   :  { %v7793_v10 = vcombine.high %v146_v1, %v154_v2 }
 0x1c8   :  { %5366 = vmatpush1.bf16.msra.mxu0 %v8364_v28  ;;  %5538 = vmatpush1.bf16.msra.mxu1 %v8366_v29  ;;  %v873_v28 = vld [vmem:[#allocation5 + $0x1858] sm:$0xff]  ;;  %v8492_v29 = vcombine.low %v848_v16, %v856_v17  ;;  %v163_v17 = vld [vmem:[#allocation5 + $0x228] sm:$0xff] }
 0x1c9   :  { %5367 = vmatprep.subr.bf16.mxu0 %v8381_v30  ;;  %5539 = vmatprep.subr.bf16.mxu1 %v8383_v31  ;;  %v8494_v30 = vcombine.low %v849_v18, %v857_v19  ;;  %v8509_v31 = vcombine.high %v864_v25, %v872_v26  ;;  %v8511_v32 = vcombine.high %v865_v27, %v873_v28  ;;  %v171_v18 = vld [vmem:[#allocation5 + $0x268] sm:$0xff] }
 0x1ca   :  { %v7792_v25 = vcombine.low %v146_v1, %v154_v2  ;;  %v218_v1 = vld [vmem:[#allocation5 + $0x3e0] sm:$0xff]  ;;  %v211_v2 = vld [vmem:[#allocation5 + $0x3a8] sm:$0xff] }
 0x1cc   :  { %5368 = vmatpush1.bf16.msra.mxu0 %v8380_v36  ;;  %5540 = vmatpush1.bf16.msra.mxu1 %v8382_v37  ;;  %v99_v36 = vld [vmem:[#allocation5 + $0x28] sm:$0xff] }
 0x1cd   :  { %5369 = vmatprep.subr.bf16.mxu0 %v8397_v38  ;;  %5541 = vmatprep.subr.bf16.mxu1 %v8399_v39  ;;  %v107_v37 = vld [vmem:[#allocation5 + $0x68] sm:$0xff]  ;;  %v8510_v38 = vcombine.low %v865_v27, %v873_v28  ;;  %v7745_v39 = vcombine.high %v98_v33, %v106_v34 }
 0x1ce   :  { %v7747_v41 = vcombine.high %v99_v36, %v107_v37  ;;  %v7746_v48 = vcombine.low %v99_v36, %v107_v37 }
 0x1d0   :  { %5370 = vmatpush1.bf16.msra.mxu0 %v8396_v44  ;;  %5542 = vmatpush1.bf16.msra.mxu1 %v8398_v45  ;;  %v122_v44 = vld [vmem:[#allocation5 + $0xe0] sm:$0xff]  ;;  %v115_v45 = vld [vmem:[#allocation5 + $0xa8] sm:$0xff] }
 0x1d1   :  { %5371 = vmatprep.subr.bf16.mxu0 %v8413_v46  ;;  %5543 = vmatprep.subr.bf16.mxu1 %v8415_v47  ;;  %v123_v46 = vld [vmem:[#allocation5 + $0xe8] sm:$0xff]  ;;  %v7744_v47 = vcombine.low %v98_v33, %v106_v34  ;;  %v7761_v49 = vcombine.high %v114_v43, %v122_v44  ;;  %v7760_v57 = vcombine.low %v114_v43, %v122_v44 }
 0x1d2   :  { %v7763_v51 = vcombine.high %v115_v45, %v123_v46  ;;  %v7762_v58 = vcombine.low %v115_v45, %v123_v46  ;;  %v179_v43 = vld [vmem:[#allocation5 + $0x2a8] sm:$0xff] }
 0x1d3   :  { %v187_v44 = vld [vmem:[#allocation5 + $0x2e8] sm:$0xff] }
 0x1d4   :  { %5372 = vmatpush1.bf16.msra.mxu0 %v8412_v52  ;;  %5544 = vmatpush1.bf16.msra.mxu1 %v8414_v53  ;;  %v130_v52 = vld [vmem:[#allocation5 + $0x120] sm:$0xff] }
 0x1d5   :  { %5373 = vmatprep.subr.bf16.mxu0 %v8429_v54  ;;  %5545 = vmatprep.subr.bf16.mxu1 %v8431_v55  ;;  %v138_v53 = vld [vmem:[#allocation5 + $0x160] sm:$0xff]  ;;  %v131_v55 = vld [vmem:[#allocation5 + $0x128] sm:$0xff] }
 0x1d6   :  { %v9159_v54 = vld [vmem:[#allocation2 + $0x18] ss:$28 sps:$4 sm:$0xff]   ;;  %v7777_v59 = vcombine.high %v130_v52, %v138_v53  ;;  %v7778_v8 = vcombine.low %v131_v55, %v139_v56 }
 0x1d8   :  { %5374 = vmatpush1.bf16.msra.mxu0 %v8428_v60  ;;  %5546 = vmatpush1.bf16.msra.mxu1 %v8430_v61  ;;  %v884_v60 = vsub.s32 0, %v9425_v50  ;;  %v7779_v61 = vcombine.high %v131_v55, %v139_v56  ;;  %v195_v55 = vld [vmem:[#allocation5 + $0x328] sm:$0xff] }
 0x1d9   :  { %5375 = vmatprep.subr.bf16.mxu0 %v8445_v62  ;;  %5547 = vmatprep.subr.bf16.mxu1 %v8447_v63  ;;  %v878_v62 = vld [vmem:[#allocation7] sm:$0xff]  ;;  %v892_v63 = vsub.s32 2, %v9425_v50  ;;  %v203_v56 = vld [vmem:[#allocation5 + $0x368] sm:$0xff] }
 0x1da   :  { %v885_v9 = vrot.slane %v878_v62, %v884_v60 }
 0x1dc   :  { %5376 = vmatpush1.bf16.msra.mxu0 %v8444_v4  ;;  %5548 = vmatpush1.bf16.msra.mxu1 %v8446_v5  ;;  %v896_v4 = vsub.s32 3, %v9425_v50  ;;  %v147_v5 = vld [vmem:[#allocation5 + $0x1a8] sm:$0xff] }
 0x1dd   :  { %5377 = vmatprep.subr.bf16.mxu0 %v8461_v6  ;;  %5549 = vmatprep.subr.bf16.mxu1 %v8463_v7  ;;  %v155_v6 = vld [vmem:[#allocation5 + $0x1e8] sm:$0xff]  ;;  %v7776_v7 = vcombine.low %v130_v52, %v138_v53  ;;  %v7827_v52 = vcombine.high %v179_v43, %v187_v44  ;;  %v194_v53 = vld [vmem:[#allocation5 + $0x320] sm:$0xff] }
 0x1de   :  { %v7795_v16 = vcombine.high %v147_v5, %v155_v6  ;;  %v7794_v26 = vcombine.low %v147_v5, %v155_v6  ;;  %v7842_v6 = vcombine.low %v195_v55, %v203_v56 }
 0x1e0   :  { %5378 = vmatpush1.bf16.msra.mxu0 %v8460_v12  ;;  %5550 = vmatpush1.bf16.msra.mxu1 %v8462_v13  ;;  %v170_v12 = vld [vmem:[#allocation5 + $0x260] sm:$0xff] }
 0x1e1   :  { %5379 = vmatprep.subr.bf16.mxu0 %v8477_v14  ;;  %5551 = vmatprep.subr.bf16.mxu1 %v8479_v15  ;;  %v893_v14 = vrot.slane %v878_v62, %v892_v63  ;;  %v889_v15 = vrot.slane %v878_v62, %v888_v0  ;;  %v7809_v27 = vcombine.high %v162_v11, %v170_v12 }
 0x1e4   :  { %5380 = vmatpush1.bf16.msra.mxu0 %v8476_v21  ;;  %5552 = vmatpush1.bf16.msra.mxu1 %v8478_v22  ;;  %v897_v22 = vrot.slane %v878_v62, %v896_v4  ;;  %v210_v62 = vld [vmem:[#allocation5 + $0x3a0] sm:$0xff] }
 0x1e5   :  { %5381 = vmatprep.subr.bf16.mxu0 %v8493_v23  ;;  %5553 = vmatprep.subr.bf16.mxu1 %v8495_v24 }
 0x1e8   :  { %5382 = vmatpush1.bf16.msra.mxu0 %v8492_v29  ;;  %5554 = vmatpush1.bf16.msra.mxu1 %v8494_v30 }
 0x1e9   :  { %5394 = vmatprep.subr.bf16.mxu0 %v8509_v31  ;;  %5566 = vmatprep.subr.bf16.mxu1 %v8511_v32  ;;  %v7811_v32 = vcombine.high %v163_v17, %v171_v18 }
 0x1eb   :  { %5384 = vmatmul.mubr.bf16.vlgmr.msra.gmra.mrb[4].mxu0 %v9158_v40  ;;  %5556 = vmatmul.mubr.bf16.vlgmr.msra.gmra.mrb[4].mxu1 %v9158_v40 }
 0x1ec   :  { %5395 = vmatpush1.bf16.msra.mxu0 %v8508_v35  ;;  %5567 = vmatpush1.bf16.msra.mxu1 %v8510_v38  ;;  %v178_v38 = vld [vmem:[#allocation5 + $0x2a0] sm:$0xff] }
 0x1ed   :  { %5426 = vmatprep.mubr.bf16.mxu0 %v9325_v20  ;;  %5598 = vmatprep.mubr.bf16.mxu1 %v9325_v20 }
 0x1ee   :  { %5609 = vmatprep.subr.bf16.mxu0 %v7745_v39  ;;  %5781 = vmatprep.subr.bf16.mxu1 %v7747_v41  ;;  %v186_v39 = vld [vmem:[#allocation5 + $0x2e0] sm:$0xff] }
 0x1f7   :  { %8522 = vmatmul.mubr.msk.bf16.vlgmr.msra.gmra.mrb[4].mxu0 %vm4917_vm0, %v9159_v54  ;;  %8523 = vmatmul.mubr.msk.bf16.vlgmr.msra.gmra.mrb[4].mxu1 %vm4917_vm0, %v9159_v54  ;;  %v202_v54 = vld [vmem:[#allocation5 + $0x360] sm:$0xff] }
 0x1f8   :  { %5610 = vmatpush1.bf16.msra.mxu0 %v7744_v47  ;;  %5782 = vmatpush1.bf16.msra.mxu1 %v7746_v48  ;;  %v7808_v47 = vcombine.low %v162_v11, %v170_v12  ;;  %v7840_v5 = vcombine.low %v194_v53, %v202_v54  ;;  %v227_v11 = vld [vmem:[#allocation5 + $0x428] sm:$0xff] }
 0x1f9   :  { %5611 = vmatprep.subr.bf16.mxu0 %v7761_v49  ;;  %5783 = vmatprep.subr.bf16.mxu1 %v7763_v51  ;;  %v7810_v49 = vcombine.low %v163_v17, %v171_v18  ;;  %v7825_v51 = vcombine.high %v178_v38, %v186_v39  ;;  %v235_v12 = vld [vmem:[#allocation5 + $0x468] sm:$0xff]  ;;  %v242_v17 = vld [vmem:[#allocation5 + $0x4a0] sm:$0xff] }
 0x1fa   :  { %5641 = vmatprep.mubr.bf16.mxu0 %v9160_v3  ;;  %5813 = vmatprep.mubr.bf16.mxu1 %v9160_v3  ;;  %v219_v3 = vld [vmem:[#allocation5 + $0x3e8] sm:$0xff]  ;;  %v250_v18 = vld [vmem:[#allocation5 + $0x4e0] sm:$0xff] }
 0x1fc   :  { %5612 = vmatpush1.bf16.msra.mxu0 %v7760_v57  ;;  %5784 = vmatpush1.bf16.msra.mxu1 %v7762_v58  ;;  %v7824_v57 = vcombine.low %v178_v38, %v186_v39  ;;  %v7826_v58 = vcombine.low %v179_v43, %v187_v44  ;;  %v274_v43 = vld [vmem:[#allocation5 + $0x5a0] sm:$0xff] }
 0x1fd   :  { %5613 = vmatprep.subr.bf16.mxu0 %v7777_v59  ;;  %5785 = vmatprep.subr.bf16.mxu1 %v7779_v61  ;;  %v7841_v59 = vcombine.high %v194_v53, %v202_v54  ;;  %v7843_v61 = vcombine.high %v195_v55, %v203_v56  ;;  %v282_v44 = vld [vmem:[#allocation5 + $0x5e0] sm:$0xff] }
 0x1fe   :  { %v5084_v13 = vpop.f32.mrb[0].mxu0  ;;  %v5256_v19 = vpop.f32.mrb[0].mxu1  ;;  %v7921_v53 = vcombine.high %v274_v43, %v282_v44  ;;  %v290_v55 = vld [vmem:[#allocation5 + $0x620] sm:$0xff] }
 0x1ff   :  { %v5086_v21 = vpop.f32.mrb[1].mxu0  ;;  %v5258_v23 = vpop.f32.mrb[1].mxu1  ;;  %v9441_v28 = vadd.f32 %v5084_v13, %v885_v9  ;;  %v9445_v33 = vadd.f32 %v5256_v19, %v893_v14  ;;  %v7856_v13 = vcombine.low %v210_v62, %v218_v1  ;;  %v243_v19 = vld [vmem:[#allocation5 + $0x4a8] sm:$0xff]  ;;  %v298_v56 = vld [vmem:[#allocation5 + $0x660] sm:$0xff] }
 0x200   :  { %5614 = vmatpush1.bf16.msra.mxu0 %v7776_v7  ;;  %v5088_v24 = vpop.f32.mrb[2].mxu0  ;;  %5786 = vmatpush1.bf16.msra.mxu1 %v7778_v8  ;;  %v5260_v30 = vpop.f32.mrb[2].mxu1  ;;  %v9447_v34 = vadd.f32 %v5086_v21, %v889_v15  ;;  %v9453_v40 = vadd.f32 %v5258_v23, %v897_v22  ;;  %v7857_v7 = vcombine.high %v210_v62, %v218_v1  ;;  %v251_v21 = vld [vmem:[#allocation5 + $0x4e8] sm:$0xff] }
 0x201   :  { %v9443_v29 = vadd.f32 %v5088_v24, %v885_v9  ;;  %v5090_v31 = vpop.f32.mrb[3].mxu0  ;;  %5615 = vmatprep.subr.bf16.mxu0 %v7793_v10  ;;  %v9449_v35 = vadd.f32 %v5260_v30, %v893_v14  ;;  %v5262_v37 = vpop.f32.mrb[3].mxu1  ;;  %5787 = vmatprep.subr.bf16.mxu1 %v7795_v16  ;;  %v7859_v8 = vcombine.high %v211_v2, %v219_v3  ;;  %v226_v9 = vld [vmem:[#allocation5 + $0x420] sm:$0xff]  ;;  %v259_v30 = vld [vmem:[#allocation5 + $0x528] sm:$0xff] }
 0x202   :  { %v9451_v36 = vadd.f32 %v5090_v31, %v889_v15  ;;  %v9457_v42 = vadd.f32 %v5262_v37, %v897_v22  ;;  %v234_v10 = vld [vmem:[#allocation5 + $0x460] sm:$0xff]  ;;  %v7858_v14 = vcombine.low %v211_v2, %v219_v3  ;;  %v7875_v16 = vcombine.high %v227_v11, %v235_v12  ;;  %v267_v31 = vld [vmem:[#allocation5 + $0x568] sm:$0xff] }
 0x203   :  { %v6297_v41 = vpack.c.bf16 %v9443_v29, %v9441_v28  ;;  %v6299_v45 = vpack.c.bf16 %v9449_v35, %v9445_v33  ;;  %v7873_v15 = vcombine.high %v226_v9, %v234_v10  ;;  %v7872_v22 = vcombine.low %v226_v9, %v234_v10  ;;  %v306_v2 = vld [vmem:[#allocation5 + $0x6a0] sm:$0xff]  ;;  %v9014_v28 = vld [vmem:[#allocation8 + $0xf8] sm:$0xff]   ;;  %v9017_v35 = vld [vmem:[#allocation8 + $0x140] sm:$0xff]  }
 0x204   :  { %v6298_v46 = vpack.c.bf16 %v9451_v36, %v9447_v34  ;;  %5616 = vmatpush1.bf16.msra.mxu0 %v7792_v25  ;;  %v6300_v48 = vpack.c.bf16 %v9457_v42, %v9453_v40  ;;  %5788 = vmatpush1.bf16.msra.mxu1 %v7794_v26  ;;  %v7874_v23 = vcombine.low %v227_v11, %v235_v12  ;;  %v258_v26 = vld [vmem:[#allocation5 + $0x520] sm:$0xff]  ;;  %v8991_v36 = vld [vmem:[#allocation8 + $0x8] sm:$0xff]   ;;  %v9015_v29 = vld [vmem:[#allocation8 + $0x38] sm:$0xff]  }
 0x205   :  { %5617 = vmatprep.subr.bf16.mxu0 %v7809_v27  ;;  %5789 = vmatprep.subr.bf16.mxu1 %v7811_v32  ;;  %v7889_v24 = vcombine.high %v242_v17, %v250_v18  ;;  %v7891_v25 = vcombine.high %v243_v19, %v251_v21  ;;  %v266_v27 = vld [vmem:[#allocation5 + $0x560] sm:$0xff]  ;;  %v7888_v32 = vcombine.low %v242_v17, %v250_v18  ;;  %v9016_v33 = vld [vmem:[#allocation8 + $0xb8] sm:$0xff]  }
 0x206   :  { %v7890_v37 = vcombine.low %v243_v19, %v251_v21  ;;  %v7905_v38 = vcombine.high %v258_v26, %v266_v27  ;;  %v7907_v39 = vcombine.high %v259_v30, %v267_v31  ;;  %v7937_v62 = vcombine.high %v290_v55, %v298_v56  ;;  %v314_v3 = vld [vmem:[#allocation5 + $0x6e0] sm:$0xff] }
 0x207   :  { %v7953_v9 = vcombine.high %v306_v2, %v314_v3  ;;  %v322_v11 = vld [vmem:[#allocation5 + $0x720] sm:$0xff]  ;;  %9113 = vtanh.bf16 %v6298_v46  ;;  %v9515_v46 = vld [vmem:[#allocation7 + $0x8] sm:$0xff] }
 0x208   :  { %5618 = vmatpush1.bf16.msra.mxu0 %v7808_v47  ;;  %5790 = vmatpush1.bf16.msra.mxu1 %v7810_v49  ;;  %v275_v47 = vld [vmem:[#allocation5 + $0x5a8] sm:$0xff]  ;;  %v330_v12 = vld [vmem:[#allocation5 + $0x760] sm:$0xff]  ;;  %9115 = vtanh.bf16 %v6300_v48 }
 0x209   :  { %5619 = vmatprep.subr.bf16.mxu0 %v7825_v51  ;;  %5791 = vmatprep.subr.bf16.mxu1 %v7827_v52  ;;  %v283_v49 = vld [vmem:[#allocation5 + $0x5e8] sm:$0xff]  ;;  %v7904_v51 = vcombine.low %v258_v26, %v266_v27  ;;  %v7906_v52 = vcombine.low %v259_v30, %v267_v31  ;;  %v7969_v17 = vcombine.high %v322_v11, %v330_v12  ;;  %v338_v19 = vld [vmem:[#allocation5 + $0x7a0] sm:$0xff]  ;;  %9117 = vtanh.bf16 %v6297_v41  ;;  %v9018_v41 = vld [vmem:[#allocation8 + $0x1c0] sm:$0xff]  }
 0x20a   :  { %v7923_v54 = vcombine.high %v275_v47, %v283_v49  ;;  %v346_v21 = vld [vmem:[#allocation5 + $0x7e0] sm:$0xff]  ;;  %9119 = vtanh.bf16 %v6299_v45  ;;  %v9019_v45 = vld [vmem:[#allocation8 + $0x100] sm:$0xff]  }
 0x20b   :  { %v7985_v26 = vcombine.high %v338_v19, %v346_v21  ;;  %v354_v30 = vld [vmem:[#allocation5 + $0x820] sm:$0xff] }
 0x20c   :  { %5620 = vmatpush1.bf16.msra.mxu0 %v7824_v57  ;;  %5792 = vmatpush1.bf16.msra.mxu1 %v7826_v58  ;;  %v291_v57 = vld [vmem:[#allocation5 + $0x628] sm:$0xff]  ;;  %v362_v31 = vld [vmem:[#allocation5 + $0x860] sm:$0xff] }
 0x20d   :  { %5621 = vmatprep.subr.bf16.mxu0 %v7841_v59  ;;  %5793 = vmatprep.subr.bf16.mxu1 %v7843_v61  ;;  %v299_v58 = vld [vmem:[#allocation5 + $0x668] sm:$0xff]  ;;  %v7920_v59 = vcombine.low %v274_v43, %v282_v44  ;;  %v7922_v61 = vcombine.low %v275_v47, %v283_v49  ;;  %v8001_v43 = vcombine.high %v354_v30, %v362_v31  ;;  %v370_v47 = vld [vmem:[#allocation5 + $0x8a0] sm:$0xff] }
 0x20e   :  { %v7939_v1 = vcombine.high %v291_v57, %v299_v58  ;;  %v378_v49 = vld [vmem:[#allocation5 + $0x8e0] sm:$0xff] }
 0x20f   :  { %v8993_v42 = vld [vmem:[#allocation8 + $0x50] sm:$0xff]  }
 0x210   :  { %5622 = vmatpush1.bf16.msra.mxu0 %v7840_v5  ;;  %5794 = vmatpush1.bf16.msra.mxu1 %v7842_v6  ;;  %v307_v5 = vld [vmem:[#allocation5 + $0x6a8] sm:$0xff]  ;;  %v8994_v48 = vld [vmem:[#allocation8 + $0xd0] sm:$0xff]  }
 0x211   :  { %5623 = vmatprep.subr.bf16.mxu0 %v7857_v7  ;;  %5795 = vmatprep.subr.bf16.mxu1 %v7859_v8  ;;  %v315_v6 = vld [vmem:[#allocation5 + $0x6e8] sm:$0xff]  ;;  %v7936_v7 = vcombine.low %v290_v55, %v298_v56  ;;  %v7938_v8 = vcombine.low %v291_v57, %v299_v58  ;;  %v8017_v55 = vcombine.high %v370_v47, %v378_v49  ;;  %v386_v57 = vld [vmem:[#allocation5 + $0x920] sm:$0xff] }
 0x212   :  { %v7955_v10 = vcombine.high %v307_v5, %v315_v6  ;;  %v394_v58 = vld [vmem:[#allocation5 + $0x960] sm:$0xff]  ;;  %v9114_v34 = vpop.eup %9113 }
 0x213   :  { %v9116_v40 = vpop.eup %9115 }
 0x214   :  { %5624 = vmatpush1.bf16.msra.mxu0 %v7856_v13  ;;  %5796 = vmatpush1.bf16.msra.mxu1 %v7858_v14  ;;  %v323_v13 = vld [vmem:[#allocation5 + $0x728] sm:$0xff] }
 0x215   :  { %5625 = vmatprep.subr.bf16.mxu0 %v7873_v15  ;;  %5797 = vmatprep.subr.bf16.mxu1 %v7875_v16  ;;  %v331_v14 = vld [vmem:[#allocation5 + $0x768] sm:$0xff]  ;;  %v7952_v15 = vcombine.low %v306_v2, %v314_v3  ;;  %v7954_v16 = vcombine.low %v307_v5, %v315_v6  ;;  %v8033_v3 = vcombine.high %v386_v57, %v394_v58  ;;  %v402_v6 = vld [vmem:[#allocation5 + $0x9a0] sm:$0xff] }
 0x216   :  { %v7971_v18 = vcombine.high %v323_v13, %v331_v14 }
 0x218   :  { %5626 = vmatpush1.bf16.msra.mxu0 %v7872_v22  ;;  %5798 = vmatpush1.bf16.msra.mxu1 %v7874_v23  ;;  %v339_v22 = vld [vmem:[#allocation5 + $0x7a8] sm:$0xff] }
 0x219   :  { %5627 = vmatprep.subr.bf16.mxu0 %v7889_v24  ;;  %5799 = vmatprep.subr.bf16.mxu1 %v7891_v25  ;;  %v347_v23 = vld [vmem:[#allocation5 + $0x7e8] sm:$0xff]  ;;  %v7968_v24 = vcombine.low %v322_v11, %v330_v12  ;;  %v7970_v25 = vcombine.low %v323_v13, %v331_v14  ;;  %v8032_v11 = vcombine.low %v386_v57, %v394_v58 }
 0x21a   :  { %v7987_v27 = vcombine.high %v339_v22, %v347_v23 }
 0x21c   :  { %5628 = vmatpush1.bf16.msra.mxu0 %v7888_v32  ;;  %5800 = vmatpush1.bf16.msra.mxu1 %v7890_v37  ;;  %v355_v32 = vld [vmem:[#allocation5 + $0x828] sm:$0xff] }
 0x21d   :  { %5629 = vmatprep.subr.bf16.mxu0 %v7905_v38  ;;  %5801 = vmatprep.subr.bf16.mxu1 %v7907_v39  ;;  %v363_v37 = vld [vmem:[#allocation5 + $0x868] sm:$0xff]  ;;  %v7984_v38 = vcombine.low %v338_v19, %v346_v21  ;;  %v7986_v39 = vcombine.low %v339_v22, %v347_v23 }
 0x21e   :  { %v8003_v44 = vcombine.high %v355_v32, %v363_v37 }
 0x220   :  { %5630 = vmatpush1.bf16.msra.mxu0 %v7904_v51  ;;  %5802 = vmatpush1.bf16.msra.mxu1 %v7906_v52  ;;  %v371_v51 = vld [vmem:[#allocation5 + $0x8a8] sm:$0xff] }
 0x221   :  { %5631 = vmatprep.subr.bf16.mxu0 %v7921_v53  ;;  %5803 = vmatprep.subr.bf16.mxu1 %v7923_v54  ;;  %v379_v52 = vld [vmem:[#allocation5 + $0x8e8] sm:$0xff]  ;;  %v8000_v53 = vcombine.low %v354_v30, %v362_v31  ;;  %v8002_v54 = vcombine.low %v355_v32, %v363_v37 }
 0x222   :  { %v8019_v56 = vcombine.high %v371_v51, %v379_v52  ;;  %v8018_v2 = vcombine.low %v371_v51, %v379_v52 }
 0x224   :  { %5632 = vmatpush1.bf16.msra.mxu0 %v7920_v59  ;;  %5804 = vmatpush1.bf16.msra.mxu1 %v7922_v61  ;;  %v9161_v59 = vld [vmem:[#allocation2] ss:$28 sps:$4 sm:$0xff]  }
 0x225   :  { %5633 = vmatprep.subr.bf16.mxu0 %v7937_v62  ;;  %5805 = vmatprep.subr.bf16.mxu1 %v7939_v1  ;;  %v387_v61 = vld [vmem:[#allocation5 + $0x928] sm:$0xff]  ;;  %v8016_v1 = vcombine.low %v370_v47, %v378_v49 }
 0x226   :  { %v395_v62 = vld [vmem:[#allocation5 + $0x968] sm:$0xff] }
 0x227   :  { %v8035_v5 = vcombine.high %v387_v61, %v395_v62  ;;  %v8034_v12 = vcombine.low %v387_v61, %v395_v62  ;;  %v482_v62 = vld [vmem:[#allocation5 + $0xc20] sm:$0xff] }
 0x228   :  { %5634 = vmatpush1.bf16.msra.mxu0 %v7936_v7  ;;  %5806 = vmatpush1.bf16.msra.mxu1 %v7938_v8  ;;  %v410_v7 = vld [vmem:[#allocation5 + $0x9e0] sm:$0xff]  ;;  %v9162_v8 = vld [vmem:[#allocation2 + $0xc] ss:$28 sps:$4 sm:$0xff]  }
 0x229   :  { %5635 = vmatprep.subr.bf16.mxu0 %v7953_v9  ;;  %5807 = vmatprep.subr.bf16.mxu1 %v7955_v10  ;;  %v403_v9 = vld [vmem:[#allocation5 + $0x9a8] sm:$0xff]  ;;  %v8049_v13 = vcombine.high %v402_v6, %v410_v7  ;;  %v8048_v19 = vcombine.low %v402_v6, %v410_v7 }
 0x22a   :  { %v411_v10 = vld [vmem:[#allocation5 + $0x9e8] sm:$0xff] }
 0x22b   :  { %v8051_v14 = vcombine.high %v403_v9, %v411_v10  ;;  %v8050_v21 = vcombine.low %v403_v9, %v411_v10  ;;  %v498_v9 = vld [vmem:[#allocation5 + $0xca0] sm:$0xff] }
 0x22c   :  { %5636 = vmatpush1.bf16.msra.mxu0 %v7952_v15  ;;  %5808 = vmatpush1.bf16.msra.mxu1 %v7954_v16  ;;  %v418_v15 = vld [vmem:[#allocation5 + $0xa20] sm:$0xff] }
 0x22d   :  { %5637 = vmatprep.subr.bf16.mxu0 %v7969_v17  ;;  %5809 = vmatprep.subr.bf16.mxu1 %v7971_v18  ;;  %v426_v16 = vld [vmem:[#allocation5 + $0xa60] sm:$0xff]  ;;  %v419_v17 = vld [vmem:[#allocation5 + $0xa28] sm:$0xff] }
 0x22e   :  { %v427_v18 = vld [vmem:[#allocation5 + $0xa68] sm:$0xff]  ;;  %v8065_v22 = vcombine.high %v418_v15, %v426_v16  ;;  %v8064_v30 = vcombine.low %v418_v15, %v426_v16  ;;  %v506_v10 = vld [vmem:[#allocation5 + $0xce0] sm:$0xff] }
 0x22f   :  { %v8067_v23 = vcombine.high %v419_v17, %v427_v18  ;;  %v8066_v31 = vcombine.low %v419_v17, %v427_v18  ;;  %v8145_v15 = vcombine.high %v498_v9, %v506_v10  ;;  %v514_v17 = vld [vmem:[#allocation5 + $0xd20] sm:$0xff] }
 0x230   :  { %5638 = vmatpush1.bf16.msra.mxu0 %v7968_v24  ;;  %5810 = vmatpush1.bf16.msra.mxu1 %v7970_v25  ;;  %v434_v24 = vld [vmem:[#allocation5 + $0xaa0] sm:$0xff] }
 0x231   :  { %5639 = vmatprep.subr.bf16.mxu0 %v7985_v26  ;;  %5811 = vmatprep.subr.bf16.mxu1 %v7987_v27  ;;  %v442_v25 = vld [vmem:[#allocation5 + $0xae0] sm:$0xff]  ;;  %v435_v26 = vld [vmem:[#allocation5 + $0xaa8] sm:$0xff] }
 0x232   :  { %v443_v27 = vld [vmem:[#allocation5 + $0xae8] sm:$0xff]  ;;  %v8081_v32 = vcombine.high %v434_v24, %v442_v25  ;;  %v8080_v47 = vcombine.low %v434_v24, %v442_v25  ;;  %v522_v18 = vld [vmem:[#allocation5 + $0xd60] sm:$0xff] }
 0x233   :  { %v8083_v37 = vcombine.high %v435_v26, %v443_v27  ;;  %v8082_v49 = vcombine.low %v435_v26, %v443_v27  ;;  %v8161_v24 = vcombine.high %v514_v17, %v522_v18  ;;  %v530_v26 = vld [vmem:[#allocation5 + $0xda0] sm:$0xff] }
 0x234   :  { %5640 = vmatpush1.bf16.msra.mxu0 %v7984_v38  ;;  %5812 = vmatpush1.bf16.msra.mxu1 %v7986_v39  ;;  %v450_v38 = vld [vmem:[#allocation5 + $0xb20] sm:$0xff] }
 0x235   :  { %5652 = vmatprep.subr.bf16.mxu0 %v8001_v43  ;;  %5824 = vmatprep.subr.bf16.mxu1 %v8003_v44  ;;  %v458_v39 = vld [vmem:[#allocation5 + $0xb60] sm:$0xff]  ;;  %v451_v43 = vld [vmem:[#allocation5 + $0xb28] sm:$0xff] }
 0x236   :  { %v459_v44 = vld [vmem:[#allocation5 + $0xb68] sm:$0xff]  ;;  %v8097_v51 = vcombine.high %v450_v38, %v458_v39  ;;  %v8096_v57 = vcombine.low %v450_v38, %v458_v39  ;;  %v538_v27 = vld [vmem:[#allocation5 + $0xde0] sm:$0xff] }
 0x237   :  { %5642 = vmatmul.mubr.bf16.vlgmr.msra.gmra.mrb[8].mxu0 %v9161_v59  ;;  %5814 = vmatmul.mubr.bf16.vlgmr.msra.gmra.mrb[8].mxu1 %v9161_v59  ;;  %v8099_v52 = vcombine.high %v451_v43, %v459_v44  ;;  %v8098_v58 = vcombine.low %v451_v43, %v459_v44  ;;  %v8177_v38 = vcombine.high %v530_v26, %v538_v27  ;;  %v546_v43 = vld [vmem:[#allocation5 + $0xe20] sm:$0xff] }
 0x238   :  { %5653 = vmatpush1.bf16.msra.mxu0 %v8000_v53  ;;  %5825 = vmatpush1.bf16.msra.mxu1 %v8002_v54  ;;  %v466_v53 = vld [vmem:[#allocation5 + $0xba0] sm:$0xff] }
 0x239   :  { %5654 = vmatprep.subr.bf16.mxu0 %v8017_v55  ;;  %5826 = vmatprep.subr.bf16.mxu1 %v8019_v56  ;;  %v474_v54 = vld [vmem:[#allocation5 + $0xbe0] sm:$0xff]  ;;  %v467_v55 = vld [vmem:[#allocation5 + $0xba8] sm:$0xff] }
 0x23a   :  { %5684 = vmatprep.mubr.bf16.mxu0 %v9162_v8  ;;  %5856 = vmatprep.mubr.bf16.mxu1 %v9162_v8  ;;  %v475_v56 = vld [vmem:[#allocation5 + $0xbe8] sm:$0xff]  ;;  %v8113_v59 = vcombine.high %v466_v53, %v474_v54  ;;  %v554_v44 = vld [vmem:[#allocation5 + $0xe60] sm:$0xff] }
 0x23b   :  { %v8115_v61 = vcombine.high %v467_v55, %v475_v56  ;;  %v8114_v6 = vcombine.low %v467_v55, %v475_v56  ;;  %v562_v55 = vld [vmem:[#allocation5 + $0xea0] sm:$0xff] }
 0x23c   :  { %5655 = vmatpush1.bf16.msra.mxu0 %v8016_v1  ;;  %5827 = vmatpush1.bf16.msra.mxu1 %v8018_v2  ;;  %v490_v1 = vld [vmem:[#allocation5 + $0xc60] sm:$0xff]  ;;  %v483_v2 = vld [vmem:[#allocation5 + $0xc28] sm:$0xff] }
 0x23d   :  { %5656 = vmatprep.subr.bf16.mxu0 %v8033_v3  ;;  %5828 = vmatprep.subr.bf16.mxu1 %v8035_v5  ;;  %v491_v3 = vld [vmem:[#allocation5 + $0xc68] sm:$0xff]  ;;  %v8112_v5 = vcombine.low %v466_v53, %v474_v54  ;;  %v8129_v7 = vcombine.high %v482_v62, %v490_v1  ;;  %v8193_v53 = vcombine.high %v546_v43, %v554_v44  ;;  %v570_v56 = vld [vmem:[#allocation5 + $0xee0] sm:$0xff] }
 0x23e   :  { %v8131_v8 = vcombine.high %v483_v2, %v491_v3 }
 0x240   :  { %5657 = vmatpush1.bf16.msra.mxu0 %v8032_v11  ;;  %5829 = vmatpush1.bf16.msra.mxu1 %v8034_v12  ;;  %v499_v11 = vld [vmem:[#allocation5 + $0xca8] sm:$0xff] }
 0x241   :  { %5658 = vmatprep.subr.bf16.mxu0 %v8049_v13  ;;  %5830 = vmatprep.subr.bf16.mxu1 %v8051_v14  ;;  %v507_v12 = vld [vmem:[#allocation5 + $0xce8] sm:$0xff]  ;;  %v8128_v13 = vcombine.low %v482_v62, %v490_v1  ;;  %v8130_v14 = vcombine.low %v483_v2, %v491_v3  ;;  %v8209_v62 = vcombine.high %v562_v55, %v570_v56  ;;  %v578_v2 = vld [vmem:[#allocation5 + $0xf20] sm:$0xff] }
 0x242   :  { %v8147_v16 = vcombine.high %v499_v11, %v507_v12  ;;  %v586_v3 = vld [vmem:[#allocation5 + $0xf60] sm:$0xff] }
 0x244   :  { %5659 = vmatpush1.bf16.msra.mxu0 %v8048_v19  ;;  %5831 = vmatpush1.bf16.msra.mxu1 %v8050_v21  ;;  %v515_v19 = vld [vmem:[#allocation5 + $0xd28] sm:$0xff] }
 0x245   :  { %5660 = vmatprep.subr.bf16.mxu0 %v8065_v22  ;;  %5832 = vmatprep.subr.bf16.mxu1 %v8067_v23  ;;  %v523_v21 = vld [vmem:[#allocation5 + $0xd68] sm:$0xff]  ;;  %v8144_v22 = vcombine.low %v498_v9, %v506_v10  ;;  %v8146_v23 = vcombine.low %v499_v11, %v507_v12  ;;  %v8225_v9 = vcombine.high %v578_v2, %v586_v3  ;;  %v594_v11 = vld [vmem:[#allocation5 + $0xfa0] sm:$0xff] }
 0x246   :  { %v8163_v25 = vcombine.high %v515_v19, %v523_v21  ;;  %v602_v12 = vld [vmem:[#allocation5 + $0xfe0] sm:$0xff] }
 0x248   :  { %5661 = vmatpush1.bf16.msra.mxu0 %v8064_v30  ;;  %5833 = vmatpush1.bf16.msra.mxu1 %v8066_v31  ;;  %v531_v30 = vld [vmem:[#allocation5 + $0xda8] sm:$0xff] }
 0x249   :  { %5662 = vmatprep.subr.bf16.mxu0 %v8081_v32  ;;  %5834 = vmatprep.subr.bf16.mxu1 %v8083_v37  ;;  %v539_v31 = vld [vmem:[#allocation5 + $0xde8] sm:$0xff]  ;;  %v8160_v32 = vcombine.low %v514_v17, %v522_v18  ;;  %v8162_v37 = vcombine.low %v515_v19, %v523_v21  ;;  %v8241_v17 = vcombine.high %v594_v11, %v602_v12  ;;  %v610_v19 = vld [vmem:[#allocation5 + $0x1020] sm:$0xff] }
 0x24a   :  { %v8179_v39 = vcombine.high %v531_v30, %v539_v31  ;;  %v618_v21 = vld [vmem:[#allocation5 + $0x1060] sm:$0xff] }
 0x24c   :  { %5663 = vmatpush1.bf16.msra.mxu0 %v8080_v47  ;;  %5835 = vmatpush1.bf16.msra.mxu1 %v8082_v49  ;;  %v547_v47 = vld [vmem:[#allocation5 + $0xe28] sm:$0xff] }
 0x24d   :  { %5664 = vmatprep.subr.bf16.mxu0 %v8097_v51  ;;  %5836 = vmatprep.subr.bf16.mxu1 %v8099_v52  ;;  %v555_v49 = vld [vmem:[#allocation5 + $0xe68] sm:$0xff]  ;;  %v8176_v51 = vcombine.low %v530_v26, %v538_v27  ;;  %v8178_v52 = vcombine.low %v531_v30, %v539_v31  ;;  %v8257_v26 = vcombine.high %v610_v19, %v618_v21  ;;  %v626_v30 = vld [vmem:[#allocation5 + $0x10a0] sm:$0xff] }
 0x24e   :  { %v8195_v54 = vcombine.high %v547_v47, %v555_v49  ;;  %v634_v31 = vld [vmem:[#allocation5 + $0x10e0] sm:$0xff] }
 0x250   :  { %5665 = vmatpush1.bf16.msra.mxu0 %v8096_v57  ;;  %5837 = vmatpush1.bf16.msra.mxu1 %v8098_v58  ;;  %v563_v57 = vld [vmem:[#allocation5 + $0xea8] sm:$0xff] }
 0x251   :  { %5666 = vmatprep.subr.bf16.mxu0 %v8113_v59  ;;  %5838 = vmatprep.subr.bf16.mxu1 %v8115_v61  ;;  %v571_v58 = vld [vmem:[#allocation5 + $0xee8] sm:$0xff]  ;;  %v8192_v59 = vcombine.low %v546_v43, %v554_v44  ;;  %v8194_v61 = vcombine.low %v547_v47, %v555_v49  ;;  %v8273_v43 = vcombine.high %v626_v30, %v634_v31  ;;  %v642_v47 = vld [vmem:[#allocation5 + $0x1120] sm:$0xff] }
 0x252   :  { %v8211_v1 = vcombine.high %v563_v57, %v571_v58  ;;  %v650_v49 = vld [vmem:[#allocation5 + $0x1160] sm:$0xff] }
 0x254   :  { %5667 = vmatpush1.bf16.msra.mxu0 %v8112_v5  ;;  %5839 = vmatpush1.bf16.msra.mxu1 %v8114_v6  ;;  %v579_v5 = vld [vmem:[#allocation5 + $0xf28] sm:$0xff] }
 0x255   :  { %5668 = vmatprep.subr.bf16.mxu0 %v8129_v7  ;;  %5840 = vmatprep.subr.bf16.mxu1 %v8131_v8  ;;  %v587_v6 = vld [vmem:[#allocation5 + $0xf68] sm:$0xff]  ;;  %v8208_v7 = vcombine.low %v562_v55, %v570_v56  ;;  %v8210_v8 = vcombine.low %v563_v57, %v571_v58  ;;  %v8289_v56 = vcombine.high %v642_v47, %v650_v49  ;;  %v658_v58 = vld [vmem:[#allocation5 + $0x11a0] sm:$0xff] }
 0x256   :  { %v8227_v10 = vcombine.high %v579_v5, %v587_v6 }
 0x258   :  { %5669 = vmatpush1.bf16.msra.mxu0 %v8128_v13  ;;  %5841 = vmatpush1.bf16.msra.mxu1 %v8130_v14  ;;  %v595_v13 = vld [vmem:[#allocation5 + $0xfa8] sm:$0xff] }
 0x259   :  { %5670 = vmatprep.subr.bf16.mxu0 %v8145_v15  ;;  %5842 = vmatprep.subr.bf16.mxu1 %v8147_v16  ;;  %v603_v14 = vld [vmem:[#allocation5 + $0xfe8] sm:$0xff]  ;;  %v8224_v15 = vcombine.low %v578_v2, %v586_v3  ;;  %v8226_v16 = vcombine.low %v579_v5, %v587_v6  ;;  %v8288_v2 = vcombine.low %v642_v47, %v650_v49 }
 0x25a   :  { %v8243_v18 = vcombine.high %v595_v13, %v603_v14 }
 0x25c   :  { %5671 = vmatpush1.bf16.msra.mxu0 %v8144_v22  ;;  %5843 = vmatpush1.bf16.msra.mxu1 %v8146_v23  ;;  %v611_v22 = vld [vmem:[#allocation5 + $0x1028] sm:$0xff] }
 0x25d   :  { %5672 = vmatprep.subr.bf16.mxu0 %v8161_v24  ;;  %5844 = vmatprep.subr.bf16.mxu1 %v8163_v25  ;;  %v619_v23 = vld [vmem:[#allocation5 + $0x1068] sm:$0xff]  ;;  %v8240_v24 = vcombine.low %v594_v11, %v602_v12  ;;  %v8242_v25 = vcombine.low %v595_v13, %v603_v14 }
 0x25e   :  { %v8259_v27 = vcombine.high %v611_v22, %v619_v23 }
 0x260   :  { %5673 = vmatpush1.bf16.msra.mxu0 %v8160_v32  ;;  %5845 = vmatpush1.bf16.msra.mxu1 %v8162_v37  ;;  %v627_v32 = vld [vmem:[#allocation5 + $0x10a8] sm:$0xff] }
 0x261   :  { %5674 = vmatprep.subr.bf16.mxu0 %v8177_v38  ;;  %5846 = vmatprep.subr.bf16.mxu1 %v8179_v39  ;;  %v635_v37 = vld [vmem:[#allocation5 + $0x10e8] sm:$0xff]  ;;  %v8256_v38 = vcombine.low %v610_v19, %v618_v21  ;;  %v8258_v39 = vcombine.low %v611_v22, %v619_v23 }
 0x262   :  { %v8275_v44 = vcombine.high %v627_v32, %v635_v37  ;;  %v8274_v55 = vcombine.low %v627_v32, %v635_v37 }
 0x264   :  { %5675 = vmatpush1.bf16.msra.mxu0 %v8176_v51  ;;  %5847 = vmatpush1.bf16.msra.mxu1 %v8178_v52  ;;  %v9163_v51 = vld [vmem:[#allocation2 + $0x8] ss:$28 sps:$4 sm:$0xff]  }
 0x265   :  { %5676 = vmatprep.subr.bf16.mxu0 %v8193_v53  ;;  %5848 = vmatprep.subr.bf16.mxu1 %v8195_v54  ;;  %v643_v52 = vld [vmem:[#allocation5 + $0x1128] sm:$0xff]  ;;  %v8272_v54 = vcombine.low %v626_v30, %v634_v31 }
 0x266   :  { %v651_v53 = vld [vmem:[#allocation5 + $0x1168] sm:$0xff] }
 0x267   :  { %v8291_v57 = vcombine.high %v643_v52, %v651_v53  ;;  %v8290_v3 = vcombine.low %v643_v52, %v651_v53  ;;  %v738_v53 = vld [vmem:[#allocation5 + $0x1420] sm:$0xff] }
 0x268   :  { %5677 = vmatpush1.bf16.msra.mxu0 %v8192_v59  ;;  %5849 = vmatpush1.bf16.msra.mxu1 %v8194_v61  ;;  %v666_v59 = vld [vmem:[#allocation5 + $0x11e0] sm:$0xff]  ;;  %v9164_v61 = vld [vmem:[#allocation2 + $0x14] ss:$28 sps:$4 sm:$0xff]  }
 0x269   :  { %5678 = vmatprep.subr.bf16.mxu0 %v8209_v62  ;;  %5850 = vmatprep.subr.bf16.mxu1 %v8211_v1  ;;  %v659_v62 = vld [vmem:[#allocation5 + $0x11a8] sm:$0xff]  ;;  %v8305_v5 = vcombine.high %v658_v58, %v666_v59  ;;  %v8304_v11 = vcombine.low %v658_v58, %v666_v59 }
 0x26a   :  { %v667_v1 = vld [vmem:[#allocation5 + $0x11e8] sm:$0xff] }
 0x26b   :  { %v8307_v6 = vcombine.high %v659_v62, %v667_v1  ;;  %v8306_v12 = vcombine.low %v659_v62, %v667_v1  ;;  %v754_v62 = vld [vmem:[#allocation5 + $0x14a0] sm:$0xff] }
 0x26c   :  { %5679 = vmatpush1.bf16.msra.mxu0 %v8208_v7  ;;  %5851 = vmatpush1.bf16.msra.mxu1 %v8210_v8  ;;  %v674_v7 = vld [vmem:[#allocation5 + $0x1220] sm:$0xff] }
 0x26d   :  { %5680 = vmatprep.subr.bf16.mxu0 %v8225_v9  ;;  %5852 = vmatprep.subr.bf16.mxu1 %v8227_v10  ;;  %v682_v8 = vld [vmem:[#allocation5 + $0x1260] sm:$0xff]  ;;  %v675_v9 = vld [vmem:[#allocation5 + $0x1228] sm:$0xff] }
 0x26e   :  { %v683_v10 = vld [vmem:[#allocation5 + $0x1268] sm:$0xff]  ;;  %v8321_v13 = vcombine.high %v674_v7, %v682_v8  ;;  %v8320_v19 = vcombine.low %v674_v7, %v682_v8  ;;  %v762_v1 = vld [vmem:[#allocation5 + $0x14e0] sm:$0xff] }
 0x26f   :  { %v8323_v14 = vcombine.high %v675_v9, %v683_v10  ;;  %v8322_v21 = vcombine.low %v675_v9, %v683_v10  ;;  %v8401_v7 = vcombine.high %v754_v62, %v762_v1  ;;  %v770_v9 = vld [vmem:[#allocation5 + $0x1520] sm:$0xff] }
 0x270   :  { %5681 = vmatpush1.bf16.msra.mxu0 %v8224_v15  ;;  %5853 = vmatpush1.bf16.msra.mxu1 %v8226_v16  ;;  %v690_v15 = vld [vmem:[#allocation5 + $0x12a0] sm:$0xff] }
 0x271   :  { %5682 = vmatprep.subr.bf16.mxu0 %v8241_v17  ;;  %5854 = vmatprep.subr.bf16.mxu1 %v8243_v18  ;;  %v698_v16 = vld [vmem:[#allocation5 + $0x12e0] sm:$0xff]  ;;  %v691_v17 = vld [vmem:[#allocation5 + $0x12a8] sm:$0xff] }
 0x272   :  { %v699_v18 = vld [vmem:[#allocation5 + $0x12e8] sm:$0xff]  ;;  %v8337_v22 = vcombine.high %v690_v15, %v698_v16  ;;  %v8336_v30 = vcombine.low %v690_v15, %v698_v16  ;;  %v778_v10 = vld [vmem:[#allocation5 + $0x1560] sm:$0xff] }
 0x273   :  { %v8339_v23 = vcombine.high %v691_v17, %v699_v18  ;;  %v8338_v31 = vcombine.low %v691_v17, %v699_v18  ;;  %v8417_v15 = vcombine.high %v770_v9, %v778_v10  ;;  %v786_v17 = vld [vmem:[#allocation5 + $0x15a0] sm:$0xff] }
 0x274   :  { %5683 = vmatpush1.bf16.msra.mxu0 %v8240_v24  ;;  %5855 = vmatpush1.bf16.msra.mxu1 %v8242_v25  ;;  %v706_v24 = vld [vmem:[#allocation5 + $0x1320] sm:$0xff] }
 0x275   :  { %5695 = vmatprep.subr.bf16.mxu0 %v8257_v26  ;;  %5867 = vmatprep.subr.bf16.mxu1 %v8259_v27  ;;  %v714_v25 = vld [vmem:[#allocation5 + $0x1360] sm:$0xff]  ;;  %v707_v26 = vld [vmem:[#allocation5 + $0x1328] sm:$0xff] }
 0x276   :  { %v715_v27 = vld [vmem:[#allocation5 + $0x1368] sm:$0xff]  ;;  %v8353_v32 = vcombine.high %v706_v24, %v714_v25  ;;  %v8352_v47 = vcombine.low %v706_v24, %v714_v25  ;;  %v794_v18 = vld [vmem:[#allocation5 + $0x15e0] sm:$0xff] }
 0x277   :  { %5685 = vmatmul.mubr.bf16.vlgmr.msra.gmra.mrb[8].mxu0 %v9163_v51  ;;  %5857 = vmatmul.mubr.bf16.vlgmr.msra.gmra.mrb[8].mxu1 %v9163_v51  ;;  %v8355_v37 = vcombine.high %v707_v26, %v715_v27  ;;  %v8354_v49 = vcombine.low %v707_v26, %v715_v27  ;;  %v8433_v24 = vcombine.high %v786_v17, %v794_v18  ;;  %v802_v26 = vld [vmem:[#allocation5 + $0x1620] sm:$0xff] }
 0x278   :  { %5696 = vmatpush1.bf16.msra.mxu0 %v8256_v38  ;;  %5868 = vmatpush1.bf16.msra.mxu1 %v8258_v39  ;;  %v722_v38 = vld [vmem:[#allocation5 + $0x13a0] sm:$0xff] }
 0x279   :  { %5697 = vmatprep.subr.bf16.mxu0 %v8273_v43  ;;  %5869 = vmatprep.subr.bf16.mxu1 %v8275_v44  ;;  %v730_v39 = vld [vmem:[#allocation5 + $0x13e0] sm:$0xff]  ;;  %v723_v43 = vld [vmem:[#allocation5 + $0x13a8] sm:$0xff] }
 0x27a   :  { %5727 = vmatprep.mubr.bf16.mxu0 %v9164_v61  ;;  %5899 = vmatprep.mubr.bf16.mxu1 %v9164_v61  ;;  %v731_v44 = vld [vmem:[#allocation5 + $0x13e8] sm:$0xff]  ;;  %v8369_v51 = vcombine.high %v722_v38, %v730_v39  ;;  %v810_v27 = vld [vmem:[#allocation5 + $0x1660] sm:$0xff] }
 0x27b   :  { %v8371_v52 = vcombine.high %v723_v43, %v731_v44  ;;  %v8370_v58 = vcombine.low %v723_v43, %v731_v44  ;;  %v818_v43 = vld [vmem:[#allocation5 + $0x16a0] sm:$0xff] }
 0x27c   :  { %5698 = vmatpush1.bf16.msra.mxu0 %v8272_v54  ;;  %5870 = vmatpush1.bf16.msra.mxu1 %v8274_v55  ;;  %v746_v54 = vld [vmem:[#allocation5 + $0x1460] sm:$0xff]  ;;  %v739_v55 = vld [vmem:[#allocation5 + $0x1428] sm:$0xff] }
 0x27d   :  { %5699 = vmatprep.subr.bf16.mxu0 %v8289_v56  ;;  %5871 = vmatprep.subr.bf16.mxu1 %v8291_v57  ;;  %v747_v56 = vld [vmem:[#allocation5 + $0x1468] sm:$0xff]  ;;  %v8368_v57 = vcombine.low %v722_v38, %v730_v39  ;;  %v8385_v59 = vcombine.high %v738_v53, %v746_v54  ;;  %v8449_v38 = vcombine.high %v802_v26, %v810_v27  ;;  %v826_v44 = vld [vmem:[#allocation5 + $0x16e0] sm:$0xff] }
 0x27e   :  { %v8387_v61 = vcombine.high %v739_v55, %v747_v56 }
 0x280   :  { %5700 = vmatpush1.bf16.msra.mxu0 %v8288_v2  ;;  %5872 = vmatpush1.bf16.msra.mxu1 %v8290_v3  ;;  %v755_v2 = vld [vmem:[#allocation5 + $0x14a8] sm:$0xff] }
 0x281   :  { %5701 = vmatprep.subr.bf16.mxu0 %v8305_v5  ;;  %5873 = vmatprep.subr.bf16.mxu1 %v8307_v6  ;;  %v763_v3 = vld [vmem:[#allocation5 + $0x14e8] sm:$0xff]  ;;  %v8384_v5 = vcombine.low %v738_v53, %v746_v54  ;;  %v8386_v6 = vcombine.low %v739_v55, %v747_v56  ;;  %v8465_v53 = vcombine.high %v818_v43, %v826_v44  ;;  %v834_v55 = vld [vmem:[#allocation5 + $0x1720] sm:$0xff] }
 0x282   :  { %v8403_v8 = vcombine.high %v755_v2, %v763_v3  ;;  %v842_v56 = vld [vmem:[#allocation5 + $0x1760] sm:$0xff] }
 0x284   :  { %5702 = vmatpush1.bf16.msra.mxu0 %v8304_v11  ;;  %5874 = vmatpush1.bf16.msra.mxu1 %v8306_v12  ;;  %v771_v11 = vld [vmem:[#allocation5 + $0x1528] sm:$0xff] }
 0x285   :  { %5703 = vmatprep.subr.bf16.mxu0 %v8321_v13  ;;  %5875 = vmatprep.subr.bf16.mxu1 %v8323_v14  ;;  %v779_v12 = vld [vmem:[#allocation5 + $0x1568] sm:$0xff]  ;;  %v8400_v13 = vcombine.low %v754_v62, %v762_v1  ;;  %v8402_v14 = vcombine.low %v755_v2, %v763_v3  ;;  %v8481_v62 = vcombine.high %v834_v55, %v842_v56  ;;  %v850_v2 = vld [vmem:[#allocation5 + $0x17a0] sm:$0xff] }
 0x286   :  { %v8419_v16 = vcombine.high %v771_v11, %v779_v12  ;;  %v858_v3 = vld [vmem:[#allocation5 + $0x17e0] sm:$0xff] }
 0x288   :  { %5704 = vmatpush1.bf16.msra.mxu0 %v8320_v19  ;;  %5876 = vmatpush1.bf16.msra.mxu1 %v8322_v21  ;;  %v787_v19 = vld [vmem:[#allocation5 + $0x15a8] sm:$0xff] }
 0x289   :  { %5705 = vmatprep.subr.bf16.mxu0 %v8337_v22  ;;  %5877 = vmatprep.subr.bf16.mxu1 %v8339_v23  ;;  %v795_v21 = vld [vmem:[#allocation5 + $0x15e8] sm:$0xff]  ;;  %v8416_v22 = vcombine.low %v770_v9, %v778_v10  ;;  %v8418_v23 = vcombine.low %v771_v11, %v779_v12  ;;  %v8497_v9 = vcombine.high %v850_v2, %v858_v3  ;;  %v866_v11 = vld [vmem:[#allocation5 + $0x1820] sm:$0xff] }
 0x28a   :  { %v8435_v25 = vcombine.high %v787_v19, %v795_v21  ;;  %v874_v12 = vld [vmem:[#allocation5 + $0x1860] sm:$0xff] }
 0x28c   :  { %5706 = vmatpush1.bf16.msra.mxu0 %v8336_v30  ;;  %5878 = vmatpush1.bf16.msra.mxu1 %v8338_v31  ;;  %v803_v30 = vld [vmem:[#allocation5 + $0x1628] sm:$0xff] }
 0x28d   :  { %5707 = vmatprep.subr.bf16.mxu0 %v8353_v32  ;;  %5879 = vmatprep.subr.bf16.mxu1 %v8355_v37  ;;  %v811_v31 = vld [vmem:[#allocation5 + $0x1668] sm:$0xff]  ;;  %v8432_v32 = vcombine.low %v786_v17, %v794_v18  ;;  %v8434_v37 = vcombine.low %v787_v19, %v795_v21  ;;  %v8513_v17 = vcombine.high %v866_v11, %v874_v12  ;;  %v100_v19 = vld [vmem:[#allocation5 + $0x30] sm:$0xff] }
 0x28e   :  { %v8451_v39 = vcombine.high %v803_v30, %v811_v31  ;;  %v108_v21 = vld [vmem:[#allocation5 + $0x70] sm:$0xff] }
 0x290   :  { %5708 = vmatpush1.bf16.msra.mxu0 %v8352_v47  ;;  %5880 = vmatpush1.bf16.msra.mxu1 %v8354_v49  ;;  %v819_v47 = vld [vmem:[#allocation5 + $0x16a8] sm:$0xff] }
 0x291   :  { %5709 = vmatprep.subr.bf16.mxu0 %v8369_v51  ;;  %5881 = vmatprep.subr.bf16.mxu1 %v8371_v52  ;;  %v827_v49 = vld [vmem:[#allocation5 + $0x16e8] sm:$0xff]  ;;  %v8448_v51 = vcombine.low %v802_v26, %v810_v27  ;;  %v8450_v52 = vcombine.low %v803_v30, %v811_v31  ;;  %v7749_v26 = vcombine.high %v100_v19, %v108_v21  ;;  %v9165_v27 = vld [vmem:[#allocation2 + $0x10] ss:$28 sps:$4 sm:$0xff]  }
 0x292   :  { %v8467_v54 = vcombine.high %v819_v47, %v827_v49  ;;  %v116_v31 = vld [vmem:[#allocation5 + $0xb0] sm:$0xff] }
 0x294   :  { %5710 = vmatpush1.bf16.msra.mxu0 %v8368_v57  ;;  %5882 = vmatpush1.bf16.msra.mxu1 %v8370_v58  ;;  %v835_v57 = vld [vmem:[#allocation5 + $0x1728] sm:$0xff] }
 0x295   :  { %5711 = vmatprep.subr.bf16.mxu0 %v8385_v59  ;;  %5883 = vmatprep.subr.bf16.mxu1 %v8387_v61  ;;  %v843_v58 = vld [vmem:[#allocation5 + $0x1768] sm:$0xff]  ;;  %v8464_v59 = vcombine.low %v818_v43, %v826_v44  ;;  %v8466_v61 = vcombine.low %v819_v47, %v827_v49  ;;  %v132_v49 = vld [vmem:[#allocation5 + $0x130] sm:$0xff] }
 0x296   :  { %v8483_v1 = vcombine.high %v835_v57, %v843_v58 }
 0x298   :  { %5712 = vmatpush1.bf16.msra.mxu0 %v8384_v5  ;;  %5884 = vmatpush1.bf16.msra.mxu1 %v8386_v6  ;;  %v851_v5 = vld [vmem:[#allocation5 + $0x17a8] sm:$0xff] }
 0x299   :  { %5713 = vmatprep.subr.bf16.mxu0 %v8401_v7  ;;  %5885 = vmatprep.subr.bf16.mxu1 %v8403_v8  ;;  %v859_v6 = vld [vmem:[#allocation5 + $0x17e8] sm:$0xff]  ;;  %v8480_v7 = vcombine.low %v834_v55, %v842_v56  ;;  %v8482_v8 = vcombine.low %v835_v57, %v843_v58  ;;  %v900_v58 = vsub.s32 4, %v9425_v50 }
 0x29a   :  { %v8499_v10 = vcombine.high %v851_v5, %v859_v6 }
 0x29c   :  { %5714 = vmatpush1.bf16.msra.mxu0 %v8400_v13  ;;  %5886 = vmatpush1.bf16.msra.mxu1 %v8402_v14  ;;  %v867_v13 = vld [vmem:[#allocation5 + $0x1828] sm:$0xff] }
 0x29d   :  { %5715 = vmatprep.subr.bf16.mxu0 %v8417_v15  ;;  %5887 = vmatprep.subr.bf16.mxu1 %v8419_v16  ;;  %v875_v14 = vld [vmem:[#allocation5 + $0x1868] sm:$0xff]  ;;  %v8496_v15 = vcombine.low %v850_v2, %v858_v3  ;;  %v8498_v16 = vcombine.low %v851_v5, %v859_v6  ;;  %v156_v2 = vld [vmem:[#allocation5 + $0x1f0] sm:$0xff]  ;;  %v912_v5 = vsub.s32 7, %v9425_v50  ;;  %v149_v6 = vld [vmem:[#allocation5 + $0x1b8] sm:$0xff] }
 0x29e   :  { %v8515_v18 = vcombine.high %v867_v13, %v875_v14  ;;  %v9167_v3 = vld [vmem:[#allocation2 + $0x4] ss:$28 sps:$4 sm:$0xff]  }
 0x2a0   :  { %5716 = vmatpush1.bf16.msra.mxu0 %v8416_v22  ;;  %5888 = vmatpush1.bf16.msra.mxu1 %v8418_v23  ;;  %v8512_v22 = vcombine.low %v866_v11, %v874_v12  ;;  %v101_v23 = vld [vmem:[#allocation5 + $0x38] sm:$0xff] }
 0x2a1   :  { %5717 = vmatprep.subr.bf16.mxu0 %v8433_v24  ;;  %5889 = vmatprep.subr.bf16.mxu1 %v8435_v25  ;;  %v109_v24 = vld [vmem:[#allocation5 + $0x78] sm:$0xff]  ;;  %v8514_v25 = vcombine.low %v867_v13, %v875_v14  ;;  %v164_v13 = vld [vmem:[#allocation5 + $0x230] sm:$0xff] }
 0x2a2   :  { %v7751_v30 = vcombine.high %v101_v23, %v109_v24  ;;  %v7750_v43 = vcombine.low %v101_v23, %v109_v24  ;;  %v172_v14 = vld [vmem:[#allocation5 + $0x270] sm:$0xff] }
 0x2a4   :  { %5718 = vmatpush1.bf16.msra.mxu0 %v8432_v32  ;;  %5890 = vmatpush1.bf16.msra.mxu1 %v8434_v37  ;;  %v124_v32 = vld [vmem:[#allocation5 + $0xf0] sm:$0xff]  ;;  %v117_v37 = vld [vmem:[#allocation5 + $0xb8] sm:$0xff] }
 0x2a5   :  { %5719 = vmatprep.subr.bf16.mxu0 %v8449_v38  ;;  %5891 = vmatprep.subr.bf16.mxu1 %v8451_v39  ;;  %v125_v38 = vld [vmem:[#allocation5 + $0xf8] sm:$0xff]  ;;  %v7748_v39 = vcombine.low %v100_v19, %v108_v21  ;;  %v7765_v44 = vcombine.high %v116_v31, %v124_v32  ;;  %v7764_v55 = vcombine.low %v116_v31, %v124_v32 }
 0x2a6   :  { %v7767_v47 = vcombine.high %v117_v37, %v125_v38  ;;  %v7766_v56 = vcombine.low %v117_v37, %v125_v38  ;;  %v165_v19 = vld [vmem:[#allocation5 + $0x238] sm:$0xff]  ;;  %v7813_v31 = vcombine.high %v164_v13, %v172_v14 }
 0x2a7   :  { %v173_v21 = vld [vmem:[#allocation5 + $0x278] sm:$0xff] }
 0x2a8   :  { %5720 = vmatpush1.bf16.msra.mxu0 %v8448_v51  ;;  %5892 = vmatpush1.bf16.msra.mxu1 %v8450_v52  ;;  %v140_v51 = vld [vmem:[#allocation5 + $0x170] sm:$0xff]  ;;  %v9166_v52 = vld [vmem:[#allocation2 + $0x18] ss:$28 sps:$4 sm:$0xff]  }
 0x2a9   :  { %5721 = vmatprep.subr.bf16.mxu0 %v8465_v53  ;;  %5893 = vmatprep.subr.bf16.mxu1 %v8467_v54  ;;  %v133_v53 = vld [vmem:[#allocation5 + $0x138] sm:$0xff]  ;;  %v7781_v57 = vcombine.high %v132_v49, %v140_v51 }
 0x2aa   :  { %v141_v54 = vld [vmem:[#allocation5 + $0x178] sm:$0xff] }
 0x2ac   :  { %5722 = vmatpush1.bf16.msra.mxu0 %v8464_v59  ;;  %5894 = vmatpush1.bf16.msra.mxu1 %v8466_v61  ;;  %v7783_v59 = vcombine.high %v133_v53, %v141_v54  ;;  %v908_v61 = vsub.s32 6, %v9425_v50 }
 0x2ad   :  { %5723 = vmatprep.subr.bf16.mxu0 %v8481_v62  ;;  %5895 = vmatprep.subr.bf16.mxu1 %v8483_v1  ;;  %v904_v62 = vsub.s32 5, %v9425_v50  ;;  %v148_v1 = vld [vmem:[#allocation5 + $0x1b0] sm:$0xff] }
 0x2ae   :  { %v7797_v12 = vcombine.high %v148_v1, %v156_v2 }
 0x2b0   :  { %5724 = vmatpush1.bf16.msra.mxu0 %v8480_v7  ;;  %5896 = vmatpush1.bf16.msra.mxu1 %v8482_v8  ;;  %v157_v7 = vld [vmem:[#allocation5 + $0x1f8] sm:$0xff]  ;;  %v7780_v8 = vcombine.low %v132_v49, %v140_v51 }
 0x2b1   :  { %5725 = vmatprep.subr.bf16.mxu0 %v8497_v9  ;;  %5897 = vmatprep.subr.bf16.mxu1 %v8499_v10  ;;  %v7782_v9 = vcombine.low %v133_v53, %v141_v54  ;;  %v9168_v10 = vld [vmem:[#allocation7] sm:$0xff]  ;;  %v180_v53 = vld [vmem:[#allocation5 + $0x2b0] sm:$0xff] }
 0x2b2   :  { %v901_v11 = vrot.slane %v9168_v10, %v900_v58  ;;  %v913_v24 = vrot.slane %v9168_v10, %v912_v5  ;;  %v188_v54 = vld [vmem:[#allocation5 + $0x2f0] sm:$0xff] }
 0x2b4   :  { %5726 = vmatpush1.bf16.msra.mxu0 %v8496_v15  ;;  %5898 = vmatpush1.bf16.msra.mxu1 %v8498_v16  ;;  %v909_v16 = vrot.slane %v9168_v10, %v908_v61 }
 0x2b5   :  { %5738 = vmatprep.subr.bf16.mxu0 %v8513_v17  ;;  %5910 = vmatprep.subr.bf16.mxu1 %v8515_v18  ;;  %v905_v17 = vrot.slane %v9168_v10, %v904_v62  ;;  %v7799_v18 = vcombine.high %v149_v6, %v157_v7 }
 0x2b7   :  { %5728 = vmatmul.mubr.bf16.vlgmr.msra.gmra.mrb[8].mxu0 %v9165_v27  ;;  %5900 = vmatmul.mubr.bf16.vlgmr.msra.gmra.mrb[8].mxu1 %v9165_v27  ;;  %v7796_v27 = vcombine.low %v148_v1, %v156_v2  ;;  %v189_v1 = vld [vmem:[#allocation5 + $0x2f8] sm:$0xff] }
 0x2b8   :  { %5739 = vmatpush1.bf16.msra.mxu0 %v8512_v22  ;;  %5911 = vmatpush1.bf16.msra.mxu1 %v8514_v25 }
 0x2b9   :  { %5770 = vmatprep.mubr.bf16.mxu0 %v9325_v20  ;;  %5942 = vmatprep.mubr.bf16.mxu1 %v9325_v20 }
 0x2ba   :  { %5953 = vmatprep.subr.bf16.mxu0 %v7749_v26  ;;  %6125 = vmatprep.subr.bf16.mxu1 %v7751_v30  ;;  %v7798_v30 = vcombine.low %v149_v6, %v157_v7  ;;  %v7812_v6 = vcombine.low %v164_v13, %v172_v14  ;;  %v212_v14 = vld [vmem:[#allocation5 + $0x3b0] sm:$0xff] }
 0x2c3   :  { %8524 = vmatmul.mubr.msk.bf16.vlgmr.msra.gmra.mrb[8].mxu0 %vm4917_vm0, %v9166_v52  ;;  %8525 = vmatmul.mubr.msk.bf16.vlgmr.msra.gmra.mrb[8].mxu1 %vm4917_vm0, %v9166_v52 }
 0x2c4   :  { %5954 = vmatpush1.bf16.msra.mxu0 %v7748_v39  ;;  %6126 = vmatpush1.bf16.msra.mxu1 %v7750_v43  ;;  %v7815_v43 = vcombine.high %v165_v19, %v173_v21 }
 0x2c5   :  { %5955 = vmatprep.subr.bf16.mxu0 %v7765_v44  ;;  %6127 = vmatprep.subr.bf16.mxu1 %v7767_v47 }
 0x2c6   :  { %5985 = vmatprep.mubr.bf16.mxu0 %v9167_v3  ;;  %6157 = vmatprep.mubr.bf16.mxu1 %v9167_v3 }
 0x2c8   :  { %5956 = vmatpush1.bf16.msra.mxu0 %v7764_v55  ;;  %6128 = vmatpush1.bf16.msra.mxu1 %v7766_v56 }
 0x2c9   :  { %5957 = vmatprep.subr.bf16.mxu0 %v7781_v57  ;;  %6129 = vmatprep.subr.bf16.mxu1 %v7783_v59  ;;  %v181_v59 = vld [vmem:[#allocation5 + $0x2b8] sm:$0xff] }
 0x2ca   :  { %v5428_v15 = vpop.f32.mrb[4].mxu0  ;;  %v5600_v22 = vpop.f32.mrb[4].mxu1  ;;  %v7831_v10 = vcombine.high %v181_v59, %v189_v1 }
 0x2cb   :  { %v5430_v23 = vpop.f32.mrb[5].mxu0  ;;  %v5602_v25 = vpop.f32.mrb[5].mxu1  ;;  %v9481_v32 = vadd.f32 %v5428_v15, %v901_v11  ;;  %v9485_v44 = vadd.f32 %v5600_v22, %v909_v16  ;;  %v197_v15 = vld [vmem:[#allocation5 + $0x338] sm:$0xff] }
 0x2cc   :  { %5958 = vmatpush1.bf16.msra.mxu0 %v7780_v8  ;;  %v5432_v26 = vpop.f32.mrb[6].mxu0  ;;  %6130 = vmatpush1.bf16.msra.mxu1 %v7782_v9  ;;  %v5604_v38 = vpop.f32.mrb[6].mxu1  ;;  %v9487_v47 = vadd.f32 %v5430_v23, %v905_v17  ;;  %v9493_v55 = vadd.f32 %v5602_v25, %v913_v24  ;;  %v7814_v8 = vcombine.low %v165_v19, %v173_v21  ;;  %v220_v23 = vld [vmem:[#allocation5 + $0x3f0] sm:$0xff]  ;;  %v221_v25 = vld [vmem:[#allocation5 + $0x3f8] sm:$0xff] }
 0x2cd   :  { %v9483_v37 = vadd.f32 %v5432_v26, %v901_v11  ;;  %v5434_v39 = vpop.f32.mrb[7].mxu0  ;;  %5959 = vmatprep.subr.bf16.mxu0 %v7797_v12  ;;  %v9489_v49 = vadd.f32 %v5604_v38, %v909_v16  ;;  %v5606_v52 = vpop.f32.mrb[7].mxu1  ;;  %6131 = vmatprep.subr.bf16.mxu1 %v7799_v18  ;;  %v7829_v9 = vcombine.high %v180_v53, %v188_v54  ;;  %v196_v11 = vld [vmem:[#allocation5 + $0x330] sm:$0xff]  ;;  %v205_v16 = vld [vmem:[#allocation5 + $0x378] sm:$0xff] }
 0x2ce   :  { %v9491_v51 = vadd.f32 %v5434_v39, %v905_v17  ;;  %v9497_v57 = vadd.f32 %v5606_v52, %v913_v24  ;;  %v204_v12 = vld [vmem:[#allocation5 + $0x370] sm:$0xff]  ;;  %v7828_v17 = vcombine.low %v180_v53, %v188_v54  ;;  %v7830_v18 = vcombine.low %v181_v59, %v189_v1  ;;  %v213_v24 = vld [vmem:[#allocation5 + $0x3b8] sm:$0xff] }
 0x2cf   :  { %v6301_v56 = vpack.c.bf16 %v9483_v37, %v9481_v32  ;;  %v6303_v2 = vpack.c.bf16 %v9489_v49, %v9485_v44  ;;  %v7845_v22 = vcombine.high %v196_v11, %v204_v12  ;;  %v7847_v13 = vcombine.high %v197_v15, %v205_v16  ;;  %v229_v38 = vld [vmem:[#allocation5 + $0x438] sm:$0xff]  ;;  %v244_v59 = vld [vmem:[#allocation5 + $0x4b0] sm:$0xff]  ;;  %v9046_v32 = vld [vmem:[#allocation8 + $0x1f8] sm:$0xff]  }
 0x2d0   :  { %v6302_v3 = vpack.c.bf16 %v9491_v51, %v9487_v47  ;;  %5960 = vmatpush1.bf16.msra.mxu0 %v7796_v27  ;;  %v6304_v7 = vpack.c.bf16 %v9497_v57, %v9493_v55  ;;  %6132 = vmatpush1.bf16.msra.mxu1 %v7798_v30  ;;  %v7844_v19 = vcombine.low %v196_v11, %v204_v12  ;;  %v228_v30 = vld [vmem:[#allocation5 + $0x430] sm:$0xff]  ;;  %v237_v39 = vld [vmem:[#allocation5 + $0x478] sm:$0xff]  ;;  %v9118_v51 = vpop.eup %9117  ;;  %v9047_v37 = vld [vmem:[#allocation8 + $0x138] sm:$0xff]  }
 0x2d1   :  { %5961 = vmatprep.subr.bf16.mxu0 %v7813_v31  ;;  %6133 = vmatprep.subr.bf16.mxu1 %v7815_v43  ;;  %v7846_v21 = vcombine.low %v197_v15, %v205_v16  ;;  %v7861_v26 = vcombine.high %v212_v14, %v220_v23  ;;  %v7863_v27 = vcombine.high %v213_v24, %v221_v25  ;;  %v236_v31 = vld [vmem:[#allocation5 + $0x470] sm:$0xff]  ;;  %v9120_v55 = vpop.eup %9119  ;;  %v9022_v57 = vld [vmem:[#allocation8 + $0x1c8] sm:$0xff]   ;;  %v9048_v44 = vld [vmem:[#allocation8 + $0x1b8] sm:$0xff]  }
 0x2d2   :  { %v7860_v43 = vcombine.low %v212_v14, %v220_v23  ;;  %v7862_v52 = vcombine.low %v213_v24, %v221_v25  ;;  %v7877_v53 = vcombine.high %v228_v30, %v236_v31  ;;  %v7879_v54 = vcombine.high %v229_v38, %v237_v39  ;;  %v252_v1 = vld [vmem:[#allocation5 + $0x4f0] sm:$0xff] }
 0x2d3   :  { %v7893_v11 = vcombine.high %v244_v59, %v252_v1  ;;  %v260_v15 = vld [vmem:[#allocation5 + $0x530] sm:$0xff]  ;;  %9121 = vtanh.bf16 %v6302_v3  ;;  %v9021_v3 = vld [vmem:[#allocation8 + $0x148] sm:$0xff]  }
 0x2d4   :  { %5962 = vmatpush1.bf16.msra.mxu0 %v7812_v6  ;;  %6134 = vmatpush1.bf16.msra.mxu1 %v7814_v8  ;;  %v245_v6 = vld [vmem:[#allocation5 + $0x4b8] sm:$0xff]  ;;  %v268_v16 = vld [vmem:[#allocation5 + $0x570] sm:$0xff]  ;;  %9123 = vtanh.bf16 %v6304_v7 }
 0x2d5   :  { %5963 = vmatprep.subr.bf16.mxu0 %v7829_v9  ;;  %6135 = vmatprep.subr.bf16.mxu1 %v7831_v10  ;;  %v253_v8 = vld [vmem:[#allocation5 + $0x4f8] sm:$0xff]  ;;  %v7876_v9 = vcombine.low %v228_v30, %v236_v31  ;;  %v7878_v10 = vcombine.low %v229_v38, %v237_v39  ;;  %v7909_v14 = vcombine.high %v260_v15, %v268_v16  ;;  %v276_v24 = vld [vmem:[#allocation5 + $0x5b0] sm:$0xff]  ;;  %9125 = vtanh.bf16 %v6301_v56 }
 0x2d6   :  { %v7895_v12 = vcombine.high %v245_v6, %v253_v8  ;;  %v284_v25 = vld [vmem:[#allocation5 + $0x5f0] sm:$0xff]  ;;  %9127 = vtanh.bf16 %v6303_v2 }
 0x2d7   :  { %v7925_v30 = vcombine.high %v276_v24, %v284_v25  ;;  %v292_v38 = vld [vmem:[#allocation5 + $0x630] sm:$0xff] }
 0x2d8   :  { %5964 = vmatpush1.bf16.msra.mxu0 %v7828_v17  ;;  %6136 = vmatpush1.bf16.msra.mxu1 %v7830_v18  ;;  %v261_v17 = vld [vmem:[#allocation5 + $0x538] sm:$0xff]  ;;  %v300_v39 = vld [vmem:[#allocation5 + $0x670] sm:$0xff] }
 0x2d9   :  { %5965 = vmatprep.subr.bf16.mxu0 %v7845_v22  ;;  %6137 = vmatprep.subr.bf16.mxu1 %v7847_v13  ;;  %v269_v18 = vld [vmem:[#allocation5 + $0x578] sm:$0xff]  ;;  %v7892_v22 = vcombine.low %v244_v59, %v252_v1  ;;  %v7894_v13 = vcombine.low %v245_v6, %v253_v8  ;;  %v7941_v59 = vcombine.high %v292_v38, %v300_v39  ;;  %v308_v6 = vld [vmem:[#allocation5 + $0x6b0] sm:$0xff] }
 0x2da   :  { %v7911_v23 = vcombine.high %v261_v17, %v269_v18  ;;  %v316_v8 = vld [vmem:[#allocation5 + $0x6f0] sm:$0xff] }
 0x2db   :  { %v9020_v47 = vld [vmem:[#allocation8 + $0x180] sm:$0xff]  }
 0x2dc   :  { %5966 = vmatpush1.bf16.msra.mxu0 %v7844_v19  ;;  %6138 = vmatpush1.bf16.msra.mxu1 %v7846_v21  ;;  %v277_v19 = vld [vmem:[#allocation5 + $0x5b8] sm:$0xff]  ;;  %v9049_v49 = vld [vmem:[#allocation8 + $0x240] sm:$0xff]  }
 0x2dd   :  { %5967 = vmatprep.subr.bf16.mxu0 %v7861_v26  ;;  %6139 = vmatprep.subr.bf16.mxu1 %v7863_v27  ;;  %v285_v21 = vld [vmem:[#allocation5 + $0x5f8] sm:$0xff]  ;;  %v7908_v26 = vcombine.low %v260_v15, %v268_v16  ;;  %v7910_v27 = vcombine.low %v261_v17, %v269_v18  ;;  %v7957_v15 = vcombine.high %v308_v6, %v316_v8  ;;  %v324_v17 = vld [vmem:[#allocation5 + $0x730] sm:$0xff] }
 0x2de   :  { %v7927_v31 = vcombine.high %v277_v19, %v285_v21  ;;  %v332_v18 = vld [vmem:[#allocation5 + $0x770] sm:$0xff]  ;;  %v9122_v7 = vpop.eup %9121 }
 0x2df   :  { %v9050_v56 = vld [vmem:[#allocation8 + $0x2c0] sm:$0xff]  }
 0x2e0   :  { %5968 = vmatpush1.bf16.msra.mxu0 %v7860_v43  ;;  %6140 = vmatpush1.bf16.msra.mxu1 %v7862_v52  ;;  %v293_v43 = vld [vmem:[#allocation5 + $0x638] sm:$0xff]  ;;  %v9051_v2 = vld [vmem:[#allocation8 + $0x200] sm:$0xff]  }
 0x2e1   :  { %5969 = vmatprep.subr.bf16.mxu0 %v7877_v53  ;;  %6141 = vmatprep.subr.bf16.mxu1 %v7879_v54  ;;  %v301_v52 = vld [vmem:[#allocation5 + $0x678] sm:$0xff]  ;;  %v7924_v53 = vcombine.low %v276_v24, %v284_v25  ;;  %v7926_v54 = vcombine.low %v277_v19, %v285_v21  ;;  %v7973_v24 = vcombine.high %v324_v17, %v332_v18  ;;  %v340_v19 = vld [vmem:[#allocation5 + $0x7b0] sm:$0xff] }
 0x2e2   :  { %v7943_v1 = vcombine.high %v293_v43, %v301_v52  ;;  %v348_v21 = vld [vmem:[#allocation5 + $0x7f0] sm:$0xff] }
 0x2e4   :  { %5970 = vmatpush1.bf16.msra.mxu0 %v7876_v9  ;;  %6142 = vmatpush1.bf16.msra.mxu1 %v7878_v10  ;;  %v309_v9 = vld [vmem:[#allocation5 + $0x6b8] sm:$0xff] }
 0x2e5   :  { %5971 = vmatprep.subr.bf16.mxu0 %v7893_v11  ;;  %6143 = vmatprep.subr.bf16.mxu1 %v7895_v12  ;;  %v317_v10 = vld [vmem:[#allocation5 + $0x6f8] sm:$0xff]  ;;  %v7940_v11 = vcombine.low %v292_v38, %v300_v39  ;;  %v7942_v12 = vcombine.low %v293_v43, %v301_v52  ;;  %v7989_v38 = vcombine.high %v340_v19, %v348_v21  ;;  %v356_v43 = vld [vmem:[#allocation5 + $0x830] sm:$0xff] }
 0x2e6   :  { %v7959_v16 = vcombine.high %v309_v9, %v317_v10  ;;  %v364_v52 = vld [vmem:[#allocation5 + $0x870] sm:$0xff] }
 0x2e8   :  { %5972 = vmatpush1.bf16.msra.mxu0 %v7892_v22  ;;  %6144 = vmatpush1.bf16.msra.mxu1 %v7894_v13  ;;  %v325_v22 = vld [vmem:[#allocation5 + $0x738] sm:$0xff] }
 0x2e9   :  { %5973 = vmatprep.subr.bf16.mxu0 %v7909_v14  ;;  %6145 = vmatprep.subr.bf16.mxu1 %v7911_v23  ;;  %v333_v13 = vld [vmem:[#allocation5 + $0x778] sm:$0xff]  ;;  %v7956_v14 = vcombine.low %v308_v6, %v316_v8  ;;  %v7958_v23 = vcombine.low %v309_v9, %v317_v10  ;;  %v8005_v6 = vcombine.high %v356_v43, %v364_v52  ;;  %v372_v9 = vld [vmem:[#allocation5 + $0x8b0] sm:$0xff] }
 0x2ea   :  { %v7975_v25 = vcombine.high %v325_v22, %v333_v13  ;;  %v380_v10 = vld [vmem:[#allocation5 + $0x8f0] sm:$0xff] }
 0x2ec   :  { %5974 = vmatpush1.bf16.msra.mxu0 %v7908_v26  ;;  %6146 = vmatpush1.bf16.msra.mxu1 %v7910_v27  ;;  %v341_v26 = vld [vmem:[#allocation5 + $0x7b8] sm:$0xff] }
 0x2ed   :  { %5975 = vmatprep.subr.bf16.mxu0 %v7925_v30  ;;  %6147 = vmatprep.subr.bf16.mxu1 %v7927_v31  ;;  %v349_v27 = vld [vmem:[#allocation5 + $0x7f8] sm:$0xff]  ;;  %v7972_v30 = vcombine.low %v324_v17, %v332_v18  ;;  %v7974_v31 = vcombine.low %v325_v22, %v333_v13  ;;  %v8021_v17 = vcombine.high %v372_v9, %v380_v10  ;;  %v388_v22 = vld [vmem:[#allocation5 + $0x930] sm:$0xff] }
 0x2ee   :  { %v7991_v39 = vcombine.high %v341_v26, %v349_v27  ;;  %v396_v13 = vld [vmem:[#allocation5 + $0x970] sm:$0xff] }
 0x2f0   :  { %5976 = vmatpush1.bf16.msra.mxu0 %v7924_v53  ;;  %6148 = vmatpush1.bf16.msra.mxu1 %v7926_v54  ;;  %v357_v53 = vld [vmem:[#allocation5 + $0x838] sm:$0xff] }
 0x2f1   :  { %5977 = vmatprep.subr.bf16.mxu0 %v7941_v59  ;;  %6149 = vmatprep.subr.bf16.mxu1 %v7943_v1  ;;  %v365_v54 = vld [vmem:[#allocation5 + $0x878] sm:$0xff]  ;;  %v7988_v59 = vcombine.low %v340_v19, %v348_v21  ;;  %v7990_v1 = vcombine.low %v341_v26, %v349_v27  ;;  %v8037_v21 = vcombine.high %v388_v22, %v396_v13  ;;  %v404_v27 = vld [vmem:[#allocation5 + $0x9b0] sm:$0xff] }
 0x2f2   :  { %v8007_v8 = vcombine.high %v357_v53, %v365_v54 }
 0x2f4   :  { %5978 = vmatpush1.bf16.msra.mxu0 %v7940_v11  ;;  %6150 = vmatpush1.bf16.msra.mxu1 %v7942_v12  ;;  %v373_v11 = vld [vmem:[#allocation5 + $0x8b8] sm:$0xff] }
 0x2f5   :  { %5979 = vmatprep.subr.bf16.mxu0 %v7957_v15  ;;  %6151 = vmatprep.subr.bf16.mxu1 %v7959_v16  ;;  %v381_v12 = vld [vmem:[#allocation5 + $0x8f8] sm:$0xff]  ;;  %v8004_v15 = vcombine.low %v356_v43, %v364_v52  ;;  %v8006_v16 = vcombine.low %v357_v53, %v365_v54  ;;  %v8036_v43 = vcombine.low %v388_v22, %v396_v13 }
 0x2f6   :  { %v8023_v18 = vcombine.high %v373_v11, %v381_v12  ;;  %v8022_v19 = vcombine.low %v373_v11, %v381_v12 }
 0x2f8   :  { %5980 = vmatpush1.bf16.msra.mxu0 %v7956_v14  ;;  %6152 = vmatpush1.bf16.msra.mxu1 %v7958_v23  ;;  %v9169_v14 = vld [vmem:[#allocation2] ss:$28 sps:$4 sm:$0xff]   ;;  %v389_v23 = vld [vmem:[#allocation5 + $0x938] sm:$0xff] }
 0x2f9   :  { %5981 = vmatprep.subr.bf16.mxu0 %v7973_v24  ;;  %6153 = vmatprep.subr.bf16.mxu1 %v7975_v25  ;;  %v397_v24 = vld [vmem:[#allocation5 + $0x978] sm:$0xff]  ;;  %v8020_v25 = vcombine.low %v372_v9, %v380_v10 }
 0x2fa   :  { %v8039_v26 = vcombine.high %v389_v23, %v397_v24  ;;  %v8038_v52 = vcombine.low %v389_v23, %v397_v24  ;;  %v452_v24 = vld [vmem:[#allocation5 + $0xb30] sm:$0xff] }
 0x2fc   :  { %5982 = vmatpush1.bf16.msra.mxu0 %v7972_v30  ;;  %6154 = vmatpush1.bf16.msra.mxu1 %v7974_v31  ;;  %v412_v30 = vld [vmem:[#allocation5 + $0x9f0] sm:$0xff] }
 0x2fd   :  { %5983 = vmatprep.subr.bf16.mxu0 %v7989_v38  ;;  %6155 = vmatprep.subr.bf16.mxu1 %v7991_v39  ;;  %v9170_v31 = vld [vmem:[#allocation2 + $0xc] ss:$28 sps:$4 sm:$0xff]   ;;  %v405_v38 = vld [vmem:[#allocation5 + $0x9b8] sm:$0xff]  ;;  %v8053_v53 = vcombine.high %v404_v27, %v412_v30  ;;  %v8052_v9 = vcombine.low %v404_v27, %v412_v30 }
 0x2fe   :  { %v413_v39 = vld [vmem:[#allocation5 + $0x9f8] sm:$0xff] }
 0x2ff   :  { %v8055_v54 = vcombine.high %v405_v38, %v413_v39  ;;  %v8054_v10 = vcombine.low %v405_v38, %v413_v39  ;;  %v468_v38 = vld [vmem:[#allocation5 + $0xbb0] sm:$0xff] }
 0x300   :  { %5984 = vmatpush1.bf16.msra.mxu0 %v7988_v59  ;;  %6156 = vmatpush1.bf16.msra.mxu1 %v7990_v1  ;;  %v420_v59 = vld [vmem:[#allocation5 + $0xa30] sm:$0xff] }
 0x301   :  { %5996 = vmatprep.subr.bf16.mxu0 %v8005_v6  ;;  %6168 = vmatprep.subr.bf16.mxu1 %v8007_v8  ;;  %v428_v1 = vld [vmem:[#allocation5 + $0xa70] sm:$0xff]  ;;  %v421_v6 = vld [vmem:[#allocation5 + $0xa38] sm:$0xff] }
 0x302   :  { %v429_v8 = vld [vmem:[#allocation5 + $0xa78] sm:$0xff]  ;;  %v8069_v11 = vcombine.high %v420_v59, %v428_v1  ;;  %v8068_v22 = vcombine.low %v420_v59, %v428_v1  ;;  %v476_v39 = vld [vmem:[#allocation5 + $0xbf0] sm:$0xff] }
 0x303   :  { %5986 = vmatmul.mubr.bf16.vlgmr.msra.gmra.mrb[12].mxu0 %v9169_v14  ;;  %6158 = vmatmul.mubr.bf16.vlgmr.msra.gmra.mrb[12].mxu1 %v9169_v14  ;;  %v8071_v12 = vcombine.high %v421_v6, %v429_v8  ;;  %v8070_v13 = vcombine.low %v421_v6, %v429_v8  ;;  %v8117_v59 = vcombine.high %v468_v38, %v476_v39  ;;  %v484_v6 = vld [vmem:[#allocation5 + $0xc30] sm:$0xff] }
 0x304   :  { %5997 = vmatpush1.bf16.msra.mxu0 %v8004_v15  ;;  %6169 = vmatpush1.bf16.msra.mxu1 %v8006_v16  ;;  %v436_v15 = vld [vmem:[#allocation5 + $0xab0] sm:$0xff] }
 0x305   :  { %5998 = vmatprep.subr.bf16.mxu0 %v8021_v17  ;;  %6170 = vmatprep.subr.bf16.mxu1 %v8023_v18  ;;  %v444_v16 = vld [vmem:[#allocation5 + $0xaf0] sm:$0xff]  ;;  %v437_v17 = vld [vmem:[#allocation5 + $0xab8] sm:$0xff] }
 0x306   :  { %6028 = vmatprep.mubr.bf16.mxu0 %v9170_v31  ;;  %6200 = vmatprep.mubr.bf16.mxu1 %v9170_v31  ;;  %v445_v18 = vld [vmem:[#allocation5 + $0xaf8] sm:$0xff]  ;;  %v8085_v14 = vcombine.high %v436_v15, %v444_v16  ;;  %v492_v8 = vld [vmem:[#allocation5 + $0xc70] sm:$0xff] }
 0x307   :  { %v8087_v23 = vcombine.high %v437_v17, %v445_v18  ;;  %v8086_v27 = vcombine.low %v437_v17, %v445_v18  ;;  %v500_v17 = vld [vmem:[#allocation5 + $0xcb0] sm:$0xff] }
 0x308   :  { %5999 = vmatpush1.bf16.msra.mxu0 %v8020_v25  ;;  %6171 = vmatpush1.bf16.msra.mxu1 %v8022_v19  ;;  %v460_v25 = vld [vmem:[#allocation5 + $0xb70] sm:$0xff]  ;;  %v453_v19 = vld [vmem:[#allocation5 + $0xb38] sm:$0xff] }
 0x309   :  { %6000 = vmatprep.subr.bf16.mxu0 %v8037_v21  ;;  %6172 = vmatprep.subr.bf16.mxu1 %v8039_v26  ;;  %v461_v21 = vld [vmem:[#allocation5 + $0xb78] sm:$0xff]  ;;  %v8084_v26 = vcombine.low %v436_v15, %v444_v16  ;;  %v8101_v30 = vcombine.high %v452_v24, %v460_v25  ;;  %v8133_v15 = vcombine.high %v484_v6, %v492_v8  ;;  %v508_v18 = vld [vmem:[#allocation5 + $0xcf0] sm:$0xff] }
 0x30a   :  { %v8103_v31 = vcombine.high %v453_v19, %v461_v21 }
 0x30c   :  { %6001 = vmatpush1.bf16.msra.mxu0 %v8036_v43  ;;  %6173 = vmatpush1.bf16.msra.mxu1 %v8038_v52  ;;  %v469_v43 = vld [vmem:[#allocation5 + $0xbb8] sm:$0xff] }
 0x30d   :  { %6002 = vmatprep.subr.bf16.mxu0 %v8053_v53  ;;  %6174 = vmatprep.subr.bf16.mxu1 %v8055_v54  ;;  %v477_v52 = vld [vmem:[#allocation5 + $0xbf8] sm:$0xff]  ;;  %v8100_v53 = vcombine.low %v452_v24, %v460_v25  ;;  %v8102_v54 = vcombine.low %v453_v19, %v461_v21  ;;  %v8149_v24 = vcombine.high %v500_v17, %v508_v18  ;;  %v516_v19 = vld [vmem:[#allocation5 + $0xd30] sm:$0xff] }
 0x30e   :  { %v8119_v1 = vcombine.high %v469_v43, %v477_v52  ;;  %v524_v21 = vld [vmem:[#allocation5 + $0xd70] sm:$0xff] }
 0x310   :  { %6003 = vmatpush1.bf16.msra.mxu0 %v8052_v9  ;;  %6175 = vmatpush1.bf16.msra.mxu1 %v8054_v10  ;;  %v485_v9 = vld [vmem:[#allocation5 + $0xc38] sm:$0xff] }
 0x311   :  { %6004 = vmatprep.subr.bf16.mxu0 %v8069_v11  ;;  %6176 = vmatprep.subr.bf16.mxu1 %v8071_v12  ;;  %v493_v10 = vld [vmem:[#allocation5 + $0xc78] sm:$0xff]  ;;  %v8116_v11 = vcombine.low %v468_v38, %v476_v39  ;;  %v8118_v12 = vcombine.low %v469_v43, %v477_v52  ;;  %v8165_v38 = vcombine.high %v516_v19, %v524_v21  ;;  %v532_v43 = vld [vmem:[#allocation5 + $0xdb0] sm:$0xff] }
 0x312   :  { %v8135_v16 = vcombine.high %v485_v9, %v493_v10  ;;  %v540_v52 = vld [vmem:[#allocation5 + $0xdf0] sm:$0xff] }
 0x314   :  { %6005 = vmatpush1.bf16.msra.mxu0 %v8068_v22  ;;  %6177 = vmatpush1.bf16.msra.mxu1 %v8070_v13  ;;  %v501_v22 = vld [vmem:[#allocation5 + $0xcb8] sm:$0xff] }
 0x315   :  { %6006 = vmatprep.subr.bf16.mxu0 %v8085_v14  ;;  %6178 = vmatprep.subr.bf16.mxu1 %v8087_v23  ;;  %v509_v13 = vld [vmem:[#allocation5 + $0xcf8] sm:$0xff]  ;;  %v8132_v14 = vcombine.low %v484_v6, %v492_v8  ;;  %v8134_v23 = vcombine.low %v485_v9, %v493_v10  ;;  %v8181_v6 = vcombine.high %v532_v43, %v540_v52  ;;  %v548_v9 = vld [vmem:[#allocation5 + $0xe30] sm:$0xff] }
 0x316   :  { %v8151_v25 = vcombine.high %v501_v22, %v509_v13  ;;  %v556_v10 = vld [vmem:[#allocation5 + $0xe70] sm:$0xff] }
 0x318   :  { %6007 = vmatpush1.bf16.msra.mxu0 %v8084_v26  ;;  %6179 = vmatpush1.bf16.msra.mxu1 %v8086_v27  ;;  %v517_v26 = vld [vmem:[#allocation5 + $0xd38] sm:$0xff] }
 0x319   :  { %6008 = vmatprep.subr.bf16.mxu0 %v8101_v30  ;;  %6180 = vmatprep.subr.bf16.mxu1 %v8103_v31  ;;  %v525_v27 = vld [vmem:[#allocation5 + $0xd78] sm:$0xff]  ;;  %v8148_v30 = vcombine.low %v500_v17, %v508_v18  ;;  %v8150_v31 = vcombine.low %v501_v22, %v509_v13  ;;  %v8197_v17 = vcombine.high %v548_v9, %v556_v10  ;;  %v564_v22 = vld [vmem:[#allocation5 + $0xeb0] sm:$0xff] }
 0x31a   :  { %v8167_v39 = vcombine.high %v517_v26, %v525_v27  ;;  %v572_v13 = vld [vmem:[#allocation5 + $0xef0] sm:$0xff] }
 0x31c   :  { %6009 = vmatpush1.bf16.msra.mxu0 %v8100_v53  ;;  %6181 = vmatpush1.bf16.msra.mxu1 %v8102_v54  ;;  %v533_v53 = vld [vmem:[#allocation5 + $0xdb8] sm:$0xff] }
 0x31d   :  { %6010 = vmatprep.subr.bf16.mxu0 %v8117_v59  ;;  %6182 = vmatprep.subr.bf16.mxu1 %v8119_v1  ;;  %v541_v54 = vld [vmem:[#allocation5 + $0xdf8] sm:$0xff]  ;;  %v8164_v59 = vcombine.low %v516_v19, %v524_v21  ;;  %v8166_v1 = vcombine.low %v517_v26, %v525_v27  ;;  %v8213_v19 = vcombine.high %v564_v22, %v572_v13  ;;  %v580_v26 = vld [vmem:[#allocation5 + $0xf30] sm:$0xff] }
 0x31e   :  { %v8183_v8 = vcombine.high %v533_v53, %v541_v54  ;;  %v588_v27 = vld [vmem:[#allocation5 + $0xf70] sm:$0xff] }
 0x320   :  { %6011 = vmatpush1.bf16.msra.mxu0 %v8116_v11  ;;  %6183 = vmatpush1.bf16.msra.mxu1 %v8118_v12  ;;  %v549_v11 = vld [vmem:[#allocation5 + $0xe38] sm:$0xff] }
 0x321   :  { %6012 = vmatprep.subr.bf16.mxu0 %v8133_v15  ;;  %6184 = vmatprep.subr.bf16.mxu1 %v8135_v16  ;;  %v557_v12 = vld [vmem:[#allocation5 + $0xe78] sm:$0xff]  ;;  %v8180_v15 = vcombine.low %v532_v43, %v540_v52  ;;  %v8182_v16 = vcombine.low %v533_v53, %v541_v54  ;;  %v8229_v43 = vcombine.high %v580_v26, %v588_v27  ;;  %v596_v53 = vld [vmem:[#allocation5 + $0xfb0] sm:$0xff] }
 0x322   :  { %v8199_v18 = vcombine.high %v549_v11, %v557_v12  ;;  %v604_v54 = vld [vmem:[#allocation5 + $0xff0] sm:$0xff] }
 0x324   :  { %6013 = vmatpush1.bf16.msra.mxu0 %v8132_v14  ;;  %6185 = vmatpush1.bf16.msra.mxu1 %v8134_v23  ;;  %v565_v14 = vld [vmem:[#allocation5 + $0xeb8] sm:$0xff] }
 0x325   :  { %6014 = vmatprep.subr.bf16.mxu0 %v8149_v24  ;;  %6186 = vmatprep.subr.bf16.mxu1 %v8151_v25  ;;  %v573_v23 = vld [vmem:[#allocation5 + $0xef8] sm:$0xff]  ;;  %v8196_v24 = vcombine.low %v548_v9, %v556_v10  ;;  %v8198_v25 = vcombine.low %v549_v11, %v557_v12  ;;  %v8245_v9 = vcombine.high %v596_v53, %v604_v54  ;;  %v612_v11 = vld [vmem:[#allocation5 + $0x1030] sm:$0xff] }
 0x326   :  { %v8215_v21 = vcombine.high %v565_v14, %v573_v23  ;;  %v620_v12 = vld [vmem:[#allocation5 + $0x1070] sm:$0xff] }
 0x328   :  { %6015 = vmatpush1.bf16.msra.mxu0 %v8148_v30  ;;  %6187 = vmatpush1.bf16.msra.mxu1 %v8150_v31  ;;  %v581_v30 = vld [vmem:[#allocation5 + $0xf38] sm:$0xff] }
 0x329   :  { %6016 = vmatprep.subr.bf16.mxu0 %v8165_v38  ;;  %6188 = vmatprep.subr.bf16.mxu1 %v8167_v39  ;;  %v589_v31 = vld [vmem:[#allocation5 + $0xf78] sm:$0xff]  ;;  %v8212_v38 = vcombine.low %v564_v22, %v572_v13  ;;  %v8214_v39 = vcombine.low %v565_v14, %v573_v23  ;;  %v8261_v22 = vcombine.high %v612_v11, %v620_v12  ;;  %v628_v14 = vld [vmem:[#allocation5 + $0x10b0] sm:$0xff] }
 0x32a   :  { %v8231_v52 = vcombine.high %v581_v30, %v589_v31  ;;  %v636_v23 = vld [vmem:[#allocation5 + $0x10f0] sm:$0xff] }
 0x32c   :  { %6017 = vmatpush1.bf16.msra.mxu0 %v8164_v59  ;;  %6189 = vmatpush1.bf16.msra.mxu1 %v8166_v1  ;;  %v597_v59 = vld [vmem:[#allocation5 + $0xfb8] sm:$0xff] }
 0x32d   :  { %6018 = vmatprep.subr.bf16.mxu0 %v8181_v6  ;;  %6190 = vmatprep.subr.bf16.mxu1 %v8183_v8  ;;  %v605_v1 = vld [vmem:[#allocation5 + $0xff8] sm:$0xff]  ;;  %v8228_v6 = vcombine.low %v580_v26, %v588_v27  ;;  %v8230_v8 = vcombine.low %v581_v30, %v589_v31  ;;  %v8277_v26 = vcombine.high %v628_v14, %v636_v23  ;;  %v644_v30 = vld [vmem:[#allocation5 + $0x1130] sm:$0xff] }
 0x32e   :  { %v8247_v10 = vcombine.high %v597_v59, %v605_v1  ;;  %v652_v31 = vld [vmem:[#allocation5 + $0x1170] sm:$0xff] }
 0x330   :  { %6019 = vmatpush1.bf16.msra.mxu0 %v8180_v15  ;;  %6191 = vmatpush1.bf16.msra.mxu1 %v8182_v16  ;;  %v613_v15 = vld [vmem:[#allocation5 + $0x1038] sm:$0xff] }
 0x331   :  { %6020 = vmatprep.subr.bf16.mxu0 %v8197_v17  ;;  %6192 = vmatprep.subr.bf16.mxu1 %v8199_v18  ;;  %v621_v16 = vld [vmem:[#allocation5 + $0x1078] sm:$0xff]  ;;  %v8244_v17 = vcombine.low %v596_v53, %v604_v54  ;;  %v8246_v18 = vcombine.low %v597_v59, %v605_v1  ;;  %v8293_v54 = vcombine.high %v644_v30, %v652_v31  ;;  %v660_v1 = vld [vmem:[#allocation5 + $0x11b0] sm:$0xff] }
 0x332   :  { %v8263_v13 = vcombine.high %v613_v15, %v621_v16 }
 0x334   :  { %6021 = vmatpush1.bf16.msra.mxu0 %v8196_v24  ;;  %6193 = vmatpush1.bf16.msra.mxu1 %v8198_v25  ;;  %v629_v24 = vld [vmem:[#allocation5 + $0x10b8] sm:$0xff] }
 0x335   :  { %6022 = vmatprep.subr.bf16.mxu0 %v8213_v19  ;;  %6194 = vmatprep.subr.bf16.mxu1 %v8215_v21  ;;  %v637_v25 = vld [vmem:[#allocation5 + $0x10f8] sm:$0xff]  ;;  %v8260_v19 = vcombine.low %v612_v11, %v620_v12  ;;  %v8262_v21 = vcombine.low %v613_v15, %v621_v16  ;;  %v8292_v11 = vcombine.low %v644_v30, %v652_v31 }
 0x336   :  { %v8279_v27 = vcombine.high %v629_v24, %v637_v25  ;;  %v8278_v53 = vcombine.low %v629_v24, %v637_v25 }
 0x338   :  { %6023 = vmatpush1.bf16.msra.mxu0 %v8212_v38  ;;  %6195 = vmatpush1.bf16.msra.mxu1 %v8214_v39  ;;  %v9171_v38 = vld [vmem:[#allocation2 + $0x8] ss:$28 sps:$4 sm:$0xff]   ;;  %v645_v39 = vld [vmem:[#allocation5 + $0x1138] sm:$0xff] }
 0x339   :  { %6024 = vmatprep.subr.bf16.mxu0 %v8229_v43  ;;  %6196 = vmatprep.subr.bf16.mxu1 %v8231_v52  ;;  %v653_v43 = vld [vmem:[#allocation5 + $0x1178] sm:$0xff]  ;;  %v8276_v52 = vcombine.low %v628_v14, %v636_v23 }
 0x33a   :  { %v8295_v59 = vcombine.high %v645_v39, %v653_v43  ;;  %v8294_v12 = vcombine.low %v645_v39, %v653_v43  ;;  %v708_v43 = vld [vmem:[#allocation5 + $0x1330] sm:$0xff] }
 0x33c   :  { %6025 = vmatpush1.bf16.msra.mxu0 %v8228_v6  ;;  %6197 = vmatpush1.bf16.msra.mxu1 %v8230_v8  ;;  %v668_v6 = vld [vmem:[#allocation5 + $0x11f0] sm:$0xff]  ;;  %v9172_v8 = vld [vmem:[#allocation2 + $0x14] ss:$28 sps:$4 sm:$0xff]  }
 0x33d   :  { %6026 = vmatprep.subr.bf16.mxu0 %v8245_v9  ;;  %6198 = vmatprep.subr.bf16.mxu1 %v8247_v10  ;;  %v661_v9 = vld [vmem:[#allocation5 + $0x11b8] sm:$0xff]  ;;  %v8309_v15 = vcombine.high %v660_v1, %v668_v6  ;;  %v8308_v14 = vcombine.low %v660_v1, %v668_v6 }
 0x33e   :  { %v669_v10 = vld [vmem:[#allocation5 + $0x11f8] sm:$0xff] }
 0x33f   :  { %v8311_v16 = vcombine.high %v661_v9, %v669_v10  ;;  %v8310_v23 = vcombine.low %v661_v9, %v669_v10  ;;  %v724_v9 = vld [vmem:[#allocation5 + $0x13b0] sm:$0xff] }
 0x340   :  { %6027 = vmatpush1.bf16.msra.mxu0 %v8244_v17  ;;  %6199 = vmatpush1.bf16.msra.mxu1 %v8246_v18  ;;  %v676_v17 = vld [vmem:[#allocation5 + $0x1230] sm:$0xff] }
 0x341   :  { %6039 = vmatprep.subr.bf16.mxu0 %v8261_v22  ;;  %6211 = vmatprep.subr.bf16.mxu1 %v8263_v13  ;;  %v684_v18 = vld [vmem:[#allocation5 + $0x1270] sm:$0xff]  ;;  %v677_v22 = vld [vmem:[#allocation5 + $0x1238] sm:$0xff] }
 0x342   :  { %v685_v13 = vld [vmem:[#allocation5 + $0x1278] sm:$0xff]  ;;  %v8325_v24 = vcombine.high %v676_v17, %v684_v18  ;;  %v8324_v30 = vcombine.low %v676_v17, %v684_v18  ;;  %v732_v10 = vld [vmem:[#allocation5 + $0x13f0] sm:$0xff] }
 0x343   :  { %6029 = vmatmul.mubr.bf16.vlgmr.msra.gmra.mrb[12].mxu0 %v9171_v38  ;;  %6201 = vmatmul.mubr.bf16.vlgmr.msra.gmra.mrb[12].mxu1 %v9171_v38  ;;  %v8327_v25 = vcombine.high %v677_v22, %v685_v13  ;;  %v8326_v31 = vcombine.low %v677_v22, %v685_v13  ;;  %v8373_v17 = vcombine.high %v724_v9, %v732_v10  ;;  %v740_v22 = vld [vmem:[#allocation5 + $0x1430] sm:$0xff] }
 0x344   :  { %6040 = vmatpush1.bf16.msra.mxu0 %v8260_v19  ;;  %6212 = vmatpush1.bf16.msra.mxu1 %v8262_v21  ;;  %v692_v19 = vld [vmem:[#allocation5 + $0x12b0] sm:$0xff] }
 0x345   :  { %6041 = vmatprep.subr.bf16.mxu0 %v8277_v26  ;;  %6213 = vmatprep.subr.bf16.mxu1 %v8279_v27  ;;  %v700_v21 = vld [vmem:[#allocation5 + $0x12f0] sm:$0xff]  ;;  %v693_v26 = vld [vmem:[#allocation5 + $0x12b8] sm:$0xff] }
 0x346   :  { %6071 = vmatprep.mubr.bf16.mxu0 %v9172_v8  ;;  %6243 = vmatprep.mubr.bf16.mxu1 %v9172_v8  ;;  %v701_v27 = vld [vmem:[#allocation5 + $0x12f8] sm:$0xff]  ;;  %v8341_v38 = vcombine.high %v692_v19, %v700_v21  ;;  %v748_v13 = vld [vmem:[#allocation5 + $0x1470] sm:$0xff] }
 0x347   :  { %v8343_v39 = vcombine.high %v693_v26, %v701_v27  ;;  %v8342_v1 = vcombine.low %v693_v26, %v701_v27  ;;  %v756_v26 = vld [vmem:[#allocation5 + $0x14b0] sm:$0xff] }
 0x348   :  { %6042 = vmatpush1.bf16.msra.mxu0 %v8276_v52  ;;  %6214 = vmatpush1.bf16.msra.mxu1 %v8278_v53  ;;  %v716_v52 = vld [vmem:[#allocation5 + $0x1370] sm:$0xff]  ;;  %v709_v53 = vld [vmem:[#allocation5 + $0x1338] sm:$0xff] }
 0x349   :  { %6043 = vmatprep.subr.bf16.mxu0 %v8293_v54  ;;  %6215 = vmatprep.subr.bf16.mxu1 %v8295_v59  ;;  %v717_v54 = vld [vmem:[#allocation5 + $0x1378] sm:$0xff]  ;;  %v8340_v59 = vcombine.low %v692_v19, %v700_v21  ;;  %v8357_v6 = vcombine.high %v708_v43, %v716_v52  ;;  %v8389_v19 = vcombine.high %v740_v22, %v748_v13  ;;  %v764_v27 = vld [vmem:[#allocation5 + $0x14f0] sm:$0xff] }
 0x34a   :  { %v8359_v8 = vcombine.high %v709_v53, %v717_v54 }
 0x34c   :  { %6044 = vmatpush1.bf16.msra.mxu0 %v8292_v11  ;;  %6216 = vmatpush1.bf16.msra.mxu1 %v8294_v12  ;;  %v725_v11 = vld [vmem:[#allocation5 + $0x13b8] sm:$0xff] }
 0x34d   :  { %6045 = vmatprep.subr.bf16.mxu0 %v8309_v15  ;;  %6217 = vmatprep.subr.bf16.mxu1 %v8311_v16  ;;  %v733_v12 = vld [vmem:[#allocation5 + $0x13f8] sm:$0xff]  ;;  %v8356_v15 = vcombine.low %v708_v43, %v716_v52  ;;  %v8358_v16 = vcombine.low %v709_v53, %v717_v54  ;;  %v8405_v43 = vcombine.high %v756_v26, %v764_v27  ;;  %v772_v53 = vld [vmem:[#allocation5 + $0x1530] sm:$0xff] }
 0x34e   :  { %v8375_v18 = vcombine.high %v725_v11, %v733_v12  ;;  %v780_v54 = vld [vmem:[#allocation5 + $0x1570] sm:$0xff] }
 0x350   :  { %6046 = vmatpush1.bf16.msra.mxu0 %v8308_v14  ;;  %6218 = vmatpush1.bf16.msra.mxu1 %v8310_v23  ;;  %v741_v14 = vld [vmem:[#allocation5 + $0x1438] sm:$0xff] }
 0x351   :  { %6047 = vmatprep.subr.bf16.mxu0 %v8325_v24  ;;  %6219 = vmatprep.subr.bf16.mxu1 %v8327_v25  ;;  %v749_v23 = vld [vmem:[#allocation5 + $0x1478] sm:$0xff]  ;;  %v8372_v24 = vcombine.low %v724_v9, %v732_v10  ;;  %v8374_v25 = vcombine.low %v725_v11, %v733_v12  ;;  %v8421_v9 = vcombine.high %v772_v53, %v780_v54  ;;  %v788_v11 = vld [vmem:[#allocation5 + $0x15b0] sm:$0xff] }
 0x352   :  { %v8391_v21 = vcombine.high %v741_v14, %v749_v23  ;;  %v796_v12 = vld [vmem:[#allocation5 + $0x15f0] sm:$0xff] }
 0x354   :  { %6048 = vmatpush1.bf16.msra.mxu0 %v8324_v30  ;;  %6220 = vmatpush1.bf16.msra.mxu1 %v8326_v31  ;;  %v757_v30 = vld [vmem:[#allocation5 + $0x14b8] sm:$0xff] }
 0x355   :  { %6049 = vmatprep.subr.bf16.mxu0 %v8341_v38  ;;  %6221 = vmatprep.subr.bf16.mxu1 %v8343_v39  ;;  %v765_v31 = vld [vmem:[#allocation5 + $0x14f8] sm:$0xff]  ;;  %v8388_v38 = vcombine.low %v740_v22, %v748_v13  ;;  %v8390_v39 = vcombine.low %v741_v14, %v749_v23  ;;  %v8437_v22 = vcombine.high %v788_v11, %v796_v12  ;;  %v804_v14 = vld [vmem:[#allocation5 + $0x1630] sm:$0xff] }
 0x356   :  { %v8407_v52 = vcombine.high %v757_v30, %v765_v31  ;;  %v812_v23 = vld [vmem:[#allocation5 + $0x1670] sm:$0xff] }
 0x358   :  { %6050 = vmatpush1.bf16.msra.mxu0 %v8340_v59  ;;  %6222 = vmatpush1.bf16.msra.mxu1 %v8342_v1  ;;  %v773_v59 = vld [vmem:[#allocation5 + $0x1538] sm:$0xff] }
 0x359   :  { %6051 = vmatprep.subr.bf16.mxu0 %v8357_v6  ;;  %6223 = vmatprep.subr.bf16.mxu1 %v8359_v8  ;;  %v781_v1 = vld [vmem:[#allocation5 + $0x1578] sm:$0xff]  ;;  %v8404_v6 = vcombine.low %v756_v26, %v764_v27  ;;  %v8406_v8 = vcombine.low %v757_v30, %v765_v31  ;;  %v8453_v26 = vcombine.high %v804_v14, %v812_v23  ;;  %v820_v30 = vld [vmem:[#allocation5 + $0x16b0] sm:$0xff] }
 0x35a   :  { %v8423_v10 = vcombine.high %v773_v59, %v781_v1  ;;  %v828_v31 = vld [vmem:[#allocation5 + $0x16f0] sm:$0xff] }
 0x35c   :  { %6052 = vmatpush1.bf16.msra.mxu0 %v8356_v15  ;;  %6224 = vmatpush1.bf16.msra.mxu1 %v8358_v16  ;;  %v789_v15 = vld [vmem:[#allocation5 + $0x15b8] sm:$0xff] }
 0x35d   :  { %6053 = vmatprep.subr.bf16.mxu0 %v8373_v17  ;;  %6225 = vmatprep.subr.bf16.mxu1 %v8375_v18  ;;  %v797_v16 = vld [vmem:[#allocation5 + $0x15f8] sm:$0xff]  ;;  %v8420_v17 = vcombine.low %v772_v53, %v780_v54  ;;  %v8422_v18 = vcombine.low %v773_v59, %v781_v1  ;;  %v8469_v53 = vcombine.high %v820_v30, %v828_v31  ;;  %v836_v59 = vld [vmem:[#allocation5 + $0x1730] sm:$0xff] }
 0x35e   :  { %v8439_v13 = vcombine.high %v789_v15, %v797_v16  ;;  %v844_v1 = vld [vmem:[#allocation5 + $0x1770] sm:$0xff] }
 0x360   :  { %6054 = vmatpush1.bf16.msra.mxu0 %v8372_v24  ;;  %6226 = vmatpush1.bf16.msra.mxu1 %v8374_v25  ;;  %v805_v24 = vld [vmem:[#allocation5 + $0x1638] sm:$0xff] }
 0x361   :  { %6055 = vmatprep.subr.bf16.mxu0 %v8389_v19  ;;  %6227 = vmatprep.subr.bf16.mxu1 %v8391_v21  ;;  %v813_v25 = vld [vmem:[#allocation5 + $0x1678] sm:$0xff]  ;;  %v8436_v19 = vcombine.low %v788_v11, %v796_v12  ;;  %v8438_v21 = vcombine.low %v789_v15, %v797_v16  ;;  %v8485_v11 = vcombine.high %v836_v59, %v844_v1  ;;  %v852_v15 = vld [vmem:[#allocation5 + $0x17b0] sm:$0xff] }
 0x362   :  { %v8455_v27 = vcombine.high %v805_v24, %v813_v25  ;;  %v860_v16 = vld [vmem:[#allocation5 + $0x17f0] sm:$0xff] }
 0x364   :  { %6056 = vmatpush1.bf16.msra.mxu0 %v8388_v38  ;;  %6228 = vmatpush1.bf16.msra.mxu1 %v8390_v39  ;;  %v821_v38 = vld [vmem:[#allocation5 + $0x16b8] sm:$0xff] }
 0x365   :  { %6057 = vmatprep.subr.bf16.mxu0 %v8405_v43  ;;  %6229 = vmatprep.subr.bf16.mxu1 %v8407_v52  ;;  %v829_v39 = vld [vmem:[#allocation5 + $0x16f8] sm:$0xff]  ;;  %v8452_v43 = vcombine.low %v804_v14, %v812_v23  ;;  %v8454_v52 = vcombine.low %v805_v24, %v813_v25  ;;  %v8501_v14 = vcombine.high %v852_v15, %v860_v16  ;;  %v868_v24 = vld [vmem:[#allocation5 + $0x1830] sm:$0xff] }
 0x366   :  { %v8471_v54 = vcombine.high %v821_v38, %v829_v39  ;;  %v876_v25 = vld [vmem:[#allocation5 + $0x1870] sm:$0xff] }
 0x368   :  { %6058 = vmatpush1.bf16.msra.mxu0 %v8404_v6  ;;  %6230 = vmatpush1.bf16.msra.mxu1 %v8406_v8  ;;  %v837_v6 = vld [vmem:[#allocation5 + $0x1738] sm:$0xff] }
 0x369   :  { %6059 = vmatprep.subr.bf16.mxu0 %v8421_v9  ;;  %6231 = vmatprep.subr.bf16.mxu1 %v8423_v10  ;;  %v845_v8 = vld [vmem:[#allocation5 + $0x1778] sm:$0xff]  ;;  %v8468_v9 = vcombine.low %v820_v30, %v828_v31  ;;  %v8470_v10 = vcombine.low %v821_v38, %v829_v39  ;;  %v8517_v30 = vcombine.high %v868_v24, %v876_v25 }
 0x36a   :  { %v8487_v12 = vcombine.high %v837_v6, %v845_v8  ;;  %v8516_v38 = vcombine.low %v868_v24, %v876_v25  ;;  %v8999_v25 = vld [vmem:[#allocation8 + $0x18] sm:$0xff]  }
 0x36c   :  { %6060 = vmatpush1.bf16.msra.mxu0 %v8420_v17  ;;  %6232 = vmatpush1.bf16.msra.mxu1 %v8422_v18  ;;  %v853_v17 = vld [vmem:[#allocation5 + $0x17b8] sm:$0xff] }
 0x36d   :  { %6061 = vmatprep.subr.bf16.mxu0 %v8437_v22  ;;  %6233 = vmatprep.subr.bf16.mxu1 %v8439_v13  ;;  %v861_v18 = vld [vmem:[#allocation5 + $0x17f8] sm:$0xff]  ;;  %v8484_v22 = vcombine.low %v836_v59, %v844_v1  ;;  %v8486_v13 = vcombine.low %v837_v6, %v845_v8  ;;  %v8988_v59 = vld [vmem:[#allocation8 + $0x80] sm:$0xff]  }
 0x36e   :  { %v8503_v23 = vcombine.high %v853_v17, %v861_v18  ;;  %v8989_v1 = vld [vmem:[#allocation8 + $0x48] sm:$0xff]  }
 0x36f   :  { %v9174_v6 = vld [vmem:[#allocation2 + $0x18] ss:$28 sps:$4 sm:$0xff]  }
 0x370   :  { %6062 = vmatpush1.bf16.msra.mxu0 %v8436_v19  ;;  %6234 = vmatpush1.bf16.msra.mxu1 %v8438_v21  ;;  %v869_v19 = vld [vmem:[#allocation5 + $0x1838] sm:$0xff] }
 0x371   :  { %6063 = vmatprep.subr.bf16.mxu0 %v8453_v26  ;;  %6235 = vmatprep.subr.bf16.mxu1 %v8455_v27  ;;  %v877_v21 = vld [vmem:[#allocation5 + $0x1878] sm:$0xff]  ;;  %v8500_v26 = vcombine.low %v852_v15, %v860_v16  ;;  %v8502_v27 = vcombine.low %v853_v17, %v861_v18  ;;  %v8996_v15 = vld [vmem:[#allocation8 + $0x90] sm:$0xff]   ;;  %v929_v16 = vrot.slane %v9515_v46, %v896_v4  ;;  %v8997_v17 = vld [vmem:[#allocation8 + $0x58] sm:$0xff]  }
 0x372   :  { %v8519_v31 = vcombine.high %v869_v19, %v877_v21  ;;  %v8518_v39 = vcombine.low %v869_v19, %v877_v21  ;;  %v8990_v8 = vld [vmem:[#allocation8 + $0xc8] sm:$0xff]   ;;  %v8998_v18 = vld [vmem:[#allocation8 + $0xd8] sm:$0xff]  }
 0x374   :  { %6064 = vmatpush1.bf16.msra.mxu0 %v8452_v43  ;;  %6236 = vmatpush1.bf16.msra.mxu1 %v8454_v52  ;;  %v8985_v43 = vld [vmem:[#allocation8 + $0x40] sm:$0xff]  }
 0x375   :  { %6065 = vmatprep.subr.bf16.mxu0 %v8469_v53  ;;  %6237 = vmatprep.subr.bf16.mxu1 %v8471_v54  ;;  %v9173_v52 = vld [vmem:[#allocation2 + $0x10] ss:$28 sps:$4 sm:$0xff]  }
 0x376   :  { %v8986_v53 = vld [vmem:[#allocation8 + $0xc0] sm:$0xff]  }
 0x377   :  { %v8987_v54 = vld [vmem:[#allocation8] sm:$0xff]  }
 0x378   :  { %6066 = vmatpush1.bf16.msra.mxu0 %v8468_v9  ;;  %6238 = vmatpush1.bf16.msra.mxu1 %v8470_v10  ;;  %v917_v9 = vrot.slane %v9515_v46, %v884_v60  ;;  %v925_v10 = vrot.slane %v9515_v46, %v892_v63 }
 0x379   :  { %6067 = vmatprep.subr.bf16.mxu0 %v8485_v11  ;;  %6239 = vmatprep.subr.bf16.mxu1 %v8487_v12  ;;  %v8995_v11 = vld [vmem:[#allocation8 + $0x10] sm:$0xff]   ;;  %v921_v12 = vrot.slane %v9515_v46, %v888_v0 }
 0x37c   :  { %6068 = vmatpush1.bf16.msra.mxu0 %v8484_v22  ;;  %6240 = vmatpush1.bf16.msra.mxu1 %v8486_v13 }
 0x37d   :  { %6069 = vmatprep.subr.bf16.mxu0 %v8501_v14  ;;  %6241 = vmatprep.subr.bf16.mxu1 %v8503_v23 }
 0x380   :  { %6070 = vmatpush1.bf16.msra.mxu0 %v8500_v26  ;;  %6242 = vmatpush1.bf16.msra.mxu1 %v8502_v27  ;;  %v9000_v27 = vld [vmem:[#allocation8 + $0x98] sm:$0xff]  }
 0x381   :  { %6082 = vmatprep.subr.bf16.mxu0 %v8517_v30  ;;  %6254 = vmatprep.subr.bf16.mxu1 %v8519_v31  ;;  %v9001_v30 = vld [vmem:[#allocation8 + $0x60] sm:$0xff]  }
 0x383   :  { %6072 = vmatmul.mubr.bf16.vlgmr.msra.gmra.mrb[12].mxu0 %v9173_v52  ;;  %6244 = vmatmul.mubr.bf16.vlgmr.msra.gmra.mrb[12].mxu1 %v9173_v52 }
 0x384   :  { %6083 = vmatpush1.bf16.msra.mxu0 %v8516_v38  ;;  %6255 = vmatpush1.bf16.msra.mxu1 %v8518_v39 }
 0x385   :  { %6114 = vmatprep.mubr.bf16.mxu0 %v9325_v20  ;;  %6286 = vmatprep.mubr.bf16.mxu1 %v9325_v20  ;;  %v8992_v20 = vld [vmem:[#allocation8 + $0x88] sm:$0xff]  }
 0x386   :  { %8657 = vmatprep.subr.bf16.mxu0 %v8985_v43  ;;  %8679 = vmatprep.subr.bf16.mxu1 %v8986_v53  ;;  %v9002_v43 = vld [vmem:[#allocation8 + $0xe0] sm:$0xff]  }
 0x38f   :  { %8526 = vmatmul.mubr.msk.bf16.vlgmr.msra.gmra.mrb[12].mxu0 %vm4917_vm0, %v9174_v6  ;;  %8527 = vmatmul.mubr.msk.bf16.vlgmr.msra.gmra.mrb[12].mxu1 %vm4917_vm0, %v9174_v6 }
 0x390   :  { %8658 = vmatpush3.bf16.msra.mxu0 %v8987_v54  ;;  %8680 = vmatpush3.bf16.msra.mxu1 %v8988_v59 }
 0x391   :  { %7392 = vmatprep.mubr.bf16.mxu0 %v9114_v34  ;;  %7433 = vmatprep.mubr.bf16.mxu1 %v9116_v40  ;;  %v9005_v34 = vld [vmem:[#allocation8 + $0x68] sm:$0xff]  }
 0x392   :  { %8659 = vmatprep.subr.bf16.mxu0 %v8989_v1  ;;  %8681 = vmatprep.subr.bf16.mxu1 %v8990_v8  ;;  %v9003_v1 = vld [vmem:[#allocation8 + $0x20] sm:$0xff]   ;;  %v9007_v40 = vld [vmem:[#allocation8 + $0x28] sm:$0xff]  }
 0x393   :  { %v9004_v8 = vld [vmem:[#allocation8 + $0xa0] sm:$0xff]  }
 0x394   :  { %8660 = vmatpush3.bf16.msra.mxu0 %v8991_v36  ;;  %8682 = vmatpush3.bf16.msra.mxu1 %v8992_v20  ;;  %v9006_v36 = vld [vmem:[#allocation8 + $0xe8] sm:$0xff]  }
 0x395   :  { %8661 = vmatprep.subr.bf16.mxu0 %v8993_v42  ;;  %8683 = vmatprep.subr.bf16.mxu1 %v8994_v48  ;;  %v9008_v20 = vld [vmem:[#allocation8 + $0xa8] sm:$0xff]   ;;  %v9009_v42 = vld [vmem:[#allocation8 + $0x70] sm:$0xff]  }
 0x396   :  { %v5772_v60 = vpop.f32.mrb[8].mxu0  ;;  %v5944_v13 = vpop.f32.mrb[8].mxu1  ;;  %v9010_v48 = vld [vmem:[#allocation8 + $0xf0] sm:$0xff]  }
 0x397   :  { %v9529_v22 = vadd.f32 %v5772_v60, %v917_v9  ;;  %v5774_v63 = vpop.f32.mrb[9].mxu0  ;;  %v9531_v14 = vadd.f32 %v5944_v13, %v925_v10  ;;  %v5946_v0 = vpop.f32.mrb[9].mxu1  ;;  %v9026_v60 = vld [vmem:[#allocation8 + $0x1d0] sm:$0xff]  }
 0x398   :  { %8662 = vmatpush3.bf16.msra.mxu0 %v8995_v11  ;;  %v9533_v23 = vadd.f32 %v5774_v63, %v921_v12  ;;  %v5776_v24 = vpop.f32.mrb[10].mxu0  ;;  %8684 = vmatpush3.bf16.msra.mxu1 %v8996_v15  ;;  %v9535_v19 = vadd.f32 %v5946_v0, %v929_v16  ;;  %v5948_v21 = vpop.f32.mrb[10].mxu1  ;;  %v9013_v11 = vld [vmem:[#allocation8 + $0x78] sm:$0xff]   ;;  %v9028_v13 = vld [vmem:[#allocation8 + $0x190] sm:$0xff]  }
 0x399   :  { %v9537_v4 = vadd.f32 %v5776_v24, %v917_v9  ;;  %v5778_v26 = vpop.f32.mrb[11].mxu0  ;;  %8663 = vmatprep.subr.bf16.mxu0 %v8997_v17  ;;  %v9539_v31 = vadd.f32 %v5948_v21, %v925_v10  ;;  %v5950_v39 = vpop.f32.mrb[11].mxu1  ;;  %8685 = vmatprep.subr.bf16.mxu1 %v8998_v18  ;;  %v9011_v9 = vld [vmem:[#allocation8 + $0x30] sm:$0xff]   ;;  %v9029_v63 = vld [vmem:[#allocation8 + $0x158] sm:$0xff]   ;;  %v9033_v21 = vld [vmem:[#allocation8 + $0x160] sm:$0xff]  }
 0x39a   :  { %v9541_v38 = vadd.f32 %v5778_v26, %v921_v12  ;;  %v9545_v53 = vadd.f32 %v5950_v39, %v929_v16  ;;  %v9012_v10 = vld [vmem:[#allocation8 + $0xb0] sm:$0xff]   ;;  %v9023_v12 = vld [vmem:[#allocation8 + $0x108] sm:$0xff]   ;;  %v9124_v15 = vpop.eup %9123  ;;  %v9030_v0 = vld [vmem:[#allocation8 + $0x1d8] sm:$0xff]  }
 0x39b   :  { %v6305_v52 = vpack.c.bf16 %v9537_v4, %v9529_v22  ;;  %v6307_v54 = vpack.c.bf16 %v9539_v31, %v9531_v14  ;;  %v9024_v16 = vld [vmem:[#allocation8 + $0x188] sm:$0xff]   ;;  %v9025_v17 = vld [vmem:[#allocation8 + $0x150] sm:$0xff]   ;;  %v9031_v24 = vld [vmem:[#allocation8 + $0x118] sm:$0xff]  }
 0x39c   :  { %v6306_v59 = vpack.c.bf16 %v9541_v38, %v9533_v23  ;;  %8664 = vmatpush3.bf16.msra.mxu0 %v8999_v25  ;;  %v6308_v6 = vpack.c.bf16 %v9545_v53, %v9535_v19  ;;  %8686 = vmatpush3.bf16.msra.mxu1 %v9000_v27  ;;  %v9027_v18 = vld [vmem:[#allocation8 + $0x110] sm:$0xff]   ;;  %v9032_v25 = vld [vmem:[#allocation8 + $0x198] sm:$0xff]   ;;  %v9034_v26 = vld [vmem:[#allocation8 + $0x1e0] sm:$0xff]   ;;  %v9126_v38 = vpop.eup %9125 }
 0x39d   :  { %8665 = vmatprep.subr.bf16.mxu0 %v9001_v30  ;;  %8687 = vmatprep.subr.bf16.mxu1 %v9002_v43  ;;  %v9035_v27 = vld [vmem:[#allocation8 + $0x120] sm:$0xff]   ;;  %v9037_v39 = vld [vmem:[#allocation8 + $0x168] sm:$0xff]   ;;  %v9128_v19 = vpop.eup %9127 }
 0x39e   :  { %v9036_v30 = vld [vmem:[#allocation8 + $0x1a0] sm:$0xff]   ;;  %v9038_v43 = vld [vmem:[#allocation8 + $0x1e8] sm:$0xff]   ;;  %9129 = vtanh.bf16 %v6306_v59 }
 0x39f   :  { %9131 = vtanh.bf16 %v6308_v6  ;;  %v9052_v23 = vld [vmem:[#allocation8 + $0x280] sm:$0xff]   ;;  %v9053_v59 = vld [vmem:[#allocation8 + $0x248] sm:$0xff]  }
 0x3a0   :  { %8666 = vmatpush3.bf16.msra.mxu0 %v9003_v1  ;;  %8688 = vmatpush3.bf16.msra.mxu1 %v9004_v8  ;;  %v9039_v1 = vld [vmem:[#allocation8 + $0x128] sm:$0xff]   ;;  %9133 = vtanh.bf16 %v6305_v52  ;;  %v9082_v22 = vld [vmem:[#allocation8 + $0x3c0] sm:$0xff]  }
 0x3a1   :  { %8667 = vmatprep.subr.bf16.mxu0 %v9005_v34  ;;  %8689 = vmatprep.subr.bf16.mxu1 %v9006_v36  ;;  %v9040_v8 = vld [vmem:[#allocation8 + $0x1a8] sm:$0xff]   ;;  %v9041_v34 = vld [vmem:[#allocation8 + $0x170] sm:$0xff]   ;;  %9135 = vtanh.bf16 %v6307_v54  ;;  %v9083_v4 = vld [vmem:[#allocation8 + $0x300] sm:$0xff]  }
 0x3a2   :  { %v9042_v36 = vld [vmem:[#allocation8 + $0x1f0] sm:$0xff]   ;;  %v9054_v53 = vld [vmem:[#allocation8 + $0x2c8] sm:$0xff]   ;;  %v9084_v14 = vld [vmem:[#allocation8 + $0x380] sm:$0xff]  }
 0x3a3   :  { %v9085_v31 = vld [vmem:[#allocation8 + $0x348] sm:$0xff]  }
 0x3a4   :  { %8668 = vmatpush3.bf16.msra.mxu0 %v9007_v40  ;;  %8690 = vmatpush3.bf16.msra.mxu1 %v9008_v20  ;;  %v9043_v40 = vld [vmem:[#allocation8 + $0x130] sm:$0xff]   ;;  %v9086_v54 = vld [vmem:[#allocation8 + $0x3c8] sm:$0xff]  }
 0x3a5   :  { %8669 = vmatprep.subr.bf16.mxu0 %v9009_v42  ;;  %8691 = vmatprep.subr.bf16.mxu1 %v9010_v48  ;;  %v9044_v20 = vld [vmem:[#allocation8 + $0x1b0] sm:$0xff]   ;;  %v9045_v42 = vld [vmem:[#allocation8 + $0x178] sm:$0xff]   ;;  %v9055_v48 = vld [vmem:[#allocation8 + $0x208] sm:$0xff]  }
 0x3a8   :  { %8670 = vmatpush3.bf16.msra.mxu0 %v9011_v9  ;;  %8692 = vmatpush3.bf16.msra.mxu1 %v9012_v10  ;;  %v9056_v10 = vld [vmem:[#allocation8 + $0x288] sm:$0xff]  }
 0x3a9   :  { %8671 = vmatprep.subr.bf16.mxu0 %v9013_v11  ;;  %8693 = vmatprep.subr.bf16.mxu1 %v9014_v28  ;;  %v9130_v6 = vpop.eup %9129  ;;  %v9057_v11 = vld [vmem:[#allocation8 + $0x250] sm:$0xff]  }
 0x3aa   :  { %v9132_v9 = vpop.eup %9131  ;;  %v9058_v28 = vld [vmem:[#allocation8 + $0x2d0] sm:$0xff]  }
 0x3ab   :  { %v9134_v52 = vpop.eup %9133 }
 0x3ac   :  { %8672 = vmatpush3.bf16.msra.mxu0 %v9015_v29  ;;  %8694 = vmatpush3.bf16.msra.mxu1 %v9016_v33  ;;  %v9059_v29 = vld [vmem:[#allocation8 + $0x210] sm:$0xff]  }
 0x3ad   :  { %8701 = vmatprep.subr.bf16.mxu0 %v9017_v35  ;;  %8723 = vmatprep.subr.bf16.mxu1 %v9018_v41  ;;  %v9060_v33 = vld [vmem:[#allocation8 + $0x290] sm:$0xff]   ;;  %v9061_v35 = vld [vmem:[#allocation8 + $0x258] sm:$0xff]  }
 0x3ae   :  { %v9062_v41 = vld [vmem:[#allocation8 + $0x2d8] sm:$0xff]  }
 0x3af   :  { %7393 = vmatmul.mubr.bf16.vlgmr.msra.gmra.mrb[16].mxu0 %v9118_v51  ;;  %7434 = vmatmul.mubr.bf16.vlgmr.msra.gmra.mrb[16].mxu1 %v9120_v55  ;;  %v9065_v51 = vld [vmem:[#allocation8 + $0x260] sm:$0xff]  }
 0x3b0   :  { %8702 = vmatpush3.bf16.msra.mxu0 %v9019_v45  ;;  %7474 = vmatprep.mubr.bf16.mxu0 %v9122_v7  ;;  %v9063_v45 = vld [vmem:[#allocation8 + $0x218] sm:$0xff]   ;;  %v9067_v55 = vld [vmem:[#allocation8 + $0x220] sm:$0xff]   ;;  %v9069_v7 = vld [vmem:[#allocation8 + $0x268] sm:$0xff]  }
 0x3b1   :  { %8724 = vmatpush3.bf16.msra.mxu1 %v9020_v47  ;;  %7515 = vmatprep.mubr.bf16.mxu1 %v9124_v15  ;;  %v9064_v47 = vld [vmem:[#allocation8 + $0x298] sm:$0xff]   ;;  %v9071_v15 = vld [vmem:[#allocation8 + $0x228] sm:$0xff]  }
 0x3b2   :  { %8703 = vmatprep.subr.bf16.mxu0 %v9021_v3  ;;  %8725 = vmatprep.subr.bf16.mxu1 %v9022_v57  ;;  %v9066_v3 = vld [vmem:[#allocation8 + $0x2e0] sm:$0xff]  }
 0x3b3   :  { %v9068_v57 = vld [vmem:[#allocation8 + $0x2a0] sm:$0xff]  }
 0x3b4   :  { %8704 = vmatpush3.bf16.msra.mxu0 %v9023_v12  ;;  %v9070_v12 = vld [vmem:[#allocation8 + $0x2e8] sm:$0xff]  }
 0x3b5   :  { %8726 = vmatpush3.bf16.msra.mxu1 %v9024_v16  ;;  %8705 = vmatprep.subr.bf16.mxu0 %v9025_v17  ;;  %v9072_v16 = vld [vmem:[#allocation8 + $0x2a8] sm:$0xff]   ;;  %v9073_v17 = vld [vmem:[#allocation8 + $0x270] sm:$0xff]  }
 0x3b6   :  { %8727 = vmatprep.subr.bf16.mxu1 %v9026_v60  ;;  %v9074_v60 = vld [vmem:[#allocation8 + $0x2f0] sm:$0xff]  }
 0x3b8   :  { %8706 = vmatpush3.bf16.msra.mxu0 %v9027_v18  ;;  %v9075_v18 = vld [vmem:[#allocation8 + $0x230] sm:$0xff]  }
 0x3b9   :  { %8728 = vmatpush3.bf16.msra.mxu1 %v9028_v13  ;;  %8707 = vmatprep.subr.bf16.mxu0 %v9029_v63  ;;  %v9076_v13 = vld [vmem:[#allocation8 + $0x2b0] sm:$0xff]   ;;  %v9077_v63 = vld [vmem:[#allocation8 + $0x278] sm:$0xff]  }
 0x3ba   :  { %8729 = vmatprep.subr.bf16.mxu1 %v9030_v0  ;;  %v9078_v0 = vld [vmem:[#allocation8 + $0x2f8] sm:$0xff]  }
 0x3bc   :  { %8708 = vmatpush3.bf16.msra.mxu0 %v9031_v24  ;;  %v9079_v24 = vld [vmem:[#allocation8 + $0x238] sm:$0xff]  }
 0x3bd   :  { %8730 = vmatpush3.bf16.msra.mxu1 %v9032_v25  ;;  %8709 = vmatprep.subr.bf16.mxu0 %v9033_v21  ;;  %v9080_v25 = vld [vmem:[#allocation8 + $0x2b8] sm:$0xff]   ;;  %v9081_v21 = vld [vmem:[#allocation8 + $0x340] sm:$0xff]  }
 0x3be   :  { %8731 = vmatprep.subr.bf16.mxu1 %v9034_v26  ;;  %v9136_v26 = vpop.eup %9135 }
 0x3c0   :  { %8710 = vmatpush3.bf16.msra.mxu0 %v9035_v27  ;;  %v9087_v27 = vld [vmem:[#allocation8 + $0x308] sm:$0xff]  }
 0x3c1   :  { %8732 = vmatpush3.bf16.msra.mxu1 %v9036_v30  ;;  %8711 = vmatprep.subr.bf16.mxu0 %v9037_v39  ;;  %v9088_v30 = vld [vmem:[#allocation8 + $0x388] sm:$0xff]   ;;  %v9089_v39 = vld [vmem:[#allocation8 + $0x350] sm:$0xff]  }
 0x3c2   :  { %8733 = vmatprep.subr.bf16.mxu1 %v9038_v43  ;;  %v9090_v43 = vld [vmem:[#allocation8 + $0x3d0] sm:$0xff]  }
 0x3c4   :  { %8712 = vmatpush3.bf16.msra.mxu0 %v9039_v1  ;;  %v9091_v1 = vld [vmem:[#allocation8 + $0x310] sm:$0xff]  }
 0x3c5   :  { %8734 = vmatpush3.bf16.msra.mxu1 %v9040_v8  ;;  %8713 = vmatprep.subr.bf16.mxu0 %v9041_v34  ;;  %v9092_v8 = vld [vmem:[#allocation8 + $0x390] sm:$0xff]   ;;  %v9093_v34 = vld [vmem:[#allocation8 + $0x358] sm:$0xff]  }
 0x3c6   :  { %8735 = vmatprep.subr.bf16.mxu1 %v9042_v36  ;;  %v9094_v36 = vld [vmem:[#allocation8 + $0x3d8] sm:$0xff]  }
 0x3c8   :  { %8714 = vmatpush3.bf16.msra.mxu0 %v9043_v40  ;;  %v9095_v40 = vld [vmem:[#allocation8 + $0x318] sm:$0xff]  }
 0x3c9   :  { %8736 = vmatpush3.bf16.msra.mxu1 %v9044_v20  ;;  %8715 = vmatprep.subr.bf16.mxu0 %v9045_v42  ;;  %v9096_v20 = vld [vmem:[#allocation8 + $0x398] sm:$0xff]   ;;  %v9097_v42 = vld [vmem:[#allocation8 + $0x360] sm:$0xff]  }
 0x3ca   :  { %8737 = vmatprep.subr.bf16.mxu1 %v9046_v32  ;;  %v9098_v32 = vld [vmem:[#allocation8 + $0x3e0] sm:$0xff]  }
 0x3cc   :  { %8716 = vmatpush3.bf16.msra.mxu0 %v9047_v37  ;;  %v9099_v37 = vld [vmem:[#allocation8 + $0x320] sm:$0xff]  }
 0x3cd   :  { %8738 = vmatpush3.bf16.msra.mxu1 %v9048_v44  ;;  %8745 = vmatprep.subr.bf16.mxu0 %v9049_v49  ;;  %v9100_v44 = vld [vmem:[#allocation8 + $0x3a0] sm:$0xff]   ;;  %v9101_v49 = vld [vmem:[#allocation8 + $0x368] sm:$0xff]  }
 0x3ce   :  { %8767 = vmatprep.subr.bf16.mxu1 %v9050_v56  ;;  %v9102_v56 = vld [vmem:[#allocation8 + $0x3e8] sm:$0xff]  }
 0x3cf   :  { %7475 = vmatmul.mubr.bf16.vlgmr.msra.gmra.mrb[20].mxu0 %v9126_v38  ;;  %v9105_v38 = vld [vmem:[#allocation8 + $0x370] sm:$0xff]  }
 0x3d0   :  { %7516 = vmatmul.mubr.bf16.vlgmr.msra.gmra.mrb[20].mxu1 %v9128_v19  ;;  %8746 = vmatpush3.bf16.msra.mxu0 %v9051_v2  ;;  %v9103_v2 = vld [vmem:[#allocation8 + $0x328] sm:$0xff]   ;;  %v9107_v19 = vld [vmem:[#allocation8 + $0x330] sm:$0xff]  }
 0x3d1   :  { %7556 = vmatprep.mubr.bf16.mxu0 %v9130_v6  ;;  %8768 = vmatpush3.bf16.msra.mxu1 %v9052_v23  ;;  %v9104_v23 = vld [vmem:[#allocation8 + $0x3a8] sm:$0xff]   ;;  %v9109_v6 = vld [vmem:[#allocation8 + $0x378] sm:$0xff]  }
 0x3d2   :  { %7597 = vmatprep.mubr.bf16.mxu1 %v9132_v9  ;;  %8747 = vmatprep.subr.bf16.mxu0 %v9053_v59  ;;  %v9106_v59 = vld [vmem:[#allocation8 + $0x3f0] sm:$0xff]   ;;  %v9111_v9 = vld [vmem:[#allocation8 + $0x338] sm:$0xff]  }
 0x3d3   :  { %8769 = vmatprep.subr.bf16.mxu1 %v9054_v53  ;;  %v9108_v53 = vld [vmem:[#allocation8 + $0x3b0] sm:$0xff]  }
 0x3d4   :  { %8748 = vmatpush3.bf16.msra.mxu0 %v9055_v48  ;;  %v9110_v48 = vld [vmem:[#allocation8 + $0x3f8] sm:$0xff]  }
 0x3d5   :  { %8770 = vmatpush3.bf16.msra.mxu1 %v9056_v10  ;;  %8749 = vmatprep.subr.bf16.mxu0 %v9057_v11  ;;  %v9112_v10 = vld [vmem:[#allocation8 + $0x3b8] sm:$0xff]   ;;  %v933_v11 = vrot.slane %v9515_v46, %v900_v58 }
 0x3d6   :  { %8771 = vmatprep.subr.bf16.mxu1 %v9058_v28 }
 0x3d8   :  { %8750 = vmatpush3.bf16.msra.mxu0 %v9059_v29  ;;  %v941_v29 = vrot.slane %v9515_v46, %v908_v61 }
 0x3d9   :  { %8772 = vmatpush3.bf16.msra.mxu1 %v9060_v33  ;;  %8751 = vmatprep.subr.bf16.mxu0 %v9061_v35  ;;  %v937_v33 = vrot.slane %v9515_v46, %v904_v62 }
 0x3da   :  { %8773 = vmatprep.subr.bf16.mxu1 %v9062_v41 }
 0x3dc   :  { %8752 = vmatpush3.bf16.msra.mxu0 %v9063_v45  ;;  %v945_v45 = vrot.slane %v9515_v46, %v912_v5 }
 0x3dd   :  { %8774 = vmatpush3.bf16.msra.mxu1 %v9064_v47  ;;  %8753 = vmatprep.subr.bf16.mxu0 %v9065_v51 }
 0x3de   :  { %8775 = vmatprep.subr.bf16.mxu1 %v9066_v3 }
 0x3e0   :  { %8754 = vmatpush3.bf16.msra.mxu0 %v9067_v55 }
 0x3e1   :  { %8776 = vmatpush3.bf16.msra.mxu1 %v9068_v57  ;;  %8755 = vmatprep.subr.bf16.mxu0 %v9069_v7 }
 0x3e2   :  { %8777 = vmatprep.subr.bf16.mxu1 %v9070_v12 }
 0x3e4   :  { %8756 = vmatpush3.bf16.msra.mxu0 %v9071_v15 }
 0x3e5   :  { %8778 = vmatpush3.bf16.msra.mxu1 %v9072_v16  ;;  %8757 = vmatprep.subr.bf16.mxu0 %v9073_v17 }
 0x3e6   :  { %8779 = vmatprep.subr.bf16.mxu1 %v9074_v60 }
 0x3e8   :  { %8758 = vmatpush3.bf16.msra.mxu0 %v9075_v18 }
 0x3e9   :  { %8780 = vmatpush3.bf16.msra.mxu1 %v9076_v13  ;;  %8759 = vmatprep.subr.bf16.mxu0 %v9077_v63 }
 0x3ea   :  { %8781 = vmatprep.subr.bf16.mxu1 %v9078_v0 }
 0x3ec   :  { %8760 = vmatpush3.bf16.msra.mxu0 %v9079_v24 }
 0x3ed   :  { %8782 = vmatpush3.bf16.msra.mxu1 %v9080_v25  ;;  %8789 = vmatprep.subr.bf16.mxu0 %v9081_v21  ;;  %v8528_v21 = vld [vmem:[#allocation10] ss:$0 sm:$0xff] }
 0x3ee   :  { %8811 = vmatprep.subr.bf16.mxu1 %v9082_v22 }
 0x3ef   :  { %7557 = vmatmul.mubr.bf16.vlgmr.msra.gmra.mrb[24].mxu0 %v9134_v52 }
 0x3f0   :  { %7598 = vmatmul.mubr.bf16.vlgmr.msra.gmra.mrb[24].mxu1 %v9136_v26  ;;  %8790 = vmatpush3.bf16.msra.mxu0 %v9083_v4 }
 0x3f1   :  { %8812 = vmatpush3.bf16.msra.mxu1 %v9084_v14  ;;  %8791 = vmatprep.subr.bf16.mxu0 %v9085_v31 }
 0x3f2   :  { %8813 = vmatprep.subr.bf16.mxu1 %v9086_v54 }
 0x3f4   :  { %8792 = vmatpush3.bf16.msra.mxu0 %v9087_v27 }
 0x3f5   :  { %8814 = vmatpush3.bf16.msra.mxu1 %v9088_v30  ;;  %8793 = vmatprep.subr.bf16.mxu0 %v9089_v39 }
 0x3f6   :  { %8815 = vmatprep.subr.bf16.mxu1 %v9090_v43 }
 0x3f8   :  { %8794 = vmatpush3.bf16.msra.mxu0 %v9091_v1 }
 0x3f9   :  { %8816 = vmatpush3.bf16.msra.mxu1 %v9092_v8  ;;  %8795 = vmatprep.subr.bf16.mxu0 %v9093_v34 }
 0x3fa   :  { %8817 = vmatprep.subr.bf16.mxu1 %v9094_v36 }
 0x3fc   :  { %8796 = vmatpush3.bf16.msra.mxu0 %v9095_v40 }
 0x3fd   :  { %8818 = vmatpush3.bf16.msra.mxu1 %v9096_v20  ;;  %8797 = vmatprep.subr.bf16.mxu0 %v9097_v42 }
 0x3fe   :  { %8819 = vmatprep.subr.bf16.mxu1 %v9098_v32 }
 0x400   :  { %8798 = vmatpush3.bf16.msra.mxu0 %v9099_v37 }
 0x401   :  { %8820 = vmatpush3.bf16.msra.mxu1 %v9100_v44  ;;  %8799 = vmatprep.subr.bf16.mxu0 %v9101_v49 }
 0x402   :  { %8821 = vmatprep.subr.bf16.mxu1 %v9102_v56 }
 0x404   :  { %8800 = vmatpush3.bf16.msra.mxu0 %v9103_v2 }
 0x405   :  { %8822 = vmatpush3.bf16.msra.mxu1 %v9104_v23  ;;  %8801 = vmatprep.subr.bf16.mxu0 %v9105_v38 }
 0x406   :  { %8823 = vmatprep.subr.bf16.mxu1 %v9106_v59 }
 0x408   :  { %8802 = vmatpush3.bf16.msra.mxu0 %v9107_v19 }
 0x409   :  { %8824 = vmatpush3.bf16.msra.mxu1 %v9108_v53  ;;  %8803 = vmatprep.subr.bf16.mxu0 %v9109_v6 }
 0x40a   :  { %8825 = vmatprep.subr.bf16.mxu1 %v9110_v48 }
 0x40c   :  { %8804 = vmatpush3.bf16.msra.mxu0 %v9111_v9 }
 0x40d   :  { %8826 = vmatpush3.bf16.msra.mxu1 %v9112_v10 }
 0x462   :  { %v6116_v28 = vpop.f32.mrb[12].mxu0  ;;  %v6288_v35 = vpop.f32.mrb[12].mxu1 }
 0x463   :  { %v6118_v41 = vpop.f32.mrb[13].mxu0  ;;  %v6290_v47 = vpop.f32.mrb[13].mxu1  ;;  %v8857_v3 = vadd.f32 %v6116_v28, %v933_v11  ;;  %v8861_v7 = vadd.f32 %v6288_v35, %v941_v29 }
 0x464   :  { %v6120_v51 = vpop.f32.mrb[14].mxu0  ;;  %v6292_v58 = vpop.f32.mrb[14].mxu1  ;;  %v8858_v12 = vadd.f32 %v6118_v41, %v937_v33  ;;  %v8862_v17 = vadd.f32 %v6290_v47, %v945_v45 }
 0x465   :  { %v8859_v55 = vadd.f32 %v6120_v51, %v933_v11  ;;  %v6122_v57 = vpop.f32.mrb[15].mxu0  ;;  %v8863_v15 = vadd.f32 %v6292_v58, %v941_v29  ;;  %v6294_v16 = vpop.f32.mrb[15].mxu1 }
 0x466   :  { %v8860_v61 = vadd.f32 %v6122_v57, %v937_v33  ;;  %v8864_v62 = vadd.f32 %v6294_v16, %v945_v45 }
 0x467   :  { %v6309_v60 = vpack.c.bf16 %v8859_v55, %v8857_v3  ;;  %v6311_v18 = vpack.c.bf16 %v8863_v15, %v8861_v7 }
 0x468   :  { %v6310_v13 = vpack.c.bf16 %v8860_v61, %v8858_v12  ;;  %v6312_v63 = vpack.c.bf16 %v8864_v62, %v8862_v17 }
 0x469   :  { %9137 = vtanh.bf16 %v6309_v60 }
 0x46a   :  { %9139 = vtanh.bf16 %v6310_v13 }
 0x46b   :  { %9141 = vtanh.bf16 %v6312_v63 }
 0x46c   :  { %9143 = vtanh.bf16 %v6311_v18 }
 0x474   :  { %v9138_v50 = vpop.eup %9137 }
 0x475   :  { %v9140_v5 = vpop.eup %9139 }
 0x476   :  { %v9142_v46 = vpop.eup %9141  ;;  %7638 = vmatprep.mubr.bf16.mxu0 %v9140_v5 }
 0x477   :  { %v9144_v0 = vpop.eup %9143  ;;  %7679 = vmatprep.mubr.bf16.mxu1 %v9142_v46  ;;  %7639 = vmatmul.mubr.bf16.vlgmr.msra.gmra.mrb[28].mxu0 %v9138_v50 }
 0x478   :  { %7680 = vmatmul.mubr.bf16.vlgmr.msra.gmra.mrb[28].mxu1 %v9144_v0 }
 0x482   :  { %v8673_v24 = vpop.f32.mrb[16].mxu0  ;;  %v8695_v25 = vpop.f32.mrb[16].mxu1 }
 0x483   :  { %v8674_v22 = vpop.f32.mrb[17].mxu0  ;;  %v8696_v14 = vpop.f32.mrb[17].mxu1 }
 0x484   :  { %v8675_v4 = vadd.f32 %v8674_v22, %v8673_v24  ;;  %v8676_v31 = vpop.f32.mrb[18].mxu0  ;;  %v8697_v52 = vadd.f32 %v8696_v14, %v8695_v25  ;;  %v8698_v54 = vpop.f32.mrb[18].mxu1 }
 0x485   :  { %v8677_v26 = vpop.f32.mrb[19].mxu0  ;;  %v8699_v39 = vpop.f32.mrb[19].mxu1 }
 0x486   :  { %v7395_v27 = vadd.f32 %v8675_v4, %v8528_v21  ;;  %v8678_v30 = vadd.f32 %v8677_v26, %v8676_v31  ;;  %v8700_v43 = vadd.f32 %v8699_v39, %v8698_v54 }
 0x488   :  { %v7436_v1 = vadd.f32 %v8697_v52, %v7395_v27  ;;  %v7398_v8 = vadd.f32 %v8678_v30, %v8528_v21 }
 0x48a   :  { %v7439_v34 = vadd.f32 %v8700_v43, %v7398_v8 }
 0x4a2   :  { %v8717_v36 = vpop.f32.mrb[20].mxu0 }
 0x4a3   :  { %v8739_v40 = vpop.f32.mrb[20].mxu1  ;;  %v8718_v20 = vpop.f32.mrb[21].mxu0 }
 0x4a4   :  { %v8719_v42 = vadd.f32 %v8718_v20, %v8717_v36  ;;  %v8740_v32 = vpop.f32.mrb[21].mxu1  ;;  %v8720_v37 = vpop.f32.mrb[22].mxu0 }
 0x4a5   :  { %v8741_v44 = vadd.f32 %v8740_v32, %v8739_v40  ;;  %v8742_v49 = vpop.f32.mrb[22].mxu1  ;;  %v8721_v56 = vpop.f32.mrb[23].mxu0 }
 0x4a6   :  { %v7477_v2 = vadd.f32 %v8719_v42, %v7436_v1  ;;  %v8722_v23 = vadd.f32 %v8721_v56, %v8720_v37  ;;  %v8743_v38 = vpop.f32.mrb[23].mxu1 }
 0x4a7   :  { %v8744_v59 = vadd.f32 %v8743_v38, %v8742_v49 }
 0x4a8   :  { %v7518_v19 = vadd.f32 %v8741_v44, %v7477_v2  ;;  %v7480_v53 = vadd.f32 %v8722_v23, %v7439_v34 }
 0x4aa   :  { %v7521_v6 = vadd.f32 %v8744_v59, %v7480_v53 }
 0x4c2   :  { %v8761_v48 = vpop.f32.mrb[24].mxu0 }
 0x4c3   :  { %v8783_v9 = vpop.f32.mrb[24].mxu1  ;;  %v8762_v10 = vpop.f32.mrb[25].mxu0 }
 0x4c4   :  { %v8763_v11 = vadd.f32 %v8762_v10, %v8761_v48  ;;  %v8784_v28 = vpop.f32.mrb[25].mxu1  ;;  %v8764_v29 = vpop.f32.mrb[26].mxu0 }
 0x4c5   :  { %v8785_v33 = vadd.f32 %v8784_v28, %v8783_v9  ;;  %v8786_v35 = vpop.f32.mrb[26].mxu1  ;;  %v8765_v41 = vpop.f32.mrb[27].mxu0 }
 0x4c6   :  { %v7559_v45 = vadd.f32 %v8763_v11, %v7518_v19  ;;  %v8766_v47 = vadd.f32 %v8765_v41, %v8764_v29  ;;  %v8787_v51 = vpop.f32.mrb[27].mxu1 }
 0x4c7   :  { %v8788_v3 = vadd.f32 %v8787_v51, %v8786_v35 }
 0x4c8   :  { %v7600_v55 = vadd.f32 %v8785_v33, %v7559_v45  ;;  %v7562_v58 = vadd.f32 %v8766_v47, %v7521_v6 }
 0x4ca   :  { %v7603_v57 = vadd.f32 %v8788_v3, %v7562_v58 }
 0x54a   :  { %v8805_v7 = vpop.f32.mrb[28].mxu0 }
 0x54b   :  { %v8827_v12 = vpop.f32.mrb[28].mxu1  ;;  %v8806_v15 = vpop.f32.mrb[29].mxu0 }
 0x54c   :  { %v8807_v61 = vadd.f32 %v8806_v15, %v8805_v7  ;;  %v8828_v16 = vpop.f32.mrb[29].mxu1  ;;  %v8808_v17 = vpop.f32.mrb[30].mxu0 }
 0x54d   :  { %v8829_v60 = vadd.f32 %v8828_v16, %v8827_v12  ;;  %v8830_v62 = vpop.f32.mrb[30].mxu1  ;;  %v8809_v18 = vpop.f32.mrb[31].mxu0 }
 0x54e   :  { %v7641_v13 = vadd.f32 %v8807_v61, %v7600_v55  ;;  %v8810_v63 = vadd.f32 %v8809_v18, %v8808_v17  ;;  %v8831_v50 = vpop.f32.mrb[31].mxu1 }
 0x54f   :  { %v8832_v5 = vadd.f32 %v8831_v50, %v8830_v62 }
 0x550   :  { %v7644_v46 = vadd.f32 %v8810_v63, %v7603_v57  ;;  %v7682_v0 = vadd.f32 %v8829_v60, %v7641_v13 }
 0x552   :  { %7688 = vmax.xlane.f32.xlu0 %v7682_v0  ;;  %v7685_v24 = vadd.f32 %v8832_v5, %v7644_v46 }
 0x556   :  { %7690 = vmax.xlane.f32.xlu0 %v7685_v24 }
 0x5df   :  { %v7689_v25 = vpop.xlane.xlu0 %7688 }
 0x5e0   :  { %v7692_v21 = vsub.f32 %v7682_v0, %v7689_v25 }
 0x5e2   :  { %v7694_v22 = vmul.f32 1.442695, %v7692_v21 }
 0x5e3   :  { %v7691_v4 = vpop.xlane.xlu0 %7690 }
 0x5e4   :  { %v7693_v14 = vsub.f32 %v7685_v24, %v7691_v4  ;;  %9145 = vpow2.f32 %v7694_v22 }
 0x5e6   :  { %v7696_v31 = vmul.f32 1.442695, %v7693_v14 }
 0x5e8   :  { %9147 = vpow2.f32 %v7696_v31 }
 0x5ee   :  { %v9146_v52 = vpop.eup %9145 }
 0x5ef   :  { %7698 = vadd.xlane.f32.xlu1 %v9146_v52 }
 0x5f2   :  { %v9148_v54 = vpop.eup %9147 }
 0x5f3   :  { %7700 = vadd.xlane.f32.xlu1 %v9148_v54 }
 0x67c   :  { %v7699_v26 = vpop.xlane.xlu1 %7698 }
 0x67d   :  { %9149 = vlog2.f32 %v7699_v26 }
 0x680   :  { %v7701_v27 = vpop.xlane.xlu1 %7700 }
 0x681   :  { %9151 = vlog2.f32 %v7701_v27 }
 0x687   :  { %v9150_v30 = vpop.eup %9149 }
 0x688   :  { %v7703_v39 = vmul.f32 0.6931472, %v9150_v30 }
 0x68a   :  { %v7706_v43 = vsub.f32 %v7692_v21, %v7703_v39 }
 0x68b   :  { %v9152_v1 = vpop.eup %9151 }
 0x68c   :  { %7708 = vst [vmem:[#allocation11] sm:$0xff] %v7706_v43  ;;  %v7705_v8 = vmul.f32 0.6931472, %v9152_v1 }
 0x68e   :  { %v7707_v34 = vsub.f32 %v7693_v14, %v7705_v8 }
 0x690   :  { %7709 = vst [vmem:[#allocation11 + $0x8] sm:$0xff] %v7707_v34 }
 0x691   :  { %9296 = shalt.err (!%p9293_p2)
}
 0x692   :  { %s9297_s7 = scalar_lea.hbm %s9612_s5, 256 }
 0x693   :  { %p9298_p3 = scmp.ne.s32.totalorder %s9612_s5, %s9297_s7  ;;  %p9301_p4 = scmp.lt.u32.totalorder %s9297_s7, %s9612_s5 }
 0x695   :  { %p9303_p5 = pnand %p9301_p4, %p9298_p3 }
 0x697   :  { %9306 = shalt.err (!%p9303_p5)
}
 0x698   :  { %s9327_s12 = smov 128   ;;  %s9328_s13 = smov 8  }
 0x699   :  { %7721 = dma.vmem_to_hbm [thread:$0]  %s7716_s3, 256, %s9612_s5, [#allocation4], %s9327_s12, %s9327_s12, %s9328_s13  }
 0x69a   :  { %9313 = dma.done.wait [#allocation4], 256  }
 0x69b   :  { %9314 = vsyncadd [#allocation4], 4294967040 }
 0x69c   :  { %7725 = vsyncpa [#allocation3], 1 }
 0x69d   :  { %7726 = vsyncpa [#allocation6], 1 }
 0x69e   :  { %7727 = vsyncpa [#allocation9], 1 }
 0x69f   :  { %7728 = vsyncpa [#allocation4], 1 }

// kernel: tpu_custom_call.1
= control target key start
LH: loop header
LB: loop body
LE: loop exit
PB: predicated region body
PF: predicated region fallthrough
CT: control target
= control target key end

     0   :  { %10 = vsyncpa [#allocation3], 0  ;;  %s9607_s0 = inlined_call_operand.hbm [shape: bf16[16,784], index: 0, kind: input, shape index: {}]   ;;  %s9608_s1 = inlined_call_operand.hbm [shape: bf16[784,2048], index: 1, kind: input, shape index: {}]   ;;  %s9609_s2 = inlined_call_operand.hbm [shape: f32[1,2048], index: 2, kind: input, shape index: {}]   ;;  %s9610_s3 = inlined_call_operand.hbm [shape: bf16[2048,128], index: 3, kind: input, shape index: {}]   ;;  %s9611_s4 = inlined_call_operand.hbm [shape: f32[1,128], index: 4, kind: input, shape index: {}]   ;;  %s9612_s5 = inlined_call_operand.hbm [shape: f32[16,128], index: 5, kind: output, shape index: {}]  }
   0x1   :  { %11 = vsyncpa [#allocation6], 0 }
   0x2   :  { %12 = vsyncpa [#allocation9], 0 }
   0x3   :  { %13 = vsyncpa [#allocation4], 0  ;;  %s9315_s18 = smov [#allocation5]   ;;  %s9175_s22 = scalar_lea.hbm %s9608_s1, 100352 }
   0x4   :  { %s31_s19 = sshll.u32 %s9315_s18, 4  ;;  %p9176_p0 = scmp.ne.s32.totalorder %s9608_s1, %s9175_s22  ;;  %s32_s19 = int_to_ptr.vmem [resolvable:$true] %s31_s19 }
   0x5   :  { %p9179_p1 = scmp.lt.u32.totalorder %s9175_s22, %s9608_s1 }
   0x7   :  { %p9181_p2 = pnand %p9179_p1, %p9176_p0 }
   0x9   :  { %9184 = shalt.err (!%p9181_p2)
}
   0xa   :  { %s9185_s27 = scalar_lea.vmem %s32_s19, 100352  ;;  %p9190_p4 = scmp.lt.s32.totalorder %s32_s19, %s32_s19 }
   0xb   :  { %p9186_p3 = scmp.ne.s32.totalorder %s32_s19, %s9185_s27  ;;  %p9191_p5 = scmp.lt.s32.totalorder %s9185_s27, %s9185_s27 }
   0xd   :  { %p9192_p6 = por %p9191_p5, %p9190_p4 }
   0xf   :  { %p9193_p7 = pnand %p9192_p6, %p9186_p3 }
  0x11   :  { %9196 = shalt.err (!%p9193_p7)
}
  0x12   :  { %s9316_s28 = smov 1024   ;;  %s9317_s29 = smov 64  }
  0x13   :  { %37 = dma.hbm_to_vmem [thread:$0]  %s9608_s1, 100352, %s32_s19, [#allocation6], %s9316_s28, %s9316_s28, %s9317_s29  }
  0x14   :  { %s9318_s7 = smov [#allocation8]   ;;  %s9197_s11 = scalar_lea.hbm %s9610_s3, 16384 }
  0x15   :  { %s53_s8 = sshll.u32 %s9318_s7, 4  ;;  %p9198_p8 = scmp.ne.s32.totalorder %s9610_s3, %s9197_s11  ;;  %s54_s8 = int_to_ptr.vmem [resolvable:$true] %s53_s8 }
  0x16   :  { %p9201_p9 = scmp.lt.u32.totalorder %s9197_s11, %s9610_s3 }
  0x18   :  { %p9203_p10 = pnand %p9201_p9, %p9198_p8 }
  0x1a   :  { %9206 = shalt.err (!%p9203_p10)
}
  0x1b   :  { %s9207_s16 = scalar_lea.vmem %s54_s8, 16384  ;;  %p9212_p12 = scmp.lt.s32.totalorder %s54_s8, %s54_s8 }
  0x1c   :  { %p9208_p11 = scmp.ne.s32.totalorder %s54_s8, %s9207_s16  ;;  %p9213_p13 = scmp.lt.s32.totalorder %s9207_s16, %s9207_s16 }
  0x1e   :  { %p9214_p0 = por %p9213_p13, %p9212_p12 }
  0x20   :  { %p9215_p1 = pnand %p9214_p0, %p9208_p11 }
  0x22   :  { %9218 = shalt.err (!%p9215_p1)
}
  0x23   :  { %s9319_s1 = smov 4   ;;  %s9320_s19 = smov [#allocation2]  }
  0x24   :  { %59 = dma.hbm_to_vmem [thread:$0]  %s9610_s3, 16384, %s54_s8, [#allocation9], %s9317_s29, %s9317_s29, %s9319_s1  }
  0x25   :  { %s19_s20 = sshll.u32 %s9320_s19, 4  ;;  %s9219_s23 = scalar_lea.hbm %s9607_s0, 896  ;;  %s20_s20 = int_to_ptr.vmem [resolvable:$true] %s19_s20 }
  0x26   :  { %p9220_p2 = scmp.ne.s32.totalorder %s9607_s0, %s9219_s23  ;;  %p9223_p3 = scmp.lt.u32.totalorder %s9219_s23, %s9607_s0 }
  0x28   :  { %p9225_p4 = pnand %p9223_p3, %p9220_p2 }
  0x2a   :  { %9228 = shalt.err (!%p9225_p4)
}
  0x2b   :  { %s9229_s28 = scalar_lea.vmem %s20_s20, 896  ;;  %p9234_p6 = scmp.lt.s32.totalorder %s20_s20, %s20_s20 }
  0x2c   :  { %p9230_p5 = scmp.ne.s32.totalorder %s20_s20, %s9229_s28  ;;  %p9235_p7 = scmp.lt.s32.totalorder %s9229_s28, %s9229_s28 }
  0x2e   :  { %p9236_p8 = por %p9235_p7, %p9234_p6 }
  0x30   :  { %p9237_p9 = pnand %p9236_p8, %p9230_p5 }
  0x32   :  { %9240 = shalt.err (!%p9237_p9)
}
  0x33   :  { %s9321_s3 = smov 448   ;;  %s9322_s29 = smov 28  }
  0x34   :  { %25 = dma.hbm_to_vmem [thread:$0]  %s9607_s0, 896, %s20_s20, [#allocation3], %s9321_s3, %s9321_s3, %s9322_s29  }
  0x35   :  { %s9323_s7 = smov [#allocation7]   ;;  %s9324_s9 = smov [#allocation10]  }
  0x36   :  { %s44_s8 = sshll.u32 %s9323_s7, 4  ;;  %s66_s10 = sshll.u32 %s9324_s9, 4  ;;  %s45_s8 = int_to_ptr.vmem [resolvable:$true] %s44_s8  ;;  %s67_s10 = int_to_ptr.vmem [resolvable:$true] %s66_s10 }
  0x37   :  { %s9241_s13 = scalar_lea.hbm %s9609_s2, 256 }
  0x38   :  { %p9242_p10 = scmp.ne.s32.totalorder %s9609_s2, %s9241_s13  ;;  %p9245_p11 = scmp.lt.u32.totalorder %s9241_s13, %s9609_s2 }
  0x3a   :  { %p9247_p12 = pnand %p9245_p11, %p9242_p10 }
  0x3c   :  { %9250 = shalt.err (!%p9247_p12)
}
  0x3d   :  { %s9251_s0 = scalar_lea.vmem %s45_s8, 256  ;;  %p9256_p0 = scmp.lt.s32.totalorder %s45_s8, %s45_s8 }
  0x3e   :  { %p9252_p13 = scmp.ne.s32.totalorder %s45_s8, %s9251_s0  ;;  %p9257_p1 = scmp.lt.s32.totalorder %s9251_s0, %s9251_s0 }
  0x40   :  { %p9258_p2 = por %p9257_p1, %p9256_p0 }
  0x42   :  { %p9259_p3 = pnand %p9258_p2, %p9252_p13 }
  0x44   :  { %9262 = shalt.err (!%p9259_p3)
}
  0x45   :  { %47 = dma.hbm_to_vmem [thread:$0]  %s9609_s2, 256, %s45_s8, [#allocation6]  }
  0x46   :  { %s9263_s21 = scalar_lea.hbm %s9611_s4, 16 }
  0x47   :  { %p9264_p4 = scmp.ne.s32.totalorder %s9611_s4, %s9263_s21  ;;  %p9267_p5 = scmp.lt.u32.totalorder %s9263_s21, %s9611_s4 }
  0x49   :  { %p9269_p6 = pnand %p9267_p5, %p9264_p4 }
  0x4b   :  { %9272 = shalt.err (!%p9269_p6)
}
  0x4c   :  { %s9273_s26 = scalar_lea.vmem %s67_s10, 16  ;;  %s9277_s27 = scalar_lea.vmem %s67_s10, 32 }
  0x4d   :  { %p9274_p7 = scmp.ne.s32.totalorder %s67_s10, %s9273_s26  ;;  %p9278_p8 = scmp.lt.s32.totalorder %s67_s10, %s67_s10 }
  0x4e   :  { %p9279_p9 = scmp.lt.s32.totalorder %s9277_s27, %s9273_s26 }
  0x50   :  { %p9280_p10 = por %p9279_p9, %p9278_p8 }
  0x52   :  { %p9281_p11 = pnand %p9280_p10, %p9274_p7 }
  0x54   :  { %9284 = shalt.err (!%p9281_p11)
}
  0x55   :  { %69 = dma.hbm_to_vmem [thread:$0]  %s9611_s4, 16, %s67_s10, [#allocation9]  }
  0x56   :  { %9307 = dma.done.wait [#allocation3], 896  }
  0x57   :  { %9308 = vsyncadd [#allocation3], 4294966400 }
  0x58   :  { %9309 = dma.done.wait [#allocation6], 100608  }
  0x59   :  { %9310 = vsyncadd [#allocation6], 4294866688 }
  0x5a   :  { %9311 = dma.done.wait [#allocation9], 16400  }
  0x5b   :  { %9312 = vsyncadd [#allocation9], 4294950896  ;;  %v94_v0 = vld [vmem:[#allocation5] sm:$0xff]  ;;  %v95_v2 = vld [vmem:[#allocation5 + $0x8] sm:$0xff]  ;;  %vm4917_vm0 = vcmask 130048   ;;  %s9326_s4 = smov [#allocation11]  }
  0x5c   :  { %v102_v1 = vld [vmem:[#allocation5 + $0x40] sm:$0xff]  ;;  %v103_v4 = vld [vmem:[#allocation5 + $0x48] sm:$0xff]  ;;  %s7715_s3 = sshll.u32 %s9326_s4, 4  ;;  %s7716_s3 = int_to_ptr.vmem [resolvable:$true] %s7715_s3 }
  0x5d   :  { %v7737_v3 = vcombine.high %v94_v0, %v102_v1  ;;  %v7736_v5 = vcombine.low %v94_v0, %v102_v1  ;;  %v110_v6 = vld [vmem:[#allocation5 + $0x80] sm:$0xff]  ;;  %v7739_v8 = vcombine.high %v95_v2, %v103_v4  ;;  %v7738_v9 = vcombine.low %v95_v2, %v103_v4  ;;  %v111_v11 = vld [vmem:[#allocation5 + $0x88] sm:$0xff]  ;;  %s9285_s29 = scalar_lea.vmem %s7716_s3, 256  ;;  %p9290_p13 = scmp.lt.s32.totalorder %s7716_s3, %s7716_s3 }
  0x5e   :  { %v118_v7 = vld [vmem:[#allocation5 + $0xc0] sm:$0xff]  ;;  %v119_v12 = vld [vmem:[#allocation5 + $0xc8] sm:$0xff]  ;;  %p9286_p12 = scmp.ne.s32.totalorder %s7716_s3, %s9285_s29  ;;  %p9291_p0 = scmp.lt.s32.totalorder %s9285_s29, %s9285_s29 }
  0x5f   :  { %v7753_v10 = vcombine.high %v110_v6, %v118_v7  ;;  %v126_v13 = vld [vmem:[#allocation5 + $0x100] sm:$0xff]  ;;  %4921 = vmatprep.subr.bf16.mxu0 %v7737_v3  ;;  %v7755_v14 = vcombine.high %v111_v11, %v119_v12  ;;  %v127_v16 = vld [vmem:[#allocation5 + $0x108] sm:$0xff]  ;;  %5093 = vmatprep.subr.bf16.mxu1 %v7739_v8  ;;  %v7752_v18 = vcombine.low %v110_v6, %v118_v7 }
  0x60   :  { %v134_v15 = vld [vmem:[#allocation5 + $0x140] sm:$0xff]  ;;  %v135_v17 = vld [vmem:[#allocation5 + $0x148] sm:$0xff]  ;;  %4922 = vmatpush1.bf16.msra.mxu0 %v7736_v5  ;;  %5094 = vmatpush1.bf16.msra.mxu1 %v7738_v9  ;;  %v7754_v19 = vcombine.low %v111_v11, %v119_v12  ;;  %p9292_p1 = por %p9291_p0, %p9290_p13 }
  0x61   :  { %4923 = vmatprep.subr.bf16.mxu0 %v7753_v10  ;;  %v7769_v20 = vcombine.high %v126_v13, %v134_v15  ;;  %5095 = vmatprep.subr.bf16.mxu1 %v7755_v14  ;;  %v7771_v21 = vcombine.high %v127_v16, %v135_v17  ;;  %v142_v22 = vld [vmem:[#allocation5 + $0x180] sm:$0xff]  ;;  %v143_v24 = vld [vmem:[#allocation5 + $0x188] sm:$0xff]  ;;  %v7768_v26 = vcombine.low %v126_v13, %v134_v15 }
  0x62   :  { %v150_v23 = vld [vmem:[#allocation5 + $0x1c0] sm:$0xff]  ;;  %v151_v25 = vld [vmem:[#allocation5 + $0x1c8] sm:$0xff]  ;;  %v7770_v27 = vcombine.low %v127_v16, %v135_v17  ;;  %p9293_p2 = pnand %p9292_p1, %p9286_p12 }
  0x63   :  { %v7785_v28 = vcombine.high %v142_v22, %v150_v23  ;;  %v7787_v29 = vcombine.high %v143_v24, %v151_v25  ;;  %v158_v30 = vld [vmem:[#allocation5 + $0x200] sm:$0xff]  ;;  %v159_v32 = vld [vmem:[#allocation5 + $0x208] sm:$0xff]  ;;  %v7784_v34 = vcombine.low %v142_v22, %v150_v23  ;;  %v7786_v35 = vcombine.low %v143_v24, %v151_v25 }
  0x64   :  { %4924 = vmatpush1.bf16.msra.mxu0 %v7752_v18  ;;  %5096 = vmatpush1.bf16.msra.mxu1 %v7754_v19  ;;  %v166_v31 = vld [vmem:[#allocation5 + $0x240] sm:$0xff]  ;;  %v167_v33 = vld [vmem:[#allocation5 + $0x248] sm:$0xff] }
  0x65   :  { %4925 = vmatprep.subr.bf16.mxu0 %v7769_v20  ;;  %5097 = vmatprep.subr.bf16.mxu1 %v7771_v21  ;;  %v7801_v36 = vcombine.high %v158_v30, %v166_v31  ;;  %v7803_v37 = vcombine.high %v159_v32, %v167_v33  ;;  %v174_v38 = vld [vmem:[#allocation5 + $0x280] sm:$0xff]  ;;  %v175_v40 = vld [vmem:[#allocation5 + $0x288] sm:$0xff]  ;;  %v7800_v42 = vcombine.low %v158_v30, %v166_v31 }
  0x66   :  { %v182_v39 = vld [vmem:[#allocation5 + $0x2c0] sm:$0xff]  ;;  %v183_v41 = vld [vmem:[#allocation5 + $0x2c8] sm:$0xff]  ;;  %v7802_v43 = vcombine.low %v159_v32, %v167_v33 }
  0x67   :  { %v7817_v44 = vcombine.high %v174_v38, %v182_v39  ;;  %v7819_v45 = vcombine.high %v175_v40, %v183_v41  ;;  %v190_v46 = vld [vmem:[#allocation5 + $0x300] sm:$0xff]  ;;  %v191_v48 = vld [vmem:[#allocation5 + $0x308] sm:$0xff]  ;;  %v7816_v50 = vcombine.low %v174_v38, %v182_v39  ;;  %v7818_v51 = vcombine.low %v175_v40, %v183_v41 }
  0x68   :  { %4926 = vmatpush1.bf16.msra.mxu0 %v7768_v26  ;;  %5098 = vmatpush1.bf16.msra.mxu1 %v7770_v27  ;;  %v198_v47 = vld [vmem:[#allocation5 + $0x340] sm:$0xff]  ;;  %v199_v49 = vld [vmem:[#allocation5 + $0x348] sm:$0xff] }
  0x69   :  { %4927 = vmatprep.subr.bf16.mxu0 %v7785_v28  ;;  %5099 = vmatprep.subr.bf16.mxu1 %v7787_v29  ;;  %v7833_v52 = vcombine.high %v190_v46, %v198_v47  ;;  %v7835_v53 = vcombine.high %v191_v48, %v199_v49  ;;  %v206_v54 = vld [vmem:[#allocation5 + $0x380] sm:$0xff]  ;;  %v8975_v56 = vld [vmem:[#allocation2 + $0x4] ss:$28 sps:$4 sm:$0xff]   ;;  %v7832_v59 = vcombine.low %v190_v46, %v198_v47 }
  0x6a   :  { %v214_v55 = vld [vmem:[#allocation5 + $0x3c0] sm:$0xff]  ;;  %v207_v57 = vld [vmem:[#allocation5 + $0x388] sm:$0xff]  ;;  %4953 = vmatprep.mubr.bf16.mxu0 %v8975_v56  ;;  %v7834_v60 = vcombine.low %v191_v48, %v199_v49  ;;  %5125 = vmatprep.mubr.bf16.mxu1 %v8975_v56 }
  0x6b   :  { %v215_v58 = vld [vmem:[#allocation5 + $0x3c8] sm:$0xff]  ;;  %v7849_v61 = vcombine.high %v206_v54, %v214_v55  ;;  %v222_v63 = vld [vmem:[#allocation5 + $0x400] sm:$0xff]  ;;  %v7848_v3 = vcombine.low %v206_v54, %v214_v55 }
  0x6c   :  { %4928 = vmatpush1.bf16.msra.mxu0 %v7784_v34  ;;  %5100 = vmatpush1.bf16.msra.mxu1 %v7786_v35  ;;  %v7851_v62 = vcombine.high %v207_v57, %v215_v58  ;;  %v230_v0 = vld [vmem:[#allocation5 + $0x440] sm:$0xff]  ;;  %v223_v1 = vld [vmem:[#allocation5 + $0x408] sm:$0xff]  ;;  %v7850_v4 = vcombine.low %v207_v57, %v215_v58 }
  0x6d   :  { %4929 = vmatprep.subr.bf16.mxu0 %v7801_v36  ;;  %5101 = vmatprep.subr.bf16.mxu1 %v7803_v37  ;;  %v231_v2 = vld [vmem:[#allocation5 + $0x448] sm:$0xff]  ;;  %v7865_v5 = vcombine.high %v222_v63, %v230_v0  ;;  %v238_v7 = vld [vmem:[#allocation5 + $0x480] sm:$0xff]  ;;  %v7864_v11 = vcombine.low %v222_v63, %v230_v0 }
  0x6e   :  { %v7867_v6 = vcombine.high %v223_v1, %v231_v2  ;;  %v246_v8 = vld [vmem:[#allocation5 + $0x4c0] sm:$0xff]  ;;  %v239_v9 = vld [vmem:[#allocation5 + $0x488] sm:$0xff]  ;;  %v7866_v12 = vcombine.low %v223_v1, %v231_v2 }
  0x6f   :  { %v247_v10 = vld [vmem:[#allocation5 + $0x4c8] sm:$0xff]  ;;  %v7881_v13 = vcombine.high %v238_v7, %v246_v8  ;;  %v254_v15 = vld [vmem:[#allocation5 + $0x500] sm:$0xff]  ;;  %v7880_v19 = vcombine.low %v238_v7, %v246_v8 }
  0x70   :  { %4930 = vmatpush1.bf16.msra.mxu0 %v7800_v42  ;;  %5102 = vmatpush1.bf16.msra.mxu1 %v7802_v43  ;;  %v7883_v14 = vcombine.high %v239_v9, %v247_v10  ;;  %v262_v16 = vld [vmem:[#allocation5 + $0x540] sm:$0xff]  ;;  %v255_v17 = vld [vmem:[#allocation5 + $0x508] sm:$0xff]  ;;  %v7882_v20 = vcombine.low %v239_v9, %v247_v10 }
  0x71   :  { %4931 = vmatprep.subr.bf16.mxu0 %v7817_v44  ;;  %5103 = vmatprep.subr.bf16.mxu1 %v7819_v45  ;;  %v263_v18 = vld [vmem:[#allocation5 + $0x548] sm:$0xff]  ;;  %v7897_v21 = vcombine.high %v254_v15, %v262_v16  ;;  %v270_v23 = vld [vmem:[#allocation5 + $0x580] sm:$0xff]  ;;  %v7896_v27 = vcombine.low %v254_v15, %v262_v16 }
  0x72   :  { %v7899_v22 = vcombine.high %v255_v17, %v263_v18  ;;  %v278_v24 = vld [vmem:[#allocation5 + $0x5c0] sm:$0xff]  ;;  %v271_v25 = vld [vmem:[#allocation5 + $0x588] sm:$0xff]  ;;  %v7898_v28 = vcombine.low %v255_v17, %v263_v18  ;;  %v8978_v18 = vld [vmem:[#allocation2 + $0xc] ss:$28 sps:$4 sm:$0xff]  }
  0x73   :  { %v279_v26 = vld [vmem:[#allocation5 + $0x5c8] sm:$0xff]  ;;  %v7913_v29 = vcombine.high %v270_v23, %v278_v24  ;;  %v286_v31 = vld [vmem:[#allocation5 + $0x600] sm:$0xff]  ;;  %v7912_v35 = vcombine.low %v270_v23, %v278_v24 }
  0x74   :  { %4932 = vmatpush1.bf16.msra.mxu0 %v7816_v50  ;;  %5104 = vmatpush1.bf16.msra.mxu1 %v7818_v51  ;;  %v7915_v30 = vcombine.high %v271_v25, %v279_v26  ;;  %v294_v32 = vld [vmem:[#allocation5 + $0x640] sm:$0xff]  ;;  %v287_v33 = vld [vmem:[#allocation5 + $0x608] sm:$0xff]  ;;  %v7914_v36 = vcombine.low %v271_v25, %v279_v26 }
  0x75   :  { %4933 = vmatprep.subr.bf16.mxu0 %v7833_v52  ;;  %5105 = vmatprep.subr.bf16.mxu1 %v7835_v53  ;;  %v295_v34 = vld [vmem:[#allocation5 + $0x648] sm:$0xff]  ;;  %v7929_v37 = vcombine.high %v286_v31, %v294_v32  ;;  %v302_v39 = vld [vmem:[#allocation5 + $0x680] sm:$0xff]  ;;  %v7928_v43 = vcombine.low %v286_v31, %v294_v32 }
  0x76   :  { %v7931_v38 = vcombine.high %v287_v33, %v295_v34  ;;  %v310_v40 = vld [vmem:[#allocation5 + $0x6c0] sm:$0xff]  ;;  %v303_v41 = vld [vmem:[#allocation5 + $0x688] sm:$0xff]  ;;  %v7930_v44 = vcombine.low %v287_v33, %v295_v34 }
  0x77   :  { %v311_v42 = vld [vmem:[#allocation5 + $0x6c8] sm:$0xff]  ;;  %v7945_v45 = vcombine.high %v302_v39, %v310_v40  ;;  %v318_v47 = vld [vmem:[#allocation5 + $0x700] sm:$0xff]  ;;  %v7944_v51 = vcombine.low %v302_v39, %v310_v40 }
  0x78   :  { %4934 = vmatpush1.bf16.msra.mxu0 %v7832_v59  ;;  %5106 = vmatpush1.bf16.msra.mxu1 %v7834_v60  ;;  %v7947_v46 = vcombine.high %v303_v41, %v311_v42  ;;  %v326_v48 = vld [vmem:[#allocation5 + $0x740] sm:$0xff]  ;;  %v319_v49 = vld [vmem:[#allocation5 + $0x708] sm:$0xff]  ;;  %v7946_v52 = vcombine.low %v303_v41, %v311_v42 }
  0x79   :  { %4935 = vmatprep.subr.bf16.mxu0 %v7849_v61  ;;  %5107 = vmatprep.subr.bf16.mxu1 %v7851_v62  ;;  %v327_v50 = vld [vmem:[#allocation5 + $0x748] sm:$0xff]  ;;  %v7961_v53 = vcombine.high %v318_v47, %v326_v48  ;;  %v334_v55 = vld [vmem:[#allocation5 + $0x780] sm:$0xff]  ;;  %v7960_v59 = vcombine.low %v318_v47, %v326_v48 }
  0x7a   :  { %v7963_v54 = vcombine.high %v319_v49, %v327_v50  ;;  %v342_v56 = vld [vmem:[#allocation5 + $0x7c0] sm:$0xff]  ;;  %v335_v57 = vld [vmem:[#allocation5 + $0x788] sm:$0xff]  ;;  %v7962_v60 = vcombine.low %v319_v49, %v327_v50 }
  0x7b   :  { %v343_v58 = vld [vmem:[#allocation5 + $0x7c8] sm:$0xff]  ;;  %v7977_v61 = vcombine.high %v334_v55, %v342_v56  ;;  %v350_v63 = vld [vmem:[#allocation5 + $0x800] sm:$0xff] }
  0x7c   :  { %4936 = vmatpush1.bf16.msra.mxu0 %v7848_v3  ;;  %5108 = vmatpush1.bf16.msra.mxu1 %v7850_v4  ;;  %v7979_v62 = vcombine.high %v335_v57, %v343_v58  ;;  %v358_v0 = vld [vmem:[#allocation5 + $0x840] sm:$0xff]  ;;  %v351_v1 = vld [vmem:[#allocation5 + $0x808] sm:$0xff]  ;;  %v7976_v3 = vcombine.low %v334_v55, %v342_v56  ;;  %v7978_v4 = vcombine.low %v335_v57, %v343_v58 }
  0x7d   :  { %4937 = vmatprep.subr.bf16.mxu0 %v7865_v5  ;;  %5109 = vmatprep.subr.bf16.mxu1 %v7867_v6  ;;  %v359_v2 = vld [vmem:[#allocation5 + $0x848] sm:$0xff]  ;;  %v7993_v5 = vcombine.high %v350_v63, %v358_v0  ;;  %v366_v7 = vld [vmem:[#allocation5 + $0x880] sm:$0xff] }
  0x7e   :  { %v7995_v6 = vcombine.high %v351_v1, %v359_v2  ;;  %v374_v8 = vld [vmem:[#allocation5 + $0x8c0] sm:$0xff]  ;;  %v367_v10 = vld [vmem:[#allocation5 + $0x888] sm:$0xff] }
  0x7f   :  { %v8977_v9 = vld [vmem:[#allocation2] ss:$28 sps:$4 sm:$0xff]  }
  0x80   :  { %4938 = vmatpush1.bf16.msra.mxu0 %v7864_v11  ;;  %5110 = vmatpush1.bf16.msra.mxu1 %v7866_v12  ;;  %v375_v11 = vld [vmem:[#allocation5 + $0x8c8] sm:$0xff]  ;;  %v7992_v12 = vcombine.low %v350_v63, %v358_v0  ;;  %v382_v15 = vld [vmem:[#allocation5 + $0x900] sm:$0xff] }
  0x81   :  { %4939 = vmatprep.subr.bf16.mxu0 %v7881_v13  ;;  %5111 = vmatprep.subr.bf16.mxu1 %v7883_v14  ;;  %v7994_v13 = vcombine.low %v351_v1, %v359_v2  ;;  %v8009_v14 = vcombine.high %v366_v7, %v374_v8  ;;  %v8011_v16 = vcombine.high %v367_v10, %v375_v11  ;;  %v390_v17 = vld [vmem:[#allocation5 + $0x940] sm:$0xff]  ;;  %v415_v34 = vld [vmem:[#allocation5 + $0xa08] sm:$0xff] }
  0x82   :  { %v8025_v23 = vcombine.high %v382_v15, %v390_v17  ;;  %v398_v25 = vld [vmem:[#allocation5 + $0x980] sm:$0xff]  ;;  %v431_v42 = vld [vmem:[#allocation5 + $0xa88] sm:$0xff] }
  0x83   :  { %v406_v26 = vld [vmem:[#allocation5 + $0x9c0] sm:$0xff]  ;;  %v447_v50 = vld [vmem:[#allocation5 + $0xb08] sm:$0xff] }
  0x84   :  { %4940 = vmatpush1.bf16.msra.mxu0 %v7880_v19  ;;  %5112 = vmatpush1.bf16.msra.mxu1 %v7882_v20  ;;  %v383_v19 = vld [vmem:[#allocation5 + $0x908] sm:$0xff]  ;;  %v422_v31 = vld [vmem:[#allocation5 + $0xa40] sm:$0xff]  ;;  %v8041_v33 = vcombine.high %v398_v25, %v406_v26 }
  0x85   :  { %4941 = vmatprep.subr.bf16.mxu0 %v7897_v21  ;;  %5113 = vmatprep.subr.bf16.mxu1 %v7899_v22  ;;  %v391_v20 = vld [vmem:[#allocation5 + $0x948] sm:$0xff]  ;;  %v8008_v21 = vcombine.low %v366_v7, %v374_v8  ;;  %v8010_v22 = vcombine.low %v367_v10, %v375_v11  ;;  %v438_v39 = vld [vmem:[#allocation5 + $0xac0] sm:$0xff] }
  0x86   :  { %v8027_v24 = vcombine.high %v383_v19, %v391_v20  ;;  %v8026_v32 = vcombine.low %v383_v19, %v391_v20  ;;  %v446_v48 = vld [vmem:[#allocation5 + $0xb00] sm:$0xff]  ;;  %v463_v58 = vld [vmem:[#allocation5 + $0xb88] sm:$0xff] }
  0x87   :  { %v454_v49 = vld [vmem:[#allocation5 + $0xb40] sm:$0xff]  ;;  %v479_v2 = vld [vmem:[#allocation5 + $0xc08] sm:$0xff] }
  0x88   :  { %4942 = vmatpush1.bf16.msra.mxu0 %v7896_v27  ;;  %5114 = vmatpush1.bf16.msra.mxu1 %v7898_v28  ;;  %v399_v27 = vld [vmem:[#allocation5 + $0x988] sm:$0xff]  ;;  %v8089_v55 = vcombine.high %v446_v48, %v454_v49  ;;  %v462_v56 = vld [vmem:[#allocation5 + $0xb80] sm:$0xff] }
  0x89   :  { %4943 = vmatprep.subr.bf16.mxu0 %v7913_v29  ;;  %5115 = vmatprep.subr.bf16.mxu1 %v7915_v30  ;;  %v407_v28 = vld [vmem:[#allocation5 + $0x9c8] sm:$0xff]  ;;  %v8024_v29 = vcombine.low %v382_v15, %v390_v17  ;;  %v414_v30 = vld [vmem:[#allocation5 + $0xa00] sm:$0xff] }
  0x8a   :  { %v8042_v40 = vcombine.low %v399_v27, %v407_v28  ;;  %v8057_v41 = vcombine.high %v414_v30, %v422_v31  ;;  %v470_v57 = vld [vmem:[#allocation5 + $0xbc0] sm:$0xff]  ;;  %v495_v10 = vld [vmem:[#allocation5 + $0xc88] sm:$0xff] }
  0x8b   :  { %v8105_v63 = vcombine.high %v462_v56, %v470_v57  ;;  %v478_v0 = vld [vmem:[#allocation5 + $0xc00] sm:$0xff]  ;;  %v519_v20 = vld [vmem:[#allocation5 + $0xd48] sm:$0xff] }
  0x8c   :  { %4944 = vmatpush1.bf16.msra.mxu0 %v7912_v35  ;;  %5116 = vmatpush1.bf16.msra.mxu1 %v7914_v36  ;;  %v423_v35 = vld [vmem:[#allocation5 + $0xa48] sm:$0xff]  ;;  %v8043_v36 = vcombine.high %v399_v27, %v407_v28  ;;  %v486_v1 = vld [vmem:[#allocation5 + $0xc40] sm:$0xff] }
  0x8d   :  { %4945 = vmatprep.subr.bf16.mxu0 %v7929_v37  ;;  %5117 = vmatprep.subr.bf16.mxu1 %v7931_v38  ;;  %v8040_v37 = vcombine.low %v398_v25, %v406_v26  ;;  %v430_v38 = vld [vmem:[#allocation5 + $0xa80] sm:$0xff]  ;;  %v8121_v7 = vcombine.high %v478_v0, %v486_v1  ;;  %v527_v26 = vld [vmem:[#allocation5 + $0xd88] sm:$0xff] }
  0x8e   :  { %v8073_v47 = vcombine.high %v430_v38, %v438_v39  ;;  %v494_v8 = vld [vmem:[#allocation5 + $0xc80] sm:$0xff]  ;;  %v535_v28 = vld [vmem:[#allocation5 + $0xdc8] sm:$0xff] }
  0x8f   :  { %v518_v17 = vld [vmem:[#allocation5 + $0xd40] sm:$0xff] }
  0x90   :  { %4946 = vmatpush1.bf16.msra.mxu0 %v7928_v43  ;;  %5118 = vmatpush1.bf16.msra.mxu1 %v7930_v44  ;;  %v439_v43 = vld [vmem:[#allocation5 + $0xac8] sm:$0xff]  ;;  %v8059_v44 = vcombine.high %v415_v34, %v423_v35  ;;  %v534_v25 = vld [vmem:[#allocation5 + $0xdc0] sm:$0xff] }
  0x91   :  { %4947 = vmatprep.subr.bf16.mxu0 %v7945_v45  ;;  %5119 = vmatprep.subr.bf16.mxu1 %v7947_v46  ;;  %v8056_v45 = vcombine.low %v414_v30, %v422_v31  ;;  %v8058_v46 = vcombine.low %v415_v34, %v423_v35  ;;  %v543_v34 = vld [vmem:[#allocation5 + $0xe08] sm:$0xff]  ;;  %v8171_v35 = vcombine.high %v527_v26, %v535_v28 }
  0x94   :  { %4948 = vmatpush1.bf16.msra.mxu0 %v7944_v51  ;;  %5120 = vmatpush1.bf16.msra.mxu1 %v7946_v52  ;;  %v8075_v51 = vcombine.high %v431_v42, %v439_v43  ;;  %v455_v52 = vld [vmem:[#allocation5 + $0xb48] sm:$0xff] }
  0x95   :  { %4949 = vmatprep.subr.bf16.mxu0 %v7961_v53  ;;  %5121 = vmatprep.subr.bf16.mxu1 %v7963_v54  ;;  %v8072_v53 = vcombine.low %v430_v38, %v438_v39  ;;  %v8074_v54 = vcombine.low %v431_v42, %v439_v43  ;;  %v8170_v38 = vcombine.low %v527_v26, %v535_v28  ;;  %v559_v42 = vld [vmem:[#allocation5 + $0xe88] sm:$0xff]  ;;  %v654_v26 = vld [vmem:[#allocation5 + $0x1180] sm:$0xff] }
  0x96   :  { %v655_v28 = vld [vmem:[#allocation5 + $0x1188] sm:$0xff] }
  0x98   :  { %4950 = vmatpush1.bf16.msra.mxu0 %v7960_v59  ;;  %5122 = vmatpush1.bf16.msra.mxu1 %v7962_v60  ;;  %v8091_v59 = vcombine.high %v447_v50, %v455_v52  ;;  %v471_v60 = vld [vmem:[#allocation5 + $0xbc8] sm:$0xff] }
  0x99   :  { %4951 = vmatprep.subr.bf16.mxu0 %v7977_v61  ;;  %5123 = vmatprep.subr.bf16.mxu1 %v7979_v62  ;;  %v8088_v61 = vcombine.low %v446_v48, %v454_v49  ;;  %v8090_v62 = vcombine.low %v447_v50, %v455_v52  ;;  %v574_v48 = vld [vmem:[#allocation5 + $0xf00] sm:$0xff]  ;;  %v575_v50 = vld [vmem:[#allocation5 + $0xf08] sm:$0xff] }
  0x9a   :  { %v582_v49 = vld [vmem:[#allocation5 + $0xf40] sm:$0xff]  ;;  %v583_v52 = vld [vmem:[#allocation5 + $0xf48] sm:$0xff] }
  0x9c   :  { %4952 = vmatpush1.bf16.msra.mxu0 %v7976_v3  ;;  %5124 = vmatpush1.bf16.msra.mxu1 %v7978_v4  ;;  %v8107_v3 = vcombine.high %v463_v58, %v471_v60  ;;  %v487_v4 = vld [vmem:[#allocation5 + $0xc48] sm:$0xff] }
  0x9d   :  { %4964 = vmatprep.subr.bf16.mxu0 %v7993_v5  ;;  %5136 = vmatprep.subr.bf16.mxu1 %v7995_v6  ;;  %v8104_v5 = vcombine.low %v462_v56, %v470_v57  ;;  %v8106_v6 = vcombine.low %v463_v58, %v471_v60  ;;  %v8123_v11 = vcombine.high %v479_v2, %v487_v4  ;;  %v590_v56 = vld [vmem:[#allocation5 + $0xf80] sm:$0xff]  ;;  %v591_v58 = vld [vmem:[#allocation5 + $0xf88] sm:$0xff] }
  0x9e   :  { %v598_v57 = vld [vmem:[#allocation5 + $0xfc0] sm:$0xff]  ;;  %v599_v60 = vld [vmem:[#allocation5 + $0xfc8] sm:$0xff] }
  0x9f   :  { %4954 = vmatmul.mubr.bf16.vlgmr.msra.gmra.mrb[0].mxu0 %v8977_v9  ;;  %5126 = vmatmul.mubr.bf16.vlgmr.msra.gmra.mrb[0].mxu1 %v8977_v9  ;;  %v502_v9 = vld [vmem:[#allocation5 + $0xcc0] sm:$0xff] }
  0xa0   :  { %4965 = vmatpush1.bf16.msra.mxu0 %v7992_v12  ;;  %5137 = vmatpush1.bf16.msra.mxu1 %v7994_v13  ;;  %v503_v12 = vld [vmem:[#allocation5 + $0xcc8] sm:$0xff]  ;;  %v8120_v13 = vcombine.low %v478_v0, %v486_v1  ;;  %v8137_v15 = vcombine.high %v494_v8, %v502_v9  ;;  %v606_v0 = vld [vmem:[#allocation5 + $0x1000] sm:$0xff] }
  0xa1   :  { %4966 = vmatprep.subr.bf16.mxu0 %v8009_v14  ;;  %5138 = vmatprep.subr.bf16.mxu1 %v8011_v16  ;;  %v8122_v14 = vcombine.low %v479_v2, %v487_v4  ;;  %v510_v16 = vld [vmem:[#allocation5 + $0xd00] sm:$0xff]  ;;  %v8139_v19 = vcombine.high %v495_v10, %v503_v12  ;;  %v607_v2 = vld [vmem:[#allocation5 + $0x1008] sm:$0xff] }
  0xa2   :  { %4996 = vmatprep.mubr.bf16.mxu0 %v8978_v18  ;;  %5168 = vmatprep.mubr.bf16.mxu1 %v8978_v18  ;;  %v511_v18 = vld [vmem:[#allocation5 + $0xd08] sm:$0xff]  ;;  %v614_v1 = vld [vmem:[#allocation5 + $0x1040] sm:$0xff] }
  0xa3   :  { %v8155_v27 = vcombine.high %v511_v18, %v519_v20  ;;  %v8154_v30 = vcombine.low %v511_v18, %v519_v20  ;;  %v615_v4 = vld [vmem:[#allocation5 + $0x1048] sm:$0xff]  ;;  %v646_v18 = vld [vmem:[#allocation5 + $0x1140] sm:$0xff] }
  0xa4   :  { %4967 = vmatpush1.bf16.msra.mxu0 %v8008_v21  ;;  %5139 = vmatpush1.bf16.msra.mxu1 %v8010_v22  ;;  %v8136_v21 = vcombine.low %v494_v8, %v502_v9  ;;  %v8138_v22 = vcombine.low %v495_v10, %v503_v12  ;;  %v8980_v8 = vld [vmem:[#allocation2 + $0x8] ss:$28 sps:$4 sm:$0xff]   ;;  %v622_v9 = vld [vmem:[#allocation5 + $0x1080] sm:$0xff]  ;;  %v8251_v12 = vcombine.high %v607_v2, %v615_v4 }
  0xa5   :  { %4968 = vmatprep.subr.bf16.mxu0 %v8025_v23  ;;  %5140 = vmatprep.subr.bf16.mxu1 %v8027_v24  ;;  %v8153_v23 = vcombine.high %v510_v16, %v518_v17  ;;  %v526_v24 = vld [vmem:[#allocation5 + $0xd80] sm:$0xff]  ;;  %v647_v20 = vld [vmem:[#allocation5 + $0x1148] sm:$0xff] }
  0xa6   :  { %v8169_v31 = vcombine.high %v526_v24, %v534_v25  ;;  %v630_v10 = vld [vmem:[#allocation5 + $0x10c0] sm:$0xff] }
  0xa8   :  { %4969 = vmatpush1.bf16.msra.mxu0 %v8024_v29  ;;  %5141 = vmatpush1.bf16.msra.mxu1 %v8026_v32  ;;  %v8152_v29 = vcombine.low %v510_v16, %v518_v17  ;;  %v542_v32 = vld [vmem:[#allocation5 + $0xe00] sm:$0xff]  ;;  %v8250_v16 = vcombine.low %v607_v2, %v615_v4  ;;  %v8265_v17 = vcombine.high %v622_v9, %v630_v10  ;;  %v735_v4 = vld [vmem:[#allocation5 + $0x1408] sm:$0xff] }
  0xa9   :  { %4970 = vmatprep.subr.bf16.mxu0 %v8041_v33  ;;  %5142 = vmatprep.subr.bf16.mxu1 %v8043_v36  ;;  %v550_v33 = vld [vmem:[#allocation5 + $0xe40] sm:$0xff]  ;;  %v551_v36 = vld [vmem:[#allocation5 + $0xe48] sm:$0xff] }
  0xaa   :  { %v8185_v39 = vcombine.high %v542_v32, %v550_v33  ;;  %v8187_v43 = vcombine.high %v543_v34, %v551_v36  ;;  %v734_v2 = vld [vmem:[#allocation5 + $0x1400] sm:$0xff] }
  0xac   :  { %4971 = vmatpush1.bf16.msra.mxu0 %v8040_v37  ;;  %5143 = vmatpush1.bf16.msra.mxu1 %v8042_v40  ;;  %v8168_v37 = vcombine.low %v526_v24, %v534_v25  ;;  %v558_v40 = vld [vmem:[#allocation5 + $0xe80] sm:$0xff] }
  0xad   :  { %4972 = vmatprep.subr.bf16.mxu0 %v8057_v41  ;;  %5144 = vmatprep.subr.bf16.mxu1 %v8059_v44  ;;  %v566_v41 = vld [vmem:[#allocation5 + $0xec0] sm:$0xff]  ;;  %v567_v44 = vld [vmem:[#allocation5 + $0xec8] sm:$0xff] }
  0xb0   :  { %4973 = vmatpush1.bf16.msra.mxu0 %v8056_v45  ;;  %5145 = vmatpush1.bf16.msra.mxu1 %v8058_v46  ;;  %v8184_v45 = vcombine.low %v542_v32, %v550_v33  ;;  %v8186_v46 = vcombine.low %v543_v34, %v551_v36  ;;  %v670_v34 = vld [vmem:[#allocation5 + $0x1200] sm:$0xff]  ;;  %v671_v36 = vld [vmem:[#allocation5 + $0x1208] sm:$0xff] }
  0xb1   :  { %4974 = vmatprep.subr.bf16.mxu0 %v8073_v47  ;;  %5146 = vmatprep.subr.bf16.mxu1 %v8075_v51  ;;  %v8201_v47 = vcombine.high %v558_v40, %v566_v41  ;;  %v8203_v51 = vcombine.high %v559_v42, %v567_v44 }
  0xb4   :  { %4975 = vmatpush1.bf16.msra.mxu0 %v8072_v53  ;;  %5147 = vmatpush1.bf16.msra.mxu1 %v8074_v54  ;;  %v8200_v53 = vcombine.low %v558_v40, %v566_v41  ;;  %v8202_v54 = vcombine.low %v559_v42, %v567_v44  ;;  %v686_v42 = vld [vmem:[#allocation5 + $0x1280] sm:$0xff]  ;;  %v687_v44 = vld [vmem:[#allocation5 + $0x1288] sm:$0xff] }
  0xb5   :  { %4976 = vmatprep.subr.bf16.mxu0 %v8089_v55  ;;  %5148 = vmatprep.subr.bf16.mxu1 %v8091_v59  ;;  %v8217_v55 = vcombine.high %v574_v48, %v582_v49  ;;  %v8219_v59 = vcombine.high %v575_v50, %v583_v52 }
  0xb8   :  { %4977 = vmatpush1.bf16.msra.mxu0 %v8088_v61  ;;  %5149 = vmatpush1.bf16.msra.mxu1 %v8090_v62  ;;  %v8216_v61 = vcombine.low %v574_v48, %v582_v49  ;;  %v8218_v62 = vcombine.low %v575_v50, %v583_v52  ;;  %v702_v50 = vld [vmem:[#allocation5 + $0x1300] sm:$0xff]  ;;  %v703_v52 = vld [vmem:[#allocation5 + $0x1308] sm:$0xff] }
  0xb9   :  { %4978 = vmatprep.subr.bf16.mxu0 %v8105_v63  ;;  %5150 = vmatprep.subr.bf16.mxu1 %v8107_v3  ;;  %v8233_v63 = vcombine.high %v590_v56, %v598_v57  ;;  %v8235_v3 = vcombine.high %v591_v58, %v599_v60 }
  0xbc   :  { %4979 = vmatpush1.bf16.msra.mxu0 %v8104_v5  ;;  %5151 = vmatpush1.bf16.msra.mxu1 %v8106_v6  ;;  %v8232_v5 = vcombine.low %v590_v56, %v598_v57  ;;  %v8234_v6 = vcombine.low %v591_v58, %v599_v60  ;;  %v718_v58 = vld [vmem:[#allocation5 + $0x1380] sm:$0xff]  ;;  %v719_v60 = vld [vmem:[#allocation5 + $0x1388] sm:$0xff] }
  0xbd   :  { %4980 = vmatprep.subr.bf16.mxu0 %v8121_v7  ;;  %5152 = vmatprep.subr.bf16.mxu1 %v8123_v11  ;;  %v8249_v7 = vcombine.high %v606_v0, %v614_v1  ;;  %v623_v11 = vld [vmem:[#allocation5 + $0x1088] sm:$0xff] }
  0xc0   :  { %4981 = vmatpush1.bf16.msra.mxu0 %v8120_v13  ;;  %5153 = vmatpush1.bf16.msra.mxu1 %v8122_v14  ;;  %v631_v13 = vld [vmem:[#allocation5 + $0x10c8] sm:$0xff]  ;;  %v8248_v14 = vcombine.low %v606_v0, %v614_v1 }
  0xc1   :  { %4982 = vmatprep.subr.bf16.mxu0 %v8137_v15  ;;  %5154 = vmatprep.subr.bf16.mxu1 %v8139_v19  ;;  %v638_v15 = vld [vmem:[#allocation5 + $0x1100] sm:$0xff]  ;;  %v639_v19 = vld [vmem:[#allocation5 + $0x1108] sm:$0xff]  ;;  %v8266_v24 = vcombine.low %v623_v11, %v631_v13 }
  0xc2   :  { %v8281_v25 = vcombine.high %v638_v15, %v646_v18  ;;  %v8282_v32 = vcombine.low %v639_v19, %v647_v20 }
  0xc4   :  { %4983 = vmatpush1.bf16.msra.mxu0 %v8136_v21  ;;  %5155 = vmatpush1.bf16.msra.mxu1 %v8138_v22  ;;  %v8267_v21 = vcombine.high %v623_v11, %v631_v13  ;;  %v8981_v22 = vld [vmem:[#allocation2 + $0x14] ss:$28 sps:$4 sm:$0xff]   ;;  %v758_v11 = vld [vmem:[#allocation5 + $0x14c0] sm:$0xff] }
  0xc5   :  { %4984 = vmatprep.subr.bf16.mxu0 %v8153_v23  ;;  %5156 = vmatprep.subr.bf16.mxu1 %v8155_v27  ;;  %v8264_v23 = vcombine.low %v622_v9, %v630_v10  ;;  %v662_v27 = vld [vmem:[#allocation5 + $0x11c0] sm:$0xff] }
  0xc6   :  { %v8297_v33 = vcombine.high %v654_v26, %v662_v27  ;;  %v750_v10 = vld [vmem:[#allocation5 + $0x1480] sm:$0xff] }
  0xc8   :  { %4985 = vmatpush1.bf16.msra.mxu0 %v8152_v29  ;;  %5157 = vmatpush1.bf16.msra.mxu1 %v8154_v30  ;;  %v8283_v29 = vcombine.high %v639_v19, %v647_v20  ;;  %v663_v30 = vld [vmem:[#allocation5 + $0x11c8] sm:$0xff]  ;;  %v774_v19 = vld [vmem:[#allocation5 + $0x1540] sm:$0xff] }
  0xc9   :  { %4986 = vmatprep.subr.bf16.mxu0 %v8169_v31  ;;  %5158 = vmatprep.subr.bf16.mxu1 %v8171_v35  ;;  %v8280_v31 = vcombine.low %v638_v15, %v646_v18  ;;  %v678_v35 = vld [vmem:[#allocation5 + $0x1240] sm:$0xff]  ;;  %v8298_v40 = vcombine.low %v655_v28, %v663_v30  ;;  %v767_v20 = vld [vmem:[#allocation5 + $0x1508] sm:$0xff] }
  0xca   :  { %v8313_v41 = vcombine.high %v670_v34, %v678_v35  ;;  %v766_v18 = vld [vmem:[#allocation5 + $0x1500] sm:$0xff] }
  0xcc   :  { %4987 = vmatpush1.bf16.msra.mxu0 %v8168_v37  ;;  %5159 = vmatpush1.bf16.msra.mxu1 %v8170_v38  ;;  %v8299_v37 = vcombine.high %v655_v28, %v663_v30  ;;  %v679_v38 = vld [vmem:[#allocation5 + $0x1248] sm:$0xff] }
  0xcd   :  { %4988 = vmatprep.subr.bf16.mxu0 %v8185_v39  ;;  %5160 = vmatprep.subr.bf16.mxu1 %v8187_v43  ;;  %v8296_v39 = vcombine.low %v654_v26, %v662_v27  ;;  %v694_v43 = vld [vmem:[#allocation5 + $0x12c0] sm:$0xff]  ;;  %v8314_v48 = vcombine.low %v671_v36, %v679_v38  ;;  %v783_v28 = vld [vmem:[#allocation5 + $0x1588] sm:$0xff] }
  0xce   :  { %v8329_v49 = vcombine.high %v686_v42, %v694_v43  ;;  %v782_v26 = vld [vmem:[#allocation5 + $0x1580] sm:$0xff]  ;;  %v791_v30 = vld [vmem:[#allocation5 + $0x15c8] sm:$0xff] }
  0xcf   :  { %v790_v27 = vld [vmem:[#allocation5 + $0x15c0] sm:$0xff] }
  0xd0   :  { %4989 = vmatpush1.bf16.msra.mxu0 %v8184_v45  ;;  %5161 = vmatpush1.bf16.msra.mxu1 %v8186_v46  ;;  %v8315_v45 = vcombine.high %v671_v36, %v679_v38  ;;  %v695_v46 = vld [vmem:[#allocation5 + $0x12c8] sm:$0xff] }
  0xd1   :  { %4990 = vmatprep.subr.bf16.mxu0 %v8201_v47  ;;  %5162 = vmatprep.subr.bf16.mxu1 %v8203_v51  ;;  %v8312_v47 = vcombine.low %v670_v34, %v678_v35  ;;  %v710_v51 = vld [vmem:[#allocation5 + $0x1340] sm:$0xff]  ;;  %v8330_v56 = vcombine.low %v687_v44, %v695_v46  ;;  %v799_v36 = vld [vmem:[#allocation5 + $0x1608] sm:$0xff] }
  0xd2   :  { %v8345_v57 = vcombine.high %v702_v50, %v710_v51  ;;  %v798_v34 = vld [vmem:[#allocation5 + $0x1600] sm:$0xff]  ;;  %v807_v38 = vld [vmem:[#allocation5 + $0x1648] sm:$0xff] }
  0xd3   :  { %v806_v35 = vld [vmem:[#allocation5 + $0x1640] sm:$0xff] }
  0xd4   :  { %4991 = vmatpush1.bf16.msra.mxu0 %v8200_v53  ;;  %5163 = vmatpush1.bf16.msra.mxu1 %v8202_v54  ;;  %v8331_v53 = vcombine.high %v687_v44, %v695_v46  ;;  %v711_v54 = vld [vmem:[#allocation5 + $0x1348] sm:$0xff] }
  0xd5   :  { %4992 = vmatprep.subr.bf16.mxu0 %v8217_v55  ;;  %5164 = vmatprep.subr.bf16.mxu1 %v8219_v59  ;;  %v8328_v55 = vcombine.low %v686_v42, %v694_v43  ;;  %v726_v59 = vld [vmem:[#allocation5 + $0x13c0] sm:$0xff]  ;;  %v8346_v0 = vcombine.low %v703_v52, %v711_v54  ;;  %v815_v44 = vld [vmem:[#allocation5 + $0x1688] sm:$0xff] }
  0xd6   :  { %v8361_v1 = vcombine.high %v718_v58, %v726_v59  ;;  %v814_v42 = vld [vmem:[#allocation5 + $0x1680] sm:$0xff]  ;;  %v823_v46 = vld [vmem:[#allocation5 + $0x16c8] sm:$0xff] }
  0xd7   :  { %v822_v43 = vld [vmem:[#allocation5 + $0x16c0] sm:$0xff] }
  0xd8   :  { %4993 = vmatpush1.bf16.msra.mxu0 %v8216_v61  ;;  %5165 = vmatpush1.bf16.msra.mxu1 %v8218_v62  ;;  %v8347_v61 = vcombine.high %v703_v52, %v711_v54  ;;  %v727_v62 = vld [vmem:[#allocation5 + $0x13c8] sm:$0xff] }
  0xd9   :  { %4994 = vmatprep.subr.bf16.mxu0 %v8233_v63  ;;  %5166 = vmatprep.subr.bf16.mxu1 %v8235_v3  ;;  %v8344_v63 = vcombine.low %v702_v50, %v710_v51  ;;  %v742_v3 = vld [vmem:[#allocation5 + $0x1440] sm:$0xff]  ;;  %v831_v52 = vld [vmem:[#allocation5 + $0x1708] sm:$0xff] }
  0xda   :  { %v8377_v9 = vcombine.high %v734_v2, %v742_v3  ;;  %v8376_v15 = vcombine.low %v734_v2, %v742_v3  ;;  %v830_v50 = vld [vmem:[#allocation5 + $0x1700] sm:$0xff]  ;;  %v839_v54 = vld [vmem:[#allocation5 + $0x1748] sm:$0xff] }
  0xdb   :  { %v838_v51 = vld [vmem:[#allocation5 + $0x1740] sm:$0xff] }
  0xdc   :  { %4995 = vmatpush1.bf16.msra.mxu0 %v8232_v5  ;;  %5167 = vmatpush1.bf16.msra.mxu1 %v8234_v6  ;;  %v8363_v5 = vcombine.high %v719_v60, %v727_v62  ;;  %v743_v6 = vld [vmem:[#allocation5 + $0x1448] sm:$0xff]  ;;  %v862_v2 = vld [vmem:[#allocation5 + $0x1800] sm:$0xff] }
  0xdd   :  { %5007 = vmatprep.subr.bf16.mxu0 %v8249_v7  ;;  %5179 = vmatprep.subr.bf16.mxu1 %v8251_v12  ;;  %v8360_v7 = vcombine.low %v718_v58, %v726_v59  ;;  %v751_v12 = vld [vmem:[#allocation5 + $0x1488] sm:$0xff]  ;;  %v8379_v13 = vcombine.high %v735_v4, %v743_v6  ;;  %v846_v58 = vld [vmem:[#allocation5 + $0x1780] sm:$0xff] }
  0xde   :  { %v854_v59 = vld [vmem:[#allocation5 + $0x17c0] sm:$0xff] }
  0xdf   :  { %4997 = vmatmul.mubr.bf16.vlgmr.msra.gmra.mrb[0].mxu0 %v8980_v8  ;;  %5169 = vmatmul.mubr.bf16.vlgmr.msra.gmra.mrb[0].mxu1 %v8980_v8  ;;  %v8362_v8 = vcombine.low %v719_v60, %v727_v62  ;;  %v847_v60 = vld [vmem:[#allocation5 + $0x1788] sm:$0xff]  ;;  %v870_v3 = vld [vmem:[#allocation5 + $0x1840] sm:$0xff] }
  0xe0   :  { %5008 = vmatpush1.bf16.msra.mxu0 %v8248_v14  ;;  %5180 = vmatpush1.bf16.msra.mxu1 %v8250_v16  ;;  %v759_v14 = vld [vmem:[#allocation5 + $0x14c8] sm:$0xff]  ;;  %v8378_v16 = vcombine.low %v735_v4, %v743_v6 }
  0xe1   :  { %5009 = vmatprep.subr.bf16.mxu0 %v8265_v17  ;;  %5181 = vmatprep.subr.bf16.mxu1 %v8267_v21  ;;  %v8393_v17 = vcombine.high %v750_v10, %v758_v11  ;;  %v8395_v21 = vcombine.high %v751_v12, %v759_v14  ;;  %v855_v62 = vld [vmem:[#allocation5 + $0x17c8] sm:$0xff] }
  0xe2   :  { %5039 = vmatprep.mubr.bf16.mxu0 %v8981_v22  ;;  %5211 = vmatprep.mubr.bf16.mxu1 %v8981_v22  ;;  %v775_v22 = vld [vmem:[#allocation5 + $0x1548] sm:$0xff] }
  0xe3   :  { %v863_v4 = vld [vmem:[#allocation5 + $0x1808] sm:$0xff] }
  0xe4   :  { %5010 = vmatpush1.bf16.msra.mxu0 %v8264_v23  ;;  %5182 = vmatpush1.bf16.msra.mxu1 %v8266_v24  ;;  %v8392_v23 = vcombine.low %v750_v10, %v758_v11  ;;  %v8394_v24 = vcombine.low %v751_v12, %v759_v14  ;;  %v871_v6 = vld [vmem:[#allocation5 + $0x1848] sm:$0xff]  ;;  %v8505_v10 = vcombine.high %v862_v2, %v870_v3  ;;  %v96_v11 = vld [vmem:[#allocation5 + $0x10] sm:$0xff]  ;;  %v97_v14 = vld [vmem:[#allocation5 + $0x18] sm:$0xff] }
  0xe5   :  { %5011 = vmatprep.subr.bf16.mxu0 %v8281_v25  ;;  %5183 = vmatprep.subr.bf16.mxu1 %v8283_v29  ;;  %v8409_v25 = vcombine.high %v766_v18, %v774_v19  ;;  %v8411_v29 = vcombine.high %v767_v20, %v775_v22  ;;  %v104_v12 = vld [vmem:[#allocation5 + $0x50] sm:$0xff] }
  0xe8   :  { %5012 = vmatpush1.bf16.msra.mxu0 %v8280_v31  ;;  %5184 = vmatpush1.bf16.msra.mxu1 %v8282_v32  ;;  %v8408_v31 = vcombine.low %v766_v18, %v774_v19  ;;  %v8410_v32 = vcombine.low %v767_v20, %v775_v22  ;;  %v7741_v18 = vcombine.high %v96_v11, %v104_v12  ;;  %v9325_v20 = vmov 0   ;;  %v120_v22 = vld [vmem:[#allocation5 + $0xd0] sm:$0xff] }
  0xe9   :  { %5013 = vmatprep.subr.bf16.mxu0 %v8297_v33  ;;  %5185 = vmatprep.subr.bf16.mxu1 %v8299_v37  ;;  %v8425_v33 = vcombine.high %v782_v26, %v790_v27  ;;  %v8427_v37 = vcombine.high %v783_v28, %v791_v30 }
  0xec   :  { %5014 = vmatpush1.bf16.msra.mxu0 %v8296_v39  ;;  %5186 = vmatpush1.bf16.msra.mxu1 %v8298_v40  ;;  %v8424_v39 = vcombine.low %v782_v26, %v790_v27  ;;  %v8426_v40 = vcombine.low %v783_v28, %v791_v30  ;;  %v7740_v26 = vcombine.low %v96_v11, %v104_v12  ;;  %v128_v30 = vld [vmem:[#allocation5 + $0x110] sm:$0xff] }
  0xed   :  { %5015 = vmatprep.subr.bf16.mxu0 %v8313_v41  ;;  %5187 = vmatprep.subr.bf16.mxu1 %v8315_v45  ;;  %v8441_v41 = vcombine.high %v798_v34, %v806_v35  ;;  %v8443_v45 = vcombine.high %v799_v36, %v807_v38 }
  0xf0   :  { %5016 = vmatpush1.bf16.msra.mxu0 %v8312_v47  ;;  %5188 = vmatpush1.bf16.msra.mxu1 %v8314_v48  ;;  %v8440_v47 = vcombine.low %v798_v34, %v806_v35  ;;  %v8442_v48 = vcombine.low %v799_v36, %v807_v38  ;;  %v144_v38 = vld [vmem:[#allocation5 + $0x190] sm:$0xff] }
  0xf1   :  { %5017 = vmatprep.subr.bf16.mxu0 %v8329_v49  ;;  %5189 = vmatprep.subr.bf16.mxu1 %v8331_v53  ;;  %v8457_v49 = vcombine.high %v814_v42, %v822_v43  ;;  %v8459_v53 = vcombine.high %v815_v44, %v823_v46 }
  0xf4   :  { %5018 = vmatpush1.bf16.msra.mxu0 %v8328_v55  ;;  %5190 = vmatpush1.bf16.msra.mxu1 %v8330_v56  ;;  %v8456_v55 = vcombine.low %v814_v42, %v822_v43  ;;  %v8458_v56 = vcombine.low %v815_v44, %v823_v46  ;;  %v153_v42 = vld [vmem:[#allocation5 + $0x1d8] sm:$0xff] }
  0xf5   :  { %5019 = vmatprep.subr.bf16.mxu0 %v8345_v57  ;;  %5191 = vmatprep.subr.bf16.mxu1 %v8347_v61  ;;  %v8473_v57 = vcombine.high %v830_v50, %v838_v51  ;;  %v8475_v61 = vcombine.high %v831_v52, %v839_v54 }
  0xf8   :  { %5020 = vmatpush1.bf16.msra.mxu0 %v8344_v63  ;;  %5192 = vmatpush1.bf16.msra.mxu1 %v8346_v0  ;;  %v8472_v63 = vcombine.low %v830_v50, %v838_v51  ;;  %v8474_v0 = vcombine.low %v831_v52, %v839_v54  ;;  %v169_v50 = vld [vmem:[#allocation5 + $0x258] sm:$0xff] }
  0xf9   :  { %5021 = vmatprep.subr.bf16.mxu0 %v8361_v1  ;;  %5193 = vmatprep.subr.bf16.mxu1 %v8363_v5  ;;  %v8489_v1 = vcombine.high %v846_v58, %v854_v59  ;;  %v8491_v5 = vcombine.high %v847_v60, %v855_v62 }
  0xfc   :  { %5022 = vmatpush1.bf16.msra.mxu0 %v8360_v7  ;;  %5194 = vmatpush1.bf16.msra.mxu1 %v8362_v8  ;;  %v8488_v7 = vcombine.low %v846_v58, %v854_v59  ;;  %v8490_v8 = vcombine.low %v847_v60, %v855_v62  ;;  %v185_v58 = vld [vmem:[#allocation5 + $0x2d8] sm:$0xff] }
  0xfd   :  { %5023 = vmatprep.subr.bf16.mxu0 %v8377_v9  ;;  %5195 = vmatprep.subr.bf16.mxu1 %v8379_v13  ;;  %v8983_v9 = vld [vmem:[#allocation2 + $0x10] ss:$28 sps:$4 sm:$0xff]   ;;  %v8507_v13 = vcombine.high %v863_v4, %v871_v6 }
 0x100   :  { %5024 = vmatpush1.bf16.msra.mxu0 %v8376_v15  ;;  %5196 = vmatpush1.bf16.msra.mxu1 %v8378_v16  ;;  %v105_v15 = vld [vmem:[#allocation5 + $0x58] sm:$0xff]  ;;  %v8504_v16 = vcombine.low %v862_v2, %v870_v3 }
 0x101   :  { %5025 = vmatprep.subr.bf16.mxu0 %v8393_v17  ;;  %5197 = vmatprep.subr.bf16.mxu1 %v8395_v21  ;;  %v8506_v17 = vcombine.low %v863_v4, %v871_v6  ;;  %v7743_v19 = vcombine.high %v97_v14, %v105_v15  ;;  %v112_v21 = vld [vmem:[#allocation5 + $0x90] sm:$0xff]  ;;  %v7742_v27 = vcombine.low %v97_v14, %v105_v15  ;;  %v201_v2 = vld [vmem:[#allocation5 + $0x358] sm:$0xff] }
 0x102   :  { %v7757_v28 = vcombine.high %v112_v21, %v120_v22  ;;  %v7756_v34 = vcombine.low %v112_v21, %v120_v22  ;;  %v224_v15 = vld [vmem:[#allocation5 + $0x410] sm:$0xff] }
 0x104   :  { %5026 = vmatpush1.bf16.msra.mxu0 %v8392_v23  ;;  %5198 = vmatpush1.bf16.msra.mxu1 %v8394_v24  ;;  %v8984_v23 = vld [vmem:[#allocation2 + $0x18] ss:$28 sps:$4 sm:$0xff]  }
 0x105   :  { %5027 = vmatprep.subr.bf16.mxu0 %v8409_v25  ;;  %5199 = vmatprep.subr.bf16.mxu1 %v8411_v29  ;;  %v113_v24 = vld [vmem:[#allocation5 + $0x98] sm:$0xff] }
 0x106   :  { %v121_v25 = vld [vmem:[#allocation5 + $0xd8] sm:$0xff] }
 0x107   :  { %v7759_v29 = vcombine.high %v113_v24, %v121_v25  ;;  %v7758_v35 = vcombine.low %v113_v24, %v121_v25  ;;  %v240_v24 = vld [vmem:[#allocation5 + $0x490] sm:$0xff] }
 0x108   :  { %5028 = vmatpush1.bf16.msra.mxu0 %v8408_v31  ;;  %5200 = vmatpush1.bf16.msra.mxu1 %v8410_v32  ;;  %v136_v31 = vld [vmem:[#allocation5 + $0x150] sm:$0xff]  ;;  %v129_v32 = vld [vmem:[#allocation5 + $0x118] sm:$0xff] }
 0x109   :  { %5029 = vmatprep.subr.bf16.mxu0 %v8425_v33  ;;  %5201 = vmatprep.subr.bf16.mxu1 %v8427_v37  ;;  %v137_v33 = vld [vmem:[#allocation5 + $0x158] sm:$0xff]  ;;  %v7773_v36 = vcombine.high %v128_v30, %v136_v31  ;;  %v7772_v43 = vcombine.low %v128_v30, %v136_v31  ;;  %v248_v25 = vld [vmem:[#allocation5 + $0x4d0] sm:$0xff] }
 0x10a   :  { %v7775_v37 = vcombine.high %v129_v32, %v137_v33  ;;  %v7774_v44 = vcombine.low %v129_v32, %v137_v33  ;;  %v7885_v30 = vcombine.high %v240_v24, %v248_v25  ;;  %v256_v32 = vld [vmem:[#allocation5 + $0x510] sm:$0xff] }
 0x10b   :  { %v264_v33 = vld [vmem:[#allocation5 + $0x550] sm:$0xff] }
 0x10c   :  { %5030 = vmatpush1.bf16.msra.mxu0 %v8424_v39  ;;  %5202 = vmatpush1.bf16.msra.mxu1 %v8426_v40  ;;  %v152_v39 = vld [vmem:[#allocation5 + $0x1d0] sm:$0xff]  ;;  %v9153_v40 = vld [vmem:[#allocation2 + $0x4] ss:$28 sps:$4 sm:$0xff]  }
 0x10d   :  { %5031 = vmatprep.subr.bf16.mxu0 %v8441_v41  ;;  %5203 = vmatprep.subr.bf16.mxu1 %v8443_v45  ;;  %v145_v41 = vld [vmem:[#allocation5 + $0x198] sm:$0xff]  ;;  %v7789_v45 = vcombine.high %v144_v38, %v152_v39  ;;  %v7788_v51 = vcombine.low %v144_v38, %v152_v39  ;;  %v7901_v38 = vcombine.high %v256_v32, %v264_v33 }
 0x10e   :  { %v7791_v46 = vcombine.high %v145_v41, %v153_v42  ;;  %v7790_v52 = vcombine.low %v145_v41, %v153_v42  ;;  %v280_v41 = vld [vmem:[#allocation5 + $0x5d0] sm:$0xff]  ;;  %v273_v42 = vld [vmem:[#allocation5 + $0x598] sm:$0xff] }
 0x110   :  { %5032 = vmatpush1.bf16.msra.mxu0 %v8440_v47  ;;  %5204 = vmatpush1.bf16.msra.mxu1 %v8442_v48  ;;  %v160_v47 = vld [vmem:[#allocation5 + $0x210] sm:$0xff] }
 0x111   :  { %5033 = vmatprep.subr.bf16.mxu0 %v8457_v49  ;;  %5205 = vmatprep.subr.bf16.mxu1 %v8459_v53  ;;  %v168_v48 = vld [vmem:[#allocation5 + $0x250] sm:$0xff]  ;;  %v161_v49 = vld [vmem:[#allocation5 + $0x218] sm:$0xff] }
 0x112   :  { %v7805_v53 = vcombine.high %v160_v47, %v168_v48  ;;  %v7807_v54 = vcombine.high %v161_v49, %v169_v50  ;;  %v7804_v59 = vcombine.low %v160_v47, %v168_v48  ;;  %v7806_v60 = vcombine.low %v161_v49, %v169_v50  ;;  %v288_v48 = vld [vmem:[#allocation5 + $0x610] sm:$0xff]  ;;  %v289_v50 = vld [vmem:[#allocation5 + $0x618] sm:$0xff] }
 0x113   :  { %v296_v49 = vld [vmem:[#allocation5 + $0x650] sm:$0xff] }
 0x114   :  { %5034 = vmatpush1.bf16.msra.mxu0 %v8456_v55  ;;  %5206 = vmatpush1.bf16.msra.mxu1 %v8458_v56  ;;  %v176_v55 = vld [vmem:[#allocation5 + $0x290] sm:$0xff] }
 0x115   :  { %5035 = vmatprep.subr.bf16.mxu0 %v8473_v57  ;;  %5207 = vmatprep.subr.bf16.mxu1 %v8475_v61  ;;  %v184_v56 = vld [vmem:[#allocation5 + $0x2d0] sm:$0xff]  ;;  %v177_v57 = vld [vmem:[#allocation5 + $0x298] sm:$0xff] }
 0x116   :  { %v7821_v61 = vcombine.high %v176_v55, %v184_v56  ;;  %v7823_v62 = vcombine.high %v177_v57, %v185_v58  ;;  %v7820_v3 = vcombine.low %v176_v55, %v184_v56  ;;  %v7822_v4 = vcombine.low %v177_v57, %v185_v58  ;;  %v304_v56 = vld [vmem:[#allocation5 + $0x690] sm:$0xff]  ;;  %v305_v58 = vld [vmem:[#allocation5 + $0x698] sm:$0xff] }
 0x117   :  { %v312_v57 = vld [vmem:[#allocation5 + $0x6d0] sm:$0xff] }
 0x118   :  { %5036 = vmatpush1.bf16.msra.mxu0 %v8472_v63  ;;  %5208 = vmatpush1.bf16.msra.mxu1 %v8474_v0  ;;  %v192_v63 = vld [vmem:[#allocation5 + $0x310] sm:$0xff] }
 0x119   :  { %5037 = vmatprep.subr.bf16.mxu0 %v8489_v1  ;;  %5209 = vmatprep.subr.bf16.mxu1 %v8491_v5  ;;  %v200_v0 = vld [vmem:[#allocation5 + $0x350] sm:$0xff]  ;;  %v193_v1 = vld [vmem:[#allocation5 + $0x318] sm:$0xff] }
 0x11a   :  { %v7837_v5 = vcombine.high %v192_v63, %v200_v0  ;;  %v7839_v6 = vcombine.high %v193_v1, %v201_v2  ;;  %v7836_v11 = vcombine.low %v192_v63, %v200_v0  ;;  %v7838_v12 = vcombine.low %v193_v1, %v201_v2  ;;  %v320_v0 = vld [vmem:[#allocation5 + $0x710] sm:$0xff]  ;;  %v321_v2 = vld [vmem:[#allocation5 + $0x718] sm:$0xff] }
 0x11b   :  { %v328_v1 = vld [vmem:[#allocation5 + $0x750] sm:$0xff] }
 0x11c   :  { %5038 = vmatpush1.bf16.msra.mxu0 %v8488_v7  ;;  %5210 = vmatpush1.bf16.msra.mxu1 %v8490_v8  ;;  %v208_v7 = vld [vmem:[#allocation5 + $0x390] sm:$0xff] }
 0x11d   :  { %5050 = vmatprep.subr.bf16.mxu0 %v8505_v10  ;;  %5222 = vmatprep.subr.bf16.mxu1 %v8507_v13  ;;  %v216_v8 = vld [vmem:[#allocation5 + $0x3d0] sm:$0xff]  ;;  %v217_v10 = vld [vmem:[#allocation5 + $0x3d8] sm:$0xff] }
 0x11e   :  { %v7853_v13 = vcombine.high %v208_v7, %v216_v8 }
 0x11f   :  { %5040 = vmatmul.mubr.bf16.vlgmr.msra.gmra.mrb[0].mxu0 %v8983_v9  ;;  %5212 = vmatmul.mubr.bf16.vlgmr.msra.gmra.mrb[0].mxu1 %v8983_v9  ;;  %v209_v9 = vld [vmem:[#allocation5 + $0x398] sm:$0xff] }
 0x120   :  { %5051 = vmatpush1.bf16.msra.mxu0 %v8504_v16  ;;  %5223 = vmatpush1.bf16.msra.mxu1 %v8506_v17  ;;  %v7855_v14 = vcombine.high %v209_v9, %v217_v10  ;;  %v232_v16 = vld [vmem:[#allocation5 + $0x450] sm:$0xff]  ;;  %v225_v17 = vld [vmem:[#allocation5 + $0x418] sm:$0xff]  ;;  %v7854_v21 = vcombine.low %v209_v9, %v217_v10 }
 0x121   :  { %5082 = vmatprep.mubr.bf16.mxu0 %v9325_v20  ;;  %5254 = vmatprep.mubr.bf16.mxu1 %v9325_v20  ;;  %v7869_v22 = vcombine.high %v224_v15, %v232_v16  ;;  %v344_v9 = vld [vmem:[#allocation5 + $0x7d0] sm:$0xff]  ;;  %v337_v10 = vld [vmem:[#allocation5 + $0x798] sm:$0xff] }
 0x122   :  { %5265 = vmatprep.subr.bf16.mxu0 %v7741_v18  ;;  %5437 = vmatprep.subr.bf16.mxu1 %v7743_v19  ;;  %v233_v18 = vld [vmem:[#allocation5 + $0x458] sm:$0xff]  ;;  %v7852_v19 = vcombine.low %v208_v7, %v216_v8  ;;  %v336_v8 = vld [vmem:[#allocation5 + $0x790] sm:$0xff] }
 0x12b   :  { %8520 = vmatmul.mubr.msk.bf16.vlgmr.msra.gmra.mrb[0].mxu0 %vm4917_vm0, %v8984_v23  ;;  %8521 = vmatmul.mubr.msk.bf16.vlgmr.msra.gmra.mrb[0].mxu1 %vm4917_vm0, %v8984_v23  ;;  %v7871_v23 = vcombine.high %v225_v17, %v233_v18 }
 0x12c   :  { %5266 = vmatpush1.bf16.msra.mxu0 %v7740_v26  ;;  %5438 = vmatpush1.bf16.msra.mxu1 %v7742_v27  ;;  %v241_v26 = vld [vmem:[#allocation5 + $0x498] sm:$0xff] }
 0x12d   :  { %5267 = vmatprep.subr.bf16.mxu0 %v7757_v28  ;;  %5439 = vmatprep.subr.bf16.mxu1 %v7759_v29  ;;  %v249_v27 = vld [vmem:[#allocation5 + $0x4d8] sm:$0xff]  ;;  %v7868_v28 = vcombine.low %v224_v15, %v232_v16  ;;  %v7870_v29 = vcombine.low %v225_v17, %v233_v18  ;;  %v352_v16 = vld [vmem:[#allocation5 + $0x810] sm:$0xff] }
 0x12e   :  { %5297 = vmatprep.mubr.bf16.mxu0 %v9153_v40  ;;  %5469 = vmatprep.mubr.bf16.mxu1 %v9153_v40  ;;  %v7887_v31 = vcombine.high %v241_v26, %v249_v27  ;;  %v272_v40 = vld [vmem:[#allocation5 + $0x590] sm:$0xff]  ;;  %v353_v18 = vld [vmem:[#allocation5 + $0x818] sm:$0xff] }
 0x12f   :  { %v360_v17 = vld [vmem:[#allocation5 + $0x850] sm:$0xff] }
 0x130   :  { %5268 = vmatpush1.bf16.msra.mxu0 %v7756_v34  ;;  %5440 = vmatpush1.bf16.msra.mxu1 %v7758_v35  ;;  %v257_v34 = vld [vmem:[#allocation5 + $0x518] sm:$0xff] }
 0x131   :  { %5269 = vmatprep.subr.bf16.mxu0 %v7773_v36  ;;  %5441 = vmatprep.subr.bf16.mxu1 %v7775_v37  ;;  %v265_v35 = vld [vmem:[#allocation5 + $0x558] sm:$0xff]  ;;  %v7884_v36 = vcombine.low %v240_v24, %v248_v25  ;;  %v7886_v37 = vcombine.low %v241_v26, %v249_v27  ;;  %v368_v25 = vld [vmem:[#allocation5 + $0x890] sm:$0xff] }
 0x132   :  { %v7903_v39 = vcombine.high %v257_v34, %v265_v35  ;;  %v376_v26 = vld [vmem:[#allocation5 + $0x8d0] sm:$0xff]  ;;  %v369_v27 = vld [vmem:[#allocation5 + $0x898] sm:$0xff] }
 0x134   :  { %5270 = vmatpush1.bf16.msra.mxu0 %v7772_v43  ;;  %5442 = vmatpush1.bf16.msra.mxu1 %v7774_v44  ;;  %v281_v43 = vld [vmem:[#allocation5 + $0x5d8] sm:$0xff]  ;;  %v7900_v44 = vcombine.low %v256_v32, %v264_v33  ;;  %v384_v33 = vld [vmem:[#allocation5 + $0x910] sm:$0xff] }
 0x135   :  { %5271 = vmatprep.subr.bf16.mxu0 %v7789_v45  ;;  %5443 = vmatprep.subr.bf16.mxu1 %v7791_v46  ;;  %v7902_v45 = vcombine.low %v257_v34, %v265_v35  ;;  %v7917_v46 = vcombine.high %v272_v40, %v280_v41  ;;  %v7919_v47 = vcombine.high %v273_v42, %v281_v43  ;;  %v392_v34 = vld [vmem:[#allocation5 + $0x950] sm:$0xff]  ;;  %v9154_v35 = vld [vmem:[#allocation2] ss:$28 sps:$4 sm:$0xff]  }
 0x138   :  { %5272 = vmatpush1.bf16.msra.mxu0 %v7788_v51  ;;  %5444 = vmatpush1.bf16.msra.mxu1 %v7790_v52  ;;  %v297_v51 = vld [vmem:[#allocation5 + $0x658] sm:$0xff]  ;;  %v7916_v52 = vcombine.low %v272_v40, %v280_v41  ;;  %v8029_v40 = vcombine.high %v384_v33, %v392_v34 }
 0x139   :  { %5273 = vmatprep.subr.bf16.mxu0 %v7805_v53  ;;  %5445 = vmatprep.subr.bf16.mxu1 %v7807_v54  ;;  %v7918_v53 = vcombine.low %v273_v42, %v281_v43  ;;  %v7933_v54 = vcombine.high %v288_v48, %v296_v49  ;;  %v7935_v55 = vcombine.high %v289_v50, %v297_v51  ;;  %v400_v42 = vld [vmem:[#allocation5 + $0x990] sm:$0xff] }
 0x13a   :  { %v408_v43 = vld [vmem:[#allocation5 + $0x9d0] sm:$0xff] }
 0x13c   :  { %5274 = vmatpush1.bf16.msra.mxu0 %v7804_v59  ;;  %5446 = vmatpush1.bf16.msra.mxu1 %v7806_v60  ;;  %v313_v59 = vld [vmem:[#allocation5 + $0x6d8] sm:$0xff]  ;;  %v7932_v60 = vcombine.low %v288_v48, %v296_v49  ;;  %v8045_v49 = vcombine.high %v400_v42, %v408_v43 }
 0x13d   :  { %5275 = vmatprep.subr.bf16.mxu0 %v7821_v61  ;;  %5447 = vmatprep.subr.bf16.mxu1 %v7823_v62  ;;  %v7934_v61 = vcombine.low %v289_v50, %v297_v51  ;;  %v7949_v62 = vcombine.high %v304_v56, %v312_v57  ;;  %v7951_v63 = vcombine.high %v305_v58, %v313_v59  ;;  %v416_v51 = vld [vmem:[#allocation5 + $0xa10] sm:$0xff] }
 0x140   :  { %5276 = vmatpush1.bf16.msra.mxu0 %v7820_v3  ;;  %5448 = vmatpush1.bf16.msra.mxu1 %v7822_v4  ;;  %v329_v3 = vld [vmem:[#allocation5 + $0x758] sm:$0xff]  ;;  %v7948_v4 = vcombine.low %v304_v56, %v312_v57 }
 0x141   :  { %5277 = vmatprep.subr.bf16.mxu0 %v7837_v5  ;;  %5449 = vmatprep.subr.bf16.mxu1 %v7839_v6  ;;  %v7950_v5 = vcombine.low %v305_v58, %v313_v59  ;;  %v7965_v6 = vcombine.high %v320_v0, %v328_v1  ;;  %v7967_v7 = vcombine.high %v321_v2, %v329_v3  ;;  %v432_v59 = vld [vmem:[#allocation5 + $0xa90] sm:$0xff] }
 0x144   :  { %5278 = vmatpush1.bf16.msra.mxu0 %v7836_v11  ;;  %5450 = vmatpush1.bf16.msra.mxu1 %v7838_v12  ;;  %v345_v11 = vld [vmem:[#allocation5 + $0x7d8] sm:$0xff]  ;;  %v7964_v12 = vcombine.low %v320_v0, %v328_v1 }
 0x145   :  { %5279 = vmatprep.subr.bf16.mxu0 %v7853_v13  ;;  %5451 = vmatprep.subr.bf16.mxu1 %v7855_v14  ;;  %v7966_v13 = vcombine.low %v321_v2, %v329_v3  ;;  %v7981_v14 = vcombine.high %v336_v8, %v344_v9  ;;  %v7983_v15 = vcombine.high %v337_v10, %v345_v11  ;;  %v448_v3 = vld [vmem:[#allocation5 + $0xb10] sm:$0xff] }
 0x148   :  { %5280 = vmatpush1.bf16.msra.mxu0 %v7852_v19  ;;  %5452 = vmatpush1.bf16.msra.mxu1 %v7854_v21  ;;  %v361_v19 = vld [vmem:[#allocation5 + $0x858] sm:$0xff]  ;;  %v7980_v21 = vcombine.low %v336_v8, %v344_v9 }
 0x149   :  { %5281 = vmatprep.subr.bf16.mxu0 %v7869_v22  ;;  %5453 = vmatprep.subr.bf16.mxu1 %v7871_v23  ;;  %v7982_v22 = vcombine.low %v337_v10, %v345_v11  ;;  %v7997_v23 = vcombine.high %v352_v16, %v360_v17  ;;  %v7999_v24 = vcombine.high %v353_v18, %v361_v19  ;;  %v464_v11 = vld [vmem:[#allocation5 + $0xb90] sm:$0xff] }
 0x14c   :  { %5282 = vmatpush1.bf16.msra.mxu0 %v7868_v28  ;;  %5454 = vmatpush1.bf16.msra.mxu1 %v7870_v29  ;;  %v377_v28 = vld [vmem:[#allocation5 + $0x8d8] sm:$0xff]  ;;  %v7996_v29 = vcombine.low %v352_v16, %v360_v17 }
 0x14d   :  { %5283 = vmatprep.subr.bf16.mxu0 %v7885_v30  ;;  %5455 = vmatprep.subr.bf16.mxu1 %v7887_v31  ;;  %v7998_v30 = vcombine.low %v353_v18, %v361_v19  ;;  %v8013_v31 = vcombine.high %v368_v25, %v376_v26  ;;  %v8015_v32 = vcombine.high %v369_v27, %v377_v28  ;;  %v480_v19 = vld [vmem:[#allocation5 + $0xc10] sm:$0xff] }
 0x150   :  { %5284 = vmatpush1.bf16.msra.mxu0 %v7884_v36  ;;  %5456 = vmatpush1.bf16.msra.mxu1 %v7886_v37  ;;  %v385_v36 = vld [vmem:[#allocation5 + $0x918] sm:$0xff] }
 0x151   :  { %5285 = vmatprep.subr.bf16.mxu0 %v7901_v38  ;;  %5457 = vmatprep.subr.bf16.mxu1 %v7903_v39  ;;  %v393_v37 = vld [vmem:[#allocation5 + $0x958] sm:$0xff]  ;;  %v8012_v38 = vcombine.low %v368_v25, %v376_v26  ;;  %v8014_v39 = vcombine.low %v369_v27, %v377_v28  ;;  %v496_v28 = vld [vmem:[#allocation5 + $0xc90] sm:$0xff] }
 0x152   :  { %v8031_v41 = vcombine.high %v385_v36, %v393_v37  ;;  %v8030_v48 = vcombine.low %v385_v36, %v393_v37  ;;  %v512_v36 = vld [vmem:[#allocation5 + $0xd10] sm:$0xff] }
 0x153   :  { %v520_v37 = vld [vmem:[#allocation5 + $0xd50] sm:$0xff] }
 0x154   :  { %5286 = vmatpush1.bf16.msra.mxu0 %v7900_v44  ;;  %5458 = vmatpush1.bf16.msra.mxu1 %v7902_v45  ;;  %v9155_v44 = vld [vmem:[#allocation2 + $0xc] ss:$28 sps:$4 sm:$0xff]   ;;  %v401_v45 = vld [vmem:[#allocation5 + $0x998] sm:$0xff] }
 0x155   :  { %5287 = vmatprep.subr.bf16.mxu0 %v7917_v46  ;;  %5459 = vmatprep.subr.bf16.mxu1 %v7919_v47  ;;  %v409_v46 = vld [vmem:[#allocation5 + $0x9d8] sm:$0xff]  ;;  %v8028_v47 = vcombine.low %v384_v33, %v392_v34 }
 0x156   :  { %v8047_v50 = vcombine.high %v401_v45, %v409_v46  ;;  %v8046_v56 = vcombine.low %v401_v45, %v409_v46  ;;  %v536_v45 = vld [vmem:[#allocation5 + $0xdd0] sm:$0xff]  ;;  %v529_v46 = vld [vmem:[#allocation5 + $0xd98] sm:$0xff] }
 0x158   :  { %5288 = vmatpush1.bf16.msra.mxu0 %v7916_v52  ;;  %5460 = vmatpush1.bf16.msra.mxu1 %v7918_v53  ;;  %v424_v52 = vld [vmem:[#allocation5 + $0xa50] sm:$0xff]  ;;  %v417_v53 = vld [vmem:[#allocation5 + $0xa18] sm:$0xff] }
 0x159   :  { %5289 = vmatprep.subr.bf16.mxu0 %v7933_v54  ;;  %5461 = vmatprep.subr.bf16.mxu1 %v7935_v55  ;;  %v425_v54 = vld [vmem:[#allocation5 + $0xa58] sm:$0xff]  ;;  %v8044_v55 = vcombine.low %v400_v42, %v408_v43  ;;  %v8061_v57 = vcombine.high %v416_v51, %v424_v52  ;;  %v8157_v42 = vcombine.high %v512_v36, %v520_v37 }
 0x15a   :  { %v8063_v58 = vcombine.high %v417_v53, %v425_v54  ;;  %v8062_v0 = vcombine.low %v417_v53, %v425_v54  ;;  %v552_v53 = vld [vmem:[#allocation5 + $0xe50] sm:$0xff]  ;;  %v545_v54 = vld [vmem:[#allocation5 + $0xe18] sm:$0xff] }
 0x15c   :  { %5290 = vmatpush1.bf16.msra.mxu0 %v7932_v60  ;;  %5462 = vmatpush1.bf16.msra.mxu1 %v7934_v61  ;;  %v440_v60 = vld [vmem:[#allocation5 + $0xad0] sm:$0xff]  ;;  %v433_v61 = vld [vmem:[#allocation5 + $0xa98] sm:$0xff] }
 0x15d   :  { %5291 = vmatprep.subr.bf16.mxu0 %v7949_v62  ;;  %5463 = vmatprep.subr.bf16.mxu1 %v7951_v63  ;;  %v441_v62 = vld [vmem:[#allocation5 + $0xad8] sm:$0xff]  ;;  %v8060_v63 = vcombine.low %v416_v51, %v424_v52  ;;  %v8077_v1 = vcombine.high %v432_v59, %v440_v60  ;;  %v544_v52 = vld [vmem:[#allocation5 + $0xe10] sm:$0xff] }
 0x15e   :  { %v8079_v2 = vcombine.high %v433_v61, %v441_v62  ;;  %v8078_v8 = vcombine.low %v433_v61, %v441_v62  ;;  %v568_v61 = vld [vmem:[#allocation5 + $0xed0] sm:$0xff]  ;;  %v561_v62 = vld [vmem:[#allocation5 + $0xe98] sm:$0xff] }
 0x160   :  { %5292 = vmatpush1.bf16.msra.mxu0 %v7948_v4  ;;  %5464 = vmatpush1.bf16.msra.mxu1 %v7950_v5  ;;  %v456_v4 = vld [vmem:[#allocation5 + $0xb50] sm:$0xff]  ;;  %v449_v5 = vld [vmem:[#allocation5 + $0xb18] sm:$0xff] }
 0x161   :  { %5293 = vmatprep.subr.bf16.mxu0 %v7965_v6  ;;  %5465 = vmatprep.subr.bf16.mxu1 %v7967_v7  ;;  %v457_v6 = vld [vmem:[#allocation5 + $0xb58] sm:$0xff]  ;;  %v8076_v7 = vcombine.low %v432_v59, %v440_v60  ;;  %v8093_v9 = vcombine.high %v448_v3, %v456_v4  ;;  %v560_v60 = vld [vmem:[#allocation5 + $0xe90] sm:$0xff] }
 0x162   :  { %v8095_v10 = vcombine.high %v449_v5, %v457_v6  ;;  %v8094_v16 = vcombine.low %v449_v5, %v457_v6  ;;  %v584_v5 = vld [vmem:[#allocation5 + $0xf50] sm:$0xff]  ;;  %v577_v6 = vld [vmem:[#allocation5 + $0xf18] sm:$0xff] }
 0x164   :  { %5294 = vmatpush1.bf16.msra.mxu0 %v7964_v12  ;;  %5466 = vmatpush1.bf16.msra.mxu1 %v7966_v13  ;;  %v472_v12 = vld [vmem:[#allocation5 + $0xbd0] sm:$0xff]  ;;  %v465_v13 = vld [vmem:[#allocation5 + $0xb98] sm:$0xff] }
 0x165   :  { %5295 = vmatprep.subr.bf16.mxu0 %v7981_v14  ;;  %5467 = vmatprep.subr.bf16.mxu1 %v7983_v15  ;;  %v473_v14 = vld [vmem:[#allocation5 + $0xbd8] sm:$0xff]  ;;  %v8092_v15 = vcombine.low %v448_v3, %v456_v4  ;;  %v8109_v17 = vcombine.high %v464_v11, %v472_v12  ;;  %v576_v4 = vld [vmem:[#allocation5 + $0xf10] sm:$0xff] }
 0x166   :  { %v8111_v18 = vcombine.high %v465_v13, %v473_v14  ;;  %v8110_v25 = vcombine.low %v465_v13, %v473_v14  ;;  %v600_v13 = vld [vmem:[#allocation5 + $0xfd0] sm:$0xff]  ;;  %v593_v14 = vld [vmem:[#allocation5 + $0xf98] sm:$0xff] }
 0x168   :  { %5296 = vmatpush1.bf16.msra.mxu0 %v7980_v21  ;;  %5468 = vmatpush1.bf16.msra.mxu1 %v7982_v22  ;;  %v488_v21 = vld [vmem:[#allocation5 + $0xc50] sm:$0xff]  ;;  %v481_v22 = vld [vmem:[#allocation5 + $0xc18] sm:$0xff] }
 0x169   :  { %5308 = vmatprep.subr.bf16.mxu0 %v7997_v23  ;;  %5480 = vmatprep.subr.bf16.mxu1 %v7999_v24  ;;  %v489_v23 = vld [vmem:[#allocation5 + $0xc58] sm:$0xff]  ;;  %v8108_v24 = vcombine.low %v464_v11, %v472_v12  ;;  %v8125_v26 = vcombine.high %v480_v19, %v488_v21  ;;  %v592_v12 = vld [vmem:[#allocation5 + $0xf90] sm:$0xff] }
 0x16a   :  { %v8127_v27 = vcombine.high %v481_v22, %v489_v23  ;;  %v8126_v33 = vcombine.low %v481_v22, %v489_v23  ;;  %v616_v22 = vld [vmem:[#allocation5 + $0x1050] sm:$0xff]  ;;  %v609_v23 = vld [vmem:[#allocation5 + $0x1018] sm:$0xff] }
 0x16b   :  { %5298 = vmatmul.mubr.bf16.vlgmr.msra.gmra.mrb[4].mxu0 %v9154_v35  ;;  %5470 = vmatmul.mubr.bf16.vlgmr.msra.gmra.mrb[4].mxu1 %v9154_v35 }
 0x16c   :  { %5309 = vmatpush1.bf16.msra.mxu0 %v7996_v29  ;;  %5481 = vmatpush1.bf16.msra.mxu1 %v7998_v30  ;;  %v504_v29 = vld [vmem:[#allocation5 + $0xcd0] sm:$0xff]  ;;  %v497_v30 = vld [vmem:[#allocation5 + $0xc98] sm:$0xff] }
 0x16d   :  { %5310 = vmatprep.subr.bf16.mxu0 %v8013_v31  ;;  %5482 = vmatprep.subr.bf16.mxu1 %v8015_v32  ;;  %v505_v31 = vld [vmem:[#allocation5 + $0xcd8] sm:$0xff]  ;;  %v8124_v32 = vcombine.low %v480_v19, %v488_v21  ;;  %v8141_v34 = vcombine.high %v496_v28, %v504_v29  ;;  %v608_v21 = vld [vmem:[#allocation5 + $0x1010] sm:$0xff] }
 0x16e   :  { %5340 = vmatprep.mubr.bf16.mxu0 %v9155_v44  ;;  %5512 = vmatprep.mubr.bf16.mxu1 %v9155_v44  ;;  %v8143_v35 = vcombine.high %v497_v30, %v505_v31  ;;  %v528_v44 = vld [vmem:[#allocation5 + $0xd90] sm:$0xff] }
 0x170   :  { %5311 = vmatpush1.bf16.msra.mxu0 %v8012_v38  ;;  %5483 = vmatpush1.bf16.msra.mxu1 %v8014_v39  ;;  %v513_v38 = vld [vmem:[#allocation5 + $0xd18] sm:$0xff] }
 0x171   :  { %5312 = vmatprep.subr.bf16.mxu0 %v8029_v40  ;;  %5484 = vmatprep.subr.bf16.mxu1 %v8031_v41  ;;  %v521_v39 = vld [vmem:[#allocation5 + $0xd58] sm:$0xff]  ;;  %v8140_v40 = vcombine.low %v496_v28, %v504_v29  ;;  %v8142_v41 = vcombine.low %v497_v30, %v505_v31  ;;  %v624_v29 = vld [vmem:[#allocation5 + $0x1090] sm:$0xff] }
 0x172   :  { %v8159_v43 = vcombine.high %v513_v38, %v521_v39  ;;  %v632_v30 = vld [vmem:[#allocation5 + $0x10d0] sm:$0xff]  ;;  %v625_v31 = vld [vmem:[#allocation5 + $0x1098] sm:$0xff] }
 0x174   :  { %5313 = vmatpush1.bf16.msra.mxu0 %v8028_v47  ;;  %5485 = vmatpush1.bf16.msra.mxu1 %v8030_v48  ;;  %v537_v47 = vld [vmem:[#allocation5 + $0xdd8] sm:$0xff]  ;;  %v8156_v48 = vcombine.low %v512_v36, %v520_v37  ;;  %v640_v37 = vld [vmem:[#allocation5 + $0x1110] sm:$0xff] }
 0x175   :  { %5314 = vmatprep.subr.bf16.mxu0 %v8045_v49  ;;  %5486 = vmatprep.subr.bf16.mxu1 %v8047_v50  ;;  %v8158_v49 = vcombine.low %v513_v38, %v521_v39  ;;  %v8173_v50 = vcombine.high %v528_v44, %v536_v45  ;;  %v8175_v51 = vcombine.high %v529_v46, %v537_v47  ;;  %v648_v38 = vld [vmem:[#allocation5 + $0x1150] sm:$0xff] }
 0x176   :  { %v9156_v39 = vld [vmem:[#allocation2 + $0x8] ss:$28 sps:$4 sm:$0xff]  }
 0x178   :  { %5315 = vmatpush1.bf16.msra.mxu0 %v8044_v55  ;;  %5487 = vmatpush1.bf16.msra.mxu1 %v8046_v56  ;;  %v553_v55 = vld [vmem:[#allocation5 + $0xe58] sm:$0xff]  ;;  %v8172_v56 = vcombine.low %v528_v44, %v536_v45  ;;  %v8285_v44 = vcombine.high %v640_v37, %v648_v38 }
 0x179   :  { %5316 = vmatprep.subr.bf16.mxu0 %v8061_v57  ;;  %5488 = vmatprep.subr.bf16.mxu1 %v8063_v58  ;;  %v8174_v57 = vcombine.low %v529_v46, %v537_v47  ;;  %v8189_v58 = vcombine.high %v544_v52, %v552_v53  ;;  %v8191_v59 = vcombine.high %v545_v54, %v553_v55  ;;  %v656_v46 = vld [vmem:[#allocation5 + $0x1190] sm:$0xff] }
 0x17a   :  { %v664_v47 = vld [vmem:[#allocation5 + $0x11d0] sm:$0xff] }
 0x17c   :  { %5317 = vmatpush1.bf16.msra.mxu0 %v8060_v63  ;;  %5489 = vmatpush1.bf16.msra.mxu1 %v8062_v0  ;;  %v569_v63 = vld [vmem:[#allocation5 + $0xed8] sm:$0xff]  ;;  %v8188_v0 = vcombine.low %v544_v52, %v552_v53  ;;  %v8301_v53 = vcombine.high %v656_v46, %v664_v47 }
 0x17d   :  { %5318 = vmatprep.subr.bf16.mxu0 %v8077_v1  ;;  %5490 = vmatprep.subr.bf16.mxu1 %v8079_v2  ;;  %v8190_v1 = vcombine.low %v545_v54, %v553_v55  ;;  %v8205_v2 = vcombine.high %v560_v60, %v568_v61  ;;  %v8207_v3 = vcombine.high %v561_v62, %v569_v63  ;;  %v672_v55 = vld [vmem:[#allocation5 + $0x1210] sm:$0xff] }
 0x180   :  { %5319 = vmatpush1.bf16.msra.mxu0 %v8076_v7  ;;  %5491 = vmatpush1.bf16.msra.mxu1 %v8078_v8  ;;  %v585_v7 = vld [vmem:[#allocation5 + $0xf58] sm:$0xff]  ;;  %v8204_v8 = vcombine.low %v560_v60, %v568_v61 }
 0x181   :  { %5320 = vmatprep.subr.bf16.mxu0 %v8093_v9  ;;  %5492 = vmatprep.subr.bf16.mxu1 %v8095_v10  ;;  %v8206_v9 = vcombine.low %v561_v62, %v569_v63  ;;  %v8221_v10 = vcombine.high %v576_v4, %v584_v5  ;;  %v8223_v11 = vcombine.high %v577_v6, %v585_v7  ;;  %v688_v63 = vld [vmem:[#allocation5 + $0x1290] sm:$0xff] }
 0x184   :  { %5321 = vmatpush1.bf16.msra.mxu0 %v8092_v15  ;;  %5493 = vmatpush1.bf16.msra.mxu1 %v8094_v16  ;;  %v601_v15 = vld [vmem:[#allocation5 + $0xfd8] sm:$0xff]  ;;  %v8220_v16 = vcombine.low %v576_v4, %v584_v5 }
 0x185   :  { %5322 = vmatprep.subr.bf16.mxu0 %v8109_v17  ;;  %5494 = vmatprep.subr.bf16.mxu1 %v8111_v18  ;;  %v8222_v17 = vcombine.low %v577_v6, %v585_v7  ;;  %v8237_v18 = vcombine.high %v592_v12, %v600_v13  ;;  %v8239_v19 = vcombine.high %v593_v14, %v601_v15  ;;  %v704_v7 = vld [vmem:[#allocation5 + $0x1310] sm:$0xff] }
 0x188   :  { %5323 = vmatpush1.bf16.msra.mxu0 %v8108_v24  ;;  %5495 = vmatpush1.bf16.msra.mxu1 %v8110_v25  ;;  %v617_v24 = vld [vmem:[#allocation5 + $0x1058] sm:$0xff]  ;;  %v8236_v25 = vcombine.low %v592_v12, %v600_v13 }
 0x189   :  { %5324 = vmatprep.subr.bf16.mxu0 %v8125_v26  ;;  %5496 = vmatprep.subr.bf16.mxu1 %v8127_v27  ;;  %v8238_v26 = vcombine.low %v593_v14, %v601_v15  ;;  %v8253_v27 = vcombine.high %v608_v21, %v616_v22  ;;  %v8255_v28 = vcombine.high %v609_v23, %v617_v24  ;;  %v720_v15 = vld [vmem:[#allocation5 + $0x1390] sm:$0xff] }
 0x18c   :  { %5325 = vmatpush1.bf16.msra.mxu0 %v8124_v32  ;;  %5497 = vmatpush1.bf16.msra.mxu1 %v8126_v33  ;;  %v633_v32 = vld [vmem:[#allocation5 + $0x10d8] sm:$0xff]  ;;  %v8252_v33 = vcombine.low %v608_v21, %v616_v22 }
 0x18d   :  { %5326 = vmatprep.subr.bf16.mxu0 %v8141_v34  ;;  %5498 = vmatprep.subr.bf16.mxu1 %v8143_v35  ;;  %v8254_v34 = vcombine.low %v609_v23, %v617_v24  ;;  %v8269_v35 = vcombine.high %v624_v29, %v632_v30  ;;  %v8271_v36 = vcombine.high %v625_v31, %v633_v32  ;;  %v736_v24 = vld [vmem:[#allocation5 + $0x1410] sm:$0xff] }
 0x190   :  { %5327 = vmatpush1.bf16.msra.mxu0 %v8140_v40  ;;  %5499 = vmatpush1.bf16.msra.mxu1 %v8142_v41  ;;  %v641_v40 = vld [vmem:[#allocation5 + $0x1118] sm:$0xff] }
 0x191   :  { %5328 = vmatprep.subr.bf16.mxu0 %v8157_v42  ;;  %5500 = vmatprep.subr.bf16.mxu1 %v8159_v43  ;;  %v649_v41 = vld [vmem:[#allocation5 + $0x1158] sm:$0xff]  ;;  %v8268_v42 = vcombine.low %v624_v29, %v632_v30  ;;  %v8270_v43 = vcombine.low %v625_v31, %v633_v32  ;;  %v752_v32 = vld [vmem:[#allocation5 + $0x1490] sm:$0xff] }
 0x192   :  { %v8287_v45 = vcombine.high %v641_v40, %v649_v41  ;;  %v8286_v52 = vcombine.low %v641_v40, %v649_v41  ;;  %v768_v40 = vld [vmem:[#allocation5 + $0x1510] sm:$0xff] }
 0x193   :  { %v776_v41 = vld [vmem:[#allocation5 + $0x1550] sm:$0xff] }
 0x194   :  { %5329 = vmatpush1.bf16.msra.mxu0 %v8156_v48  ;;  %5501 = vmatpush1.bf16.msra.mxu1 %v8158_v49  ;;  %v9157_v48 = vld [vmem:[#allocation2 + $0x14] ss:$28 sps:$4 sm:$0xff]  }
 0x195   :  { %5330 = vmatprep.subr.bf16.mxu0 %v8173_v50  ;;  %5502 = vmatprep.subr.bf16.mxu1 %v8175_v51  ;;  %v657_v49 = vld [vmem:[#allocation5 + $0x1198] sm:$0xff]  ;;  %v8284_v51 = vcombine.low %v640_v37, %v648_v38 }
 0x196   :  { %v665_v50 = vld [vmem:[#allocation5 + $0x11d8] sm:$0xff] }
 0x197   :  { %v8303_v54 = vcombine.high %v657_v49, %v665_v50  ;;  %v8302_v60 = vcombine.low %v657_v49, %v665_v50  ;;  %v792_v49 = vld [vmem:[#allocation5 + $0x15d0] sm:$0xff]  ;;  %v785_v50 = vld [vmem:[#allocation5 + $0x1598] sm:$0xff] }
 0x198   :  { %5331 = vmatpush1.bf16.msra.mxu0 %v8172_v56  ;;  %5503 = vmatpush1.bf16.msra.mxu1 %v8174_v57  ;;  %v680_v56 = vld [vmem:[#allocation5 + $0x1250] sm:$0xff]  ;;  %v673_v57 = vld [vmem:[#allocation5 + $0x1218] sm:$0xff] }
 0x199   :  { %5332 = vmatprep.subr.bf16.mxu0 %v8189_v58  ;;  %5504 = vmatprep.subr.bf16.mxu1 %v8191_v59  ;;  %v681_v58 = vld [vmem:[#allocation5 + $0x1258] sm:$0xff]  ;;  %v8300_v59 = vcombine.low %v656_v46, %v664_v47  ;;  %v8317_v61 = vcombine.high %v672_v55, %v680_v56  ;;  %v8413_v46 = vcombine.high %v768_v40, %v776_v41 }
 0x19a   :  { %v8319_v62 = vcombine.high %v673_v57, %v681_v58  ;;  %v8318_v4 = vcombine.low %v673_v57, %v681_v58  ;;  %v808_v57 = vld [vmem:[#allocation5 + $0x1650] sm:$0xff]  ;;  %v801_v58 = vld [vmem:[#allocation5 + $0x1618] sm:$0xff] }
 0x19c   :  { %5333 = vmatpush1.bf16.msra.mxu0 %v8188_v0  ;;  %5505 = vmatpush1.bf16.msra.mxu1 %v8190_v1  ;;  %v696_v0 = vld [vmem:[#allocation5 + $0x12d0] sm:$0xff]  ;;  %v689_v1 = vld [vmem:[#allocation5 + $0x1298] sm:$0xff] }
 0x19d   :  { %5334 = vmatprep.subr.bf16.mxu0 %v8205_v2  ;;  %5506 = vmatprep.subr.bf16.mxu1 %v8207_v3  ;;  %v697_v2 = vld [vmem:[#allocation5 + $0x12d8] sm:$0xff]  ;;  %v8316_v3 = vcombine.low %v672_v55, %v680_v56  ;;  %v8333_v5 = vcombine.high %v688_v63, %v696_v0  ;;  %v800_v56 = vld [vmem:[#allocation5 + $0x1610] sm:$0xff] }
 0x19e   :  { %v8335_v6 = vcombine.high %v689_v1, %v697_v2  ;;  %v8334_v12 = vcombine.low %v689_v1, %v697_v2  ;;  %v824_v1 = vld [vmem:[#allocation5 + $0x16d0] sm:$0xff]  ;;  %v817_v2 = vld [vmem:[#allocation5 + $0x1698] sm:$0xff] }
 0x1a0   :  { %5335 = vmatpush1.bf16.msra.mxu0 %v8204_v8  ;;  %5507 = vmatpush1.bf16.msra.mxu1 %v8206_v9  ;;  %v712_v8 = vld [vmem:[#allocation5 + $0x1350] sm:$0xff]  ;;  %v705_v9 = vld [vmem:[#allocation5 + $0x1318] sm:$0xff] }
 0x1a1   :  { %5336 = vmatprep.subr.bf16.mxu0 %v8221_v10  ;;  %5508 = vmatprep.subr.bf16.mxu1 %v8223_v11  ;;  %v713_v10 = vld [vmem:[#allocation5 + $0x1358] sm:$0xff]  ;;  %v8332_v11 = vcombine.low %v688_v63, %v696_v0  ;;  %v8349_v13 = vcombine.high %v704_v7, %v712_v8  ;;  %v816_v0 = vld [vmem:[#allocation5 + $0x1690] sm:$0xff] }
 0x1a2   :  { %v8351_v14 = vcombine.high %v705_v9, %v713_v10  ;;  %v8350_v21 = vcombine.low %v705_v9, %v713_v10  ;;  %v840_v9 = vld [vmem:[#allocation5 + $0x1750] sm:$0xff]  ;;  %v833_v10 = vld [vmem:[#allocation5 + $0x1718] sm:$0xff] }
 0x1a4   :  { %5337 = vmatpush1.bf16.msra.mxu0 %v8220_v16  ;;  %5509 = vmatpush1.bf16.msra.mxu1 %v8222_v17  ;;  %v728_v16 = vld [vmem:[#allocation5 + $0x13d0] sm:$0xff]  ;;  %v721_v17 = vld [vmem:[#allocation5 + $0x1398] sm:$0xff] }
 0x1a5   :  { %5338 = vmatprep.subr.bf16.mxu0 %v8237_v18  ;;  %5510 = vmatprep.subr.bf16.mxu1 %v8239_v19  ;;  %v729_v18 = vld [vmem:[#allocation5 + $0x13d8] sm:$0xff]  ;;  %v8348_v19 = vcombine.low %v704_v7, %v712_v8  ;;  %v8365_v22 = vcombine.high %v720_v15, %v728_v16  ;;  %v832_v8 = vld [vmem:[#allocation5 + $0x1710] sm:$0xff] }
 0x1a6   :  { %v8367_v23 = vcombine.high %v721_v17, %v729_v18  ;;  %v8366_v29 = vcombine.low %v721_v17, %v729_v18  ;;  %v856_v17 = vld [vmem:[#allocation5 + $0x17d0] sm:$0xff]  ;;  %v849_v18 = vld [vmem:[#allocation5 + $0x1798] sm:$0xff] }
 0x1a8   :  { %5339 = vmatpush1.bf16.msra.mxu0 %v8236_v25  ;;  %5511 = vmatpush1.bf16.msra.mxu1 %v8238_v26  ;;  %v744_v25 = vld [vmem:[#allocation5 + $0x1450] sm:$0xff]  ;;  %v737_v26 = vld [vmem:[#allocation5 + $0x1418] sm:$0xff] }
 0x1a9   :  { %5351 = vmatprep.subr.bf16.mxu0 %v8253_v27  ;;  %5523 = vmatprep.subr.bf16.mxu1 %v8255_v28  ;;  %v745_v27 = vld [vmem:[#allocation5 + $0x1458] sm:$0xff]  ;;  %v8364_v28 = vcombine.low %v720_v15, %v728_v16  ;;  %v8381_v30 = vcombine.high %v736_v24, %v744_v25  ;;  %v848_v16 = vld [vmem:[#allocation5 + $0x1790] sm:$0xff] }
 0x1aa   :  { %v8383_v31 = vcombine.high %v737_v26, %v745_v27  ;;  %v8382_v37 = vcombine.low %v737_v26, %v745_v27  ;;  %v872_v26 = vld [vmem:[#allocation5 + $0x1850] sm:$0xff]  ;;  %v865_v27 = vld [vmem:[#allocation5 + $0x1818] sm:$0xff] }
 0x1ab   :  { %5341 = vmatmul.mubr.bf16.vlgmr.msra.gmra.mrb[4].mxu0 %v9156_v39  ;;  %5513 = vmatmul.mubr.bf16.vlgmr.msra.gmra.mrb[4].mxu1 %v9156_v39 }
 0x1ac   :  { %5352 = vmatpush1.bf16.msra.mxu0 %v8252_v33  ;;  %5524 = vmatpush1.bf16.msra.mxu1 %v8254_v34  ;;  %v760_v33 = vld [vmem:[#allocation5 + $0x14d0] sm:$0xff]  ;;  %v753_v34 = vld [vmem:[#allocation5 + $0x1498] sm:$0xff] }
 0x1ad   :  { %5353 = vmatprep.subr.bf16.mxu0 %v8269_v35  ;;  %5525 = vmatprep.subr.bf16.mxu1 %v8271_v36  ;;  %v761_v35 = vld [vmem:[#allocation5 + $0x14d8] sm:$0xff]  ;;  %v8380_v36 = vcombine.low %v736_v24, %v744_v25  ;;  %v8397_v38 = vcombine.high %v752_v32, %v760_v33  ;;  %v864_v25 = vld [vmem:[#allocation5 + $0x1810] sm:$0xff] }
 0x1ae   :  { %5383 = vmatprep.mubr.bf16.mxu0 %v9157_v48  ;;  %5555 = vmatprep.mubr.bf16.mxu1 %v9157_v48  ;;  %v8399_v39 = vcombine.high %v753_v34, %v761_v35  ;;  %v784_v48 = vld [vmem:[#allocation5 + $0x1590] sm:$0xff] }
 0x1b0   :  { %5354 = vmatpush1.bf16.msra.mxu0 %v8268_v42  ;;  %5526 = vmatpush1.bf16.msra.mxu1 %v8270_v43  ;;  %v769_v42 = vld [vmem:[#allocation5 + $0x1518] sm:$0xff] }
 0x1b1   :  { %5355 = vmatprep.subr.bf16.mxu0 %v8285_v44  ;;  %5527 = vmatprep.subr.bf16.mxu1 %v8287_v45  ;;  %v777_v43 = vld [vmem:[#allocation5 + $0x1558] sm:$0xff]  ;;  %v8396_v44 = vcombine.low %v752_v32, %v760_v33  ;;  %v8398_v45 = vcombine.low %v753_v34, %v761_v35  ;;  %v98_v33 = vld [vmem:[#allocation5 + $0x20] sm:$0xff]  ;;  %v8508_v35 = vcombine.low %v864_v25, %v872_v26 }
 0x1b2   :  { %v8415_v47 = vcombine.high %v769_v42, %v777_v43  ;;  %v106_v34 = vld [vmem:[#allocation5 + $0x60] sm:$0xff] }
 0x1b4   :  { %5356 = vmatpush1.bf16.msra.mxu0 %v8284_v51  ;;  %5528 = vmatpush1.bf16.msra.mxu1 %v8286_v52  ;;  %v793_v51 = vld [vmem:[#allocation5 + $0x15d8] sm:$0xff]  ;;  %v8412_v52 = vcombine.low %v768_v40, %v776_v41 }
 0x1b5   :  { %5357 = vmatprep.subr.bf16.mxu0 %v8301_v53  ;;  %5529 = vmatprep.subr.bf16.mxu1 %v8303_v54  ;;  %v8414_v53 = vcombine.low %v769_v42, %v777_v43  ;;  %v8429_v54 = vcombine.high %v784_v48, %v792_v49  ;;  %v8431_v55 = vcombine.high %v785_v50, %v793_v51  ;;  %v9158_v40 = vld [vmem:[#allocation2 + $0x10] ss:$28 sps:$4 sm:$0xff]   ;;  %v882_v42 = vlaneseq  ;;  %v114_v43 = vld [vmem:[#allocation5 + $0xa0] sm:$0xff] }
 0x1b8   :  { %5358 = vmatpush1.bf16.msra.mxu0 %v8300_v59  ;;  %5530 = vmatpush1.bf16.msra.mxu1 %v8302_v60  ;;  %v809_v59 = vld [vmem:[#allocation5 + $0x1658] sm:$0xff]  ;;  %v8428_v60 = vcombine.low %v784_v48, %v792_v49 }
 0x1b9   :  { %5359 = vmatprep.subr.bf16.mxu0 %v8317_v61  ;;  %5531 = vmatprep.subr.bf16.mxu1 %v8319_v62  ;;  %v8430_v61 = vcombine.low %v785_v50, %v793_v51  ;;  %v8445_v62 = vcombine.high %v800_v56, %v808_v57  ;;  %v8447_v63 = vcombine.high %v801_v58, %v809_v59  ;;  %v9425_v50 = vshrl.u32 %v882_v42, 7 }
 0x1bc   :  { %5360 = vmatpush1.bf16.msra.mxu0 %v8316_v3  ;;  %5532 = vmatpush1.bf16.msra.mxu1 %v8318_v4  ;;  %v825_v3 = vld [vmem:[#allocation5 + $0x16d8] sm:$0xff]  ;;  %v8444_v4 = vcombine.low %v800_v56, %v808_v57  ;;  %v139_v56 = vld [vmem:[#allocation5 + $0x168] sm:$0xff] }
 0x1bd   :  { %5361 = vmatprep.subr.bf16.mxu0 %v8333_v5  ;;  %5533 = vmatprep.subr.bf16.mxu1 %v8335_v6  ;;  %v8446_v5 = vcombine.low %v801_v58, %v809_v59  ;;  %v8461_v6 = vcombine.high %v816_v0, %v824_v1  ;;  %v8463_v7 = vcombine.high %v817_v2, %v825_v3 }
 0x1c0   :  { %5362 = vmatpush1.bf16.msra.mxu0 %v8332_v11  ;;  %5534 = vmatpush1.bf16.msra.mxu1 %v8334_v12  ;;  %v841_v11 = vld [vmem:[#allocation5 + $0x1758] sm:$0xff]  ;;  %v8460_v12 = vcombine.low %v816_v0, %v824_v1  ;;  %v888_v0 = vsub.s32 1, %v9425_v50  ;;  %v146_v1 = vld [vmem:[#allocation5 + $0x1a0] sm:$0xff] }
 0x1c1   :  { %5363 = vmatprep.subr.bf16.mxu0 %v8349_v13  ;;  %5535 = vmatprep.subr.bf16.mxu1 %v8351_v14  ;;  %v8462_v13 = vcombine.low %v817_v2, %v825_v3  ;;  %v8477_v14 = vcombine.high %v832_v8, %v840_v9  ;;  %v8479_v15 = vcombine.high %v833_v10, %v841_v11  ;;  %v154_v2 = vld [vmem:[#allocation5 + $0x1e0] sm:$0xff]  ;;  %v9160_v3 = vld [vmem:[#allocation2 + $0x4] ss:$28 sps:$4 sm:$0xff]  }
 0x1c4   :  { %5364 = vmatpush1.bf16.msra.mxu0 %v8348_v19  ;;  %5536 = vmatpush1.bf16.msra.mxu1 %v8350_v21  ;;  %v857_v19 = vld [vmem:[#allocation5 + $0x17d8] sm:$0xff]  ;;  %v8476_v21 = vcombine.low %v832_v8, %v840_v9 }
 0x1c5   :  { %5365 = vmatprep.subr.bf16.mxu0 %v8365_v22  ;;  %5537 = vmatprep.subr.bf16.mxu1 %v8367_v23  ;;  %v8478_v22 = vcombine.low %v833_v10, %v841_v11  ;;  %v8493_v23 = vcombine.high %v848_v16, %v856_v17  ;;  %v8495_v24 = vcombine.high %v849_v18, %v857_v19  ;;  %v162_v11 = vld [vmem:[#allocation5 + $0x220] sm:$0xff] }
 0x1c6   :  { %v7793_v10 = vcombine.high %v146_v1, %v154_v2 }
 0x1c8   :  { %5366 = vmatpush1.bf16.msra.mxu0 %v8364_v28  ;;  %5538 = vmatpush1.bf16.msra.mxu1 %v8366_v29  ;;  %v873_v28 = vld [vmem:[#allocation5 + $0x1858] sm:$0xff]  ;;  %v8492_v29 = vcombine.low %v848_v16, %v856_v17  ;;  %v163_v17 = vld [vmem:[#allocation5 + $0x228] sm:$0xff] }
 0x1c9   :  { %5367 = vmatprep.subr.bf16.mxu0 %v8381_v30  ;;  %5539 = vmatprep.subr.bf16.mxu1 %v8383_v31  ;;  %v8494_v30 = vcombine.low %v849_v18, %v857_v19  ;;  %v8509_v31 = vcombine.high %v864_v25, %v872_v26  ;;  %v8511_v32 = vcombine.high %v865_v27, %v873_v28  ;;  %v171_v18 = vld [vmem:[#allocation5 + $0x268] sm:$0xff] }
 0x1ca   :  { %v7792_v25 = vcombine.low %v146_v1, %v154_v2  ;;  %v218_v1 = vld [vmem:[#allocation5 + $0x3e0] sm:$0xff]  ;;  %v211_v2 = vld [vmem:[#allocation5 + $0x3a8] sm:$0xff] }
 0x1cc   :  { %5368 = vmatpush1.bf16.msra.mxu0 %v8380_v36  ;;  %5540 = vmatpush1.bf16.msra.mxu1 %v8382_v37  ;;  %v99_v36 = vld [vmem:[#allocation5 + $0x28] sm:$0xff] }
 0x1cd   :  { %5369 = vmatprep.subr.bf16.mxu0 %v8397_v38  ;;  %5541 = vmatprep.subr.bf16.mxu1 %v8399_v39  ;;  %v107_v37 = vld [vmem:[#allocation5 + $0x68] sm:$0xff]  ;;  %v8510_v38 = vcombine.low %v865_v27, %v873_v28  ;;  %v7745_v39 = vcombine.high %v98_v33, %v106_v34 }
 0x1ce   :  { %v7747_v41 = vcombine.high %v99_v36, %v107_v37  ;;  %v7746_v48 = vcombine.low %v99_v36, %v107_v37 }
 0x1d0   :  { %5370 = vmatpush1.bf16.msra.mxu0 %v8396_v44  ;;  %5542 = vmatpush1.bf16.msra.mxu1 %v8398_v45  ;;  %v122_v44 = vld [vmem:[#allocation5 + $0xe0] sm:$0xff]  ;;  %v115_v45 = vld [vmem:[#allocation5 + $0xa8] sm:$0xff] }
 0x1d1   :  { %5371 = vmatprep.subr.bf16.mxu0 %v8413_v46  ;;  %5543 = vmatprep.subr.bf16.mxu1 %v8415_v47  ;;  %v123_v46 = vld [vmem:[#allocation5 + $0xe8] sm:$0xff]  ;;  %v7744_v47 = vcombine.low %v98_v33, %v106_v34  ;;  %v7761_v49 = vcombine.high %v114_v43, %v122_v44  ;;  %v7760_v57 = vcombine.low %v114_v43, %v122_v44 }
 0x1d2   :  { %v7763_v51 = vcombine.high %v115_v45, %v123_v46  ;;  %v7762_v58 = vcombine.low %v115_v45, %v123_v46  ;;  %v179_v43 = vld [vmem:[#allocation5 + $0x2a8] sm:$0xff] }
 0x1d3   :  { %v187_v44 = vld [vmem:[#allocation5 + $0x2e8] sm:$0xff] }
 0x1d4   :  { %5372 = vmatpush1.bf16.msra.mxu0 %v8412_v52  ;;  %5544 = vmatpush1.bf16.msra.mxu1 %v8414_v53  ;;  %v130_v52 = vld [vmem:[#allocation5 + $0x120] sm:$0xff] }
 0x1d5   :  { %5373 = vmatprep.subr.bf16.mxu0 %v8429_v54  ;;  %5545 = vmatprep.subr.bf16.mxu1 %v8431_v55  ;;  %v138_v53 = vld [vmem:[#allocation5 + $0x160] sm:$0xff]  ;;  %v131_v55 = vld [vmem:[#allocation5 + $0x128] sm:$0xff] }
 0x1d6   :  { %v9159_v54 = vld [vmem:[#allocation2 + $0x18] ss:$28 sps:$4 sm:$0xff]   ;;  %v7777_v59 = vcombine.high %v130_v52, %v138_v53  ;;  %v7778_v8 = vcombine.low %v131_v55, %v139_v56 }
 0x1d8   :  { %5374 = vmatpush1.bf16.msra.mxu0 %v8428_v60  ;;  %5546 = vmatpush1.bf16.msra.mxu1 %v8430_v61  ;;  %v884_v60 = vsub.s32 0, %v9425_v50  ;;  %v7779_v61 = vcombine.high %v131_v55, %v139_v56  ;;  %v195_v55 = vld [vmem:[#allocation5 + $0x328] sm:$0xff] }
 0x1d9   :  { %5375 = vmatprep.subr.bf16.mxu0 %v8445_v62  ;;  %5547 = vmatprep.subr.bf16.mxu1 %v8447_v63  ;;  %v878_v62 = vld [vmem:[#allocation7] sm:$0xff]  ;;  %v892_v63 = vsub.s32 2, %v9425_v50  ;;  %v203_v56 = vld [vmem:[#allocation5 + $0x368] sm:$0xff] }
 0x1da   :  { %v885_v9 = vrot.slane %v878_v62, %v884_v60 }
 0x1dc   :  { %5376 = vmatpush1.bf16.msra.mxu0 %v8444_v4  ;;  %5548 = vmatpush1.bf16.msra.mxu1 %v8446_v5  ;;  %v896_v4 = vsub.s32 3, %v9425_v50  ;;  %v147_v5 = vld [vmem:[#allocation5 + $0x1a8] sm:$0xff] }
 0x1dd   :  { %5377 = vmatprep.subr.bf16.mxu0 %v8461_v6  ;;  %5549 = vmatprep.subr.bf16.mxu1 %v8463_v7  ;;  %v155_v6 = vld [vmem:[#allocation5 + $0x1e8] sm:$0xff]  ;;  %v7776_v7 = vcombine.low %v130_v52, %v138_v53  ;;  %v7827_v52 = vcombine.high %v179_v43, %v187_v44  ;;  %v194_v53 = vld [vmem:[#allocation5 + $0x320] sm:$0xff] }
 0x1de   :  { %v7795_v16 = vcombine.high %v147_v5, %v155_v6  ;;  %v7794_v26 = vcombine.low %v147_v5, %v155_v6  ;;  %v7842_v6 = vcombine.low %v195_v55, %v203_v56 }
 0x1e0   :  { %5378 = vmatpush1.bf16.msra.mxu0 %v8460_v12  ;;  %5550 = vmatpush1.bf16.msra.mxu1 %v8462_v13  ;;  %v170_v12 = vld [vmem:[#allocation5 + $0x260] sm:$0xff] }
 0x1e1   :  { %5379 = vmatprep.subr.bf16.mxu0 %v8477_v14  ;;  %5551 = vmatprep.subr.bf16.mxu1 %v8479_v15  ;;  %v893_v14 = vrot.slane %v878_v62, %v892_v63  ;;  %v889_v15 = vrot.slane %v878_v62, %v888_v0  ;;  %v7809_v27 = vcombine.high %v162_v11, %v170_v12 }
 0x1e4   :  { %5380 = vmatpush1.bf16.msra.mxu0 %v8476_v21  ;;  %5552 = vmatpush1.bf16.msra.mxu1 %v8478_v22  ;;  %v897_v22 = vrot.slane %v878_v62, %v896_v4  ;;  %v210_v62 = vld [vmem:[#allocation5 + $0x3a0] sm:$0xff] }
 0x1e5   :  { %5381 = vmatprep.subr.bf16.mxu0 %v8493_v23  ;;  %5553 = vmatprep.subr.bf16.mxu1 %v8495_v24 }
 0x1e8   :  { %5382 = vmatpush1.bf16.msra.mxu0 %v8492_v29  ;;  %5554 = vmatpush1.bf16.msra.mxu1 %v8494_v30 }
 0x1e9   :  { %5394 = vmatprep.subr.bf16.mxu0 %v8509_v31  ;;  %5566 = vmatprep.subr.bf16.mxu1 %v8511_v32  ;;  %v7811_v32 = vcombine.high %v163_v17, %v171_v18 }
 0x1eb   :  { %5384 = vmatmul.mubr.bf16.vlgmr.msra.gmra.mrb[4].mxu0 %v9158_v40  ;;  %5556 = vmatmul.mubr.bf16.vlgmr.msra.gmra.mrb[4].mxu1 %v9158_v40 }
 0x1ec   :  { %5395 = vmatpush1.bf16.msra.mxu0 %v8508_v35  ;;  %5567 = vmatpush1.bf16.msra.mxu1 %v8510_v38  ;;  %v178_v38 = vld [vmem:[#allocation5 + $0x2a0] sm:$0xff] }
 0x1ed   :  { %5426 = vmatprep.mubr.bf16.mxu0 %v9325_v20  ;;  %5598 = vmatprep.mubr.bf16.mxu1 %v9325_v20 }
 0x1ee   :  { %5609 = vmatprep.subr.bf16.mxu0 %v7745_v39  ;;  %5781 = vmatprep.subr.bf16.mxu1 %v7747_v41  ;;  %v186_v39 = vld [vmem:[#allocation5 + $0x2e0] sm:$0xff] }
 0x1f7   :  { %8522 = vmatmul.mubr.msk.bf16.vlgmr.msra.gmra.mrb[4].mxu0 %vm4917_vm0, %v9159_v54  ;;  %8523 = vmatmul.mubr.msk.bf16.vlgmr.msra.gmra.mrb[4].mxu1 %vm4917_vm0, %v9159_v54  ;;  %v202_v54 = vld [vmem:[#allocation5 + $0x360] sm:$0xff] }
 0x1f8   :  { %5610 = vmatpush1.bf16.msra.mxu0 %v7744_v47  ;;  %5782 = vmatpush1.bf16.msra.mxu1 %v7746_v48  ;;  %v7808_v47 = vcombine.low %v162_v11, %v170_v12  ;;  %v7840_v5 = vcombine.low %v194_v53, %v202_v54  ;;  %v227_v11 = vld [vmem:[#allocation5 + $0x428] sm:$0xff] }
 0x1f9   :  { %5611 = vmatprep.subr.bf16.mxu0 %v7761_v49  ;;  %5783 = vmatprep.subr.bf16.mxu1 %v7763_v51  ;;  %v7810_v49 = vcombine.low %v163_v17, %v171_v18  ;;  %v7825_v51 = vcombine.high %v178_v38, %v186_v39  ;;  %v235_v12 = vld [vmem:[#allocation5 + $0x468] sm:$0xff]  ;;  %v242_v17 = vld [vmem:[#allocation5 + $0x4a0] sm:$0xff] }
 0x1fa   :  { %5641 = vmatprep.mubr.bf16.mxu0 %v9160_v3  ;;  %5813 = vmatprep.mubr.bf16.mxu1 %v9160_v3  ;;  %v219_v3 = vld [vmem:[#allocation5 + $0x3e8] sm:$0xff]  ;;  %v250_v18 = vld [vmem:[#allocation5 + $0x4e0] sm:$0xff] }
 0x1fc   :  { %5612 = vmatpush1.bf16.msra.mxu0 %v7760_v57  ;;  %5784 = vmatpush1.bf16.msra.mxu1 %v7762_v58  ;;  %v7824_v57 = vcombine.low %v178_v38, %v186_v39  ;;  %v7826_v58 = vcombine.low %v179_v43, %v187_v44  ;;  %v274_v43 = vld [vmem:[#allocation5 + $0x5a0] sm:$0xff] }
 0x1fd   :  { %5613 = vmatprep.subr.bf16.mxu0 %v7777_v59  ;;  %5785 = vmatprep.subr.bf16.mxu1 %v7779_v61  ;;  %v7841_v59 = vcombine.high %v194_v53, %v202_v54  ;;  %v7843_v61 = vcombine.high %v195_v55, %v203_v56  ;;  %v282_v44 = vld [vmem:[#allocation5 + $0x5e0] sm:$0xff] }
 0x1fe   :  { %v5084_v13 = vpop.f32.mrb[0].mxu0  ;;  %v5256_v19 = vpop.f32.mrb[0].mxu1  ;;  %v7921_v53 = vcombine.high %v274_v43, %v282_v44  ;;  %v290_v55 = vld [vmem:[#allocation5 + $0x620] sm:$0xff] }
 0x1ff   :  { %v5086_v21 = vpop.f32.mrb[1].mxu0  ;;  %v5258_v23 = vpop.f32.mrb[1].mxu1  ;;  %v9441_v28 = vadd.f32 %v5084_v13, %v885_v9  ;;  %v9445_v33 = vadd.f32 %v5256_v19, %v893_v14  ;;  %v7856_v13 = vcombine.low %v210_v62, %v218_v1  ;;  %v243_v19 = vld [vmem:[#allocation5 + $0x4a8] sm:$0xff]  ;;  %v298_v56 = vld [vmem:[#allocation5 + $0x660] sm:$0xff] }
 0x200   :  { %5614 = vmatpush1.bf16.msra.mxu0 %v7776_v7  ;;  %v5088_v24 = vpop.f32.mrb[2].mxu0  ;;  %5786 = vmatpush1.bf16.msra.mxu1 %v7778_v8  ;;  %v5260_v30 = vpop.f32.mrb[2].mxu1  ;;  %v9447_v34 = vadd.f32 %v5086_v21, %v889_v15  ;;  %v9453_v40 = vadd.f32 %v5258_v23, %v897_v22  ;;  %v7857_v7 = vcombine.high %v210_v62, %v218_v1  ;;  %v251_v21 = vld [vmem:[#allocation5 + $0x4e8] sm:$0xff] }
 0x201   :  { %v9443_v29 = vadd.f32 %v5088_v24, %v885_v9  ;;  %v5090_v31 = vpop.f32.mrb[3].mxu0  ;;  %5615 = vmatprep.subr.bf16.mxu0 %v7793_v10  ;;  %v9449_v35 = vadd.f32 %v5260_v30, %v893_v14  ;;  %v5262_v37 = vpop.f32.mrb[3].mxu1  ;;  %5787 = vmatprep.subr.bf16.mxu1 %v7795_v16  ;;  %v7859_v8 = vcombine.high %v211_v2, %v219_v3  ;;  %v226_v9 = vld [vmem:[#allocation5 + $0x420] sm:$0xff]  ;;  %v259_v30 = vld [vmem:[#allocation5 + $0x528] sm:$0xff] }
 0x202   :  { %v9451_v36 = vadd.f32 %v5090_v31, %v889_v15  ;;  %v9457_v42 = vadd.f32 %v5262_v37, %v897_v22  ;;  %v234_v10 = vld [vmem:[#allocation5 + $0x460] sm:$0xff]  ;;  %v7858_v14 = vcombine.low %v211_v2, %v219_v3  ;;  %v7875_v16 = vcombine.high %v227_v11, %v235_v12  ;;  %v267_v31 = vld [vmem:[#allocation5 + $0x568] sm:$0xff] }
 0x203   :  { %v6297_v41 = vpack.c.bf16 %v9443_v29, %v9441_v28  ;;  %v6299_v45 = vpack.c.bf16 %v9449_v35, %v9445_v33  ;;  %v7873_v15 = vcombine.high %v226_v9, %v234_v10  ;;  %v7872_v22 = vcombine.low %v226_v9, %v234_v10  ;;  %v306_v2 = vld [vmem:[#allocation5 + $0x6a0] sm:$0xff]  ;;  %v9014_v28 = vld [vmem:[#allocation8 + $0xf8] sm:$0xff]   ;;  %v9017_v35 = vld [vmem:[#allocation8 + $0x140] sm:$0xff]  }
 0x204   :  { %v6298_v46 = vpack.c.bf16 %v9451_v36, %v9447_v34  ;;  %5616 = vmatpush1.bf16.msra.mxu0 %v7792_v25  ;;  %v6300_v48 = vpack.c.bf16 %v9457_v42, %v9453_v40  ;;  %5788 = vmatpush1.bf16.msra.mxu1 %v7794_v26  ;;  %v7874_v23 = vcombine.low %v227_v11, %v235_v12  ;;  %v258_v26 = vld [vmem:[#allocation5 + $0x520] sm:$0xff]  ;;  %v8991_v36 = vld [vmem:[#allocation8 + $0x8] sm:$0xff]   ;;  %v9015_v29 = vld [vmem:[#allocation8 + $0x38] sm:$0xff]  }
 0x205   :  { %5617 = vmatprep.subr.bf16.mxu0 %v7809_v27  ;;  %5789 = vmatprep.subr.bf16.mxu1 %v7811_v32  ;;  %v7889_v24 = vcombine.high %v242_v17, %v250_v18  ;;  %v7891_v25 = vcombine.high %v243_v19, %v251_v21  ;;  %v266_v27 = vld [vmem:[#allocation5 + $0x560] sm:$0xff]  ;;  %v7888_v32 = vcombine.low %v242_v17, %v250_v18  ;;  %v9016_v33 = vld [vmem:[#allocation8 + $0xb8] sm:$0xff]  }
 0x206   :  { %v7890_v37 = vcombine.low %v243_v19, %v251_v21  ;;  %v7905_v38 = vcombine.high %v258_v26, %v266_v27  ;;  %v7907_v39 = vcombine.high %v259_v30, %v267_v31  ;;  %v7937_v62 = vcombine.high %v290_v55, %v298_v56  ;;  %v314_v3 = vld [vmem:[#allocation5 + $0x6e0] sm:$0xff] }
 0x207   :  { %v7953_v9 = vcombine.high %v306_v2, %v314_v3  ;;  %v322_v11 = vld [vmem:[#allocation5 + $0x720] sm:$0xff]  ;;  %9113 = vtanh.bf16 %v6298_v46  ;;  %v9515_v46 = vld [vmem:[#allocation7 + $0x8] sm:$0xff] }
 0x208   :  { %5618 = vmatpush1.bf16.msra.mxu0 %v7808_v47  ;;  %5790 = vmatpush1.bf16.msra.mxu1 %v7810_v49  ;;  %v275_v47 = vld [vmem:[#allocation5 + $0x5a8] sm:$0xff]  ;;  %v330_v12 = vld [vmem:[#allocation5 + $0x760] sm:$0xff]  ;;  %9115 = vtanh.bf16 %v6300_v48 }
 0x209   :  { %5619 = vmatprep.subr.bf16.mxu0 %v7825_v51  ;;  %5791 = vmatprep.subr.bf16.mxu1 %v7827_v52  ;;  %v283_v49 = vld [vmem:[#allocation5 + $0x5e8] sm:$0xff]  ;;  %v7904_v51 = vcombine.low %v258_v26, %v266_v27  ;;  %v7906_v52 = vcombine.low %v259_v30, %v267_v31  ;;  %v7969_v17 = vcombine.high %v322_v11, %v330_v12  ;;  %v338_v19 = vld [vmem:[#allocation5 + $0x7a0] sm:$0xff]  ;;  %9117 = vtanh.bf16 %v6297_v41  ;;  %v9018_v41 = vld [vmem:[#allocation8 + $0x1c0] sm:$0xff]  }
 0x20a   :  { %v7923_v54 = vcombine.high %v275_v47, %v283_v49  ;;  %v346_v21 = vld [vmem:[#allocation5 + $0x7e0] sm:$0xff]  ;;  %9119 = vtanh.bf16 %v6299_v45  ;;  %v9019_v45 = vld [vmem:[#allocation8 + $0x100] sm:$0xff]  }
 0x20b   :  { %v7985_v26 = vcombine.high %v338_v19, %v346_v21  ;;  %v354_v30 = vld [vmem:[#allocation5 + $0x820] sm:$0xff] }
 0x20c   :  { %5620 = vmatpush1.bf16.msra.mxu0 %v7824_v57  ;;  %5792 = vmatpush1.bf16.msra.mxu1 %v7826_v58  ;;  %v291_v57 = vld [vmem:[#allocation5 + $0x628] sm:$0xff]  ;;  %v362_v31 = vld [vmem:[#allocation5 + $0x860] sm:$0xff] }
 0x20d   :  { %5621 = vmatprep.subr.bf16.mxu0 %v7841_v59  ;;  %5793 = vmatprep.subr.bf16.mxu1 %v7843_v61  ;;  %v299_v58 = vld [vmem:[#allocation5 + $0x668] sm:$0xff]  ;;  %v7920_v59 = vcombine.low %v274_v43, %v282_v44  ;;  %v7922_v61 = vcombine.low %v275_v47, %v283_v49  ;;  %v8001_v43 = vcombine.high %v354_v30, %v362_v31  ;;  %v370_v47 = vld [vmem:[#allocation5 + $0x8a0] sm:$0xff] }
 0x20e   :  { %v7939_v1 = vcombine.high %v291_v57, %v299_v58  ;;  %v378_v49 = vld [vmem:[#allocation5 + $0x8e0] sm:$0xff] }
 0x20f   :  { %v8993_v42 = vld [vmem:[#allocation8 + $0x50] sm:$0xff]  }
 0x210   :  { %5622 = vmatpush1.bf16.msra.mxu0 %v7840_v5  ;;  %5794 = vmatpush1.bf16.msra.mxu1 %v7842_v6  ;;  %v307_v5 = vld [vmem:[#allocation5 + $0x6a8] sm:$0xff]  ;;  %v8994_v48 = vld [vmem:[#allocation8 + $0xd0] sm:$0xff]  }
 0x211   :  { %5623 = vmatprep.subr.bf16.mxu0 %v7857_v7  ;;  %5795 = vmatprep.subr.bf16.mxu1 %v7859_v8  ;;  %v315_v6 = vld [vmem:[#allocation5 + $0x6e8] sm:$0xff]  ;;  %v7936_v7 = vcombine.low %v290_v55, %v298_v56  ;;  %v7938_v8 = vcombine.low %v291_v57, %v299_v58  ;;  %v8017_v55 = vcombine.high %v370_v47, %v378_v49  ;;  %v386_v57 = vld [vmem:[#allocation5 + $0x920] sm:$0xff] }
 0x212   :  { %v7955_v10 = vcombine.high %v307_v5, %v315_v6  ;;  %v394_v58 = vld [vmem:[#allocation5 + $0x960] sm:$0xff]  ;;  %v9114_v34 = vpop.eup %9113 }
 0x213   :  { %v9116_v40 = vpop.eup %9115 }
 0x214   :  { %5624 = vmatpush1.bf16.msra.mxu0 %v7856_v13  ;;  %5796 = vmatpush1.bf16.msra.mxu1 %v7858_v14  ;;  %v323_v13 = vld [vmem:[#allocation5 + $0x728] sm:$0xff] }
 0x215   :  { %5625 = vmatprep.subr.bf16.mxu0 %v7873_v15  ;;  %5797 = vmatprep.subr.bf16.mxu1 %v7875_v16  ;;  %v331_v14 = vld [vmem:[#allocation5 + $0x768] sm:$0xff]  ;;  %v7952_v15 = vcombine.low %v306_v2, %v314_v3  ;;  %v7954_v16 = vcombine.low %v307_v5, %v315_v6  ;;  %v8033_v3 = vcombine.high %v386_v57, %v394_v58  ;;  %v402_v6 = vld [vmem:[#allocation5 + $0x9a0] sm:$0xff] }
 0x216   :  { %v7971_v18 = vcombine.high %v323_v13, %v331_v14 }
 0x218   :  { %5626 = vmatpush1.bf16.msra.mxu0 %v7872_v22  ;;  %5798 = vmatpush1.bf16.msra.mxu1 %v7874_v23  ;;  %v339_v22 = vld [vmem:[#allocation5 + $0x7a8] sm:$0xff] }
 0x219   :  { %5627 = vmatprep.subr.bf16.mxu0 %v7889_v24  ;;  %5799 = vmatprep.subr.bf16.mxu1 %v7891_v25  ;;  %v347_v23 = vld [vmem:[#allocation5 + $0x7e8] sm:$0xff]  ;;  %v7968_v24 = vcombine.low %v322_v11, %v330_v12  ;;  %v7970_v25 = vcombine.low %v323_v13, %v331_v14  ;;  %v8032_v11 = vcombine.low %v386_v57, %v394_v58 }
 0x21a   :  { %v7987_v27 = vcombine.high %v339_v22, %v347_v23 }
 0x21c   :  { %5628 = vmatpush1.bf16.msra.mxu0 %v7888_v32  ;;  %5800 = vmatpush1.bf16.msra.mxu1 %v7890_v37  ;;  %v355_v32 = vld [vmem:[#allocation5 + $0x828] sm:$0xff] }
 0x21d   :  { %5629 = vmatprep.subr.bf16.mxu0 %v7905_v38  ;;  %5801 = vmatprep.subr.bf16.mxu1 %v7907_v39  ;;  %v363_v37 = vld [vmem:[#allocation5 + $0x868] sm:$0xff]  ;;  %v7984_v38 = vcombine.low %v338_v19, %v346_v21  ;;  %v7986_v39 = vcombine.low %v339_v22, %v347_v23 }
 0x21e   :  { %v8003_v44 = vcombine.high %v355_v32, %v363_v37 }
 0x220   :  { %5630 = vmatpush1.bf16.msra.mxu0 %v7904_v51  ;;  %5802 = vmatpush1.bf16.msra.mxu1 %v7906_v52  ;;  %v371_v51 = vld [vmem:[#allocation5 + $0x8a8] sm:$0xff] }
 0x221   :  { %5631 = vmatprep.subr.bf16.mxu0 %v7921_v53  ;;  %5803 = vmatprep.subr.bf16.mxu1 %v7923_v54  ;;  %v379_v52 = vld [vmem:[#allocation5 + $0x8e8] sm:$0xff]  ;;  %v8000_v53 = vcombine.low %v354_v30, %v362_v31  ;;  %v8002_v54 = vcombine.low %v355_v32, %v363_v37 }
 0x222   :  { %v8019_v56 = vcombine.high %v371_v51, %v379_v52  ;;  %v8018_v2 = vcombine.low %v371_v51, %v379_v52 }
 0x224   :  { %5632 = vmatpush1.bf16.msra.mxu0 %v7920_v59  ;;  %5804 = vmatpush1.bf16.msra.mxu1 %v7922_v61  ;;  %v9161_v59 = vld [vmem:[#allocation2] ss:$28 sps:$4 sm:$0xff]  }
 0x225   :  { %5633 = vmatprep.subr.bf16.mxu0 %v7937_v62  ;;  %5805 = vmatprep.subr.bf16.mxu1 %v7939_v1  ;;  %v387_v61 = vld [vmem:[#allocation5 + $0x928] sm:$0xff]  ;;  %v8016_v1 = vcombine.low %v370_v47, %v378_v49 }
 0x226   :  { %v395_v62 = vld [vmem:[#allocation5 + $0x968] sm:$0xff] }
 0x227   :  { %v8035_v5 = vcombine.high %v387_v61, %v395_v62  ;;  %v8034_v12 = vcombine.low %v387_v61, %v395_v62  ;;  %v482_v62 = vld [vmem:[#allocation5 + $0xc20] sm:$0xff] }
 0x228   :  { %5634 = vmatpush1.bf16.msra.mxu0 %v7936_v7  ;;  %5806 = vmatpush1.bf16.msra.mxu1 %v7938_v8  ;;  %v410_v7 = vld [vmem:[#allocation5 + $0x9e0] sm:$0xff]  ;;  %v9162_v8 = vld [vmem:[#allocation2 + $0xc] ss:$28 sps:$4 sm:$0xff]  }
 0x229   :  { %5635 = vmatprep.subr.bf16.mxu0 %v7953_v9  ;;  %5807 = vmatprep.subr.bf16.mxu1 %v7955_v10  ;;  %v403_v9 = vld [vmem:[#allocation5 + $0x9a8] sm:$0xff]  ;;  %v8049_v13 = vcombine.high %v402_v6, %v410_v7  ;;  %v8048_v19 = vcombine.low %v402_v6, %v410_v7 }
 0x22a   :  { %v411_v10 = vld [vmem:[#allocation5 + $0x9e8] sm:$0xff] }
 0x22b   :  { %v8051_v14 = vcombine.high %v403_v9, %v411_v10  ;;  %v8050_v21 = vcombine.low %v403_v9, %v411_v10  ;;  %v498_v9 = vld [vmem:[#allocation5 + $0xca0] sm:$0xff] }
 0x22c   :  { %5636 = vmatpush1.bf16.msra.mxu0 %v7952_v15  ;;  %5808 = vmatpush1.bf16.msra.mxu1 %v7954_v16  ;;  %v418_v15 = vld [vmem:[#allocation5 + $0xa20] sm:$0xff] }
 0x22d   :  { %5637 = vmatprep.subr.bf16.mxu0 %v7969_v17  ;;  %5809 = vmatprep.subr.bf16.mxu1 %v7971_v18  ;;  %v426_v16 = vld [vmem:[#allocation5 + $0xa60] sm:$0xff]  ;;  %v419_v17 = vld [vmem:[#allocation5 + $0xa28] sm:$0xff] }
 0x22e   :  { %v427_v18 = vld [vmem:[#allocation5 + $0xa68] sm:$0xff]  ;;  %v8065_v22 = vcombine.high %v418_v15, %v426_v16  ;;  %v8064_v30 = vcombine.low %v418_v15, %v426_v16  ;;  %v506_v10 = vld [vmem:[#allocation5 + $0xce0] sm:$0xff] }
 0x22f   :  { %v8067_v23 = vcombine.high %v419_v17, %v427_v18  ;;  %v8066_v31 = vcombine.low %v419_v17, %v427_v18  ;;  %v8145_v15 = vcombine.high %v498_v9, %v506_v10  ;;  %v514_v17 = vld [vmem:[#allocation5 + $0xd20] sm:$0xff] }
 0x230   :  { %5638 = vmatpush1.bf16.msra.mxu0 %v7968_v24  ;;  %5810 = vmatpush1.bf16.msra.mxu1 %v7970_v25  ;;  %v434_v24 = vld [vmem:[#allocation5 + $0xaa0] sm:$0xff] }
 0x231   :  { %5639 = vmatprep.subr.bf16.mxu0 %v7985_v26  ;;  %5811 = vmatprep.subr.bf16.mxu1 %v7987_v27  ;;  %v442_v25 = vld [vmem:[#allocation5 + $0xae0] sm:$0xff]  ;;  %v435_v26 = vld [vmem:[#allocation5 + $0xaa8] sm:$0xff] }
 0x232   :  { %v443_v27 = vld [vmem:[#allocation5 + $0xae8] sm:$0xff]  ;;  %v8081_v32 = vcombine.high %v434_v24, %v442_v25  ;;  %v8080_v47 = vcombine.low %v434_v24, %v442_v25  ;;  %v522_v18 = vld [vmem:[#allocation5 + $0xd60] sm:$0xff] }
 0x233   :  { %v8083_v37 = vcombine.high %v435_v26, %v443_v27  ;;  %v8082_v49 = vcombine.low %v435_v26, %v443_v27  ;;  %v8161_v24 = vcombine.high %v514_v17, %v522_v18  ;;  %v530_v26 = vld [vmem:[#allocation5 + $0xda0] sm:$0xff] }
 0x234   :  { %5640 = vmatpush1.bf16.msra.mxu0 %v7984_v38  ;;  %5812 = vmatpush1.bf16.msra.mxu1 %v7986_v39  ;;  %v450_v38 = vld [vmem:[#allocation5 + $0xb20] sm:$0xff] }
 0x235   :  { %5652 = vmatprep.subr.bf16.mxu0 %v8001_v43  ;;  %5824 = vmatprep.subr.bf16.mxu1 %v8003_v44  ;;  %v458_v39 = vld [vmem:[#allocation5 + $0xb60] sm:$0xff]  ;;  %v451_v43 = vld [vmem:[#allocation5 + $0xb28] sm:$0xff] }
 0x236   :  { %v459_v44 = vld [vmem:[#allocation5 + $0xb68] sm:$0xff]  ;;  %v8097_v51 = vcombine.high %v450_v38, %v458_v39  ;;  %v8096_v57 = vcombine.low %v450_v38, %v458_v39  ;;  %v538_v27 = vld [vmem:[#allocation5 + $0xde0] sm:$0xff] }
 0x237   :  { %5642 = vmatmul.mubr.bf16.vlgmr.msra.gmra.mrb[8].mxu0 %v9161_v59  ;;  %5814 = vmatmul.mubr.bf16.vlgmr.msra.gmra.mrb[8].mxu1 %v9161_v59  ;;  %v8099_v52 = vcombine.high %v451_v43, %v459_v44  ;;  %v8098_v58 = vcombine.low %v451_v43, %v459_v44  ;;  %v8177_v38 = vcombine.high %v530_v26, %v538_v27  ;;  %v546_v43 = vld [vmem:[#allocation5 + $0xe20] sm:$0xff] }
 0x238   :  { %5653 = vmatpush1.bf16.msra.mxu0 %v8000_v53  ;;  %5825 = vmatpush1.bf16.msra.mxu1 %v8002_v54  ;;  %v466_v53 = vld [vmem:[#allocation5 + $0xba0] sm:$0xff] }
 0x239   :  { %5654 = vmatprep.subr.bf16.mxu0 %v8017_v55  ;;  %5826 = vmatprep.subr.bf16.mxu1 %v8019_v56  ;;  %v474_v54 = vld [vmem:[#allocation5 + $0xbe0] sm:$0xff]  ;;  %v467_v55 = vld [vmem:[#allocation5 + $0xba8] sm:$0xff] }
 0x23a   :  { %5684 = vmatprep.mubr.bf16.mxu0 %v9162_v8  ;;  %5856 = vmatprep.mubr.bf16.mxu1 %v9162_v8  ;;  %v475_v56 = vld [vmem:[#allocation5 + $0xbe8] sm:$0xff]  ;;  %v8113_v59 = vcombine.high %v466_v53, %v474_v54  ;;  %v554_v44 = vld [vmem:[#allocation5 + $0xe60] sm:$0xff] }
 0x23b   :  { %v8115_v61 = vcombine.high %v467_v55, %v475_v56  ;;  %v8114_v6 = vcombine.low %v467_v55, %v475_v56  ;;  %v562_v55 = vld [vmem:[#allocation5 + $0xea0] sm:$0xff] }
 0x23c   :  { %5655 = vmatpush1.bf16.msra.mxu0 %v8016_v1  ;;  %5827 = vmatpush1.bf16.msra.mxu1 %v8018_v2  ;;  %v490_v1 = vld [vmem:[#allocation5 + $0xc60] sm:$0xff]  ;;  %v483_v2 = vld [vmem:[#allocation5 + $0xc28] sm:$0xff] }
 0x23d   :  { %5656 = vmatprep.subr.bf16.mxu0 %v8033_v3  ;;  %5828 = vmatprep.subr.bf16.mxu1 %v8035_v5  ;;  %v491_v3 = vld [vmem:[#allocation5 + $0xc68] sm:$0xff]  ;;  %v8112_v5 = vcombine.low %v466_v53, %v474_v54  ;;  %v8129_v7 = vcombine.high %v482_v62, %v490_v1  ;;  %v8193_v53 = vcombine.high %v546_v43, %v554_v44  ;;  %v570_v56 = vld [vmem:[#allocation5 + $0xee0] sm:$0xff] }
 0x23e   :  { %v8131_v8 = vcombine.high %v483_v2, %v491_v3 }
 0x240   :  { %5657 = vmatpush1.bf16.msra.mxu0 %v8032_v11  ;;  %5829 = vmatpush1.bf16.msra.mxu1 %v8034_v12  ;;  %v499_v11 = vld [vmem:[#allocation5 + $0xca8] sm:$0xff] }
 0x241   :  { %5658 = vmatprep.subr.bf16.mxu0 %v8049_v13  ;;  %5830 = vmatprep.subr.bf16.mxu1 %v8051_v14  ;;  %v507_v12 = vld [vmem:[#allocation5 + $0xce8] sm:$0xff]  ;;  %v8128_v13 = vcombine.low %v482_v62, %v490_v1  ;;  %v8130_v14 = vcombine.low %v483_v2, %v491_v3  ;;  %v8209_v62 = vcombine.high %v562_v55, %v570_v56  ;;  %v578_v2 = vld [vmem:[#allocation5 + $0xf20] sm:$0xff] }
 0x242   :  { %v8147_v16 = vcombine.high %v499_v11, %v507_v12  ;;  %v586_v3 = vld [vmem:[#allocation5 + $0xf60] sm:$0xff] }
 0x244   :  { %5659 = vmatpush1.bf16.msra.mxu0 %v8048_v19  ;;  %5831 = vmatpush1.bf16.msra.mxu1 %v8050_v21  ;;  %v515_v19 = vld [vmem:[#allocation5 + $0xd28] sm:$0xff] }
 0x245   :  { %5660 = vmatprep.subr.bf16.mxu0 %v8065_v22  ;;  %5832 = vmatprep.subr.bf16.mxu1 %v8067_v23  ;;  %v523_v21 = vld [vmem:[#allocation5 + $0xd68] sm:$0xff]  ;;  %v8144_v22 = vcombine.low %v498_v9, %v506_v10  ;;  %v8146_v23 = vcombine.low %v499_v11, %v507_v12  ;;  %v8225_v9 = vcombine.high %v578_v2, %v586_v3  ;;  %v594_v11 = vld [vmem:[#allocation5 + $0xfa0] sm:$0xff] }
 0x246   :  { %v8163_v25 = vcombine.high %v515_v19, %v523_v21  ;;  %v602_v12 = vld [vmem:[#allocation5 + $0xfe0] sm:$0xff] }
 0x248   :  { %5661 = vmatpush1.bf16.msra.mxu0 %v8064_v30  ;;  %5833 = vmatpush1.bf16.msra.mxu1 %v8066_v31  ;;  %v531_v30 = vld [vmem:[#allocation5 + $0xda8] sm:$0xff] }
 0x249   :  { %5662 = vmatprep.subr.bf16.mxu0 %v8081_v32  ;;  %5834 = vmatprep.subr.bf16.mxu1 %v8083_v37  ;;  %v539_v31 = vld [vmem:[#allocation5 + $0xde8] sm:$0xff]  ;;  %v8160_v32 = vcombine.low %v514_v17, %v522_v18  ;;  %v8162_v37 = vcombine.low %v515_v19, %v523_v21  ;;  %v8241_v17 = vcombine.high %v594_v11, %v602_v12  ;;  %v610_v19 = vld [vmem:[#allocation5 + $0x1020] sm:$0xff] }
 0x24a   :  { %v8179_v39 = vcombine.high %v531_v30, %v539_v31  ;;  %v618_v21 = vld [vmem:[#allocation5 + $0x1060] sm:$0xff] }
 0x24c   :  { %5663 = vmatpush1.bf16.msra.mxu0 %v8080_v47  ;;  %5835 = vmatpush1.bf16.msra.mxu1 %v8082_v49  ;;  %v547_v47 = vld [vmem:[#allocation5 + $0xe28] sm:$0xff] }
 0x24d   :  { %5664 = vmatprep.subr.bf16.mxu0 %v8097_v51  ;;  %5836 = vmatprep.subr.bf16.mxu1 %v8099_v52  ;;  %v555_v49 = vld [vmem:[#allocation5 + $0xe68] sm:$0xff]  ;;  %v8176_v51 = vcombine.low %v530_v26, %v538_v27  ;;  %v8178_v52 = vcombine.low %v531_v30, %v539_v31  ;;  %v8257_v26 = vcombine.high %v610_v19, %v618_v21  ;;  %v626_v30 = vld [vmem:[#allocation5 + $0x10a0] sm:$0xff] }
 0x24e   :  { %v8195_v54 = vcombine.high %v547_v47, %v555_v49  ;;  %v634_v31 = vld [vmem:[#allocation5 + $0x10e0] sm:$0xff] }
 0x250   :  { %5665 = vmatpush1.bf16.msra.mxu0 %v8096_v57  ;;  %5837 = vmatpush1.bf16.msra.mxu1 %v8098_v58  ;;  %v563_v57 = vld [vmem:[#allocation5 + $0xea8] sm:$0xff] }
 0x251   :  { %5666 = vmatprep.subr.bf16.mxu0 %v8113_v59  ;;  %5838 = vmatprep.subr.bf16.mxu1 %v8115_v61  ;;  %v571_v58 = vld [vmem:[#allocation5 + $0xee8] sm:$0xff]  ;;  %v8192_v59 = vcombine.low %v546_v43, %v554_v44  ;;  %v8194_v61 = vcombine.low %v547_v47, %v555_v49  ;;  %v8273_v43 = vcombine.high %v626_v30, %v634_v31  ;;  %v642_v47 = vld [vmem:[#allocation5 + $0x1120] sm:$0xff] }
 0x252   :  { %v8211_v1 = vcombine.high %v563_v57, %v571_v58  ;;  %v650_v49 = vld [vmem:[#allocation5 + $0x1160] sm:$0xff] }
 0x254   :  { %5667 = vmatpush1.bf16.msra.mxu0 %v8112_v5  ;;  %5839 = vmatpush1.bf16.msra.mxu1 %v8114_v6  ;;  %v579_v5 = vld [vmem:[#allocation5 + $0xf28] sm:$0xff] }
 0x255   :  { %5668 = vmatprep.subr.bf16.mxu0 %v8129_v7  ;;  %5840 = vmatprep.subr.bf16.mxu1 %v8131_v8  ;;  %v587_v6 = vld [vmem:[#allocation5 + $0xf68] sm:$0xff]  ;;  %v8208_v7 = vcombine.low %v562_v55, %v570_v56  ;;  %v8210_v8 = vcombine.low %v563_v57, %v571_v58  ;;  %v8289_v56 = vcombine.high %v642_v47, %v650_v49  ;;  %v658_v58 = vld [vmem:[#allocation5 + $0x11a0] sm:$0xff] }
 0x256   :  { %v8227_v10 = vcombine.high %v579_v5, %v587_v6 }
 0x258   :  { %5669 = vmatpush1.bf16.msra.mxu0 %v8128_v13  ;;  %5841 = vmatpush1.bf16.msra.mxu1 %v8130_v14  ;;  %v595_v13 = vld [vmem:[#allocation5 + $0xfa8] sm:$0xff] }
 0x259   :  { %5670 = vmatprep.subr.bf16.mxu0 %v8145_v15  ;;  %5842 = vmatprep.subr.bf16.mxu1 %v8147_v16  ;;  %v603_v14 = vld [vmem:[#allocation5 + $0xfe8] sm:$0xff]  ;;  %v8224_v15 = vcombine.low %v578_v2, %v586_v3  ;;  %v8226_v16 = vcombine.low %v579_v5, %v587_v6  ;;  %v8288_v2 = vcombine.low %v642_v47, %v650_v49 }
 0x25a   :  { %v8243_v18 = vcombine.high %v595_v13, %v603_v14 }
 0x25c   :  { %5671 = vmatpush1.bf16.msra.mxu0 %v8144_v22  ;;  %5843 = vmatpush1.bf16.msra.mxu1 %v8146_v23  ;;  %v611_v22 = vld [vmem:[#allocation5 + $0x1028] sm:$0xff] }
 0x25d   :  { %5672 = vmatprep.subr.bf16.mxu0 %v8161_v24  ;;  %5844 = vmatprep.subr.bf16.mxu1 %v8163_v25  ;;  %v619_v23 = vld [vmem:[#allocation5 + $0x1068] sm:$0xff]  ;;  %v8240_v24 = vcombine.low %v594_v11, %v602_v12  ;;  %v8242_v25 = vcombine.low %v595_v13, %v603_v14 }
 0x25e   :  { %v8259_v27 = vcombine.high %v611_v22, %v619_v23 }
 0x260   :  { %5673 = vmatpush1.bf16.msra.mxu0 %v8160_v32  ;;  %5845 = vmatpush1.bf16.msra.mxu1 %v8162_v37  ;;  %v627_v32 = vld [vmem:[#allocation5 + $0x10a8] sm:$0xff] }
 0x261   :  { %5674 = vmatprep.subr.bf16.mxu0 %v8177_v38  ;;  %5846 = vmatprep.subr.bf16.mxu1 %v8179_v39  ;;  %v635_v37 = vld [vmem:[#allocation5 + $0x10e8] sm:$0xff]  ;;  %v8256_v38 = vcombine.low %v610_v19, %v618_v21  ;;  %v8258_v39 = vcombine.low %v611_v22, %v619_v23 }
 0x262   :  { %v8275_v44 = vcombine.high %v627_v32, %v635_v37  ;;  %v8274_v55 = vcombine.low %v627_v32, %v635_v37 }
 0x264   :  { %5675 = vmatpush1.bf16.msra.mxu0 %v8176_v51  ;;  %5847 = vmatpush1.bf16.msra.mxu1 %v8178_v52  ;;  %v9163_v51 = vld [vmem:[#allocation2 + $0x8] ss:$28 sps:$4 sm:$0xff]  }
 0x265   :  { %5676 = vmatprep.subr.bf16.mxu0 %v8193_v53  ;;  %5848 = vmatprep.subr.bf16.mxu1 %v8195_v54  ;;  %v643_v52 = vld [vmem:[#allocation5 + $0x1128] sm:$0xff]  ;;  %v8272_v54 = vcombine.low %v626_v30, %v634_v31 }
 0x266   :  { %v651_v53 = vld [vmem:[#allocation5 + $0x1168] sm:$0xff] }
 0x267   :  { %v8291_v57 = vcombine.high %v643_v52, %v651_v53  ;;  %v8290_v3 = vcombine.low %v643_v52, %v651_v53  ;;  %v738_v53 = vld [vmem:[#allocation5 + $0x1420] sm:$0xff] }
 0x268   :  { %5677 = vmatpush1.bf16.msra.mxu0 %v8192_v59  ;;  %5849 = vmatpush1.bf16.msra.mxu1 %v8194_v61  ;;  %v666_v59 = vld [vmem:[#allocation5 + $0x11e0] sm:$0xff]  ;;  %v9164_v61 = vld [vmem:[#allocation2 + $0x14] ss:$28 sps:$4 sm:$0xff]  }
 0x269   :  { %5678 = vmatprep.subr.bf16.mxu0 %v8209_v62  ;;  %5850 = vmatprep.subr.bf16.mxu1 %v8211_v1  ;;  %v659_v62 = vld [vmem:[#allocation5 + $0x11a8] sm:$0xff]  ;;  %v8305_v5 = vcombine.high %v658_v58, %v666_v59  ;;  %v8304_v11 = vcombine.low %v658_v58, %v666_v59 }
 0x26a   :  { %v667_v1 = vld [vmem:[#allocation5 + $0x11e8] sm:$0xff] }
 0x26b   :  { %v8307_v6 = vcombine.high %v659_v62, %v667_v1  ;;  %v8306_v12 = vcombine.low %v659_v62, %v667_v1  ;;  %v754_v62 = vld [vmem:[#allocation5 + $0x14a0] sm:$0xff] }
 0x26c   :  { %5679 = vmatpush1.bf16.msra.mxu0 %v8208_v7  ;;  %5851 = vmatpush1.bf16.msra.mxu1 %v8210_v8  ;;  %v674_v7 = vld [vmem:[#allocation5 + $0x1220] sm:$0xff] }
 0x26d   :  { %5680 = vmatprep.subr.bf16.mxu0 %v8225_v9  ;;  %5852 = vmatprep.subr.bf16.mxu1 %v8227_v10  ;;  %v682_v8 = vld [vmem:[#allocation5 + $0x1260] sm:$0xff]  ;;  %v675_v9 = vld [vmem:[#allocation5 + $0x1228] sm:$0xff] }
 0x26e   :  { %v683_v10 = vld [vmem:[#allocation5 + $0x1268] sm:$0xff]  ;;  %v8321_v13 = vcombine.high %v674_v7, %v682_v8  ;;  %v8320_v19 = vcombine.low %v674_v7, %v682_v8  ;;  %v762_v1 = vld [vmem:[#allocation5 + $0x14e0] sm:$0xff] }
 0x26f   :  { %v8323_v14 = vcombine.high %v675_v9, %v683_v10  ;;  %v8322_v21 = vcombine.low %v675_v9, %v683_v10  ;;  %v8401_v7 = vcombine.high %v754_v62, %v762_v1  ;;  %v770_v9 = vld [vmem:[#allocation5 + $0x1520] sm:$0xff] }
 0x270   :  { %5681 = vmatpush1.bf16.msra.mxu0 %v8224_v15  ;;  %5853 = vmatpush1.bf16.msra.mxu1 %v8226_v16  ;;  %v690_v15 = vld [vmem:[#allocation5 + $0x12a0] sm:$0xff] }
 0x271   :  { %5682 = vmatprep.subr.bf16.mxu0 %v8241_v17  ;;  %5854 = vmatprep.subr.bf16.mxu1 %v8243_v18  ;;  %v698_v16 = vld [vmem:[#allocation5 + $0x12e0] sm:$0xff]  ;;  %v691_v17 = vld [vmem:[#allocation5 + $0x12a8] sm:$0xff] }
 0x272   :  { %v699_v18 = vld [vmem:[#allocation5 + $0x12e8] sm:$0xff]  ;;  %v8337_v22 = vcombine.high %v690_v15, %v698_v16  ;;  %v8336_v30 = vcombine.low %v690_v15, %v698_v16  ;;  %v778_v10 = vld [vmem:[#allocation5 + $0x1560] sm:$0xff] }
 0x273   :  { %v8339_v23 = vcombine.high %v691_v17, %v699_v18  ;;  %v8338_v31 = vcombine.low %v691_v17, %v699_v18  ;;  %v8417_v15 = vcombine.high %v770_v9, %v778_v10  ;;  %v786_v17 = vld [vmem:[#allocation5 + $0x15a0] sm:$0xff] }
 0x274   :  { %5683 = vmatpush1.bf16.msra.mxu0 %v8240_v24  ;;  %5855 = vmatpush1.bf16.msra.mxu1 %v8242_v25  ;;  %v706_v24 = vld [vmem:[#allocation5 + $0x1320] sm:$0xff] }
 0x275   :  { %5695 = vmatprep.subr.bf16.mxu0 %v8257_v26  ;;  %5867 = vmatprep.subr.bf16.mxu1 %v8259_v27  ;;  %v714_v25 = vld [vmem:[#allocation5 + $0x1360] sm:$0xff]  ;;  %v707_v26 = vld [vmem:[#allocation5 + $0x1328] sm:$0xff] }
 0x276   :  { %v715_v27 = vld [vmem:[#allocation5 + $0x1368] sm:$0xff]  ;;  %v8353_v32 = vcombine.high %v706_v24, %v714_v25  ;;  %v8352_v47 = vcombine.low %v706_v24, %v714_v25  ;;  %v794_v18 = vld [vmem:[#allocation5 + $0x15e0] sm:$0xff] }
 0x277   :  { %5685 = vmatmul.mubr.bf16.vlgmr.msra.gmra.mrb[8].mxu0 %v9163_v51  ;;  %5857 = vmatmul.mubr.bf16.vlgmr.msra.gmra.mrb[8].mxu1 %v9163_v51  ;;  %v8355_v37 = vcombine.high %v707_v26, %v715_v27  ;;  %v8354_v49 = vcombine.low %v707_v26, %v715_v27  ;;  %v8433_v24 = vcombine.high %v786_v17, %v794_v18  ;;  %v802_v26 = vld [vmem:[#allocation5 + $0x1620] sm:$0xff] }
 0x278   :  { %5696 = vmatpush1.bf16.msra.mxu0 %v8256_v38  ;;  %5868 = vmatpush1.bf16.msra.mxu1 %v8258_v39  ;;  %v722_v38 = vld [vmem:[#allocation5 + $0x13a0] sm:$0xff] }
 0x279   :  { %5697 = vmatprep.subr.bf16.mxu0 %v8273_v43  ;;  %5869 = vmatprep.subr.bf16.mxu1 %v8275_v44  ;;  %v730_v39 = vld [vmem:[#allocation5 + $0x13e0] sm:$0xff]  ;;  %v723_v43 = vld [vmem:[#allocation5 + $0x13a8] sm:$0xff] }
 0x27a   :  { %5727 = vmatprep.mubr.bf16.mxu0 %v9164_v61  ;;  %5899 = vmatprep.mubr.bf16.mxu1 %v9164_v61  ;;  %v731_v44 = vld [vmem:[#allocation5 + $0x13e8] sm:$0xff]  ;;  %v8369_v51 = vcombine.high %v722_v38, %v730_v39  ;;  %v810_v27 = vld [vmem:[#allocation5 + $0x1660] sm:$0xff] }
 0x27b   :  { %v8371_v52 = vcombine.high %v723_v43, %v731_v44  ;;  %v8370_v58 = vcombine.low %v723_v43, %v731_v44  ;;  %v818_v43 = vld [vmem:[#allocation5 + $0x16a0] sm:$0xff] }
 0x27c   :  { %5698 = vmatpush1.bf16.msra.mxu0 %v8272_v54  ;;  %5870 = vmatpush1.bf16.msra.mxu1 %v8274_v55  ;;  %v746_v54 = vld [vmem:[#allocation5 + $0x1460] sm:$0xff]  ;;  %v739_v55 = vld [vmem:[#allocation5 + $0x1428] sm:$0xff] }
 0x27d   :  { %5699 = vmatprep.subr.bf16.mxu0 %v8289_v56  ;;  %5871 = vmatprep.subr.bf16.mxu1 %v8291_v57  ;;  %v747_v56 = vld [vmem:[#allocation5 + $0x1468] sm:$0xff]  ;;  %v8368_v57 = vcombine.low %v722_v38, %v730_v39  ;;  %v8385_v59 = vcombine.high %v738_v53, %v746_v54  ;;  %v8449_v38 = vcombine.high %v802_v26, %v810_v27  ;;  %v826_v44 = vld [vmem:[#allocation5 + $0x16e0] sm:$0xff] }
 0x27e   :  { %v8387_v61 = vcombine.high %v739_v55, %v747_v56 }
 0x280   :  { %5700 = vmatpush1.bf16.msra.mxu0 %v8288_v2  ;;  %5872 = vmatpush1.bf16.msra.mxu1 %v8290_v3  ;;  %v755_v2 = vld [vmem:[#allocation5 + $0x14a8] sm:$0xff] }
 0x281   :  { %5701 = vmatprep.subr.bf16.mxu0 %v8305_v5  ;;  %5873 = vmatprep.subr.bf16.mxu1 %v8307_v6  ;;  %v763_v3 = vld [vmem:[#allocation5 + $0x14e8] sm:$0xff]  ;;  %v8384_v5 = vcombine.low %v738_v53, %v746_v54  ;;  %v8386_v6 = vcombine.low %v739_v55, %v747_v56  ;;  %v8465_v53 = vcombine.high %v818_v43, %v826_v44  ;;  %v834_v55 = vld [vmem:[#allocation5 + $0x1720] sm:$0xff] }
 0x282   :  { %v8403_v8 = vcombine.high %v755_v2, %v763_v3  ;;  %v842_v56 = vld [vmem:[#allocation5 + $0x1760] sm:$0xff] }
 0x284   :  { %5702 = vmatpush1.bf16.msra.mxu0 %v8304_v11  ;;  %5874 = vmatpush1.bf16.msra.mxu1 %v8306_v12  ;;  %v771_v11 = vld [vmem:[#allocation5 + $0x1528] sm:$0xff] }
 0x285   :  { %5703 = vmatprep.subr.bf16.mxu0 %v8321_v13  ;;  %5875 = vmatprep.subr.bf16.mxu1 %v8323_v14  ;;  %v779_v12 = vld [vmem:[#allocation5 + $0x1568] sm:$0xff]  ;;  %v8400_v13 = vcombine.low %v754_v62, %v762_v1  ;;  %v8402_v14 = vcombine.low %v755_v2, %v763_v3  ;;  %v8481_v62 = vcombine.high %v834_v55, %v842_v56  ;;  %v850_v2 = vld [vmem:[#allocation5 + $0x17a0] sm:$0xff] }
 0x286   :  { %v8419_v16 = vcombine.high %v771_v11, %v779_v12  ;;  %v858_v3 = vld [vmem:[#allocation5 + $0x17e0] sm:$0xff] }
 0x288   :  { %5704 = vmatpush1.bf16.msra.mxu0 %v8320_v19  ;;  %5876 = vmatpush1.bf16.msra.mxu1 %v8322_v21  ;;  %v787_v19 = vld [vmem:[#allocation5 + $0x15a8] sm:$0xff] }
 0x289   :  { %5705 = vmatprep.subr.bf16.mxu0 %v8337_v22  ;;  %5877 = vmatprep.subr.bf16.mxu1 %v8339_v23  ;;  %v795_v21 = vld [vmem:[#allocation5 + $0x15e8] sm:$0xff]  ;;  %v8416_v22 = vcombine.low %v770_v9, %v778_v10  ;;  %v8418_v23 = vcombine.low %v771_v11, %v779_v12  ;;  %v8497_v9 = vcombine.high %v850_v2, %v858_v3  ;;  %v866_v11 = vld [vmem:[#allocation5 + $0x1820] sm:$0xff] }
 0x28a   :  { %v8435_v25 = vcombine.high %v787_v19, %v795_v21  ;;  %v874_v12 = vld [vmem:[#allocation5 + $0x1860] sm:$0xff] }
 0x28c   :  { %5706 = vmatpush1.bf16.msra.mxu0 %v8336_v30  ;;  %5878 = vmatpush1.bf16.msra.mxu1 %v8338_v31  ;;  %v803_v30 = vld [vmem:[#allocation5 + $0x1628] sm:$0xff] }
 0x28d   :  { %5707 = vmatprep.subr.bf16.mxu0 %v8353_v32  ;;  %5879 = vmatprep.subr.bf16.mxu1 %v8355_v37  ;;  %v811_v31 = vld [vmem:[#allocation5 + $0x1668] sm:$0xff]  ;;  %v8432_v32 = vcombine.low %v786_v17, %v794_v18  ;;  %v8434_v37 = vcombine.low %v787_v19, %v795_v21  ;;  %v8513_v17 = vcombine.high %v866_v11, %v874_v12  ;;  %v100_v19 = vld [vmem:[#allocation5 + $0x30] sm:$0xff] }
 0x28e   :  { %v8451_v39 = vcombine.high %v803_v30, %v811_v31  ;;  %v108_v21 = vld [vmem:[#allocation5 + $0x70] sm:$0xff] }
 0x290   :  { %5708 = vmatpush1.bf16.msra.mxu0 %v8352_v47  ;;  %5880 = vmatpush1.bf16.msra.mxu1 %v8354_v49  ;;  %v819_v47 = vld [vmem:[#allocation5 + $0x16a8] sm:$0xff] }
 0x291   :  { %5709 = vmatprep.subr.bf16.mxu0 %v8369_v51  ;;  %5881 = vmatprep.subr.bf16.mxu1 %v8371_v52  ;;  %v827_v49 = vld [vmem:[#allocation5 + $0x16e8] sm:$0xff]  ;;  %v8448_v51 = vcombine.low %v802_v26, %v810_v27  ;;  %v8450_v52 = vcombine.low %v803_v30, %v811_v31  ;;  %v7749_v26 = vcombine.high %v100_v19, %v108_v21  ;;  %v9165_v27 = vld [vmem:[#allocation2 + $0x10] ss:$28 sps:$4 sm:$0xff]  }
 0x292   :  { %v8467_v54 = vcombine.high %v819_v47, %v827_v49  ;;  %v116_v31 = vld [vmem:[#allocation5 + $0xb0] sm:$0xff] }
 0x294   :  { %5710 = vmatpush1.bf16.msra.mxu0 %v8368_v57  ;;  %5882 = vmatpush1.bf16.msra.mxu1 %v8370_v58  ;;  %v835_v57 = vld [vmem:[#allocation5 + $0x1728] sm:$0xff] }
 0x295   :  { %5711 = vmatprep.subr.bf16.mxu0 %v8385_v59  ;;  %5883 = vmatprep.subr.bf16.mxu1 %v8387_v61  ;;  %v843_v58 = vld [vmem:[#allocation5 + $0x1768] sm:$0xff]  ;;  %v8464_v59 = vcombine.low %v818_v43, %v826_v44  ;;  %v8466_v61 = vcombine.low %v819_v47, %v827_v49  ;;  %v132_v49 = vld [vmem:[#allocation5 + $0x130] sm:$0xff] }
 0x296   :  { %v8483_v1 = vcombine.high %v835_v57, %v843_v58 }
 0x298   :  { %5712 = vmatpush1.bf16.msra.mxu0 %v8384_v5  ;;  %5884 = vmatpush1.bf16.msra.mxu1 %v8386_v6  ;;  %v851_v5 = vld [vmem:[#allocation5 + $0x17a8] sm:$0xff] }
 0x299   :  { %5713 = vmatprep.subr.bf16.mxu0 %v8401_v7  ;;  %5885 = vmatprep.subr.bf16.mxu1 %v8403_v8  ;;  %v859_v6 = vld [vmem:[#allocation5 + $0x17e8] sm:$0xff]  ;;  %v8480_v7 = vcombine.low %v834_v55, %v842_v56  ;;  %v8482_v8 = vcombine.low %v835_v57, %v843_v58  ;;  %v900_v58 = vsub.s32 4, %v9425_v50 }
 0x29a   :  { %v8499_v10 = vcombine.high %v851_v5, %v859_v6 }
 0x29c   :  { %5714 = vmatpush1.bf16.msra.mxu0 %v8400_v13  ;;  %5886 = vmatpush1.bf16.msra.mxu1 %v8402_v14  ;;  %v867_v13 = vld [vmem:[#allocation5 + $0x1828] sm:$0xff] }
 0x29d   :  { %5715 = vmatprep.subr.bf16.mxu0 %v8417_v15  ;;  %5887 = vmatprep.subr.bf16.mxu1 %v8419_v16  ;;  %v875_v14 = vld [vmem:[#allocation5 + $0x1868] sm:$0xff]  ;;  %v8496_v15 = vcombine.low %v850_v2, %v858_v3  ;;  %v8498_v16 = vcombine.low %v851_v5, %v859_v6  ;;  %v156_v2 = vld [vmem:[#allocation5 + $0x1f0] sm:$0xff]  ;;  %v912_v5 = vsub.s32 7, %v9425_v50  ;;  %v149_v6 = vld [vmem:[#allocation5 + $0x1b8] sm:$0xff] }
 0x29e   :  { %v8515_v18 = vcombine.high %v867_v13, %v875_v14  ;;  %v9167_v3 = vld [vmem:[#allocation2 + $0x4] ss:$28 sps:$4 sm:$0xff]  }
 0x2a0   :  { %5716 = vmatpush1.bf16.msra.mxu0 %v8416_v22  ;;  %5888 = vmatpush1.bf16.msra.mxu1 %v8418_v23  ;;  %v8512_v22 = vcombine.low %v866_v11, %v874_v12  ;;  %v101_v23 = vld [vmem:[#allocation5 + $0x38] sm:$0xff] }
 0x2a1   :  { %5717 = vmatprep.subr.bf16.mxu0 %v8433_v24  ;;  %5889 = vmatprep.subr.bf16.mxu1 %v8435_v25  ;;  %v109_v24 = vld [vmem:[#allocation5 + $0x78] sm:$0xff]  ;;  %v8514_v25 = vcombine.low %v867_v13, %v875_v14  ;;  %v164_v13 = vld [vmem:[#allocation5 + $0x230] sm:$0xff] }
 0x2a2   :  { %v7751_v30 = vcombine.high %v101_v23, %v109_v24  ;;  %v7750_v43 = vcombine.low %v101_v23, %v109_v24  ;;  %v172_v14 = vld [vmem:[#allocation5 + $0x270] sm:$0xff] }
 0x2a4   :  { %5718 = vmatpush1.bf16.msra.mxu0 %v8432_v32  ;;  %5890 = vmatpush1.bf16.msra.mxu1 %v8434_v37  ;;  %v124_v32 = vld [vmem:[#allocation5 + $0xf0] sm:$0xff]  ;;  %v117_v37 = vld [vmem:[#allocation5 + $0xb8] sm:$0xff] }
 0x2a5   :  { %5719 = vmatprep.subr.bf16.mxu0 %v8449_v38  ;;  %5891 = vmatprep.subr.bf16.mxu1 %v8451_v39  ;;  %v125_v38 = vld [vmem:[#allocation5 + $0xf8] sm:$0xff]  ;;  %v7748_v39 = vcombine.low %v100_v19, %v108_v21  ;;  %v7765_v44 = vcombine.high %v116_v31, %v124_v32  ;;  %v7764_v55 = vcombine.low %v116_v31, %v124_v32 }
 0x2a6   :  { %v7767_v47 = vcombine.high %v117_v37, %v125_v38  ;;  %v7766_v56 = vcombine.low %v117_v37, %v125_v38  ;;  %v165_v19 = vld [vmem:[#allocation5 + $0x238] sm:$0xff]  ;;  %v7813_v31 = vcombine.high %v164_v13, %v172_v14 }
 0x2a7   :  { %v173_v21 = vld [vmem:[#allocation5 + $0x278] sm:$0xff] }
 0x2a8   :  { %5720 = vmatpush1.bf16.msra.mxu0 %v8448_v51  ;;  %5892 = vmatpush1.bf16.msra.mxu1 %v8450_v52  ;;  %v140_v51 = vld [vmem:[#allocation5 + $0x170] sm:$0xff]  ;;  %v9166_v52 = vld [vmem:[#allocation2 + $0x18] ss:$28 sps:$4 sm:$0xff]  }
 0x2a9   :  { %5721 = vmatprep.subr.bf16.mxu0 %v8465_v53  ;;  %5893 = vmatprep.subr.bf16.mxu1 %v8467_v54  ;;  %v133_v53 = vld [vmem:[#allocation5 + $0x138] sm:$0xff]  ;;  %v7781_v57 = vcombine.high %v132_v49, %v140_v51 }
 0x2aa   :  { %v141_v54 = vld [vmem:[#allocation5 + $0x178] sm:$0xff] }
 0x2ac   :  { %5722 = vmatpush1.bf16.msra.mxu0 %v8464_v59  ;;  %5894 = vmatpush1.bf16.msra.mxu1 %v8466_v61  ;;  %v7783_v59 = vcombine.high %v133_v53, %v141_v54  ;;  %v908_v61 = vsub.s32 6, %v9425_v50 }
 0x2ad   :  { %5723 = vmatprep.subr.bf16.mxu0 %v8481_v62  ;;  %5895 = vmatprep.subr.bf16.mxu1 %v8483_v1  ;;  %v904_v62 = vsub.s32 5, %v9425_v50  ;;  %v148_v1 = vld [vmem:[#allocation5 + $0x1b0] sm:$0xff] }
 0x2ae   :  { %v7797_v12 = vcombine.high %v148_v1, %v156_v2 }
 0x2b0   :  { %5724 = vmatpush1.bf16.msra.mxu0 %v8480_v7  ;;  %5896 = vmatpush1.bf16.msra.mxu1 %v8482_v8  ;;  %v157_v7 = vld [vmem:[#allocation5 + $0x1f8] sm:$0xff]  ;;  %v7780_v8 = vcombine.low %v132_v49, %v140_v51 }
 0x2b1   :  { %5725 = vmatprep.subr.bf16.mxu0 %v8497_v9  ;;  %5897 = vmatprep.subr.bf16.mxu1 %v8499_v10  ;;  %v7782_v9 = vcombine.low %v133_v53, %v141_v54  ;;  %v9168_v10 = vld [vmem:[#allocation7] sm:$0xff]  ;;  %v180_v53 = vld [vmem:[#allocation5 + $0x2b0] sm:$0xff] }
 0x2b2   :  { %v901_v11 = vrot.slane %v9168_v10, %v900_v58  ;;  %v913_v24 = vrot.slane %v9168_v10, %v912_v5  ;;  %v188_v54 = vld [vmem:[#allocation5 + $0x2f0] sm:$0xff] }
 0x2b4   :  { %5726 = vmatpush1.bf16.msra.mxu0 %v8496_v15  ;;  %5898 = vmatpush1.bf16.msra.mxu1 %v8498_v16  ;;  %v909_v16 = vrot.slane %v9168_v10, %v908_v61 }
 0x2b5   :  { %5738 = vmatprep.subr.bf16.mxu0 %v8513_v17  ;;  %5910 = vmatprep.subr.bf16.mxu1 %v8515_v18  ;;  %v905_v17 = vrot.slane %v9168_v10, %v904_v62  ;;  %v7799_v18 = vcombine.high %v149_v6, %v157_v7 }
 0x2b7   :  { %5728 = vmatmul.mubr.bf16.vlgmr.msra.gmra.mrb[8].mxu0 %v9165_v27  ;;  %5900 = vmatmul.mubr.bf16.vlgmr.msra.gmra.mrb[8].mxu1 %v9165_v27  ;;  %v7796_v27 = vcombine.low %v148_v1, %v156_v2  ;;  %v189_v1 = vld [vmem:[#allocation5 + $0x2f8] sm:$0xff] }
 0x2b8   :  { %5739 = vmatpush1.bf16.msra.mxu0 %v8512_v22  ;;  %5911 = vmatpush1.bf16.msra.mxu1 %v8514_v25 }
 0x2b9   :  { %5770 = vmatprep.mubr.bf16.mxu0 %v9325_v20  ;;  %5942 = vmatprep.mubr.bf16.mxu1 %v9325_v20 }
 0x2ba   :  { %5953 = vmatprep.subr.bf16.mxu0 %v7749_v26  ;;  %6125 = vmatprep.subr.bf16.mxu1 %v7751_v30  ;;  %v7798_v30 = vcombine.low %v149_v6, %v157_v7  ;;  %v7812_v6 = vcombine.low %v164_v13, %v172_v14  ;;  %v212_v14 = vld [vmem:[#allocation5 + $0x3b0] sm:$0xff] }
 0x2c3   :  { %8524 = vmatmul.mubr.msk.bf16.vlgmr.msra.gmra.mrb[8].mxu0 %vm4917_vm0, %v9166_v52  ;;  %8525 = vmatmul.mubr.msk.bf16.vlgmr.msra.gmra.mrb[8].mxu1 %vm4917_vm0, %v9166_v52 }
 0x2c4   :  { %5954 = vmatpush1.bf16.msra.mxu0 %v7748_v39  ;;  %6126 = vmatpush1.bf16.msra.mxu1 %v7750_v43  ;;  %v7815_v43 = vcombine.high %v165_v19, %v173_v21 }
 0x2c5   :  { %5955 = vmatprep.subr.bf16.mxu0 %v7765_v44  ;;  %6127 = vmatprep.subr.bf16.mxu1 %v7767_v47 }
 0x2c6   :  { %5985 = vmatprep.mubr.bf16.mxu0 %v9167_v3  ;;  %6157 = vmatprep.mubr.bf16.mxu1 %v9167_v3 }
 0x2c8   :  { %5956 = vmatpush1.bf16.msra.mxu0 %v7764_v55  ;;  %6128 = vmatpush1.bf16.msra.mxu1 %v7766_v56 }
 0x2c9   :  { %5957 = vmatprep.subr.bf16.mxu0 %v7781_v57  ;;  %6129 = vmatprep.subr.bf16.mxu1 %v7783_v59  ;;  %v181_v59 = vld [vmem:[#allocation5 + $0x2b8] sm:$0xff] }
 0x2ca   :  { %v5428_v15 = vpop.f32.mrb[4].mxu0  ;;  %v5600_v22 = vpop.f32.mrb[4].mxu1  ;;  %v7831_v10 = vcombine.high %v181_v59, %v189_v1 }
 0x2cb   :  { %v5430_v23 = vpop.f32.mrb[5].mxu0  ;;  %v5602_v25 = vpop.f32.mrb[5].mxu1  ;;  %v9481_v32 = vadd.f32 %v5428_v15, %v901_v11  ;;  %v9485_v44 = vadd.f32 %v5600_v22, %v909_v16  ;;  %v197_v15 = vld [vmem:[#allocation5 + $0x338] sm:$0xff] }
 0x2cc   :  { %5958 = vmatpush1.bf16.msra.mxu0 %v7780_v8  ;;  %v5432_v26 = vpop.f32.mrb[6].mxu0  ;;  %6130 = vmatpush1.bf16.msra.mxu1 %v7782_v9  ;;  %v5604_v38 = vpop.f32.mrb[6].mxu1  ;;  %v9487_v47 = vadd.f32 %v5430_v23, %v905_v17  ;;  %v9493_v55 = vadd.f32 %v5602_v25, %v913_v24  ;;  %v7814_v8 = vcombine.low %v165_v19, %v173_v21  ;;  %v220_v23 = vld [vmem:[#allocation5 + $0x3f0] sm:$0xff]  ;;  %v221_v25 = vld [vmem:[#allocation5 + $0x3f8] sm:$0xff] }
 0x2cd   :  { %v9483_v37 = vadd.f32 %v5432_v26, %v901_v11  ;;  %v5434_v39 = vpop.f32.mrb[7].mxu0  ;;  %5959 = vmatprep.subr.bf16.mxu0 %v7797_v12  ;;  %v9489_v49 = vadd.f32 %v5604_v38, %v909_v16  ;;  %v5606_v52 = vpop.f32.mrb[7].mxu1  ;;  %6131 = vmatprep.subr.bf16.mxu1 %v7799_v18  ;;  %v7829_v9 = vcombine.high %v180_v53, %v188_v54  ;;  %v196_v11 = vld [vmem:[#allocation5 + $0x330] sm:$0xff]  ;;  %v205_v16 = vld [vmem:[#allocation5 + $0x378] sm:$0xff] }
 0x2ce   :  { %v9491_v51 = vadd.f32 %v5434_v39, %v905_v17  ;;  %v9497_v57 = vadd.f32 %v5606_v52, %v913_v24  ;;  %v204_v12 = vld [vmem:[#allocation5 + $0x370] sm:$0xff]  ;;  %v7828_v17 = vcombine.low %v180_v53, %v188_v54  ;;  %v7830_v18 = vcombine.low %v181_v59, %v189_v1  ;;  %v213_v24 = vld [vmem:[#allocation5 + $0x3b8] sm:$0xff] }
 0x2cf   :  { %v6301_v56 = vpack.c.bf16 %v9483_v37, %v9481_v32  ;;  %v6303_v2 = vpack.c.bf16 %v9489_v49, %v9485_v44  ;;  %v7845_v22 = vcombine.high %v196_v11, %v204_v12  ;;  %v7847_v13 = vcombine.high %v197_v15, %v205_v16  ;;  %v229_v38 = vld [vmem:[#allocation5 + $0x438] sm:$0xff]  ;;  %v244_v59 = vld [vmem:[#allocation5 + $0x4b0] sm:$0xff]  ;;  %v9046_v32 = vld [vmem:[#allocation8 + $0x1f8] sm:$0xff]  }
 0x2d0   :  { %v6302_v3 = vpack.c.bf16 %v9491_v51, %v9487_v47  ;;  %5960 = vmatpush1.bf16.msra.mxu0 %v7796_v27  ;;  %v6304_v7 = vpack.c.bf16 %v9497_v57, %v9493_v55  ;;  %6132 = vmatpush1.bf16.msra.mxu1 %v7798_v30  ;;  %v7844_v19 = vcombine.low %v196_v11, %v204_v12  ;;  %v228_v30 = vld [vmem:[#allocation5 + $0x430] sm:$0xff]  ;;  %v237_v39 = vld [vmem:[#allocation5 + $0x478] sm:$0xff]  ;;  %v9118_v51 = vpop.eup %9117  ;;  %v9047_v37 = vld [vmem:[#allocation8 + $0x138] sm:$0xff]  }
 0x2d1   :  { %5961 = vmatprep.subr.bf16.mxu0 %v7813_v31  ;;  %6133 = vmatprep.subr.bf16.mxu1 %v7815_v43  ;;  %v7846_v21 = vcombine.low %v197_v15, %v205_v16  ;;  %v7861_v26 = vcombine.high %v212_v14, %v220_v23  ;;  %v7863_v27 = vcombine.high %v213_v24, %v221_v25  ;;  %v236_v31 = vld [vmem:[#allocation5 + $0x470] sm:$0xff]  ;;  %v9120_v55 = vpop.eup %9119  ;;  %v9022_v57 = vld [vmem:[#allocation8 + $0x1c8] sm:$0xff]   ;;  %v9048_v44 = vld [vmem:[#allocation8 + $0x1b8] sm:$0xff]  }
 0x2d2   :  { %v7860_v43 = vcombine.low %v212_v14, %v220_v23  ;;  %v7862_v52 = vcombine.low %v213_v24, %v221_v25  ;;  %v7877_v53 = vcombine.high %v228_v30, %v236_v31  ;;  %v7879_v54 = vcombine.high %v229_v38, %v237_v39  ;;  %v252_v1 = vld [vmem:[#allocation5 + $0x4f0] sm:$0xff] }
 0x2d3   :  { %v7893_v11 = vcombine.high %v244_v59, %v252_v1  ;;  %v260_v15 = vld [vmem:[#allocation5 + $0x530] sm:$0xff]  ;;  %9121 = vtanh.bf16 %v6302_v3  ;;  %v9021_v3 = vld [vmem:[#allocation8 + $0x148] sm:$0xff]  }
 0x2d4   :  { %5962 = vmatpush1.bf16.msra.mxu0 %v7812_v6  ;;  %6134 = vmatpush1.bf16.msra.mxu1 %v7814_v8  ;;  %v245_v6 = vld [vmem:[#allocation5 + $0x4b8] sm:$0xff]  ;;  %v268_v16 = vld [vmem:[#allocation5 + $0x570] sm:$0xff]  ;;  %9123 = vtanh.bf16 %v6304_v7 }
 0x2d5   :  { %5963 = vmatprep.subr.bf16.mxu0 %v7829_v9  ;;  %6135 = vmatprep.subr.bf16.mxu1 %v7831_v10  ;;  %v253_v8 = vld [vmem:[#allocation5 + $0x4f8] sm:$0xff]  ;;  %v7876_v9 = vcombine.low %v228_v30, %v236_v31  ;;  %v7878_v10 = vcombine.low %v229_v38, %v237_v39  ;;  %v7909_v14 = vcombine.high %v260_v15, %v268_v16  ;;  %v276_v24 = vld [vmem:[#allocation5 + $0x5b0] sm:$0xff]  ;;  %9125 = vtanh.bf16 %v6301_v56 }
 0x2d6   :  { %v7895_v12 = vcombine.high %v245_v6, %v253_v8  ;;  %v284_v25 = vld [vmem:[#allocation5 + $0x5f0] sm:$0xff]  ;;  %9127 = vtanh.bf16 %v6303_v2 }
 0x2d7   :  { %v7925_v30 = vcombine.high %v276_v24, %v284_v25  ;;  %v292_v38 = vld [vmem:[#allocation5 + $0x630] sm:$0xff] }
 0x2d8   :  { %5964 = vmatpush1.bf16.msra.mxu0 %v7828_v17  ;;  %6136 = vmatpush1.bf16.msra.mxu1 %v7830_v18  ;;  %v261_v17 = vld [vmem:[#allocation5 + $0x538] sm:$0xff]  ;;  %v300_v39 = vld [vmem:[#allocation5 + $0x670] sm:$0xff] }
 0x2d9   :  { %5965 = vmatprep.subr.bf16.mxu0 %v7845_v22  ;;  %6137 = vmatprep.subr.bf16.mxu1 %v7847_v13  ;;  %v269_v18 = vld [vmem:[#allocation5 + $0x578] sm:$0xff]  ;;  %v7892_v22 = vcombine.low %v244_v59, %v252_v1  ;;  %v7894_v13 = vcombine.low %v245_v6, %v253_v8  ;;  %v7941_v59 = vcombine.high %v292_v38, %v300_v39  ;;  %v308_v6 = vld [vmem:[#allocation5 + $0x6b0] sm:$0xff] }
 0x2da   :  { %v7911_v23 = vcombine.high %v261_v17, %v269_v18  ;;  %v316_v8 = vld [vmem:[#allocation5 + $0x6f0] sm:$0xff] }
 0x2db   :  { %v9020_v47 = vld [vmem:[#allocation8 + $0x180] sm:$0xff]  }
 0x2dc   :  { %5966 = vmatpush1.bf16.msra.mxu0 %v7844_v19  ;;  %6138 = vmatpush1.bf16.msra.mxu1 %v7846_v21  ;;  %v277_v19 = vld [vmem:[#allocation5 + $0x5b8] sm:$0xff]  ;;  %v9049_v49 = vld [vmem:[#allocation8 + $0x240] sm:$0xff]  }
 0x2dd   :  { %5967 = vmatprep.subr.bf16.mxu0 %v7861_v26  ;;  %6139 = vmatprep.subr.bf16.mxu1 %v7863_v27  ;;  %v285_v21 = vld [vmem:[#allocation5 + $0x5f8] sm:$0xff]  ;;  %v7908_v26 = vcombine.low %v260_v15, %v268_v16  ;;  %v7910_v27 = vcombine.low %v261_v17, %v269_v18  ;;  %v7957_v15 = vcombine.high %v308_v6, %v316_v8  ;;  %v324_v17 = vld [vmem:[#allocation5 + $0x730] sm:$0xff] }
 0x2de   :  { %v7927_v31 = vcombine.high %v277_v19, %v285_v21  ;;  %v332_v18 = vld [vmem:[#allocation5 + $0x770] sm:$0xff]  ;;  %v9122_v7 = vpop.eup %9121 }
 0x2df   :  { %v9050_v56 = vld [vmem:[#allocation8 + $0x2c0] sm:$0xff]  }
 0x2e0   :  { %5968 = vmatpush1.bf16.msra.mxu0 %v7860_v43  ;;  %6140 = vmatpush1.bf16.msra.mxu1 %v7862_v52  ;;  %v293_v43 = vld [vmem:[#allocation5 + $0x638] sm:$0xff]  ;;  %v9051_v2 = vld [vmem:[#allocation8 + $0x200] sm:$0xff]  }
 0x2e1   :  { %5969 = vmatprep.subr.bf16.mxu0 %v7877_v53  ;;  %6141 = vmatprep.subr.bf16.mxu1 %v7879_v54  ;;  %v301_v52 = vld [vmem:[#allocation5 + $0x678] sm:$0xff]  ;;  %v7924_v53 = vcombine.low %v276_v24, %v284_v25  ;;  %v7926_v54 = vcombine.low %v277_v19, %v285_v21  ;;  %v7973_v24 = vcombine.high %v324_v17, %v332_v18  ;;  %v340_v19 = vld [vmem:[#allocation5 + $0x7b0] sm:$0xff] }
 0x2e2   :  { %v7943_v1 = vcombine.high %v293_v43, %v301_v52  ;;  %v348_v21 = vld [vmem:[#allocation5 + $0x7f0] sm:$0xff] }
 0x2e4   :  { %5970 = vmatpush1.bf16.msra.mxu0 %v7876_v9  ;;  %6142 = vmatpush1.bf16.msra.mxu1 %v7878_v10  ;;  %v309_v9 = vld [vmem:[#allocation5 + $0x6b8] sm:$0xff] }
 0x2e5   :  { %5971 = vmatprep.subr.bf16.mxu0 %v7893_v11  ;;  %6143 = vmatprep.subr.bf16.mxu1 %v7895_v12  ;;  %v317_v10 = vld [vmem:[#allocation5 + $0x6f8] sm:$0xff]  ;;  %v7940_v11 = vcombine.low %v292_v38, %v300_v39  ;;  %v7942_v12 = vcombine.low %v293_v43, %v301_v52  ;;  %v7989_v38 = vcombine.high %v340_v19, %v348_v21  ;;  %v356_v43 = vld [vmem:[#allocation5 + $0x830] sm:$0xff] }
 0x2e6   :  { %v7959_v16 = vcombine.high %v309_v9, %v317_v10  ;;  %v364_v52 = vld [vmem:[#allocation5 + $0x870] sm:$0xff] }
 0x2e8   :  { %5972 = vmatpush1.bf16.msra.mxu0 %v7892_v22  ;;  %6144 = vmatpush1.bf16.msra.mxu1 %v7894_v13  ;;  %v325_v22 = vld [vmem:[#allocation5 + $0x738] sm:$0xff] }
 0x2e9   :  { %5973 = vmatprep.subr.bf16.mxu0 %v7909_v14  ;;  %6145 = vmatprep.subr.bf16.mxu1 %v7911_v23  ;;  %v333_v13 = vld [vmem:[#allocation5 + $0x778] sm:$0xff]  ;;  %v7956_v14 = vcombine.low %v308_v6, %v316_v8  ;;  %v7958_v23 = vcombine.low %v309_v9, %v317_v10  ;;  %v8005_v6 = vcombine.high %v356_v43, %v364_v52  ;;  %v372_v9 = vld [vmem:[#allocation5 + $0x8b0] sm:$0xff] }
 0x2ea   :  { %v7975_v25 = vcombine.high %v325_v22, %v333_v13  ;;  %v380_v10 = vld [vmem:[#allocation5 + $0x8f0] sm:$0xff] }
 0x2ec   :  { %5974 = vmatpush1.bf16.msra.mxu0 %v7908_v26  ;;  %6146 = vmatpush1.bf16.msra.mxu1 %v7910_v27  ;;  %v341_v26 = vld [vmem:[#allocation5 + $0x7b8] sm:$0xff] }
 0x2ed   :  { %5975 = vmatprep.subr.bf16.mxu0 %v7925_v30  ;;  %6147 = vmatprep.subr.bf16.mxu1 %v7927_v31  ;;  %v349_v27 = vld [vmem:[#allocation5 + $0x7f8] sm:$0xff]  ;;  %v7972_v30 = vcombine.low %v324_v17, %v332_v18  ;;  %v7974_v31 = vcombine.low %v325_v22, %v333_v13  ;;  %v8021_v17 = vcombine.high %v372_v9, %v380_v10  ;;  %v388_v22 = vld [vmem:[#allocation5 + $0x930] sm:$0xff] }
 0x2ee   :  { %v7991_v39 = vcombine.high %v341_v26, %v349_v27  ;;  %v396_v13 = vld [vmem:[#allocation5 + $0x970] sm:$0xff] }
 0x2f0   :  { %5976 = vmatpush1.bf16.msra.mxu0 %v7924_v53  ;;  %6148 = vmatpush1.bf16.msra.mxu1 %v7926_v54  ;;  %v357_v53 = vld [vmem:[#allocation5 + $0x838] sm:$0xff] }
 0x2f1   :  { %5977 = vmatprep.subr.bf16.mxu0 %v7941_v59  ;;  %6149 = vmatprep.subr.bf16.mxu1 %v7943_v1  ;;  %v365_v54 = vld [vmem:[#allocation5 + $0x878] sm:$0xff]  ;;  %v7988_v59 = vcombine.low %v340_v19, %v348_v21  ;;  %v7990_v1 = vcombine.low %v341_v26, %v349_v27  ;;  %v8037_v21 = vcombine.high %v388_v22, %v396_v13  ;;  %v404_v27 = vld [vmem:[#allocation5 + $0x9b0] sm:$0xff] }
 0x2f2   :  { %v8007_v8 = vcombine.high %v357_v53, %v365_v54 }
 0x2f4   :  { %5978 = vmatpush1.bf16.msra.mxu0 %v7940_v11  ;;  %6150 = vmatpush1.bf16.msra.mxu1 %v7942_v12  ;;  %v373_v11 = vld [vmem:[#allocation5 + $0x8b8] sm:$0xff] }
 0x2f5   :  { %5979 = vmatprep.subr.bf16.mxu0 %v7957_v15  ;;  %6151 = vmatprep.subr.bf16.mxu1 %v7959_v16  ;;  %v381_v12 = vld [vmem:[#allocation5 + $0x8f8] sm:$0xff]  ;;  %v8004_v15 = vcombine.low %v356_v43, %v364_v52  ;;  %v8006_v16 = vcombine.low %v357_v53, %v365_v54  ;;  %v8036_v43 = vcombine.low %v388_v22, %v396_v13 }
 0x2f6   :  { %v8023_v18 = vcombine.high %v373_v11, %v381_v12  ;;  %v8022_v19 = vcombine.low %v373_v11, %v381_v12 }
 0x2f8   :  { %5980 = vmatpush1.bf16.msra.mxu0 %v7956_v14  ;;  %6152 = vmatpush1.bf16.msra.mxu1 %v7958_v23  ;;  %v9169_v14 = vld [vmem:[#allocation2] ss:$28 sps:$4 sm:$0xff]   ;;  %v389_v23 = vld [vmem:[#allocation5 + $0x938] sm:$0xff] }
 0x2f9   :  { %5981 = vmatprep.subr.bf16.mxu0 %v7973_v24  ;;  %6153 = vmatprep.subr.bf16.mxu1 %v7975_v25  ;;  %v397_v24 = vld [vmem:[#allocation5 + $0x978] sm:$0xff]  ;;  %v8020_v25 = vcombine.low %v372_v9, %v380_v10 }
 0x2fa   :  { %v8039_v26 = vcombine.high %v389_v23, %v397_v24  ;;  %v8038_v52 = vcombine.low %v389_v23, %v397_v24  ;;  %v452_v24 = vld [vmem:[#allocation5 + $0xb30] sm:$0xff] }
 0x2fc   :  { %5982 = vmatpush1.bf16.msra.mxu0 %v7972_v30  ;;  %6154 = vmatpush1.bf16.msra.mxu1 %v7974_v31  ;;  %v412_v30 = vld [vmem:[#allocation5 + $0x9f0] sm:$0xff] }
 0x2fd   :  { %5983 = vmatprep.subr.bf16.mxu0 %v7989_v38  ;;  %6155 = vmatprep.subr.bf16.mxu1 %v7991_v39  ;;  %v9170_v31 = vld [vmem:[#allocation2 + $0xc] ss:$28 sps:$4 sm:$0xff]   ;;  %v405_v38 = vld [vmem:[#allocation5 + $0x9b8] sm:$0xff]  ;;  %v8053_v53 = vcombine.high %v404_v27, %v412_v30  ;;  %v8052_v9 = vcombine.low %v404_v27, %v412_v30 }
 0x2fe   :  { %v413_v39 = vld [vmem:[#allocation5 + $0x9f8] sm:$0xff] }
 0x2ff   :  { %v8055_v54 = vcombine.high %v405_v38, %v413_v39  ;;  %v8054_v10 = vcombine.low %v405_v38, %v413_v39  ;;  %v468_v38 = vld [vmem:[#allocation5 + $0xbb0] sm:$0xff] }
 0x300   :  { %5984 = vmatpush1.bf16.msra.mxu0 %v7988_v59  ;;  %6156 = vmatpush1.bf16.msra.mxu1 %v7990_v1  ;;  %v420_v59 = vld [vmem:[#allocation5 + $0xa30] sm:$0xff] }
 0x301   :  { %5996 = vmatprep.subr.bf16.mxu0 %v8005_v6  ;;  %6168 = vmatprep.subr.bf16.mxu1 %v8007_v8  ;;  %v428_v1 = vld [vmem:[#allocation5 + $0xa70] sm:$0xff]  ;;  %v421_v6 = vld [vmem:[#allocation5 + $0xa38] sm:$0xff] }
 0x302   :  { %v429_v8 = vld [vmem:[#allocation5 + $0xa78] sm:$0xff]  ;;  %v8069_v11 = vcombine.high %v420_v59, %v428_v1  ;;  %v8068_v22 = vcombine.low %v420_v59, %v428_v1  ;;  %v476_v39 = vld [vmem:[#allocation5 + $0xbf0] sm:$0xff] }
 0x303   :  { %5986 = vmatmul.mubr.bf16.vlgmr.msra.gmra.mrb[12].mxu0 %v9169_v14  ;;  %6158 = vmatmul.mubr.bf16.vlgmr.msra.gmra.mrb[12].mxu1 %v9169_v14  ;;  %v8071_v12 = vcombine.high %v421_v6, %v429_v8  ;;  %v8070_v13 = vcombine.low %v421_v6, %v429_v8  ;;  %v8117_v59 = vcombine.high %v468_v38, %v476_v39  ;;  %v484_v6 = vld [vmem:[#allocation5 + $0xc30] sm:$0xff] }
 0x304   :  { %5997 = vmatpush1.bf16.msra.mxu0 %v8004_v15  ;;  %6169 = vmatpush1.bf16.msra.mxu1 %v8006_v16  ;;  %v436_v15 = vld [vmem:[#allocation5 + $0xab0] sm:$0xff] }
 0x305   :  { %5998 = vmatprep.subr.bf16.mxu0 %v8021_v17  ;;  %6170 = vmatprep.subr.bf16.mxu1 %v8023_v18  ;;  %v444_v16 = vld [vmem:[#allocation5 + $0xaf0] sm:$0xff]  ;;  %v437_v17 = vld [vmem:[#allocation5 + $0xab8] sm:$0xff] }
 0x306   :  { %6028 = vmatprep.mubr.bf16.mxu0 %v9170_v31  ;;  %6200 = vmatprep.mubr.bf16.mxu1 %v9170_v31  ;;  %v445_v18 = vld [vmem:[#allocation5 + $0xaf8] sm:$0xff]  ;;  %v8085_v14 = vcombine.high %v436_v15, %v444_v16  ;;  %v492_v8 = vld [vmem:[#allocation5 + $0xc70] sm:$0xff] }
 0x307   :  { %v8087_v23 = vcombine.high %v437_v17, %v445_v18  ;;  %v8086_v27 = vcombine.low %v437_v17, %v445_v18  ;;  %v500_v17 = vld [vmem:[#allocation5 + $0xcb0] sm:$0xff] }
 0x308   :  { %5999 = vmatpush1.bf16.msra.mxu0 %v8020_v25  ;;  %6171 = vmatpush1.bf16.msra.mxu1 %v8022_v19  ;;  %v460_v25 = vld [vmem:[#allocation5 + $0xb70] sm:$0xff]  ;;  %v453_v19 = vld [vmem:[#allocation5 + $0xb38] sm:$0xff] }
 0x309   :  { %6000 = vmatprep.subr.bf16.mxu0 %v8037_v21  ;;  %6172 = vmatprep.subr.bf16.mxu1 %v8039_v26  ;;  %v461_v21 = vld [vmem:[#allocation5 + $0xb78] sm:$0xff]  ;;  %v8084_v26 = vcombine.low %v436_v15, %v444_v16  ;;  %v8101_v30 = vcombine.high %v452_v24, %v460_v25  ;;  %v8133_v15 = vcombine.high %v484_v6, %v492_v8  ;;  %v508_v18 = vld [vmem:[#allocation5 + $0xcf0] sm:$0xff] }
 0x30a   :  { %v8103_v31 = vcombine.high %v453_v19, %v461_v21 }
 0x30c   :  { %6001 = vmatpush1.bf16.msra.mxu0 %v8036_v43  ;;  %6173 = vmatpush1.bf16.msra.mxu1 %v8038_v52  ;;  %v469_v43 = vld [vmem:[#allocation5 + $0xbb8] sm:$0xff] }
 0x30d   :  { %6002 = vmatprep.subr.bf16.mxu0 %v8053_v53  ;;  %6174 = vmatprep.subr.bf16.mxu1 %v8055_v54  ;;  %v477_v52 = vld [vmem:[#allocation5 + $0xbf8] sm:$0xff]  ;;  %v8100_v53 = vcombine.low %v452_v24, %v460_v25  ;;  %v8102_v54 = vcombine.low %v453_v19, %v461_v21  ;;  %v8149_v24 = vcombine.high %v500_v17, %v508_v18  ;;  %v516_v19 = vld [vmem:[#allocation5 + $0xd30] sm:$0xff] }
 0x30e   :  { %v8119_v1 = vcombine.high %v469_v43, %v477_v52  ;;  %v524_v21 = vld [vmem:[#allocation5 + $0xd70] sm:$0xff] }
 0x310   :  { %6003 = vmatpush1.bf16.msra.mxu0 %v8052_v9  ;;  %6175 = vmatpush1.bf16.msra.mxu1 %v8054_v10  ;;  %v485_v9 = vld [vmem:[#allocation5 + $0xc38] sm:$0xff] }
 0x311   :  { %6004 = vmatprep.subr.bf16.mxu0 %v8069_v11  ;;  %6176 = vmatprep.subr.bf16.mxu1 %v8071_v12  ;;  %v493_v10 = vld [vmem:[#allocation5 + $0xc78] sm:$0xff]  ;;  %v8116_v11 = vcombine.low %v468_v38, %v476_v39  ;;  %v8118_v12 = vcombine.low %v469_v43, %v477_v52  ;;  %v8165_v38 = vcombine.high %v516_v19, %v524_v21  ;;  %v532_v43 = vld [vmem:[#allocation5 + $0xdb0] sm:$0xff] }
 0x312   :  { %v8135_v16 = vcombine.high %v485_v9, %v493_v10  ;;  %v540_v52 = vld [vmem:[#allocation5 + $0xdf0] sm:$0xff] }
 0x314   :  { %6005 = vmatpush1.bf16.msra.mxu0 %v8068_v22  ;;  %6177 = vmatpush1.bf16.msra.mxu1 %v8070_v13  ;;  %v501_v22 = vld [vmem:[#allocation5 + $0xcb8] sm:$0xff] }
 0x315   :  { %6006 = vmatprep.subr.bf16.mxu0 %v8085_v14  ;;  %6178 = vmatprep.subr.bf16.mxu1 %v8087_v23  ;;  %v509_v13 = vld [vmem:[#allocation5 + $0xcf8] sm:$0xff]  ;;  %v8132_v14 = vcombine.low %v484_v6, %v492_v8  ;;  %v8134_v23 = vcombine.low %v485_v9, %v493_v10  ;;  %v8181_v6 = vcombine.high %v532_v43, %v540_v52  ;;  %v548_v9 = vld [vmem:[#allocation5 + $0xe30] sm:$0xff] }
 0x316   :  { %v8151_v25 = vcombine.high %v501_v22, %v509_v13  ;;  %v556_v10 = vld [vmem:[#allocation5 + $0xe70] sm:$0xff] }
 0x318   :  { %6007 = vmatpush1.bf16.msra.mxu0 %v8084_v26  ;;  %6179 = vmatpush1.bf16.msra.mxu1 %v8086_v27  ;;  %v517_v26 = vld [vmem:[#allocation5 + $0xd38] sm:$0xff] }
 0x319   :  { %6008 = vmatprep.subr.bf16.mxu0 %v8101_v30  ;;  %6180 = vmatprep.subr.bf16.mxu1 %v8103_v31  ;;  %v525_v27 = vld [vmem:[#allocation5 + $0xd78] sm:$0xff]  ;;  %v8148_v30 = vcombine.low %v500_v17, %v508_v18  ;;  %v8150_v31 = vcombine.low %v501_v22, %v509_v13  ;;  %v8197_v17 = vcombine.high %v548_v9, %v556_v10  ;;  %v564_v22 = vld [vmem:[#allocation5 + $0xeb0] sm:$0xff] }
 0x31a   :  { %v8167_v39 = vcombine.high %v517_v26, %v525_v27  ;;  %v572_v13 = vld [vmem:[#allocation5 + $0xef0] sm:$0xff] }
 0x31c   :  { %6009 = vmatpush1.bf16.msra.mxu0 %v8100_v53  ;;  %6181 = vmatpush1.bf16.msra.mxu1 %v8102_v54  ;;  %v533_v53 = vld [vmem:[#allocation5 + $0xdb8] sm:$0xff] }
 0x31d   :  { %6010 = vmatprep.subr.bf16.mxu0 %v8117_v59  ;;  %6182 = vmatprep.subr.bf16.mxu1 %v8119_v1  ;;  %v541_v54 = vld [vmem:[#allocation5 + $0xdf8] sm:$0xff]  ;;  %v8164_v59 = vcombine.low %v516_v19, %v524_v21  ;;  %v8166_v1 = vcombine.low %v517_v26, %v525_v27  ;;  %v8213_v19 = vcombine.high %v564_v22, %v572_v13  ;;  %v580_v26 = vld [vmem:[#allocation5 + $0xf30] sm:$0xff] }
 0x31e   :  { %v8183_v8 = vcombine.high %v533_v53, %v541_v54  ;;  %v588_v27 = vld [vmem:[#allocation5 + $0xf70] sm:$0xff] }
 0x320   :  { %6011 = vmatpush1.bf16.msra.mxu0 %v8116_v11  ;;  %6183 = vmatpush1.bf16.msra.mxu1 %v8118_v12  ;;  %v549_v11 = vld [vmem:[#allocation5 + $0xe38] sm:$0xff] }
 0x321   :  { %6012 = vmatprep.subr.bf16.mxu0 %v8133_v15  ;;  %6184 = vmatprep.subr.bf16.mxu1 %v8135_v16  ;;  %v557_v12 = vld [vmem:[#allocation5 + $0xe78] sm:$0xff]  ;;  %v8180_v15 = vcombine.low %v532_v43, %v540_v52  ;;  %v8182_v16 = vcombine.low %v533_v53, %v541_v54  ;;  %v8229_v43 = vcombine.high %v580_v26, %v588_v27  ;;  %v596_v53 = vld [vmem:[#allocation5 + $0xfb0] sm:$0xff] }
 0x322   :  { %v8199_v18 = vcombine.high %v549_v11, %v557_v12  ;;  %v604_v54 = vld [vmem:[#allocation5 + $0xff0] sm:$0xff] }
 0x324   :  { %6013 = vmatpush1.bf16.msra.mxu0 %v8132_v14  ;;  %6185 = vmatpush1.bf16.msra.mxu1 %v8134_v23  ;;  %v565_v14 = vld [vmem:[#allocation5 + $0xeb8] sm:$0xff] }
 0x325   :  { %6014 = vmatprep.subr.bf16.mxu0 %v8149_v24  ;;  %6186 = vmatprep.subr.bf16.mxu1 %v8151_v25  ;;  %v573_v23 = vld [vmem:[#allocation5 + $0xef8] sm:$0xff]  ;;  %v8196_v24 = vcombine.low %v548_v9, %v556_v10  ;;  %v8198_v25 = vcombine.low %v549_v11, %v557_v12  ;;  %v8245_v9 = vcombine.high %v596_v53, %v604_v54  ;;  %v612_v11 = vld [vmem:[#allocation5 + $0x1030] sm:$0xff] }
 0x326   :  { %v8215_v21 = vcombine.high %v565_v14, %v573_v23  ;;  %v620_v12 = vld [vmem:[#allocation5 + $0x1070] sm:$0xff] }
 0x328   :  { %6015 = vmatpush1.bf16.msra.mxu0 %v8148_v30  ;;  %6187 = vmatpush1.bf16.msra.mxu1 %v8150_v31  ;;  %v581_v30 = vld [vmem:[#allocation5 + $0xf38] sm:$0xff] }
 0x329   :  { %6016 = vmatprep.subr.bf16.mxu0 %v8165_v38  ;;  %6188 = vmatprep.subr.bf16.mxu1 %v8167_v39  ;;  %v589_v31 = vld [vmem:[#allocation5 + $0xf78] sm:$0xff]  ;;  %v8212_v38 = vcombine.low %v564_v22, %v572_v13  ;;  %v8214_v39 = vcombine.low %v565_v14, %v573_v23  ;;  %v8261_v22 = vcombine.high %v612_v11, %v620_v12  ;;  %v628_v14 = vld [vmem:[#allocation5 + $0x10b0] sm:$0xff] }
 0x32a   :  { %v8231_v52 = vcombine.high %v581_v30, %v589_v31  ;;  %v636_v23 = vld [vmem:[#allocation5 + $0x10f0] sm:$0xff] }
 0x32c   :  { %6017 = vmatpush1.bf16.msra.mxu0 %v8164_v59  ;;  %6189 = vmatpush1.bf16.msra.mxu1 %v8166_v1  ;;  %v597_v59 = vld [vmem:[#allocation5 + $0xfb8] sm:$0xff] }
 0x32d   :  { %6018 = vmatprep.subr.bf16.mxu0 %v8181_v6  ;;  %6190 = vmatprep.subr.bf16.mxu1 %v8183_v8  ;;  %v605_v1 = vld [vmem:[#allocation5 + $0xff8] sm:$0xff]  ;;  %v8228_v6 = vcombine.low %v580_v26, %v588_v27  ;;  %v8230_v8 = vcombine.low %v581_v30, %v589_v31  ;;  %v8277_v26 = vcombine.high %v628_v14, %v636_v23  ;;  %v644_v30 = vld [vmem:[#allocation5 + $0x1130] sm:$0xff] }
 0x32e   :  { %v8247_v10 = vcombine.high %v597_v59, %v605_v1  ;;  %v652_v31 = vld [vmem:[#allocation5 + $0x1170] sm:$0xff] }
 0x330   :  { %6019 = vmatpush1.bf16.msra.mxu0 %v8180_v15  ;;  %6191 = vmatpush1.bf16.msra.mxu1 %v8182_v16  ;;  %v613_v15 = vld [vmem:[#allocation5 + $0x1038] sm:$0xff] }
 0x331   :  { %6020 = vmatprep.subr.bf16.mxu0 %v8197_v17  ;;  %6192 = vmatprep.subr.bf16.mxu1 %v8199_v18  ;;  %v621_v16 = vld [vmem:[#allocation5 + $0x1078] sm:$0xff]  ;;  %v8244_v17 = vcombine.low %v596_v53, %v604_v54  ;;  %v8246_v18 = vcombine.low %v597_v59, %v605_v1  ;;  %v8293_v54 = vcombine.high %v644_v30, %v652_v31  ;;  %v660_v1 = vld [vmem:[#allocation5 + $0x11b0] sm:$0xff] }
 0x332   :  { %v8263_v13 = vcombine.high %v613_v15, %v621_v16 }
 0x334   :  { %6021 = vmatpush1.bf16.msra.mxu0 %v8196_v24  ;;  %6193 = vmatpush1.bf16.msra.mxu1 %v8198_v25  ;;  %v629_v24 = vld [vmem:[#allocation5 + $0x10b8] sm:$0xff] }
 0x335   :  { %6022 = vmatprep.subr.bf16.mxu0 %v8213_v19  ;;  %6194 = vmatprep.subr.bf16.mxu1 %v8215_v21  ;;  %v637_v25 = vld [vmem:[#allocation5 + $0x10f8] sm:$0xff]  ;;  %v8260_v19 = vcombine.low %v612_v11, %v620_v12  ;;  %v8262_v21 = vcombine.low %v613_v15, %v621_v16  ;;  %v8292_v11 = vcombine.low %v644_v30, %v652_v31 }
 0x336   :  { %v8279_v27 = vcombine.high %v629_v24, %v637_v25  ;;  %v8278_v53 = vcombine.low %v629_v24, %v637_v25 }
 0x338   :  { %6023 = vmatpush1.bf16.msra.mxu0 %v8212_v38  ;;  %6195 = vmatpush1.bf16.msra.mxu1 %v8214_v39  ;;  %v9171_v38 = vld [vmem:[#allocation2 + $0x8] ss:$28 sps:$4 sm:$0xff]   ;;  %v645_v39 = vld [vmem:[#allocation5 + $0x1138] sm:$0xff] }
 0x339   :  { %6024 = vmatprep.subr.bf16.mxu0 %v8229_v43  ;;  %6196 = vmatprep.subr.bf16.mxu1 %v8231_v52  ;;  %v653_v43 = vld [vmem:[#allocation5 + $0x1178] sm:$0xff]  ;;  %v8276_v52 = vcombine.low %v628_v14, %v636_v23 }
 0x33a   :  { %v8295_v59 = vcombine.high %v645_v39, %v653_v43  ;;  %v8294_v12 = vcombine.low %v645_v39, %v653_v43  ;;  %v708_v43 = vld [vmem:[#allocation5 + $0x1330] sm:$0xff] }
 0x33c   :  { %6025 = vmatpush1.bf16.msra.mxu0 %v8228_v6  ;;  %6197 = vmatpush1.bf16.msra.mxu1 %v8230_v8  ;;  %v668_v6 = vld [vmem:[#allocation5 + $0x11f0] sm:$0xff]  ;;  %v9172_v8 = vld [vmem:[#allocation2 + $0x14] ss:$28 sps:$4 sm:$0xff]  }
 0x33d   :  { %6026 = vmatprep.subr.bf16.mxu0 %v8245_v9  ;;  %6198 = vmatprep.subr.bf16.mxu1 %v8247_v10  ;;  %v661_v9 = vld [vmem:[#allocation5 + $0x11b8] sm:$0xff]  ;;  %v8309_v15 = vcombine.high %v660_v1, %v668_v6  ;;  %v8308_v14 = vcombine.low %v660_v1, %v668_v6 }
 0x33e   :  { %v669_v10 = vld [vmem:[#allocation5 + $0x11f8] sm:$0xff] }
 0x33f   :  { %v8311_v16 = vcombine.high %v661_v9, %v669_v10  ;;  %v8310_v23 = vcombine.low %v661_v9, %v669_v10  ;;  %v724_v9 = vld [vmem:[#allocation5 + $0x13b0] sm:$0xff] }
 0x340   :  { %6027 = vmatpush1.bf16.msra.mxu0 %v8244_v17  ;;  %6199 = vmatpush1.bf16.msra.mxu1 %v8246_v18  ;;  %v676_v17 = vld [vmem:[#allocation5 + $0x1230] sm:$0xff] }
 0x341   :  { %6039 = vmatprep.subr.bf16.mxu0 %v8261_v22  ;;  %6211 = vmatprep.subr.bf16.mxu1 %v8263_v13  ;;  %v684_v18 = vld [vmem:[#allocation5 + $0x1270] sm:$0xff]  ;;  %v677_v22 = vld [vmem:[#allocation5 + $0x1238] sm:$0xff] }
 0x342   :  { %v685_v13 = vld [vmem:[#allocation5 + $0x1278] sm:$0xff]  ;;  %v8325_v24 = vcombine.high %v676_v17, %v684_v18  ;;  %v8324_v30 = vcombine.low %v676_v17, %v684_v18  ;;  %v732_v10 = vld [vmem:[#allocation5 + $0x13f0] sm:$0xff] }
 0x343   :  { %6029 = vmatmul.mubr.bf16.vlgmr.msra.gmra.mrb[12].mxu0 %v9171_v38  ;;  %6201 = vmatmul.mubr.bf16.vlgmr.msra.gmra.mrb[12].mxu1 %v9171_v38  ;;  %v8327_v25 = vcombine.high %v677_v22, %v685_v13  ;;  %v8326_v31 = vcombine.low %v677_v22, %v685_v13  ;;  %v8373_v17 = vcombine.high %v724_v9, %v732_v10  ;;  %v740_v22 = vld [vmem:[#allocation5 + $0x1430] sm:$0xff] }
 0x344   :  { %6040 = vmatpush1.bf16.msra.mxu0 %v8260_v19  ;;  %6212 = vmatpush1.bf16.msra.mxu1 %v8262_v21  ;;  %v692_v19 = vld [vmem:[#allocation5 + $0x12b0] sm:$0xff] }
 0x345   :  { %6041 = vmatprep.subr.bf16.mxu0 %v8277_v26  ;;  %6213 = vmatprep.subr.bf16.mxu1 %v8279_v27  ;;  %v700_v21 = vld [vmem:[#allocation5 + $0x12f0] sm:$0xff]  ;;  %v693_v26 = vld [vmem:[#allocation5 + $0x12b8] sm:$0xff] }
 0x346   :  { %6071 = vmatprep.mubr.bf16.mxu0 %v9172_v8  ;;  %6243 = vmatprep.mubr.bf16.mxu1 %v9172_v8  ;;  %v701_v27 = vld [vmem:[#allocation5 + $0x12f8] sm:$0xff]  ;;  %v8341_v38 = vcombine.high %v692_v19, %v700_v21  ;;  %v748_v13 = vld [vmem:[#allocation5 + $0x1470] sm:$0xff] }
 0x347   :  { %v8343_v39 = vcombine.high %v693_v26, %v701_v27  ;;  %v8342_v1 = vcombine.low %v693_v26, %v701_v27  ;;  %v756_v26 = vld [vmem:[#allocation5 + $0x14b0] sm:$0xff] }
 0x348   :  { %6042 = vmatpush1.bf16.msra.mxu0 %v8276_v52  ;;  %6214 = vmatpush1.bf16.msra.mxu1 %v8278_v53  ;;  %v716_v52 = vld [vmem:[#allocation5 + $0x1370] sm:$0xff]  ;;  %v709_v53 = vld [vmem:[#allocation5 + $0x1338] sm:$0xff] }
 0x349   :  { %6043 = vmatprep.subr.bf16.mxu0 %v8293_v54  ;;  %6215 = vmatprep.subr.bf16.mxu1 %v8295_v59  ;;  %v717_v54 = vld [vmem:[#allocation5 + $0x1378] sm:$0xff]  ;;  %v8340_v59 = vcombine.low %v692_v19, %v700_v21  ;;  %v8357_v6 = vcombine.high %v708_v43, %v716_v52  ;;  %v8389_v19 = vcombine.high %v740_v22, %v748_v13  ;;  %v764_v27 = vld [vmem:[#allocation5 + $0x14f0] sm:$0xff] }
 0x34a   :  { %v8359_v8 = vcombine.high %v709_v53, %v717_v54 }
 0x34c   :  { %6044 = vmatpush1.bf16.msra.mxu0 %v8292_v11  ;;  %6216 = vmatpush1.bf16.msra.mxu1 %v8294_v12  ;;  %v725_v11 = vld [vmem:[#allocation5 + $0x13b8] sm:$0xff] }
 0x34d   :  { %6045 = vmatprep.subr.bf16.mxu0 %v8309_v15  ;;  %6217 = vmatprep.subr.bf16.mxu1 %v8311_v16  ;;  %v733_v12 = vld [vmem:[#allocation5 + $0x13f8] sm:$0xff]  ;;  %v8356_v15 = vcombine.low %v708_v43, %v716_v52  ;;  %v8358_v16 = vcombine.low %v709_v53, %v717_v54  ;;  %v8405_v43 = vcombine.high %v756_v26, %v764_v27  ;;  %v772_v53 = vld [vmem:[#allocation5 + $0x1530] sm:$0xff] }
 0x34e   :  { %v8375_v18 = vcombine.high %v725_v11, %v733_v12  ;;  %v780_v54 = vld [vmem:[#allocation5 + $0x1570] sm:$0xff] }
 0x350   :  { %6046 = vmatpush1.bf16.msra.mxu0 %v8308_v14  ;;  %6218 = vmatpush1.bf16.msra.mxu1 %v8310_v23  ;;  %v741_v14 = vld [vmem:[#allocation5 + $0x1438] sm:$0xff] }
 0x351   :  { %6047 = vmatprep.subr.bf16.mxu0 %v8325_v24  ;;  %6219 = vmatprep.subr.bf16.mxu1 %v8327_v25  ;;  %v749_v23 = vld [vmem:[#allocation5 + $0x1478] sm:$0xff]  ;;  %v8372_v24 = vcombine.low %v724_v9, %v732_v10  ;;  %v8374_v25 = vcombine.low %v725_v11, %v733_v12  ;;  %v8421_v9 = vcombine.high %v772_v53, %v780_v54  ;;  %v788_v11 = vld [vmem:[#allocation5 + $0x15b0] sm:$0xff] }
 0x352   :  { %v8391_v21 = vcombine.high %v741_v14, %v749_v23  ;;  %v796_v12 = vld [vmem:[#allocation5 + $0x15f0] sm:$0xff] }
 0x354   :  { %6048 = vmatpush1.bf16.msra.mxu0 %v8324_v30  ;;  %6220 = vmatpush1.bf16.msra.mxu1 %v8326_v31  ;;  %v757_v30 = vld [vmem:[#allocation5 + $0x14b8] sm:$0xff] }
 0x355   :  { %6049 = vmatprep.subr.bf16.mxu0 %v8341_v38  ;;  %6221 = vmatprep.subr.bf16.mxu1 %v8343_v39  ;;  %v765_v31 = vld [vmem:[#allocation5 + $0x14f8] sm:$0xff]  ;;  %v8388_v38 = vcombine.low %v740_v22, %v748_v13  ;;  %v8390_v39 = vcombine.low %v741_v14, %v749_v23  ;;  %v8437_v22 = vcombine.high %v788_v11, %v796_v12  ;;  %v804_v14 = vld [vmem:[#allocation5 + $0x1630] sm:$0xff] }
 0x356   :  { %v8407_v52 = vcombine.high %v757_v30, %v765_v31  ;;  %v812_v23 = vld [vmem:[#allocation5 + $0x1670] sm:$0xff] }
 0x358   :  { %6050 = vmatpush1.bf16.msra.mxu0 %v8340_v59  ;;  %6222 = vmatpush1.bf16.msra.mxu1 %v8342_v1  ;;  %v773_v59 = vld [vmem:[#allocation5 + $0x1538] sm:$0xff] }
 0x359   :  { %6051 = vmatprep.subr.bf16.mxu0 %v8357_v6  ;;  %6223 = vmatprep.subr.bf16.mxu1 %v8359_v8  ;;  %v781_v1 = vld [vmem:[#allocation5 + $0x1578] sm:$0xff]  ;;  %v8404_v6 = vcombine.low %v756_v26, %v764_v27  ;;  %v8406_v8 = vcombine.low %v757_v30, %v765_v31  ;;  %v8453_v26 = vcombine.high %v804_v14, %v812_v23  ;;  %v820_v30 = vld [vmem:[#allocation5 + $0x16b0] sm:$0xff] }
 0x35a   :  { %v8423_v10 = vcombine.high %v773_v59, %v781_v1  ;;  %v828_v31 = vld [vmem:[#allocation5 + $0x16f0] sm:$0xff] }
 0x35c   :  { %6052 = vmatpush1.bf16.msra.mxu0 %v8356_v15  ;;  %6224 = vmatpush1.bf16.msra.mxu1 %v8358_v16  ;;  %v789_v15 = vld [vmem:[#allocation5 + $0x15b8] sm:$0xff] }
 0x35d   :  { %6053 = vmatprep.subr.bf16.mxu0 %v8373_v17  ;;  %6225 = vmatprep.subr.bf16.mxu1 %v8375_v18  ;;  %v797_v16 = vld [vmem:[#allocation5 + $0x15f8] sm:$0xff]  ;;  %v8420_v17 = vcombine.low %v772_v53, %v780_v54  ;;  %v8422_v18 = vcombine.low %v773_v59, %v781_v1  ;;  %v8469_v53 = vcombine.high %v820_v30, %v828_v31  ;;  %v836_v59 = vld [vmem:[#allocation5 + $0x1730] sm:$0xff] }
 0x35e   :  { %v8439_v13 = vcombine.high %v789_v15, %v797_v16  ;;  %v844_v1 = vld [vmem:[#allocation5 + $0x1770] sm:$0xff] }
 0x360   :  { %6054 = vmatpush1.bf16.msra.mxu0 %v8372_v24  ;;  %6226 = vmatpush1.bf16.msra.mxu1 %v8374_v25  ;;  %v805_v24 = vld [vmem:[#allocation5 + $0x1638] sm:$0xff] }
 0x361   :  { %6055 = vmatprep.subr.bf16.mxu0 %v8389_v19  ;;  %6227 = vmatprep.subr.bf16.mxu1 %v8391_v21  ;;  %v813_v25 = vld [vmem:[#allocation5 + $0x1678] sm:$0xff]  ;;  %v8436_v19 = vcombine.low %v788_v11, %v796_v12  ;;  %v8438_v21 = vcombine.low %v789_v15, %v797_v16  ;;  %v8485_v11 = vcombine.high %v836_v59, %v844_v1  ;;  %v852_v15 = vld [vmem:[#allocation5 + $0x17b0] sm:$0xff] }
 0x362   :  { %v8455_v27 = vcombine.high %v805_v24, %v813_v25  ;;  %v860_v16 = vld [vmem:[#allocation5 + $0x17f0] sm:$0xff] }
 0x364   :  { %6056 = vmatpush1.bf16.msra.mxu0 %v8388_v38  ;;  %6228 = vmatpush1.bf16.msra.mxu1 %v8390_v39  ;;  %v821_v38 = vld [vmem:[#allocation5 + $0x16b8] sm:$0xff] }
 0x365   :  { %6057 = vmatprep.subr.bf16.mxu0 %v8405_v43  ;;  %6229 = vmatprep.subr.bf16.mxu1 %v8407_v52  ;;  %v829_v39 = vld [vmem:[#allocation5 + $0x16f8] sm:$0xff]  ;;  %v8452_v43 = vcombine.low %v804_v14, %v812_v23  ;;  %v8454_v52 = vcombine.low %v805_v24, %v813_v25  ;;  %v8501_v14 = vcombine.high %v852_v15, %v860_v16  ;;  %v868_v24 = vld [vmem:[#allocation5 + $0x1830] sm:$0xff] }
 0x366   :  { %v8471_v54 = vcombine.high %v821_v38, %v829_v39  ;;  %v876_v25 = vld [vmem:[#allocation5 + $0x1870] sm:$0xff] }
 0x368   :  { %6058 = vmatpush1.bf16.msra.mxu0 %v8404_v6  ;;  %6230 = vmatpush1.bf16.msra.mxu1 %v8406_v8  ;;  %v837_v6 = vld [vmem:[#allocation5 + $0x1738] sm:$0xff] }
 0x369   :  { %6059 = vmatprep.subr.bf16.mxu0 %v8421_v9  ;;  %6231 = vmatprep.subr.bf16.mxu1 %v8423_v10  ;;  %v845_v8 = vld [vmem:[#allocation5 + $0x1778] sm:$0xff]  ;;  %v8468_v9 = vcombine.low %v820_v30, %v828_v31  ;;  %v8470_v10 = vcombine.low %v821_v38, %v829_v39  ;;  %v8517_v30 = vcombine.high %v868_v24, %v876_v25 }
 0x36a   :  { %v8487_v12 = vcombine.high %v837_v6, %v845_v8  ;;  %v8516_v38 = vcombine.low %v868_v24, %v876_v25  ;;  %v8999_v25 = vld [vmem:[#allocation8 + $0x18] sm:$0xff]  }
 0x36c   :  { %6060 = vmatpush1.bf16.msra.mxu0 %v8420_v17  ;;  %6232 = vmatpush1.bf16.msra.mxu1 %v8422_v18  ;;  %v853_v17 = vld [vmem:[#allocation5 + $0x17b8] sm:$0xff] }
 0x36d   :  { %6061 = vmatprep.subr.bf16.mxu0 %v8437_v22  ;;  %6233 = vmatprep.subr.bf16.mxu1 %v8439_v13  ;;  %v861_v18 = vld [vmem:[#allocation5 + $0x17f8] sm:$0xff]  ;;  %v8484_v22 = vcombine.low %v836_v59, %v844_v1  ;;  %v8486_v13 = vcombine.low %v837_v6, %v845_v8  ;;  %v8988_v59 = vld [vmem:[#allocation8 + $0x80] sm:$0xff]  }
 0x36e   :  { %v8503_v23 = vcombine.high %v853_v17, %v861_v18  ;;  %v8989_v1 = vld [vmem:[#allocation8 + $0x48] sm:$0xff]  }
 0x36f   :  { %v9174_v6 = vld [vmem:[#allocation2 + $0x18] ss:$28 sps:$4 sm:$0xff]  }
 0x370   :  { %6062 = vmatpush1.bf16.msra.mxu0 %v8436_v19  ;;  %6234 = vmatpush1.bf16.msra.mxu1 %v8438_v21  ;;  %v869_v19 = vld [vmem:[#allocation5 + $0x1838] sm:$0xff] }
 0x371   :  { %6063 = vmatprep.subr.bf16.mxu0 %v8453_v26  ;;  %6235 = vmatprep.subr.bf16.mxu1 %v8455_v27  ;;  %v877_v21 = vld [vmem:[#allocation5 + $0x1878] sm:$0xff]  ;;  %v8500_v26 = vcombine.low %v852_v15, %v860_v16  ;;  %v8502_v27 = vcombine.low %v853_v17, %v861_v18  ;;  %v8996_v15 = vld [vmem:[#allocation8 + $0x90] sm:$0xff]   ;;  %v929_v16 = vrot.slane %v9515_v46, %v896_v4  ;;  %v8997_v17 = vld [vmem:[#allocation8 + $0x58] sm:$0xff]  }
 0x372   :  { %v8519_v31 = vcombine.high %v869_v19, %v877_v21  ;;  %v8518_v39 = vcombine.low %v869_v19, %v877_v21  ;;  %v8990_v8 = vld [vmem:[#allocation8 + $0xc8] sm:$0xff]   ;;  %v8998_v18 = vld [vmem:[#allocation8 + $0xd8] sm:$0xff]  }
 0x374   :  { %6064 = vmatpush1.bf16.msra.mxu0 %v8452_v43  ;;  %6236 = vmatpush1.bf16.msra.mxu1 %v8454_v52  ;;  %v8985_v43 = vld [vmem:[#allocation8 + $0x40] sm:$0xff]  }
 0x375   :  { %6065 = vmatprep.subr.bf16.mxu0 %v8469_v53  ;;  %6237 = vmatprep.subr.bf16.mxu1 %v8471_v54  ;;  %v9173_v52 = vld [vmem:[#allocation2 + $0x10] ss:$28 sps:$4 sm:$0xff]  }
 0x376   :  { %v8986_v53 = vld [vmem:[#allocation8 + $0xc0] sm:$0xff]  }
 0x377   :  { %v8987_v54 = vld [vmem:[#allocation8] sm:$0xff]  }
 0x378   :  { %6066 = vmatpush1.bf16.msra.mxu0 %v8468_v9  ;;  %6238 = vmatpush1.bf16.msra.mxu1 %v8470_v10  ;;  %v917_v9 = vrot.slane %v9515_v46, %v884_v60  ;;  %v925_v10 = vrot.slane %v9515_v46, %v892_v63 }
 0x379   :  { %6067 = vmatprep.subr.bf16.mxu0 %v8485_v11  ;;  %6239 = vmatprep.subr.bf16.mxu1 %v8487_v12  ;;  %v8995_v11 = vld [vmem:[#allocation8 + $0x10] sm:$0xff]   ;;  %v921_v12 = vrot.slane %v9515_v46, %v888_v0 }
 0x37c   :  { %6068 = vmatpush1.bf16.msra.mxu0 %v8484_v22  ;;  %6240 = vmatpush1.bf16.msra.mxu1 %v8486_v13 }
 0x37d   :  { %6069 = vmatprep.subr.bf16.mxu0 %v8501_v14  ;;  %6241 = vmatprep.subr.bf16.mxu1 %v8503_v23 }
 0x380   :  { %6070 = vmatpush1.bf16.msra.mxu0 %v8500_v26  ;;  %6242 = vmatpush1.bf16.msra.mxu1 %v8502_v27  ;;  %v9000_v27 = vld [vmem:[#allocation8 + $0x98] sm:$0xff]  }
 0x381   :  { %6082 = vmatprep.subr.bf16.mxu0 %v8517_v30  ;;  %6254 = vmatprep.subr.bf16.mxu1 %v8519_v31  ;;  %v9001_v30 = vld [vmem:[#allocation8 + $0x60] sm:$0xff]  }
 0x383   :  { %6072 = vmatmul.mubr.bf16.vlgmr.msra.gmra.mrb[12].mxu0 %v9173_v52  ;;  %6244 = vmatmul.mubr.bf16.vlgmr.msra.gmra.mrb[12].mxu1 %v9173_v52 }
 0x384   :  { %6083 = vmatpush1.bf16.msra.mxu0 %v8516_v38  ;;  %6255 = vmatpush1.bf16.msra.mxu1 %v8518_v39 }
 0x385   :  { %6114 = vmatprep.mubr.bf16.mxu0 %v9325_v20  ;;  %6286 = vmatprep.mubr.bf16.mxu1 %v9325_v20  ;;  %v8992_v20 = vld [vmem:[#allocation8 + $0x88] sm:$0xff]  }
 0x386   :  { %8657 = vmatprep.subr.bf16.mxu0 %v8985_v43  ;;  %8679 = vmatprep.subr.bf16.mxu1 %v8986_v53  ;;  %v9002_v43 = vld [vmem:[#allocation8 + $0xe0] sm:$0xff]  }
 0x38f   :  { %8526 = vmatmul.mubr.msk.bf16.vlgmr.msra.gmra.mrb[12].mxu0 %vm4917_vm0, %v9174_v6  ;;  %8527 = vmatmul.mubr.msk.bf16.vlgmr.msra.gmra.mrb[12].mxu1 %vm4917_vm0, %v9174_v6 }
 0x390   :  { %8658 = vmatpush3.bf16.msra.mxu0 %v8987_v54  ;;  %8680 = vmatpush3.bf16.msra.mxu1 %v8988_v59 }
 0x391   :  { %7392 = vmatprep.mubr.bf16.mxu0 %v9114_v34  ;;  %7433 = vmatprep.mubr.bf16.mxu1 %v9116_v40  ;;  %v9005_v34 = vld [vmem:[#allocation8 + $0x68] sm:$0xff]  }
 0x392   :  { %8659 = vmatprep.subr.bf16.mxu0 %v8989_v1  ;;  %8681 = vmatprep.subr.bf16.mxu1 %v8990_v8  ;;  %v9003_v1 = vld [vmem:[#allocation8 + $0x20] sm:$0xff]   ;;  %v9007_v40 = vld [vmem:[#allocation8 + $0x28] sm:$0xff]  }
 0x393   :  { %v9004_v8 = vld [vmem:[#allocation8 + $0xa0] sm:$0xff]  }
 0x394   :  { %8660 = vmatpush3.bf16.msra.mxu0 %v8991_v36  ;;  %8682 = vmatpush3.bf16.msra.mxu1 %v8992_v20  ;;  %v9006_v36 = vld [vmem:[#allocation8 + $0xe8] sm:$0xff]  }
 0x395   :  { %8661 = vmatprep.subr.bf16.mxu0 %v8993_v42  ;;  %8683 = vmatprep.subr.bf16.mxu1 %v8994_v48  ;;  %v9008_v20 = vld [vmem:[#allocation8 + $0xa8] sm:$0xff]   ;;  %v9009_v42 = vld [vmem:[#allocation8 + $0x70] sm:$0xff]  }
 0x396   :  { %v5772_v60 = vpop.f32.mrb[8].mxu0  ;;  %v5944_v13 = vpop.f32.mrb[8].mxu1  ;;  %v9010_v48 = vld [vmem:[#allocation8 + $0xf0] sm:$0xff]  }
 0x397   :  { %v9529_v22 = vadd.f32 %v5772_v60, %v917_v9  ;;  %v5774_v63 = vpop.f32.mrb[9].mxu0  ;;  %v9531_v14 = vadd.f32 %v5944_v13, %v925_v10  ;;  %v5946_v0 = vpop.f32.mrb[9].mxu1  ;;  %v9026_v60 = vld [vmem:[#allocation8 + $0x1d0] sm:$0xff]  }
 0x398   :  { %8662 = vmatpush3.bf16.msra.mxu0 %v8995_v11  ;;  %v9533_v23 = vadd.f32 %v5774_v63, %v921_v12  ;;  %v5776_v24 = vpop.f32.mrb[10].mxu0  ;;  %8684 = vmatpush3.bf16.msra.mxu1 %v8996_v15  ;;  %v9535_v19 = vadd.f32 %v5946_v0, %v929_v16  ;;  %v5948_v21 = vpop.f32.mrb[10].mxu1  ;;  %v9013_v11 = vld [vmem:[#allocation8 + $0x78] sm:$0xff]   ;;  %v9028_v13 = vld [vmem:[#allocation8 + $0x190] sm:$0xff]  }
 0x399   :  { %v9537_v4 = vadd.f32 %v5776_v24, %v917_v9  ;;  %v5778_v26 = vpop.f32.mrb[11].mxu0  ;;  %8663 = vmatprep.subr.bf16.mxu0 %v8997_v17  ;;  %v9539_v31 = vadd.f32 %v5948_v21, %v925_v10  ;;  %v5950_v39 = vpop.f32.mrb[11].mxu1  ;;  %8685 = vmatprep.subr.bf16.mxu1 %v8998_v18  ;;  %v9011_v9 = vld [vmem:[#allocation8 + $0x30] sm:$0xff]   ;;  %v9029_v63 = vld [vmem:[#allocation8 + $0x158] sm:$0xff]   ;;  %v9033_v21 = vld [vmem:[#allocation8 + $0x160] sm:$0xff]  }
 0x39a   :  { %v9541_v38 = vadd.f32 %v5778_v26, %v921_v12  ;;  %v9545_v53 = vadd.f32 %v5950_v39, %v929_v16  ;;  %v9012_v10 = vld [vmem:[#allocation8 + $0xb0] sm:$0xff]   ;;  %v9023_v12 = vld [vmem:[#allocation8 + $0x108] sm:$0xff]   ;;  %v9124_v15 = vpop.eup %9123  ;;  %v9030_v0 = vld [vmem:[#allocation8 + $0x1d8] sm:$0xff]  }
 0x39b   :  { %v6305_v52 = vpack.c.bf16 %v9537_v4, %v9529_v22  ;;  %v6307_v54 = vpack.c.bf16 %v9539_v31, %v9531_v14  ;;  %v9024_v16 = vld [vmem:[#allocation8 + $0x188] sm:$0xff]   ;;  %v9025_v17 = vld [vmem:[#allocation8 + $0x150] sm:$0xff]   ;;  %v9031_v24 = vld [vmem:[#allocation8 + $0x118] sm:$0xff]  }
 0x39c   :  { %v6306_v59 = vpack.c.bf16 %v9541_v38, %v9533_v23  ;;  %8664 = vmatpush3.bf16.msra.mxu0 %v8999_v25  ;;  %v6308_v6 = vpack.c.bf16 %v9545_v53, %v9535_v19  ;;  %8686 = vmatpush3.bf16.msra.mxu1 %v9000_v27  ;;  %v9027_v18 = vld [vmem:[#allocation8 + $0x110] sm:$0xff]   ;;  %v9032_v25 = vld [vmem:[#allocation8 + $0x198] sm:$0xff]   ;;  %v9034_v26 = vld [vmem:[#allocation8 + $0x1e0] sm:$0xff]   ;;  %v9126_v38 = vpop.eup %9125 }
 0x39d   :  { %8665 = vmatprep.subr.bf16.mxu0 %v9001_v30  ;;  %8687 = vmatprep.subr.bf16.mxu1 %v9002_v43  ;;  %v9035_v27 = vld [vmem:[#allocation8 + $0x120] sm:$0xff]   ;;  %v9037_v39 = vld [vmem:[#allocation8 + $0x168] sm:$0xff]   ;;  %v9128_v19 = vpop.eup %9127 }
 0x39e   :  { %v9036_v30 = vld [vmem:[#allocation8 + $0x1a0] sm:$0xff]   ;;  %v9038_v43 = vld [vmem:[#allocation8 + $0x1e8] sm:$0xff]   ;;  %9129 = vtanh.bf16 %v6306_v59 }
 0x39f   :  { %9131 = vtanh.bf16 %v6308_v6  ;;  %v9052_v23 = vld [vmem:[#allocation8 + $0x280] sm:$0xff]   ;;  %v9053_v59 = vld [vmem:[#allocation8 + $0x248] sm:$0xff]  }
 0x3a0   :  { %8666 = vmatpush3.bf16.msra.mxu0 %v9003_v1  ;;  %8688 = vmatpush3.bf16.msra.mxu1 %v9004_v8  ;;  %v9039_v1 = vld [vmem:[#allocation8 + $0x128] sm:$0xff]   ;;  %9133 = vtanh.bf16 %v6305_v52  ;;  %v9082_v22 = vld [vmem:[#allocation8 + $0x3c0] sm:$0xff]  }
 0x3a1   :  { %8667 = vmatprep.subr.bf16.mxu0 %v9005_v34  ;;  %8689 = vmatprep.subr.bf16.mxu1 %v9006_v36  ;;  %v9040_v8 = vld [vmem:[#allocation8 + $0x1a8] sm:$0xff]   ;;  %v9041_v34 = vld [vmem:[#allocation8 + $0x170] sm:$0xff]   ;;  %9135 = vtanh.bf16 %v6307_v54  ;;  %v9083_v4 = vld [vmem:[#allocation8 + $0x300] sm:$0xff]  }
 0x3a2   :  { %v9042_v36 = vld [vmem:[#allocation8 + $0x1f0] sm:$0xff]   ;;  %v9054_v53 = vld [vmem:[#allocation8 + $0x2c8] sm:$0xff]   ;;  %v9084_v14 = vld [vmem:[#allocation8 + $0x380] sm:$0xff]  }
 0x3a3   :  { %v9085_v31 = vld [vmem:[#allocation8 + $0x348] sm:$0xff]  }
 0x3a4   :  { %8668 = vmatpush3.bf16.msra.mxu0 %v9007_v40  ;;  %8690 = vmatpush3.bf16.msra.mxu1 %v9008_v20  ;;  %v9043_v40 = vld [vmem:[#allocation8 + $0x130] sm:$0xff]   ;;  %v9086_v54 = vld [vmem:[#allocation8 + $0x3c8] sm:$0xff]  }
 0x3a5   :  { %8669 = vmatprep.subr.bf16.mxu0 %v9009_v42  ;;  %8691 = vmatprep.subr.bf16.mxu1 %v9010_v48  ;;  %v9044_v20 = vld [vmem:[#allocation8 + $0x1b0] sm:$0xff]   ;;  %v9045_v42 = vld [vmem:[#allocation8 + $0x178] sm:$0xff]   ;;  %v9055_v48 = vld [vmem:[#allocation8 + $0x208] sm:$0xff]  }
 0x3a8   :  { %8670 = vmatpush3.bf16.msra.mxu0 %v9011_v9  ;;  %8692 = vmatpush3.bf16.msra.mxu1 %v9012_v10  ;;  %v9056_v10 = vld [vmem:[#allocation8 + $0x288] sm:$0xff]  }
 0x3a9   :  { %8671 = vmatprep.subr.bf16.mxu0 %v9013_v11  ;;  %8693 = vmatprep.subr.bf16.mxu1 %v9014_v28  ;;  %v9130_v6 = vpop.eup %9129  ;;  %v9057_v11 = vld [vmem:[#allocation8 + $0x250] sm:$0xff]  }
 0x3aa   :  { %v9132_v9 = vpop.eup %9131  ;;  %v9058_v28 = vld [vmem:[#allocation8 + $0x2d0] sm:$0xff]  }
 0x3ab   :  { %v9134_v52 = vpop.eup %9133 }
 0x3ac   :  { %8672 = vmatpush3.bf16.msra.mxu0 %v9015_v29  ;;  %8694 = vmatpush3.bf16.msra.mxu1 %v9016_v33  ;;  %v9059_v29 = vld [vmem:[#allocation8 + $0x210] sm:$0xff]  }
 0x3ad   :  { %8701 = vmatprep.subr.bf16.mxu0 %v9017_v35  ;;  %8723 = vmatprep.subr.bf16.mxu1 %v9018_v41  ;;  %v9060_v33 = vld [vmem:[#allocation8 + $0x290] sm:$0xff]   ;;  %v9061_v35 = vld [vmem:[#allocation8 + $0x258] sm:$0xff]  }
 0x3ae   :  { %v9062_v41 = vld [vmem:[#allocation8 + $0x2d8] sm:$0xff]  }
 0x3af   :  { %7393 = vmatmul.mubr.bf16.vlgmr.msra.gmra.mrb[16].mxu0 %v9118_v51  ;;  %7434 = vmatmul.mubr.bf16.vlgmr.msra.gmra.mrb[16].mxu1 %v9120_v55  ;;  %v9065_v51 = vld [vmem:[#allocation8 + $0x260] sm:$0xff]  }
 0x3b0   :  { %8702 = vmatpush3.bf16.msra.mxu0 %v9019_v45  ;;  %7474 = vmatprep.mubr.bf16.mxu0 %v9122_v7  ;;  %v9063_v45 = vld [vmem:[#allocation8 + $0x218] sm:$0xff]   ;;  %v9067_v55 = vld [vmem:[#allocation8 + $0x220] sm:$0xff]   ;;  %v9069_v7 = vld [vmem:[#allocation8 + $0x268] sm:$0xff]  }
 0x3b1   :  { %8724 = vmatpush3.bf16.msra.mxu1 %v9020_v47  ;;  %7515 = vmatprep.mubr.bf16.mxu1 %v9124_v15  ;;  %v9064_v47 = vld [vmem:[#allocation8 + $0x298] sm:$0xff]   ;;  %v9071_v15 = vld [vmem:[#allocation8 + $0x228] sm:$0xff]  }
 0x3b2   :  { %8703 = vmatprep.subr.bf16.mxu0 %v9021_v3  ;;  %8725 = vmatprep.subr.bf16.mxu1 %v9022_v57  ;;  %v9066_v3 = vld [vmem:[#allocation8 + $0x2e0] sm:$0xff]  }
 0x3b3   :  { %v9068_v57 = vld [vmem:[#allocation8 + $0x2a0] sm:$0xff]  }
 0x3b4   :  { %8704 = vmatpush3.bf16.msra.mxu0 %v9023_v12  ;;  %v9070_v12 = vld [vmem:[#allocation8 + $0x2e8] sm:$0xff]  }
 0x3b5   :  { %8726 = vmatpush3.bf16.msra.mxu1 %v9024_v16  ;;  %8705 = vmatprep.subr.bf16.mxu0 %v9025_v17  ;;  %v9072_v16 = vld [vmem:[#allocation8 + $0x2a8] sm:$0xff]   ;;  %v9073_v17 = vld [vmem:[#allocation8 + $0x270] sm:$0xff]  }
 0x3b6   :  { %8727 = vmatprep.subr.bf16.mxu1 %v9026_v60  ;;  %v9074_v60 = vld [vmem:[#allocation8 + $0x2f0] sm:$0xff]  }
 0x3b8   :  { %8706 = vmatpush3.bf16.msra.mxu0 %v9027_v18  ;;  %v9075_v18 = vld [vmem:[#allocation8 + $0x230] sm:$0xff]  }
 0x3b9   :  { %8728 = vmatpush3.bf16.msra.mxu1 %v9028_v13  ;;  %8707 = vmatprep.subr.bf16.mxu0 %v9029_v63  ;;  %v9076_v13 = vld [vmem:[#allocation8 + $0x2b0] sm:$0xff]   ;;  %v9077_v63 = vld [vmem:[#allocation8 + $0x278] sm:$0xff]  }
 0x3ba   :  { %8729 = vmatprep.subr.bf16.mxu1 %v9030_v0  ;;  %v9078_v0 = vld [vmem:[#allocation8 + $0x2f8] sm:$0xff]  }
 0x3bc   :  { %8708 = vmatpush3.bf16.msra.mxu0 %v9031_v24  ;;  %v9079_v24 = vld [vmem:[#allocation8 + $0x238] sm:$0xff]  }
 0x3bd   :  { %8730 = vmatpush3.bf16.msra.mxu1 %v9032_v25  ;;  %8709 = vmatprep.subr.bf16.mxu0 %v9033_v21  ;;  %v9080_v25 = vld [vmem:[#allocation8 + $0x2b8] sm:$0xff]   ;;  %v9081_v21 = vld [vmem:[#allocation8 + $0x340] sm:$0xff]  }
 0x3be   :  { %8731 = vmatprep.subr.bf16.mxu1 %v9034_v26  ;;  %v9136_v26 = vpop.eup %9135 }
 0x3c0   :  { %8710 = vmatpush3.bf16.msra.mxu0 %v9035_v27  ;;  %v9087_v27 = vld [vmem:[#allocation8 + $0x308] sm:$0xff]  }
 0x3c1   :  { %8732 = vmatpush3.bf16.msra.mxu1 %v9036_v30  ;;  %8711 = vmatprep.subr.bf16.mxu0 %v9037_v39  ;;  %v9088_v30 = vld [vmem:[#allocation8 + $0x388] sm:$0xff]   ;;  %v9089_v39 = vld [vmem:[#allocation8 + $0x350] sm:$0xff]  }
 0x3c2   :  { %8733 = vmatprep.subr.bf16.mxu1 %v9038_v43  ;;  %v9090_v43 = vld [vmem:[#allocation8 + $0x3d0] sm:$0xff]  }
 0x3c4   :  { %8712 = vmatpush3.bf16.msra.mxu0 %v9039_v1  ;;  %v9091_v1 = vld [vmem:[#allocation8 + $0x310] sm:$0xff]  }
 0x3c5   :  { %8734 = vmatpush3.bf16.msra.mxu1 %v9040_v8  ;;  %8713 = vmatprep.subr.bf16.mxu0 %v9041_v34  ;;  %v9092_v8 = vld [vmem:[#allocation8 + $0x390] sm:$0xff]   ;;  %v9093_v34 = vld [vmem:[#allocation8 + $0x358] sm:$0xff]  }
 0x3c6   :  { %8735 = vmatprep.subr.bf16.mxu1 %v9042_v36  ;;  %v9094_v36 = vld [vmem:[#allocation8 + $0x3d8] sm:$0xff]  }
 0x3c8   :  { %8714 = vmatpush3.bf16.msra.mxu0 %v9043_v40  ;;  %v9095_v40 = vld [vmem:[#allocation8 + $0x318] sm:$0xff]  }
 0x3c9   :  { %8736 = vmatpush3.bf16.msra.mxu1 %v9044_v20  ;;  %8715 = vmatprep.subr.bf16.mxu0 %v9045_v42  ;;  %v9096_v20 = vld [vmem:[#allocation8 + $0x398] sm:$0xff]   ;;  %v9097_v42 = vld [vmem:[#allocation8 + $0x360] sm:$0xff]  }
 0x3ca   :  { %8737 = vmatprep.subr.bf16.mxu1 %v9046_v32  ;;  %v9098_v32 = vld [vmem:[#allocation8 + $0x3e0] sm:$0xff]  }
 0x3cc   :  { %8716 = vmatpush3.bf16.msra.mxu0 %v9047_v37  ;;  %v9099_v37 = vld [vmem:[#allocation8 + $0x320] sm:$0xff]  }
 0x3cd   :  { %8738 = vmatpush3.bf16.msra.mxu1 %v9048_v44  ;;  %8745 = vmatprep.subr.bf16.mxu0 %v9049_v49  ;;  %v9100_v44 = vld [vmem:[#allocation8 + $0x3a0] sm:$0xff]   ;;  %v9101_v49 = vld [vmem:[#allocation8 + $0x368] sm:$0xff]  }
 0x3ce   :  { %8767 = vmatprep.subr.bf16.mxu1 %v9050_v56  ;;  %v9102_v56 = vld [vmem:[#allocation8 + $0x3e8] sm:$0xff]  }
 0x3cf   :  { %7475 = vmatmul.mubr.bf16.vlgmr.msra.gmra.mrb[20].mxu0 %v9126_v38  ;;  %v9105_v38 = vld [vmem:[#allocation8 + $0x370] sm:$0xff]  }
 0x3d0   :  { %7516 = vmatmul.mubr.bf16.vlgmr.msra.gmra.mrb[20].mxu1 %v9128_v19  ;;  %8746 = vmatpush3.bf16.msra.mxu0 %v9051_v2  ;;  %v9103_v2 = vld [vmem:[#allocation8 + $0x328] sm:$0xff]   ;;  %v9107_v19 = vld [vmem:[#allocation8 + $0x330] sm:$0xff]  }
 0x3d1   :  { %7556 = vmatprep.mubr.bf16.mxu0 %v9130_v6  ;;  %8768 = vmatpush3.bf16.msra.mxu1 %v9052_v23  ;;  %v9104_v23 = vld [vmem:[#allocation8 + $0x3a8] sm:$0xff]   ;;  %v9109_v6 = vld [vmem:[#allocation8 + $0x378] sm:$0xff]  }
 0x3d2   :  { %7597 = vmatprep.mubr.bf16.mxu1 %v9132_v9  ;;  %8747 = vmatprep.subr.bf16.mxu0 %v9053_v59  ;;  %v9106_v59 = vld [vmem:[#allocation8 + $0x3f0] sm:$0xff]   ;;  %v9111_v9 = vld [vmem:[#allocation8 + $0x338] sm:$0xff]  }
 0x3d3   :  { %8769 = vmatprep.subr.bf16.mxu1 %v9054_v53  ;;  %v9108_v53 = vld [vmem:[#allocation8 + $0x3b0] sm:$0xff]  }
 0x3d4   :  { %8748 = vmatpush3.bf16.msra.mxu0 %v9055_v48  ;;  %v9110_v48 = vld [vmem:[#allocation8 + $0x3f8] sm:$0xff]  }
 0x3d5   :  { %8770 = vmatpush3.bf16.msra.mxu1 %v9056_v10  ;;  %8749 = vmatprep.subr.bf16.mxu0 %v9057_v11  ;;  %v9112_v10 = vld [vmem:[#allocation8 + $0x3b8] sm:$0xff]   ;;  %v933_v11 = vrot.slane %v9515_v46, %v900_v58 }
 0x3d6   :  { %8771 = vmatprep.subr.bf16.mxu1 %v9058_v28 }
 0x3d8   :  { %8750 = vmatpush3.bf16.msra.mxu0 %v9059_v29  ;;  %v941_v29 = vrot.slane %v9515_v46, %v908_v61 }
 0x3d9   :  { %8772 = vmatpush3.bf16.msra.mxu1 %v9060_v33  ;;  %8751 = vmatprep.subr.bf16.mxu0 %v9061_v35  ;;  %v937_v33 = vrot.slane %v9515_v46, %v904_v62 }
 0x3da   :  { %8773 = vmatprep.subr.bf16.mxu1 %v9062_v41 }
 0x3dc   :  { %8752 = vmatpush3.bf16.msra.mxu0 %v9063_v45  ;;  %v945_v45 = vrot.slane %v9515_v46, %v912_v5 }
 0x3dd   :  { %8774 = vmatpush3.bf16.msra.mxu1 %v9064_v47  ;;  %8753 = vmatprep.subr.bf16.mxu0 %v9065_v51 }
 0x3de   :  { %8775 = vmatprep.subr.bf16.mxu1 %v9066_v3 }
 0x3e0   :  { %8754 = vmatpush3.bf16.msra.mxu0 %v9067_v55 }
 0x3e1   :  { %8776 = vmatpush3.bf16.msra.mxu1 %v9068_v57  ;;  %8755 = vmatprep.subr.bf16.mxu0 %v9069_v7 }
 0x3e2   :  { %8777 = vmatprep.subr.bf16.mxu1 %v9070_v12 }
 0x3e4   :  { %8756 = vmatpush3.bf16.msra.mxu0 %v9071_v15 }
 0x3e5   :  { %8778 = vmatpush3.bf16.msra.mxu1 %v9072_v16  ;;  %8757 = vmatprep.subr.bf16.mxu0 %v9073_v17 }
 0x3e6   :  { %8779 = vmatprep.subr.bf16.mxu1 %v9074_v60 }
 0x3e8   :  { %8758 = vmatpush3.bf16.msra.mxu0 %v9075_v18 }
 0x3e9   :  { %8780 = vmatpush3.bf16.msra.mxu1 %v9076_v13  ;;  %8759 = vmatprep.subr.bf16.mxu0 %v9077_v63 }
 0x3ea   :  { %8781 = vmatprep.subr.bf16.mxu1 %v9078_v0 }
 0x3ec   :  { %8760 = vmatpush3.bf16.msra.mxu0 %v9079_v24 }
 0x3ed   :  { %8782 = vmatpush3.bf16.msra.mxu1 %v9080_v25  ;;  %8789 = vmatprep.subr.bf16.mxu0 %v9081_v21  ;;  %v8528_v21 = vld [vmem:[#allocation10] ss:$0 sm:$0xff] }
 0x3ee   :  { %8811 = vmatprep.subr.bf16.mxu1 %v9082_v22 }
 0x3ef   :  { %7557 = vmatmul.mubr.bf16.vlgmr.msra.gmra.mrb[24].mxu0 %v9134_v52 }
 0x3f0   :  { %7598 = vmatmul.mubr.bf16.vlgmr.msra.gmra.mrb[24].mxu1 %v9136_v26  ;;  %8790 = vmatpush3.bf16.msra.mxu0 %v9083_v4 }
 0x3f1   :  { %8812 = vmatpush3.bf16.msra.mxu1 %v9084_v14  ;;  %8791 = vmatprep.subr.bf16.mxu0 %v9085_v31 }
 0x3f2   :  { %8813 = vmatprep.subr.bf16.mxu1 %v9086_v54 }
 0x3f4   :  { %8792 = vmatpush3.bf16.msra.mxu0 %v9087_v27 }
 0x3f5   :  { %8814 = vmatpush3.bf16.msra.mxu1 %v9088_v30  ;;  %8793 = vmatprep.subr.bf16.mxu0 %v9089_v39 }
 0x3f6   :  { %8815 = vmatprep.subr.bf16.mxu1 %v9090_v43 }
 0x3f8   :  { %8794 = vmatpush3.bf16.msra.mxu0 %v9091_v1 }
 0x3f9   :  { %8816 = vmatpush3.bf16.msra.mxu1 %v9092_v8  ;;  %8795 = vmatprep.subr.bf16.mxu0 %v9093_v34 }
 0x3fa   :  { %8817 = vmatprep.subr.bf16.mxu1 %v9094_v36 }
 0x3fc   :  { %8796 = vmatpush3.bf16.msra.mxu0 %v9095_v40 }
 0x3fd   :  { %8818 = vmatpush3.bf16.msra.mxu1 %v9096_v20  ;;  %8797 = vmatprep.subr.bf16.mxu0 %v9097_v42 }
 0x3fe   :  { %8819 = vmatprep.subr.bf16.mxu1 %v9098_v32 }
 0x400   :  { %8798 = vmatpush3.bf16.msra.mxu0 %v9099_v37 }
 0x401   :  { %8820 = vmatpush3.bf16.msra.mxu1 %v9100_v44  ;;  %8799 = vmatprep.subr.bf16.mxu0 %v9101_v49 }
 0x402   :  { %8821 = vmatprep.subr.bf16.mxu1 %v9102_v56 }
 0x404   :  { %8800 = vmatpush3.bf16.msra.mxu0 %v9103_v2 }
 0x405   :  { %8822 = vmatpush3.bf16.msra.mxu1 %v9104_v23  ;;  %8801 = vmatprep.subr.bf16.mxu0 %v9105_v38 }
 0x406   :  { %8823 = vmatprep.subr.bf16.mxu1 %v9106_v59 }
 0x408   :  { %8802 = vmatpush3.bf16.msra.mxu0 %v9107_v19 }
 0x409   :  { %8824 = vmatpush3.bf16.msra.mxu1 %v9108_v53  ;;  %8803 = vmatprep.subr.bf16.mxu0 %v9109_v6 }
 0x40a   :  { %8825 = vmatprep.subr.bf16.mxu1 %v9110_v48 }
 0x40c   :  { %8804 = vmatpush3.bf16.msra.mxu0 %v9111_v9 }
 0x40d   :  { %8826 = vmatpush3.bf16.msra.mxu1 %v9112_v10 }
 0x462   :  { %v6116_v28 = vpop.f32.mrb[12].mxu0  ;;  %v6288_v35 = vpop.f32.mrb[12].mxu1 }
 0x463   :  { %v6118_v41 = vpop.f32.mrb[13].mxu0  ;;  %v6290_v47 = vpop.f32.mrb[13].mxu1  ;;  %v8857_v3 = vadd.f32 %v6116_v28, %v933_v11  ;;  %v8861_v7 = vadd.f32 %v6288_v35, %v941_v29 }
 0x464   :  { %v6120_v51 = vpop.f32.mrb[14].mxu0  ;;  %v6292_v58 = vpop.f32.mrb[14].mxu1  ;;  %v8858_v12 = vadd.f32 %v6118_v41, %v937_v33  ;;  %v8862_v17 = vadd.f32 %v6290_v47, %v945_v45 }
 0x465   :  { %v8859_v55 = vadd.f32 %v6120_v51, %v933_v11  ;;  %v6122_v57 = vpop.f32.mrb[15].mxu0  ;;  %v8863_v15 = vadd.f32 %v6292_v58, %v941_v29  ;;  %v6294_v16 = vpop.f32.mrb[15].mxu1 }
 0x466   :  { %v8860_v61 = vadd.f32 %v6122_v57, %v937_v33  ;;  %v8864_v62 = vadd.f32 %v6294_v16, %v945_v45 }
 0x467   :  { %v6309_v60 = vpack.c.bf16 %v8859_v55, %v8857_v3  ;;  %v6311_v18 = vpack.c.bf16 %v8863_v15, %v8861_v7 }
 0x468   :  { %v6310_v13 = vpack.c.bf16 %v8860_v61, %v8858_v12  ;;  %v6312_v63 = vpack.c.bf16 %v8864_v62, %v8862_v17 }
 0x469   :  { %9137 = vtanh.bf16 %v6309_v60 }
 0x46a   :  { %9139 = vtanh.bf16 %v6310_v13 }
 0x46b   :  { %9141 = vtanh.bf16 %v6312_v63 }
 0x46c   :  { %9143 = vtanh.bf16 %v6311_v18 }
 0x474   :  { %v9138_v50 = vpop.eup %9137 }
 0x475   :  { %v9140_v5 = vpop.eup %9139 }
 0x476   :  { %v9142_v46 = vpop.eup %9141  ;;  %7638 = vmatprep.mubr.bf16.mxu0 %v9140_v5 }
 0x477   :  { %v9144_v0 = vpop.eup %9143  ;;  %7679 = vmatprep.mubr.bf16.mxu1 %v9142_v46  ;;  %7639 = vmatmul.mubr.bf16.vlgmr.msra.gmra.mrb[28].mxu0 %v9138_v50 }
 0x478   :  { %7680 = vmatmul.mubr.bf16.vlgmr.msra.gmra.mrb[28].mxu1 %v9144_v0 }
 0x482   :  { %v8673_v24 = vpop.f32.mrb[16].mxu0  ;;  %v8695_v25 = vpop.f32.mrb[16].mxu1 }
 0x483   :  { %v8674_v22 = vpop.f32.mrb[17].mxu0  ;;  %v8696_v14 = vpop.f32.mrb[17].mxu1 }
 0x484   :  { %v8675_v4 = vadd.f32 %v8674_v22, %v8673_v24  ;;  %v8676_v31 = vpop.f32.mrb[18].mxu0  ;;  %v8697_v52 = vadd.f32 %v8696_v14, %v8695_v25  ;;  %v8698_v54 = vpop.f32.mrb[18].mxu1 }
 0x485   :  { %v8677_v26 = vpop.f32.mrb[19].mxu0  ;;  %v8699_v39 = vpop.f32.mrb[19].mxu1 }
 0x486   :  { %v7395_v27 = vadd.f32 %v8675_v4, %v8528_v21  ;;  %v8678_v30 = vadd.f32 %v8677_v26, %v8676_v31  ;;  %v8700_v43 = vadd.f32 %v8699_v39, %v8698_v54 }
 0x488   :  { %v7436_v1 = vadd.f32 %v8697_v52, %v7395_v27  ;;  %v7398_v8 = vadd.f32 %v8678_v30, %v8528_v21 }
 0x48a   :  { %v7439_v34 = vadd.f32 %v8700_v43, %v7398_v8 }
 0x4a2   :  { %v8717_v36 = vpop.f32.mrb[20].mxu0 }
 0x4a3   :  { %v8739_v40 = vpop.f32.mrb[20].mxu1  ;;  %v8718_v20 = vpop.f32.mrb[21].mxu0 }
 0x4a4   :  { %v8719_v42 = vadd.f32 %v8718_v20, %v8717_v36  ;;  %v8740_v32 = vpop.f32.mrb[21].mxu1  ;;  %v8720_v37 = vpop.f32.mrb[22].mxu0 }
 0x4a5   :  { %v8741_v44 = vadd.f32 %v8740_v32, %v8739_v40  ;;  %v8742_v49 = vpop.f32.mrb[22].mxu1  ;;  %v8721_v56 = vpop.f32.mrb[23].mxu0 }
 0x4a6   :  { %v7477_v2 = vadd.f32 %v8719_v42, %v7436_v1  ;;  %v8722_v23 = vadd.f32 %v8721_v56, %v8720_v37  ;;  %v8743_v38 = vpop.f32.mrb[23].mxu1 }
 0x4a7   :  { %v8744_v59 = vadd.f32 %v8743_v38, %v8742_v49 }
 0x4a8   :  { %v7518_v19 = vadd.f32 %v8741_v44, %v7477_v2  ;;  %v7480_v53 = vadd.f32 %v8722_v23, %v7439_v34 }
 0x4aa   :  { %v7521_v6 = vadd.f32 %v8744_v59, %v7480_v53 }
 0x4c2   :  { %v8761_v48 = vpop.f32.mrb[24].mxu0 }
 0x4c3   :  { %v8783_v9 = vpop.f32.mrb[24].mxu1  ;;  %v8762_v10 = vpop.f32.mrb[25].mxu0 }
 0x4c4   :  { %v8763_v11 = vadd.f32 %v8762_v10, %v8761_v48  ;;  %v8784_v28 = vpop.f32.mrb[25].mxu1  ;;  %v8764_v29 = vpop.f32.mrb[26].mxu0 }
 0x4c5   :  { %v8785_v33 = vadd.f32 %v8784_v28, %v8783_v9  ;;  %v8786_v35 = vpop.f32.mrb[26].mxu1  ;;  %v8765_v41 = vpop.f32.mrb[27].mxu0 }
 0x4c6   :  { %v7559_v45 = vadd.f32 %v8763_v11, %v7518_v19  ;;  %v8766_v47 = vadd.f32 %v8765_v41, %v8764_v29  ;;  %v8787_v51 = vpop.f32.mrb[27].mxu1 }
 0x4c7   :  { %v8788_v3 = vadd.f32 %v8787_v51, %v8786_v35 }
 0x4c8   :  { %v7600_v55 = vadd.f32 %v8785_v33, %v7559_v45  ;;  %v7562_v58 = vadd.f32 %v8766_v47, %v7521_v6 }
 0x4ca   :  { %v7603_v57 = vadd.f32 %v8788_v3, %v7562_v58 }
 0x54a   :  { %v8805_v7 = vpop.f32.mrb[28].mxu0 }
 0x54b   :  { %v8827_v12 = vpop.f32.mrb[28].mxu1  ;;  %v8806_v15 = vpop.f32.mrb[29].mxu0 }
 0x54c   :  { %v8807_v61 = vadd.f32 %v8806_v15, %v8805_v7  ;;  %v8828_v16 = vpop.f32.mrb[29].mxu1  ;;  %v8808_v17 = vpop.f32.mrb[30].mxu0 }
 0x54d   :  { %v8829_v60 = vadd.f32 %v8828_v16, %v8827_v12  ;;  %v8830_v62 = vpop.f32.mrb[30].mxu1  ;;  %v8809_v18 = vpop.f32.mrb[31].mxu0 }
 0x54e   :  { %v7641_v13 = vadd.f32 %v8807_v61, %v7600_v55  ;;  %v8810_v63 = vadd.f32 %v8809_v18, %v8808_v17  ;;  %v8831_v50 = vpop.f32.mrb[31].mxu1 }
 0x54f   :  { %v8832_v5 = vadd.f32 %v8831_v50, %v8830_v62 }
 0x550   :  { %v7644_v46 = vadd.f32 %v8810_v63, %v7603_v57  ;;  %v7682_v0 = vadd.f32 %v8829_v60, %v7641_v13 }
 0x552   :  { %7688 = vmax.xlane.f32.xlu0 %v7682_v0  ;;  %v7685_v24 = vadd.f32 %v8832_v5, %v7644_v46 }
 0x556   :  { %7690 = vmax.xlane.f32.xlu0 %v7685_v24 }
 0x5df   :  { %v7689_v25 = vpop.xlane.xlu0 %7688 }
 0x5e0   :  { %v7692_v21 = vsub.f32 %v7682_v0, %v7689_v25 }
 0x5e2   :  { %v7694_v22 = vmul.f32 1.442695, %v7692_v21 }
 0x5e3   :  { %v7691_v4 = vpop.xlane.xlu0 %7690 }
 0x5e4   :  { %v7693_v14 = vsub.f32 %v7685_v24, %v7691_v4  ;;  %9145 = vpow2.f32 %v7694_v22 }
 0x5e6   :  { %v7696_v31 = vmul.f32 1.442695, %v7693_v14 }
 0x5e8   :  { %9147 = vpow2.f32 %v7696_v31 }
 0x5ee   :  { %v9146_v52 = vpop.eup %9145 }
 0x5ef   :  { %7698 = vadd.xlane.f32.xlu1 %v9146_v52 }
 0x5f2   :  { %v9148_v54 = vpop.eup %9147 }
 0x5f3   :  { %7700 = vadd.xlane.f32.xlu1 %v9148_v54 }
 0x67c   :  { %v7699_v26 = vpop.xlane.xlu1 %7698 }
 0x67d   :  { %9149 = vlog2.f32 %v7699_v26 }
 0x680   :  { %v7701_v27 = vpop.xlane.xlu1 %7700 }
 0x681   :  { %9151 = vlog2.f32 %v7701_v27 }
 0x687   :  { %v9150_v30 = vpop.eup %9149 }
 0x688   :  { %v7703_v39 = vmul.f32 0.6931472, %v9150_v30 }
 0x68a   :  { %v7706_v43 = vsub.f32 %v7692_v21, %v7703_v39 }
 0x68b   :  { %v9152_v1 = vpop.eup %9151 }
 0x68c   :  { %7708 = vst [vmem:[#allocation11] sm:$0xff] %v7706_v43  ;;  %v7705_v8 = vmul.f32 0.6931472, %v9152_v1 }
 0x68e   :  { %v7707_v34 = vsub.f32 %v7693_v14, %v7705_v8 }
 0x690   :  { %7709 = vst [vmem:[#allocation11 + $0x8] sm:$0xff] %v7707_v34 }
 0x691   :  { %9296 = shalt.err (!%p9293_p2)
}
 0x692   :  { %s9297_s7 = scalar_lea.hbm %s9612_s5, 256 }
 0x693   :  { %p9298_p3 = scmp.ne.s32.totalorder %s9612_s5, %s9297_s7  ;;  %p9301_p4 = scmp.lt.u32.totalorder %s9297_s7, %s9612_s5 }
 0x695   :  { %p9303_p5 = pnand %p9301_p4, %p9298_p3 }
 0x697   :  { %9306 = shalt.err (!%p9303_p5)
}
 0x698   :  { %s9327_s12 = smov 128   ;;  %s9328_s13 = smov 8  }
 0x699   :  { %7721 = dma.vmem_to_hbm [thread:$0]  %s7716_s3, 256, %s9612_s5, [#allocation4], %s9327_s12, %s9327_s12, %s9328_s13  }
 0x69a   :  { %9313 = dma.done.wait [#allocation4], 256  }
 0x69b   :  { %9314 = vsyncadd [#allocation4], 4294967040 }
 0x69c   :  { %7725 = vsyncpa [#allocation3], 1 }
 0x69d   :  { %7726 = vsyncpa [#allocation6], 1 }
 0x69e   :  { %7727 = vsyncpa [#allocation9], 1 }
 0x69f   :  { %7728 = vsyncpa [#allocation4], 1 }

</bundles_post_ra>
